<compile_context>
chip_gen: v7x
topology: tpu7x:2x2x1
jax: 0.10.0
libtpu: 0.0.40
codegen_flags: <defaults>
</compile_context>

<pallas_src>
import functools

import jax
import jax.numpy as jnp
from jax.experimental import pallas as pl
from jax.experimental.pallas import tpu as pltpu

C_IN = 1024    # fixed by the module (fc: Linear(1024, .), conv in-channels 1024)
C_HID = 512    # attention hidden channels


def _softplus(x):
    # numerically-stable softplus: log(1 + exp(x))
    return jnp.maximum(x, 0.0) + jnp.log1p(jnp.exp(-jnp.abs(x)))


def delf_kernel(x_ref, w1_ref, b1_ref, w2_ref, b2_ref, prob_ref, feat_ref,
                acc_ref, *, inv_total_s, lane_group):
    s_idx = pl.program_id(1)
    n_s = pl.num_programs(1)

    x = x_ref[0]                                      # (C, TS), f32 or bf16
    ts = x.shape[1]

    # attention conv1 (1x1): relu(W1 @ x + b1) -> (C_HID, TS) on the MXU.
    # (bf16 path: both operands already bf16, f32 accumulation.)
    hidden = jnp.dot(w1_ref[...], x, preferred_element_type=jnp.float32)
    hidden = jnp.maximum(hidden + b1_ref[...], 0.0)

    # attention conv2 (1x1) has M == 1 -> keep it OFF the MXU: a sublane (VPU)
    # reduction of hidden * w2_col is far cheaper than a (1,512)@(512,TS)
    # matmul with fully exposed stationary-weight loads.
    score = jnp.sum(hidden * w2_ref[...], axis=0, keepdims=True) + b2_ref[0, 0]

    prob = _softplus(score)                           # (1, TS) f32
    prob_ref[0] = prob.astype(prob_ref.dtype)         # lane-dense store

    # Fused channel-wise L2 norm + attention weighting + spatial mean:
    #   feat[c] += (1/S) * sum_s prob[s] * x[c, s] * rsqrt(sum_c x[c, s]^2)
    x_f32 = x.astype(jnp.float32)                     # no-op on the f32 path
    ssq = jnp.sum(x_f32 * x_f32, axis=0, keepdims=True)   # (1, TS) sublane reduce
    inv = jax.lax.rsqrt(jnp.maximum(ssq, 1e-24))          # == 1/max(||x||_2, 1e-12)
    scale = (prob * inv) * inv_total_s                # (1, TS)
    contrib = x_f32 * scale                           # (C, TS)

    if lane_group:
        # Collapse the TS/128 lane groups with pure VPU adds into a lane-wide
        # (C, 128) accumulator.  Cross-lane reduce + lane-width-1 feat store
        # happen once per batch in the epilogue, not once per S tile.
        part = contrib[:, 0:128]
        for g in range(1, ts // 128):
            part = part + contrib[:, g * 128:(g + 1) * 128]

        @pl.when(s_idx == 0)
        def _init():
            acc_ref[...] = jnp.zeros_like(acc_ref)

        acc_ref[...] = acc_ref[...] + part

        @pl.when(s_idx == n_s - 1)
        def _finalize():
            feat_ref[0] = jnp.sum(acc_ref[...], axis=1, keepdims=True)
    else:
        # Ragged-S fallback (single full-S block, TS not a multiple of 128):
        # reduce directly into the output-resident feat block.
        part = jnp.sum(contrib, axis=1, keepdims=True)    # (C, 1)

        @pl.when(s_idx == 0)
        def _init():
            feat_ref[...] = jnp.zeros_like(feat_ref)

        feat_ref[0] = feat_ref[0] + part


def _vmem_capacity_bytes():
    """Physical VMEM of the local TPU generation (fallback: v7x's 64 MiB)."""
    try:
        cap = getattr(pltpu.get_tpu_info(), "vmem_capacity_bytes", None)
        if cap:
            return int(cap)
    except Exception:
        pass
    return 64 << 20


def _vmem_budget_bytes(s_tile, x_itemsize):
    """Rough per-step VMEM working set for a given lane tile."""
    x_buf = 2 * C_IN * s_tile * x_itemsize       # double-buffered x tile
    w1_buf = 2 * C_HID * C_IN * x_itemsize       # default 2 pipeline buffers
    # TODO(synk): single-buffer w1 (pl.Buffered(1) or a one-shot VMEM copy) to
    # reclaim one w1 buffer; budgeted conservatively for 2 buffers here.
    small = 4 * C_HID * 4                        # b1 / w2 column buffers
    hidden = C_HID * s_tile * 4                  # f32 temp
    contrib = C_IN * s_tile * 4                  # f32 temp
    acc = C_IN * 128 * 4                         # lane-wide accumulator scratch
    outs = 2 * (s_tile * 4 + C_IN * 4)           # prob / feat output buffers
    return x_buf + w1_buf + small + hidden + contrib + acc + outs


def _pick_s_tile(S, x_itemsize, vmem_cap):
    """Largest lane tile whose working set fits in half the physical VMEM.

    Candidates are 256-multiples first (v6e/v7x MXUs are 256x256); 128 is the
    last resort (fine on v5e's 128x128 MXUs).  Bigger tiles amortize the
    ~0.35us grid-step overhead and the stationary-operand reloads of matmul1.
    """
    budget_cap = vmem_cap // 2
    for cand in (2048, 1024, 512, 256, 128):
        if S % cand == 0 and _vmem_budget_bytes(cand, x_itemsize) <= budget_cap:
            return cand
    # TODO(synk): ragged S (not a multiple of 128) falls back to one full-S
    # block per batch; tiling such inputs needs padding + masking.
    return S


def delf_classification(x_nchw, w1, b1, w2, b2, wfc, bfc, *,
                        s_tile=None, use_bf16_matmul=False):
    """x_nchw: (B, 1024, H, W).  Weights in PyTorch layout:
       w1 (512, 1024), b1 (512,), w2 (1, 512), b2 (1,), wfc (NC, 1024), bfc (NC,).
       Returns (fc, attention_prob)."""
    B, C, H, W = x_nchw.shape
    assert C == C_IN
    S = H * W

    # bf16 path: stream x itself as bf16 (x is ~100% of kernel HBM bytes) and
    # run the big matmul in bf16.  Beneficial on all generations (incl. v5e,
    # whose peak MXU rate is the bf16 number).  In a real pipeline x would
    # already arrive as bf16 from the backbone; the cast here is for the demo.
    x_dtype = jnp.bfloat16 if use_bf16_matmul else jnp.float32
    itemsize = 2 if use_bf16_matmul else 4
    x_seq = x_nchw.reshape(B, C, S).astype(x_dtype)   # free reshape, channels-first

    cap = _vmem_capacity_bytes()
    if s_tile is None:
        s_tile = _pick_s_tile(S, itemsize, cap)
    assert S % s_tile == 0, "s_tile must divide H*W"
    n_s = S // s_tile
    lane_group = (s_tile % 128 == 0)

    w1_k = w1.astype(x_dtype)
    b1_col = b1.reshape(C_HID, 1).astype(jnp.float32)
    w2_col = w2.reshape(C_HID, 1).astype(jnp.float32)   # column for VPU reduce
    b2_s = b2.reshape(1, 1).astype(jnp.float32)

    budget = _vmem_budget_bytes(s_tile, itemsize)
    vmem_limit = int(min((cap * 3) // 4, max(32 << 20, 2 * budget)))

    kernel = functools.partial(delf_kernel,
                               inv_total_s=float(1.0 / S),
                               lane_group=lane_group)

    prob_out, feat_out = pl.pallas_call(
        kernel,
        out_shape=(
            jax.ShapeDtypeStruct((B, 1, S), jnp.float32),   # attention prob
            jax.ShapeDtypeStruct((B, C, 1), jnp.float32),   # pooled feature
        ),
        grid_spec=pltpu.PrefetchScalarGridSpec(
            num_scalar_prefetch=0,
            grid=(B, n_s),
            in_specs=[
                pl.BlockSpec((1, C, s_tile), lambda b, s: (b, 0, s)),   # x tile
                pl.BlockSpec((C_HID, C), lambda b, s: (0, 0)),          # w1
                pl.BlockSpec((C_HID, 1), lambda b, s: (0, 0)),          # b1 col
                pl.BlockSpec((C_HID, 1), lambda b, s: (0, 0)),          # w2 col
                pl.BlockSpec(memory_space=pltpu.MemorySpace.SMEM),      # b2 scalar
            ],
            out_specs=[
                pl.BlockSpec((1, 1, s_tile), lambda b, s: (b, 0, s)),   # prob
                pl.BlockSpec((1, C, 1), lambda b, s: (b, 0, 0)),        # feat
            ],
            scratch_shapes=[pltpu.VMEM((C_IN, 128), jnp.float32)],      # lane acc
        ),
        compiler_params=pltpu.CompilerParams(
            dimension_semantics=("parallel", "arbitrary"),
            vmem_limit_bytes=vmem_limit),
    )(x_seq, w1_k, b1_col, w2_col, b2_s)
    # TODO(synk): for v7x with B == 1 (or odd B), add a second "parallel"
    # split of the S axis emitting partial feat blocks summed outside the
    # kernel so both TensorCores stay busy.

    attention_prob = prob_out.reshape(B, 1, H, W)
    feat = feat_out.reshape(B, C)
    # Final fc outside the kernel: batched (B, C) @ (C, NC) keeps the MXU fed
    # and never pins wfc in VMEM (DELF class counts can be huge).
    fc = feat @ wfc.T + bfc
    return fc, attention_prob


def reference(x_nchw, w1, b1, w2, b2, wfc, bfc):
    """Pure-JAX reference mirroring the PyTorch forward (l2-normalized feature)."""
    hidden = jnp.einsum('oc,bchw->bohw', w1, x_nchw) + b1[None, :, None, None]
    hidden = jnp.maximum(hidden, 0.0)
    score = jnp.einsum('oc,bchw->bohw', w2, hidden) + b2[None, :, None, None]
    prob = jax.nn.softplus(score)                               # (B,1,H,W)
    norm = jnp.sqrt(jnp.sum(x_nchw * x_nchw, axis=1, keepdims=True))
    x_norm = x_nchw / jnp.maximum(norm, 1e-12)
    feat = jnp.mean(prob * x_norm, axis=(2, 3))                 # (B,C)
    fc = feat @ wfc.T + bfc
    return fc, prob


if __name__ == "__main__":
    key = jax.random.PRNGKey(0)
    k_x, k_w1, k_b1, k_w2, k_b2, k_wfc, k_bfc = jax.random.split(key, 7)

    B, H, W = 2, 16, 16        # channels fixed at 1024 by the module
    NUM_CLASSES = 8

    x = jax.random.normal(k_x, (B, C_IN, H, W), jnp.float32)

    # Parameters in PyTorch layouts.
    w1 = jax.random.normal(k_w1, (C_HID, C_IN), jnp.float32) * 0.02
    b1 = jax.random.normal(k_b1, (C_HID,), jnp.float32) * 0.02
    w2 = jax.random.normal(k_w2, (1, C_HID), jnp.float32) * 0.02
    b2 = jax.random.normal(k_b2, (1,), jnp.float32) * 0.02
    wfc = jax.random.normal(k_wfc, (NUM_CLASSES, C_IN), jnp.float32) * 0.02
    bfc = jax.random.normal(k_bfc, (NUM_CLASSES,), jnp.float32) * 0.02

    fc_ref, prob_ref = reference(x, w1, b1, w2, b2, wfc, bfc)

    # f32 path, forced s_tile=128 with S=256 -> 2 S-tiles per batch: exercises
    # the lane-wide accumulator init / accumulate / epilogue reduce.
    fc, prob = delf_classification(x, w1, b1, w2, b2, wfc, bfc, s_tile=128)
    fc = jax.block_until_ready(fc)
    prob = jax.block_until_ready(prob)

    assert fc.shape == (B, NUM_CLASSES)
    assert prob.shape == (B, 1, H, W)
    assert jnp.allclose(fc, fc_ref, atol=1e-4, rtol=1e-4)
    assert jnp.allclose(prob, prob_ref, atol=5e-5, rtol=5e-5)

    # f32 path with the generation-aware auto tile pick (single 256-lane tile
    # here; on big spatial maps this picks 512-2048 per VMEM budget).
    fc_a, prob_a = delf_classification(x, w1, b1, w2, b2, wfc, bfc)
    fc_a = jax.block_until_ready(fc_a)
    prob_a = jax.block_until_ready(prob_a)
    assert jnp.allclose(fc_a, fc_ref, atol=1e-4, rtol=1e-4)
    assert jnp.allclose(prob_a, prob_ref, atol=5e-5, rtol=5e-5)

    # bf16 path (bf16 x streaming + bf16 matmul, f32 accumulation);
    # looser tolerance for the bf16-quantized input.
    fc_bf, prob_bf = delf_classification(x, w1, b1, w2, b2, wfc, bfc,
                                         s_tile=128, use_bf16_matmul=True)
    fc_bf = jax.block_until_ready(fc_bf)
    prob_bf = jax.block_until_ready(prob_bf)

    assert jnp.allclose(fc_bf, fc_ref, atol=3e-2, rtol=5e-2)
    assert jnp.allclose(prob_bf, prob_ref, atol=3e-2, rtol=5e-2)

    print("KERNEL_OK")
</pallas_src>

<mosaic_0001>
module attributes {stable_mosaic.version = 11 : i64} {
  func.func @delf_kernel(%arg0: i32, %arg1: i32, %arg2: memref<1x1024x128xf32, #tpu.memory_space<vmem>>, %arg3: memref<512x1024xf32, #tpu.memory_space<vmem>>, %arg4: memref<512x1xf32, #tpu.memory_space<vmem>>, %arg5: memref<512x1xf32, #tpu.memory_space<vmem>>, %arg6: memref<1x1xf32, #tpu.memory_space<smem>>, %arg7: memref<1x1x128xf32, #tpu.memory_space<vmem>>, %arg8: memref<1x1024x1xf32, #tpu.memory_space<vmem>>, %arg9: memref<1024x128xf32, #tpu.memory_space<vmem>>) attributes {dimension_semantics = [#tpu.dimension_semantics<parallel>, #tpu.dimension_semantics<arbitrary>], iteration_bounds = array<i64: 2, 2>, scalar_prefetch = 0 : i64, scratch_operands = 1 : i64, tpu.core_type = #tpu.core_type<tc>, window_params = [{transform_indices = @transform_0, window_bounds = array<i64: 1, 1024, 128>}, {pipeline_mode = #tpu.pipeline_mode<synchronous>, transform_indices = @transform_1, window_bounds = array<i64: 512, 1024>}, {pipeline_mode = #tpu.pipeline_mode<synchronous>, transform_indices = @transform_2, window_bounds = array<i64: 512, 1>}, {pipeline_mode = #tpu.pipeline_mode<synchronous>, transform_indices = @transform_3, window_bounds = array<i64: 512, 1>}, {transform_indices = @transform_4, window_bounds = array<i64: 1, 1>}, {transform_indices = @transform_5, window_bounds = array<i64: 1, 1, 128>}, {transform_indices = @transform_6, window_bounds = array<i64: 1, 1024, 1>}]} {
    %c0 = arith.constant 0 : index
    %c0_0 = arith.constant 0 : index
    %c0_1 = arith.constant 0 : index
    %0 = vector.load %arg2[%c0, %c0_0, %c0_1] : memref<1x1024x128xf32, #tpu.memory_space<vmem>>, vector<1x1024x128xf32>
    %1 = vector.shape_cast %0 : vector<1x1024x128xf32> to vector<1024x128xf32>
    %c0_2 = arith.constant 0 : index
    %c0_3 = arith.constant 0 : index
    %2 = vector.load %arg3[%c0_2, %c0_3] : memref<512x1024xf32, #tpu.memory_space<vmem>>, vector<512x1024xf32>
    %cst = arith.constant dense<0.000000e+00> : vector<512x128xf32>
    %3 = tpu.matmul %2, %1, %cst {dimension_numbers = #tpu.dot_dimension_numbers<[1], [0], [0], [1], [0, 0, 1, 1], [], []>} : vector<512x1024xf32>, vector<1024x128xf32>, vector<512x128xf32> -> vector<512x128xf32>
    %c0_4 = arith.constant 0 : index
    %c0_5 = arith.constant 0 : index
    %4 = vector.load %arg4[%c0_4, %c0_5] : memref<512x1xf32, #tpu.memory_space<vmem>>, vector<512x1xf32>
    %5 = vector.broadcast %4 : vector<512x1xf32> to vector<512x128xf32>
    %6 = arith.addf %3, %5 : vector<512x128xf32>
    %cst_6 = arith.constant 0.000000e+00 : f32
    %7 = vector.broadcast %cst_6 : f32 to vector<512x128xf32>
    %8 = arith.maximumf %6, %7 : vector<512x128xf32>
    %c0_7 = arith.constant 0 : index
    %c0_8 = arith.constant 0 : index
    %9 = vector.load %arg5[%c0_7, %c0_8] : memref<512x1xf32, #tpu.memory_space<vmem>>, vector<512x1xf32>
    %10 = vector.broadcast %9 : vector<512x1xf32> to vector<512x128xf32>
    %11 = arith.mulf %8, %10 : vector<512x128xf32>
    %cst_9 = arith.constant dense<0.000000e+00> : vector<128xf32>
    %12 = vector.multi_reduction <add>, %11, %cst_9 [0] : vector<512x128xf32> to vector<128xf32>
    %13 = vector.shape_cast %12 : vector<128xf32> to vector<1x128xf32>
    %c0_10 = arith.constant 0 : index
    %c0_11 = arith.constant 0 : index
    %14 = memref.load %arg6[%c0_10, %c0_11] : memref<1x1xf32, #tpu.memory_space<smem>>
    %15 = vector.broadcast %14 : f32 to vector<1x128xf32>
    %16 = arith.addf %13, %15 : vector<1x128xf32>
    %cst_12 = arith.constant 0.000000e+00 : f32
    %17 = vector.broadcast %cst_12 : f32 to vector<1x128xf32>
    %18 = arith.maximumf %16, %17 : vector<1x128xf32>
    %19 = math.absf %16 : vector<1x128xf32>
    %cst_13 = arith.constant 0.000000e+00 : f32
    %20 = vector.broadcast %cst_13 : f32 to vector<1x128xf32>
    %21 = arith.subf %20, %19 : vector<1x128xf32>
    %22 = math.exp %21 : vector<1x128xf32>
    %23 = math.log1p %22 : vector<1x128xf32>
    %24 = arith.addf %18, %23 : vector<1x128xf32>
    %c0_14 = arith.constant 0 : index
    %c0_15 = arith.constant 0 : index
    %c0_16 = arith.constant 0 : index
    %25 = vector.load %arg7[%c0_14, %c0_15, %c0_16] : memref<1x1x128xf32, #tpu.memory_space<vmem>>, vector<1x1x128xf32>
    %26 = vector.shape_cast %25 : vector<1x1x128xf32> to vector<1x128xf32>
    %27 = vector.shape_cast %24 : vector<1x128xf32> to vector<1x1x128xf32>
    tpu.vector_store %arg7[%c0_14, %c0_15, %c0_16], %27 {strides = array<i32>} : memref<1x1x128xf32, #tpu.memory_space<vmem>>, vector<1x1x128xf32>,
    %28 = arith.mulf %1, %1 : vector<1024x128xf32>
    %cst_17 = arith.constant dense<0.000000e+00> : vector<128xf32>
    %29 = vector.multi_reduction <add>, %28, %cst_17 [0] : vector<1024x128xf32> to vector<128xf32>
    %30 = vector.shape_cast %29 : vector<128xf32> to vector<1x128xf32>
    %cst_18 = arith.constant 1.000000e-24 : f32
    %31 = vector.broadcast %cst_18 : f32 to vector<1x128xf32>
    %32 = arith.maximumf %30, %31 : vector<1x128xf32>
    %33 = math.rsqrt %32 : vector<1x128xf32>
    %34 = arith.mulf %24, %33 : vector<1x128xf32>
    %cst_19 = arith.constant 3.906250e-03 : f32
    %35 = vector.broadcast %cst_19 : f32 to vector<1x128xf32>
    %36 = arith.mulf %34, %35 : vector<1x128xf32>
    %37 = vector.broadcast %36 : vector<1x128xf32> to vector<1024x128xf32>
    %38 = arith.mulf %1, %37 : vector<1024x128xf32>
    %c0_i32 = arith.constant 0 : i32
    %39 = arith.cmpi eq, %arg1, %c0_i32 : i32
    %40 = arith.extui %39 : i1 to i32
    %c0_i32_20 = arith.constant 0 : i32
    %41 = arith.cmpi ne, %40, %c0_i32_20 : i32
    scf.if %41 {
      %cst_26 = arith.constant 0.000000e+00 : f32
      %48 = vector.broadcast %cst_26 : f32 to vector<1024x128xf32>
      %c0_27 = arith.constant 0 : index
      %c0_28 = arith.constant 0 : index
      %49 = vector.load %arg9[%c0_27, %c0_28] : memref<1024x128xf32, #tpu.memory_space<vmem>>, vector<1024x128xf32>
      tpu.vector_store %arg9[%c0_27, %c0_28], %48 {strides = array<i32>} : memref<1024x128xf32, #tpu.memory_space<vmem>>, vector<1024x128xf32>,
    } else {
    }
    %c0_21 = arith.constant 0 : index
    %c0_22 = arith.constant 0 : index
    %42 = vector.load %arg9[%c0_21, %c0_22] : memref<1024x128xf32, #tpu.memory_space<vmem>>, vector<1024x128xf32>
    %43 = arith.addf %42, %38 : vector<1024x128xf32>
    %c0_23 = arith.constant 0 : index
    %c0_24 = arith.constant 0 : index
    %44 = vector.load %arg9[%c0_23, %c0_24] : memref<1024x128xf32, #tpu.memory_space<vmem>>, vector<1024x128xf32>
    tpu.vector_store %arg9[%c0_23, %c0_24], %43 {strides = array<i32>} : memref<1024x128xf32, #tpu.memory_space<vmem>>, vector<1024x128xf32>,
    %c1_i32 = arith.constant 1 : i32
    %45 = arith.cmpi eq, %arg1, %c1_i32 : i32
    %46 = arith.extui %45 : i1 to i32
    %c0_i32_25 = arith.constant 0 : i32
    %47 = arith.cmpi ne, %46, %c0_i32_25 : i32
    scf.if %47 {
      %c0_26 = arith.constant 0 : index
      %c0_27 = arith.constant 0 : index
      %48 = vector.load %arg9[%c0_26, %c0_27] : memref<1024x128xf32, #tpu.memory_space<vmem>>, vector<1024x128xf32>
      %cst_28 = arith.constant dense<0.000000e+00> : vector<1024xf32>
      %49 = vector.multi_reduction <add>, %48, %cst_28 [1] : vector<1024x128xf32> to vector<1024xf32>
      %50 = vector.shape_cast %49 : vector<1024xf32> to vector<1024x1xf32>
      %c0_29 = arith.constant 0 : index
      %c0_30 = arith.constant 0 : index
      %c0_31 = arith.constant 0 : index
      %51 = vector.load %arg8[%c0_29, %c0_30, %c0_31] : memref<1x1024x1xf32, #tpu.memory_space<vmem>>, vector<1x1024x1xf32>
      %52 = vector.shape_cast %51 : vector<1x1024x1xf32> to vector<1024x1xf32>
      %53 = vector.shape_cast %50 : vector<1024x1xf32> to vector<1x1024x1xf32>
      tpu.vector_store %arg8[%c0_29, %c0_30, %c0_31], %53 {strides = array<i32>} : memref<1x1024x1xf32, #tpu.memory_space<vmem>>, vector<1x1024x1xf32>,
    } else {
    }
    return
  }
  func.func @transform_0(%arg0: i32, %arg1: i32) -> (i32, i32, i32) {
    %c0_i32 = arith.constant 0 : i32
    %c0_i32_0 = arith.constant 0 : i32
    return %arg0, %c0_i32, %arg1 : i32, i32, i32
  }
  func.func @transform_1(%arg0: i32, %arg1: i32) -> (i32, i32) {
    %c0_i32 = arith.constant 0 : i32
    %c0_i32_0 = arith.constant 0 : i32
    %c0_i32_1 = arith.constant 0 : i32
    return %c0_i32, %c0_i32_0 : i32, i32
  }
  func.func @transform_2(%arg0: i32, %arg1: i32) -> (i32, i32) {
    %c0_i32 = arith.constant 0 : i32
    %c0_i32_0 = arith.constant 0 : i32
    %c0_i32_1 = arith.constant 0 : i32
    return %c0_i32, %c0_i32_0 : i32, i32
  }
  func.func @transform_3(%arg0: i32, %arg1: i32) -> (i32, i32) {
    %c0_i32 = arith.constant 0 : i32
    %c0_i32_0 = arith.constant 0 : i32
    %c0_i32_1 = arith.constant 0 : i32
    return %c0_i32, %c0_i32_0 : i32, i32
  }
  func.func @transform_4(%arg0: i32, %arg1: i32) -> (i32, i32) {
    %c0_i32 = arith.constant 0 : i32
    %c0_i32_0 = arith.constant 0 : i32
    %c0_i32_1 = arith.constant 0 : i32
    return %c0_i32, %c0_i32_0 : i32, i32
  }
  func.func @transform_5(%arg0: i32, %arg1: i32) -> (i32, i32, i32) {
    %c0_i32 = arith.constant 0 : i32
    %c0_i32_0 = arith.constant 0 : i32
    return %arg0, %c0_i32, %arg1 : i32, i32, i32
  }
  func.func @transform_6(%arg0: i32, %arg1: i32) -> (i32, i32, i32) {
    %c0_i32 = arith.constant 0 : i32
    %c0_i32_0 = arith.constant 0 : i32
    %c0_i32_1 = arith.constant 0 : i32
    return %arg0, %c0_i32, %c0_i32_0 : i32, i32, i32
  }
}

</mosaic_0001>

<bundles_post_ra>
// kernel: tpu_custom_call.1
= control target key start
LH: loop header
LB: loop body
LE: loop exit
PB: predicated region body
PF: predicated region fallthrough
CT: control target
= control target key end

     0   :  { %s8477_s0 = inlined_call_operand.hbm [shape: f32[2,1024,256], index: 0, kind: input, shape index: {}]   ;;  %s8478_s1 = inlined_call_operand.hbm [shape: f32[512,1024], index: 1, kind: input, shape index: {}]   ;;  %s8479_s2 = inlined_call_operand.vmem [shape: f32[512,1], index: 2, kind: input, shape index: {}]   ;;  %s8480_s3 = inlined_call_operand.vmem [shape: f32[512,1], index: 3, kind: input, shape index: {}]   ;;  %s8481_s4 = inlined_call_operand.<no memory space> [shape: f32[1,1], index: 4, kind: input, shape index: {}]   ;;  %s8482_s5 = inlined_call_operand.hbm [shape: f32[2,1,256], index: 5, kind: output, shape index: {0}]   ;;  %s8483_s6 = inlined_call_operand.vmem [shape: f32[2,1024,1], index: 6, kind: output, shape index: {1}]  }
   0x1   :  { %8494 = sst [smem:[#allocation96_spill]] %s8478_s1 }
   0x2   :  { %12 = sst [smem:[#allocation3]] %s8481_s4 }
   0x3   :  { %13 = vsyncpa [#allocation5], 0 }
   0x4   :  { %15 = vsyncpa [#allocation5 + $0x1], 0 }
   0x5   :  { %16 = vsyncpa [#allocation8], 0 }
   0x6   :  { %17 = vsyncpa [#allocation6], 0 }
   0x7   :  { %19 = vsyncpa [#allocation6 + $0x1], 0  ;;  %s6179_s23 = smov 0   ;;  %s6181_s24 = smov 0  }
   0x8   :  { %s6183_s25 = smov 0   ;;  %s6185_s26 = smov 0  }
   0x9   :  { %s6187_s27 = smov 0   ;;  %s6189_s28 = smov 0  }
   0xa   :  { %s6191_s29 = smov 0   ;;  %s6193_s4 = smov 0  }
   0xb LB: > { %8495 = sst [smem:[#allocation13_spill]] %s6100_s23  ;;  %s5044_s30 = sadd.s32 4294967295, %s6128_s4   ;;  %s6128_s4 = sphi %s6193_s4, %s25_s4   ;;  %s6124_s29 = sphi %s6191_s29, %s8730_s29   ;;  %s6120_s28 = sphi %s6189_s28, %s8729_s28   ;;  %s6116_s27 = sphi %s6187_s27, %s8728_s27   ;;  %s6112_s26 = sphi %s6185_s26, %s8723_s26   ;;  %s6108_s25 = sphi %s6183_s25, %s8727_s25   ;;  %s6104_s24 = sphi %s6181_s24, %s8726_s24   ;;  %s6100_s23 = sphi %s6179_s23, %s8725_s23  }
   0xc   : > { %8496 = sst [smem:[#allocation14_spill]] %s6120_s28  ;;  %s5045_s7 = sadd.s32 4294967294, %s6128_s4  }
   0xd   : > { %p53_p0 = scmp.ne.s32.totalorder %s6108_s25, %s6104_s24  ;;  %p54_p1 = scmp.eq.s32.totalorder %s6128_s4, 0 }
   0xe   : > { %p59_p2 = scmp.ne.s32.totalorder %s6104_s24, %s6100_s23  ;;  %p6227_p3 = scmp.eq.s32.totalorder %s5044_s30, 0 }
   0xf   : > { %p169_p4 = scmp.eq.s32.totalorder %s5044_s30, 3  ;;  %p6231_p5 = por %p54_p1, %p53_p0 }
  0x10   : > { %s8497_s9 = scalar_select %p6227_p3, 1, 0 }
  0x11   : > { %p175_p6 = scmp.eq.s32.totalorder %s5045_s7, 3  ;;  %p6237_p7 = por %p6227_p3, %p59_p2 }
  0x12   : > { %p6241_p8 = por %p169_p4, %p53_p0  ;;  %p5046_p10 = scmp.ge.s32.totalorder %s6128_s4, 1 }
  0x13   : > { %s8499_s11 = scalar_select %p6237_p7, 1, 0 }
  0x14   : > { %s8500_s12 = scalar_select %p6241_p8, 1, 0 }
  0x15   : > { %p6245_p9 = por %p175_p6, %p59_p2  ;;  %p208_p11 = scmp.lt.s32.totalorder %s6128_s4, 5 }
  0x16   : > { %s6130_s15 = smov [#allocation7]   ;;  %p5661_p0 = scmp.lt.s32.totalorder %s6128_s4, 4 }
  0x17   : > { %s8501_s13 = scalar_select %p6245_p9, 1, 0 }
  0x18   : > { %p6251_p12 = pnand %p5046_p10, %p208_p11  ;;  %s220_s16 = sshll.u32 %s6130_s15, 4  ;;  %s221_s16 = int_to_ptr.vmem [resolvable:$true] %s220_s16 }
  0x19   : > { %8502 = sst [smem:[#allocation15_spill]] %s8501_s13  ;;  %p6266_p2 = pnand %p5661_p0, %p6231_p5 }
  0x1a   : > { %s8503_s14 = scalar_select %p6251_p12, 1, 0 }
  0x1b   : > { %p5648_p13 = pneg %p6251_p12  ;;  %s8506_s1 = sld [smem:[#allocation96_spill]] }
  0x1c   : > { %s8505_s18 = scalar_select %p6266_p2, 1, 0 }
  0x1d   : > { %p6260_p1 = pnand %p5648_p13, %p6227_p3 }
  0x1f   : > { %p5970_p6 = pneg %p6260_p1 }
  0x21   : > { %s5968_s21 = scalar_lea.hbm %s8506_s1, 65536 }
  0x22   : > { %p5969_p4 = scmp.ne.s32.totalorder %s8506_s1, %s5968_s21  ;;  %p5975_p13 = scmp.lt.u32.totalorder %s5968_s21, %s8506_s1 }
  0x24   : > { %p5971_p10 = pnand %p5970_p6, %p5969_p4 }
  0x26   : > { %p5972_p11 = pneg %p5971_p10 }
  0x28   : > { %p5977_p5 = pnand %p5975_p13, %p5972_p11 }
  0x2a   : > { %5980 = shalt.err (!%p5977_p5)
}
  0x2b   : > { %s5981_s10 = scalar_lea.vmem %s221_s16, 65536  ;;  %p5989_p3 = scmp.lt.s32.totalorder %s221_s16, %s221_s16 }
  0x2c   : > { %p5982_p0 = scmp.ne.s32.totalorder %s221_s16, %s5981_s10  ;;  %p5990_p7 = scmp.lt.s32.totalorder %s5981_s10, %s5981_s10 }
  0x2e   : > { %p5984_p9 = pnand %p5982_p0, %p5970_p6  ;;  %p5991_p12 = por %p5990_p7, %p5989_p3 }
  0x30   : > { %p5985_p8 = pneg %p5984_p9 }
  0x32   : > { %p5992_p2 = pnand %p5991_p12, %p5985_p8 }
  0x34   : > { %5995 = shalt.err (!%p5992_p2)
}
  0x35   : > { %s6131_s19 = smov 1024   ;;  %s6132_s20 = smov 64  }
  0x36   : > { %5651 = dma.hbm_to_vmem [thread:$0]  (!%p6260_p1), %s8506_s1, 65536, %s221_s16, [#allocation8], %s6131_s19, %s6131_s19, %s6132_s20  }
  0x37   : > { %s34_s30 = sadd.s32 1, %s6120_s28  ;;  %s37_s7 = sadd.s32 1, %s6124_s29 }
  0x38   : > { %p35_p3 = scmp.ge.s32.totalorder %s34_s30, 2  ;;  %s243_s15 = sand.u32 1, %s6108_s25  }
  0x39   : > { %s5050_s10 = sshll.u32 %s6124_s29, 8  ;;  %s5049_s17 = sshll.u32 %s243_s15, 10 }
  0x3a   : > { %s8732_s30 = smov (%p35_p3, %s34_s30), 0  ;;  %s8734_s7 = smov (!%p35_p3, %s37_s7), %s6124_s29 }
  0x3b   : > { %8507 = sst [smem:[#allocation16_spill]] %s8732_s30  ;;  %s42_s8 = ssub.s32 %s6120_s28, %s8732_s30 }
  0x3c   : > { %p39_p7 = scmp.ge.s32.totalorder %s8734_s7, 2  ;;  %s252_s13 = sadd.s32 %s6120_s28, %s5050_s10 }
  0x3d   : > { %s5051_s16 = sshll.u32 %s252_s13, 7  ;;  %s247_s19 = scalar_lea.vmem [#allocation4], %s5049_s17 }
  0x3e   : > { %s8736_s7 = smov (%p39_p7, %s8734_s7), 0  ;;  %s255_s20 = sshll.u32 %s247_s19, 4  ;;  %s6305_s20 = int_to_ptr.vmem [resolvable:$true] %s255_s20 }
  0x3f   : > { %s41_s21 = ssub.s32 %s6124_s29, %s8736_s7  ;;  %s6303_s23 = scalar_lea.hbm %s8477_s0, %s5051_s16 }
  0x40   : > { %s43_s30 = sor.u32 %s42_s8, %s41_s21  ;;  %s8508_s10 = sadd.s32 1, %s6108_s25 }
  0x41   : > { %p44_p8 = scmp.eq.s32.totalorder %s43_s30, 0  ;;  %s6312_s13 = scalar_lea.sflag [#allocation5], %s243_s15 }
  0x42   : > { %s5996_s17 = scalar_lea.hbm %s6303_s23, 16384  ;;  %p8509_p12 = scmp.ne.s32.totalorder %s8505_s18, 0 }
  0x43   : > { %s6310_s28 = scalar_select %p44_p8, %s6108_s25, %s8508_s10  }
  0x44   : > { %p5997_p9 = scmp.ne.s32.totalorder %s6303_s23, %s5996_s17  ;;  %p5998_p1 = pneg %p8509_p12 }
  0x45   : > { %s6001_s8 = scalar_lea.hbm %s8477_s0, 65536  ;;  %p6002_p6 = scmp.lt.u32.totalorder %s6303_s23, %s8477_s0 }
  0x46   : > { %p5999_p2 = pnand %p5998_p1, %p5997_p9  ;;  %p6003_p10 = scmp.lt.u32.totalorder %s6001_s8, %s5996_s17 }
  0x47   : > { %p6005_p13 = scmp.lt.u32.totalorder %s5996_s17, %s6303_s23 }
  0x48   : > { %p6000_p4 = pneg %p5999_p2  ;;  %p6004_p11 = por %p6003_p10, %p6002_p6 }
  0x4a   : > { %p6006_p5 = por %p6005_p13, %p6004_p11 }
  0x4c   : > { %p6007_p0 = pnand %p6006_p5, %p6000_p4 }
  0x4e   : > { %6010 = shalt.err (!%p6007_p0)
}
  0x4f   : > { %s6011_s30 = scalar_lea.vmem %s6305_s20, 16384  ;;  %s6133_s15 = smov [#allocation4]  }
  0x50   : > { %p6012_p3 = scmp.ne.s32.totalorder %s6305_s20, %s6011_s30  ;;  %s6016_s22 = sshll.u32 %s6133_s15, 4  ;;  %s6017_s22 = int_to_ptr.vmem [resolvable:$false] %s6016_s22 }
  0x51   : > { %s6018_s10 = scalar_lea.vmem %s6017_s22, 32768  ;;  %p6019_p9 = scmp.lt.s32.totalorder %s6305_s20, %s6017_s22 }
  0x52   : > { %p6014_p7 = pnand %p6012_p3, %p5998_p1  ;;  %p6020_p2 = scmp.lt.s32.totalorder %s6018_s10, %s6011_s30 }
  0x54   : > { %p6015_p8 = pneg %p6014_p7  ;;  %p6021_p6 = por %p6020_p2, %p6019_p9 }
  0x56   : > { %p6022_p10 = pnand %p6021_p6, %p6015_p8 }
  0x58   : > { %6025 = shalt.err (!%p6022_p10)
}
  0x59   : > { %s6134_s17 = smov 256   ;;  %s6135_s1 = smov 128  }
  0x5a   : > { %s6136_s16 = smov 8   ;;  %p8510_p1 = scmp.ne.s32.totalorder %s8503_s14, 0 }
  0x5b   : > { %5655 = dma.hbm_to_vmem [thread:$0]  (!%p8509_p12), %s6303_s23, 16384, %s6305_s20, %s6312_s13, %s6134_s17, %s6135_s1, %s6136_s16  }
  0x5c   : > { %267 = sbr.rel (%p8510_p1) target bundleno = 1587 (0x633), region = 40 }
  0x63   : > { %s6343_s8 = sand.u32 1, %s6104_s24   ;;  %p8511_p4 = scmp.ne.s32.totalorder %s8499_s11, 0 }
  0x64   : > { %s5053_s19 = sshll.u32 %s6343_s8, 10  ;;  %s270_s21 = scalar_lea.sflag [#allocation5], %s6343_s8 }
  0x65   : > { %s6347_s30 = scalar_lea.vmem [#allocation4], %s5053_s19 }
  0x66   : > { %6087 = dma.done.wait (%p8511_p4), %s270_s21, 16384  }
  0x67   : > { %6089 = vsyncadd (%p8511_p4), %s270_s21, 4294950912  ;;  %p8512_p12 = scmp.ne.s32.totalorder %s8497_s9, 0 }
  0x69   : > { %6091 = dma.done.wait (%p8512_p12), [#allocation8], 65536  }
  0x6a   : > { %6093 = vsyncadd (%p8512_p12), [#allocation8], 4294901760  ;;  %p310_p11 = scmp.lt.s32.totalorder %s6116_s27, 1  ;;  %v6137_v0 = vmov 0.0|0.0   ;;  %v315_v1 = vld [vmem:[%s6347_s30] sm:$0xff]  ;;  %v316_v2 = vld [vmem:[%s6347_s30 + $0x8] sm:$0xff] }
  0x6b   : > { %5064 = vmatprep.subr.bf16.mxu1 %v6137_v0  ;;  %5160 = vmatprep.subr.bf16.mxu0 %v6137_v0  ;;  %v379_v3 = vld [vmem:[%s6347_s30 + $0x200] sm:$0xff]  ;;  %v5065_v4 = vpack.c.bf16 %v316_v2, %v315_v1  ;;  %v380_v5 = vld [vmem:[%s6347_s30 + $0x208] sm:$0xff]  ;;  %v317_v6 = vld [vmem:[%s6347_s30 + $0x10] sm:$0xff]  ;;  %s3460_s10 = sld [smem:[#allocation3]]  ;;  %s302_s17 = scalar_lea.vmem [#allocation9], %s6343_s8 }
  0x6c   : > { %s311_s23 = scalar_select %p310_p11, %s6116_s27, 1  ;;  %v318_v7 = vld [vmem:[%s6347_s30 + $0x18] sm:$0xff]  ;;  %v5161_v8 = vpack.c.bf16 %v380_v5, %v379_v3  ;;  %v381_v9 = vld [vmem:[%s6347_s30 + $0x210] sm:$0xff]  ;;  %v319_v13 = vld [vmem:[%s6347_s30 + $0x20] sm:$0xff] }
  0x6d   : > { %v382_v10 = vld [vmem:[%s6347_s30 + $0x218] sm:$0xff]  ;;  %5066 = vmatpush1.bf16.msra.mxu1 %v5065_v4  ;;  %v5068_v11 = vpack.c.bf16 %v318_v7, %v317_v6  ;;  %v320_v14 = vld [vmem:[%s6347_s30 + $0x28] sm:$0xff]  ;;  %v383_v15 = vld [vmem:[%s6347_s30 + $0x220] sm:$0xff]  ;;  %p5057_p13 = scmp.ne.s32.totalorder %s6112_s26, 0 }
  0x6e   : > { %s5063_s11 = sshll.u32 %s311_s23, 10  ;;  %5162 = vmatpush1.bf16.msra.mxu0 %v5161_v8  ;;  %5067 = vmatprep.subr.bf16.mxu1 %v6137_v0  ;;  %v5164_v12 = vpack.c.bf16 %v382_v10, %v381_v9  ;;  %v384_v16 = vld [vmem:[%s6347_s30 + $0x228] sm:$0xff]  ;;  %v5071_v17 = vpack.c.bf16 %v320_v14, %v319_v13  ;;  %v321_v19 = vld [vmem:[%s6347_s30 + $0x30] sm:$0xff]  ;;  %v322_v20 = vld [vmem:[%s6347_s30 + $0x38] sm:$0xff]  ;;  %v6138_v10 = vmov 0  }
  0x6f   : > { %s6364_s18 = scalar_lea.vmem %s8483_s6, %s5063_s11  ;;  %5163 = vmatprep.subr.bf16.mxu0 %v6137_v0  ;;  %v5167_v18 = vpack.c.bf16 %v384_v16, %v383_v15  ;;  %v385_v21 = vld [vmem:[%s6347_s30 + $0x230] sm:$0xff]  ;;  %v386_v22 = vld [vmem:[%s6347_s30 + $0x238] sm:$0xff]  ;;  %v5074_v23 = vpack.c.bf16 %v322_v20, %v321_v19  ;;  %v323_v25 = vld [vmem:[%s6347_s30 + $0x40] sm:$0xff]  ;;  %5737 = vset.pattern.permute.xlu0 %v6138_v10 }
  0x70   : > { %v5170_v24 = vpack.c.bf16 %v386_v22, %v385_v21  ;;  %v324_v26 = vld [vmem:[%s6347_s30 + $0x48] sm:$0xff]  ;;  %v387_v27 = vld [vmem:[%s6347_s30 + $0x240] sm:$0xff]  ;;  %v325_v31 = vld [vmem:[%s6347_s30 + $0x50] sm:$0xff]  ;;  %5738 = vset.pattern.permute.xlu1 %v6138_v10 }
  0x71   : > { %5069 = vmatpush1.bf16.msra.mxu1 %v5068_v11  ;;  %v388_v28 = vld [vmem:[%s6347_s30 + $0x248] sm:$0xff]  ;;  %v5077_v29 = vpack.c.bf16 %v324_v26, %v323_v25  ;;  %v326_v32 = vld [vmem:[%s6347_s30 + $0x58] sm:$0xff]  ;;  %v389_v33 = vld [vmem:[%s6347_s30 + $0x250] sm:$0xff] }
  0x72   : > { %5165 = vmatpush1.bf16.msra.mxu0 %v5164_v12  ;;  %5070 = vmatprep.subr.bf16.mxu1 %v6137_v0  ;;  %v5173_v30 = vpack.c.bf16 %v388_v28, %v387_v27  ;;  %v390_v34 = vld [vmem:[%s6347_s30 + $0x258] sm:$0xff]  ;;  %v5080_v35 = vpack.c.bf16 %v326_v32, %v325_v31  ;;  %v327_v37 = vld [vmem:[%s6347_s30 + $0x60] sm:$0xff]  ;;  %v328_v38 = vld [vmem:[%s6347_s30 + $0x68] sm:$0xff] }
  0x73   : > { %5166 = vmatprep.subr.bf16.mxu0 %v6137_v0  ;;  %v5176_v36 = vpack.c.bf16 %v390_v34, %v389_v33  ;;  %v391_v39 = vld [vmem:[%s6347_s30 + $0x260] sm:$0xff]  ;;  %v392_v40 = vld [vmem:[%s6347_s30 + $0x268] sm:$0xff]  ;;  %v5083_v41 = vpack.c.bf16 %v328_v38, %v327_v37  ;;  %v329_v43 = vld [vmem:[%s6347_s30 + $0x70] sm:$0xff] }
  0x74   : > { %v5179_v42 = vpack.c.bf16 %v392_v40, %v391_v39  ;;  %v330_v44 = vld [vmem:[%s6347_s30 + $0x78] sm:$0xff]  ;;  %v393_v45 = vld [vmem:[%s6347_s30 + $0x270] sm:$0xff]  ;;  %v331_v49 = vld [vmem:[%s6347_s30 + $0x80] sm:$0xff] }
  0x75   : > { %5072 = vmatpush1.bf16.msra.mxu1 %v5071_v17  ;;  %v394_v46 = vld [vmem:[%s6347_s30 + $0x278] sm:$0xff]  ;;  %v5086_v47 = vpack.c.bf16 %v330_v44, %v329_v43  ;;  %v332_v50 = vld [vmem:[%s6347_s30 + $0x88] sm:$0xff]  ;;  %v395_v51 = vld [vmem:[%s6347_s30 + $0x280] sm:$0xff] }
  0x76   : > { %5168 = vmatpush1.bf16.msra.mxu0 %v5167_v18  ;;  %5073 = vmatprep.subr.bf16.mxu1 %v6137_v0  ;;  %v5182_v48 = vpack.c.bf16 %v394_v46, %v393_v45  ;;  %v396_v52 = vld [vmem:[%s6347_s30 + $0x288] sm:$0xff]  ;;  %v5089_v53 = vpack.c.bf16 %v332_v50, %v331_v49  ;;  %v333_v55 = vld [vmem:[%s6347_s30 + $0x90] sm:$0xff]  ;;  %v334_v56 = vld [vmem:[%s6347_s30 + $0x98] sm:$0xff] }
  0x77   : > { %5169 = vmatprep.subr.bf16.mxu0 %v6137_v0  ;;  %v5185_v54 = vpack.c.bf16 %v396_v52, %v395_v51  ;;  %v444_v57 = vld [vmem:[#allocation7 + $0x8] sm:$0xff]  ;;  %v397_v58 = vld [vmem:[%s6347_s30 + $0x290] sm:$0xff]  ;;  %v398_v59 = vld [vmem:[%s6347_s30 + $0x298] sm:$0xff]  ;;  %v5092_v60 = vpack.c.bf16 %v334_v56, %v333_v55 }
  0x78   : > { %1403 = vmatprep.mubr.f32.mxu1 %v444_v57  ;;  %v448_v61 = vld [vmem:[#allocation7 + $0x28] sm:$0xff]  ;;  %v5188_v62 = vpack.c.bf16 %v398_v59, %v397_v58  ;;  %v335_v63 = vld [vmem:[%s6347_s30 + $0xa0] sm:$0xff]  ;;  %v337_v6 = vld [vmem:[%s6347_s30 + $0xb0] sm:$0xff] }
  0x79   : > { %5075 = vmatpush1.bf16.msra.mxu1 %v5074_v23  ;;  %v336_v1 = vld [vmem:[%s6347_s30 + $0xa8] sm:$0xff]  ;;  %v399_v2 = vld [vmem:[%s6347_s30 + $0x2a0] sm:$0xff]  ;;  %2173 = vmatprep.mubr.f32.mxu0 %v448_v61  ;;  %v338_v7 = vld [vmem:[%s6347_s30 + $0xb8] sm:$0xff] }
  0x7a   : > { %5171 = vmatpush1.bf16.msra.mxu0 %v5170_v24  ;;  %5076 = vmatprep.subr.bf16.mxu1 %v6137_v0  ;;  %v400_v3 = vld [vmem:[%s6347_s30 + $0x2a8] sm:$0xff]  ;;  %v5095_v4 = vpack.c.bf16 %v336_v1, %v335_v63  ;;  %v401_v8 = vld [vmem:[%s6347_s30 + $0x2b0] sm:$0xff]  ;;  %v402_v9 = vld [vmem:[%s6347_s30 + $0x2b8] sm:$0xff]  ;;  %v5098_v11 = vpack.c.bf16 %v338_v7, %v337_v6 }
  0x7b   : > { %5172 = vmatprep.subr.bf16.mxu0 %v6137_v0  ;;  %v5191_v5 = vpack.c.bf16 %v400_v3, %v399_v2  ;;  %v5194_v12 = vpack.c.bf16 %v402_v9, %v401_v8  ;;  %v339_v13 = vld [vmem:[%s6347_s30 + $0xc0] sm:$0xff]  ;;  %v340_v14 = vld [vmem:[%s6347_s30 + $0xc8] sm:$0xff]  ;;  %v341_v19 = vld [vmem:[%s6347_s30 + $0xd0] sm:$0xff] }
  0x7c   : > { %v403_v15 = vld [vmem:[%s6347_s30 + $0x2c0] sm:$0xff]  ;;  %v404_v16 = vld [vmem:[%s6347_s30 + $0x2c8] sm:$0xff]  ;;  %v5101_v17 = vpack.c.bf16 %v340_v14, %v339_v13  ;;  %v342_v20 = vld [vmem:[%s6347_s30 + $0xd8] sm:$0xff] }
  0x7d   : > { %5078 = vmatpush1.bf16.msra.mxu1 %v5077_v29  ;;  %v5197_v18 = vpack.c.bf16 %v404_v16, %v403_v15  ;;  %v405_v21 = vld [vmem:[%s6347_s30 + $0x2d0] sm:$0xff]  ;;  %v406_v22 = vld [vmem:[%s6347_s30 + $0x2d8] sm:$0xff]  ;;  %v5104_v23 = vpack.c.bf16 %v342_v20, %v341_v19  ;;  %v343_v25 = vld [vmem:[%s6347_s30 + $0xe0] sm:$0xff] }
  0x7e   : > { %5174 = vmatpush1.bf16.msra.mxu0 %v5173_v30  ;;  %5079 = vmatprep.subr.bf16.mxu1 %v6137_v0  ;;  %v5200_v24 = vpack.c.bf16 %v406_v22, %v405_v21  ;;  %v344_v26 = vld [vmem:[%s6347_s30 + $0xe8] sm:$0xff]  ;;  %v407_v27 = vld [vmem:[%s6347_s30 + $0x2e0] sm:$0xff]  ;;  %v345_v31 = vld [vmem:[%s6347_s30 + $0xf0] sm:$0xff] }
  0x7f   : > { %5175 = vmatprep.subr.bf16.mxu0 %v6137_v0  ;;  %v408_v28 = vld [vmem:[%s6347_s30 + $0x2e8] sm:$0xff]  ;;  %v5107_v29 = vpack.c.bf16 %v344_v26, %v343_v25  ;;  %v346_v32 = vld [vmem:[%s6347_s30 + $0xf8] sm:$0xff]  ;;  %v409_v33 = vld [vmem:[%s6347_s30 + $0x2f0] sm:$0xff] }
  0x80   : > { %v5203_v30 = vpack.c.bf16 %v408_v28, %v407_v27  ;;  %v410_v34 = vld [vmem:[%s6347_s30 + $0x2f8] sm:$0xff]  ;;  %v348_v37 = vld [vmem:[%s6347_s30 + $0x108] sm:$0xff]  ;;  %v349_v39 = vld [vmem:[%s6347_s30 + $0x110] sm:$0xff] }
  0x81   : > { %5081 = vmatpush1.bf16.msra.mxu1 %v5080_v35  ;;  %v5110_v35 = vpack.c.bf16 %v346_v32, %v345_v31  ;;  %v5206_v38 = vpack.c.bf16 %v410_v34, %v409_v33  ;;  %v443_v40 = vld [vmem:[#allocation7] sm:$0xff]  ;;  %v412_v43 = vld [vmem:[%s6347_s30 + $0x308] sm:$0xff]  ;;  %v350_v44 = vld [vmem:[%s6347_s30 + $0x118] sm:$0xff] }
  0x82   : > { %5177 = vmatpush1.bf16.msra.mxu0 %v5176_v36  ;;  %5082 = vmatprep.subr.bf16.mxu1 %v6137_v0  ;;  %v347_v36 = vld [vmem:[%s6347_s30 + $0x100] sm:$0xff]  ;;  %v957_v50 = vld [vmem:[%s8479_s2 + $0x10] sm:$0xff]  ;;  %v460_v55 = vld [vmem:[#allocation7 + $0x88] sm:$0xff]  ;;  %v5116_v56 = vpack.c.bf16 %v350_v44, %v349_v39 }
  0x83   : > { %5178 = vmatprep.subr.bf16.mxu0 %v6137_v0  ;;  %v447_v45 = vld [vmem:[#allocation7 + $0x20] sm:$0xff]  ;;  %1031 = vperm.xlu1 %5738, %v957_v50   ;;  %v413_v52 = vld [vmem:[%s6347_s30 + $0x310] sm:$0xff]  ;;  %v352_v58 = vld [vmem:[%s6347_s30 + $0x128] sm:$0xff] }
  0x84   : > { %v955_v46 = vld [vmem:[%s8479_s2] sm:$0xff]  ;;  %v464_v59 = vld [vmem:[#allocation7 + $0xa8] sm:$0xff]  ;;  %v417_v9 = vld [vmem:[%s6347_s30 + $0x330] sm:$0xff] }
  0x85   : > { %5084 = vmatpush1.bf16.msra.mxu1 %v5083_v41  ;;  %v5113_v41 = vpack.c.bf16 %v348_v37, %v347_v36  ;;  %1021 = vperm.xlu0 %5737, %v955_v46   ;;  %v451_v51 = vld [vmem:[#allocation7 + $0x40] sm:$0xff]  ;;  %v416_v63 = vld [vmem:[%s6347_s30 + $0x328] sm:$0xff]  ;;  %v418_v10 = vld [vmem:[%s6347_s30 + $0x338] sm:$0xff] }
  0x86   : > { %5180 = vmatpush1.bf16.msra.mxu0 %v5179_v42  ;;  %5085 = vmatprep.subr.bf16.mxu1 %v6137_v0  ;;  %v411_v42 = vld [vmem:[%s6347_s30 + $0x300] sm:$0xff]  ;;  %v468_v2 = vld [vmem:[#allocation7 + $0xc8] sm:$0xff]  ;;  %v358_v25 = vld [vmem:[%s6347_s30 + $0x158] sm:$0xff] }
  0x87   : > { %5181 = vmatprep.subr.bf16.mxu0 %v6137_v0  ;;  %v5209_v49 = vpack.c.bf16 %v412_v43, %v411_v42  ;;  %v351_v57 = vld [vmem:[%s6347_s30 + $0x120] sm:$0xff]  ;;  %v472_v6 = vld [vmem:[#allocation7 + $0xe8] sm:$0xff]  ;;  %v958_v46 = vld [vmem:[%s8479_s2 + $0x18] sm:$0xff] }
  0x88   : > { %v459_v61 = vld [vmem:[#allocation7 + $0x80] sm:$0xff]  ;;  %v5119_v3 = vpack.c.bf16 %v352_v58, %v351_v57  ;;  %v356_v15 = vld [vmem:[%s6347_s30 + $0x148] sm:$0xff]  ;;  %1036 = vperm.xlu1 %5738, %v958_v46   ;;  %v425_v57 = vld [vmem:[%s6347_s30 + $0x370] sm:$0xff] }
  0x89   : > { %5087 = vmatpush1.bf16.msra.mxu1 %v5086_v47  ;;  %v452_v47 = vld [vmem:[#allocation7 + $0x48] sm:$0xff]  ;;  %v463_v1 = vld [vmem:[#allocation7 + $0xa0] sm:$0xff]  ;;  %v426_v58 = vld [vmem:[%s6347_s30 + $0x378] sm:$0xff] }
  0x8a   : > { %5183 = vmatpush1.bf16.msra.mxu0 %v5182_v48  ;;  %5088 = vmatprep.subr.bf16.mxu1 %v6137_v0  ;;  %v456_v48 = vld [vmem:[#allocation7 + $0x68] sm:$0xff]  ;;  %v467_v8 = vld [vmem:[#allocation7 + $0xc0] sm:$0xff] }
  0x8b   : > { %5184 = vmatprep.subr.bf16.mxu0 %v6137_v0  ;;  %v355_v14 = vld [vmem:[%s6347_s30 + $0x140] sm:$0xff]  ;;  %v480_v16 = vld [vmem:[#allocation7 + $0x128] sm:$0xff] }
  0x8c   : > { %v419_v19 = vld [vmem:[%s6347_s30 + $0x340] sm:$0xff]  ;;  %v420_v20 = vld [vmem:[%s6347_s30 + $0x348] sm:$0xff] }
  0x8d   : > { %5090 = vmatpush1.bf16.msra.mxu1 %v5089_v53  ;;  %v414_v53 = vld [vmem:[%s6347_s30 + $0x318] sm:$0xff]  ;;  %v479_v21 = vld [vmem:[#allocation7 + $0x120] sm:$0xff]  ;;  %v484_v22 = vld [vmem:[#allocation7 + $0x148] sm:$0xff]  ;;  %v5221_v27 = vpack.c.bf16 %v420_v20, %v419_v19 }
  0x8e   : > { %5186 = vmatpush1.bf16.msra.mxu0 %v5185_v54  ;;  %5091 = vmatprep.subr.bf16.mxu1 %v6137_v0  ;;  %v455_v54 = vld [vmem:[#allocation7 + $0x60] sm:$0xff]  ;;  %v488_v26 = vld [vmem:[#allocation7 + $0x168] sm:$0xff]  ;;  %v966_v19 = vld [vmem:[%s8479_s2 + $0x58] sm:$0xff] }
  0x8f   : > { %5187 = vmatprep.subr.bf16.mxu0 %v6137_v0  ;;  %v483_v28 = vld [vmem:[#allocation7 + $0x140] sm:$0xff]  ;;  %v492_v32 = vld [vmem:[#allocation7 + $0x188] sm:$0xff] }
  0x90   : > { %v487_v31 = vld [vmem:[#allocation7 + $0x160] sm:$0xff]  ;;  %v496_v36 = vld [vmem:[#allocation7 + $0x1a8] sm:$0xff] }
  0x91   : > { %5093 = vmatpush1.bf16.msra.mxu1 %v5092_v60  ;;  %v5212_v60 = vpack.c.bf16 %v414_v53, %v413_v52  ;;  %v359_v34 = vld [vmem:[%s6347_s30 + $0x160] sm:$0xff]  ;;  %v956_v39 = vld [vmem:[%s8479_s2 + $0x8] sm:$0xff]  ;;  %v361_v53 = vld [vmem:[%s6347_s30 + $0x170] sm:$0xff] }
  0x92   : > { %5189 = vmatpush1.bf16.msra.mxu0 %v5188_v62  ;;  %5094 = vmatprep.subr.bf16.mxu1 %v6137_v0  ;;  %v415_v62 = vld [vmem:[%s6347_s30 + $0x320] sm:$0xff]  ;;  %v500_v43 = vld [vmem:[#allocation7 + $0x1c8] sm:$0xff] }
  0x93   : > { %5190 = vmatprep.subr.bf16.mxu0 %v6137_v0  ;;  %v5215_v7 = vpack.c.bf16 %v416_v63, %v415_v62  ;;  %v495_v42 = vld [vmem:[#allocation7 + $0x1a0] sm:$0xff]  ;;  %1026 = vperm.xlu0 %5737, %v956_v39   ;;  %v508_v50 = vld [vmem:[#allocation7 + $0x208] sm:$0xff]  ;;  %v961_v62 = vld [vmem:[%s8479_s2 + $0x30] sm:$0xff] }
  0x94   : > { %v959_v52 = vld [vmem:[%s8479_s2 + $0x20] sm:$0xff]  ;;  %v972_v46 = vld [vmem:[%s8479_s2 + $0x88] sm:$0xff] }
  0x95   : > { %5096 = vmatpush1.bf16.msra.mxu1 %v5095_v4  ;;  %v353_v4 = vld [vmem:[%s6347_s30 + $0x130] sm:$0xff]  ;;  %v547_v39 = vld [vmem:[#allocation7 + $0x340] sm:$0xff] }
  0x96   : > { %5192 = vmatpush1.bf16.msra.mxu0 %v5191_v5  ;;  %5097 = vmatprep.subr.bf16.mxu1 %v6137_v0  ;;  %v354_v5 = vld [vmem:[%s6347_s30 + $0x138] sm:$0xff] }
  0x97   : > { %5193 = vmatprep.subr.bf16.mxu0 %v6137_v0  ;;  %v5122_v13 = vpack.c.bf16 %v354_v5, %v353_v4  ;;  %1041 = vperm.xlu0 %5737, %v959_v52   ;;  %v519_v4 = vld [vmem:[#allocation7 + $0x260] sm:$0xff]  ;;  %v524_v5 = vld [vmem:[#allocation7 + $0x288] sm:$0xff] }
  0x98   : > { %v568_v52 = vld [vmem:[#allocation7 + $0x3e8] sm:$0xff] }
  0x99   : > { %5099 = vmatpush1.bf16.msra.mxu1 %v5098_v11  ;;  %v471_v11 = vld [vmem:[#allocation7 + $0xe0] sm:$0xff] }
  0x9a   : > { %5195 = vmatpush1.bf16.msra.mxu0 %v5194_v12  ;;  %5100 = vmatprep.subr.bf16.mxu1 %v6137_v0  ;;  %v476_v12 = vld [vmem:[#allocation7 + $0x108] sm:$0xff] }
  0x9b   : > { %5196 = vmatprep.subr.bf16.mxu0 %v6137_v0  ;;  %1051 = vperm.xlu0 %5737, %v961_v62   ;;  %v369_v62 = vld [vmem:[%s6347_s30 + $0x1b0] sm:$0xff] }
  0x9d   : > { %5102 = vmatpush1.bf16.msra.mxu1 %v5101_v17  ;;  %v5218_v17 = vpack.c.bf16 %v418_v10, %v417_v9  ;;  %v364_v9 = vld [vmem:[%s6347_s30 + $0x188] sm:$0xff] }
  0x9e   : > { %5198 = vmatpush1.bf16.msra.mxu0 %v5197_v18  ;;  %5103 = vmatprep.subr.bf16.mxu1 %v6137_v0  ;;  %v475_v18 = vld [vmem:[#allocation7 + $0x100] sm:$0xff]  ;;  %v964_v10 = vld [vmem:[%s8479_s2 + $0x48] sm:$0xff] }
  0x9f   : > { %5199 = vmatprep.subr.bf16.mxu0 %v6137_v0 }
  0xa1   : > { %5105 = vmatpush1.bf16.msra.mxu1 %v5104_v23  ;;  %v5125_v23 = vpack.c.bf16 %v356_v15, %v355_v14  ;;  %v527_v14 = vld [vmem:[#allocation7 + $0x2a0] sm:$0xff]  ;;  %v532_v15 = vld [vmem:[#allocation7 + $0x2c8] sm:$0xff] }
  0xa2   : > { %5201 = vmatpush1.bf16.msra.mxu0 %v5200_v24  ;;  %5106 = vmatprep.subr.bf16.mxu1 %v6137_v0  ;;  %v357_v24 = vld [vmem:[%s6347_s30 + $0x150] sm:$0xff] }
  0xa3   : > { %5202 = vmatprep.subr.bf16.mxu0 %v6137_v0  ;;  %v5128_v33 = vpack.c.bf16 %v358_v25, %v357_v24  ;;  %v544_v24 = vld [vmem:[#allocation7 + $0x328] sm:$0xff]  ;;  %v967_v25 = vld [vmem:[%s8479_s2 + $0x60] sm:$0xff] }
  0xa5   : > { %5108 = vmatpush1.bf16.msra.mxu1 %v5107_v29  ;;  %v421_v29 = vld [vmem:[%s6347_s30 + $0x350] sm:$0xff] }
  0xa6   : > { %5204 = vmatpush1.bf16.msra.mxu0 %v5203_v30  ;;  %5109 = vmatprep.subr.bf16.mxu1 %v6137_v0  ;;  %v422_v30 = vld [vmem:[%s6347_s30 + $0x358] sm:$0xff] }
  0xa7   : > { %5205 = vmatprep.subr.bf16.mxu0 %v6137_v0  ;;  %v5224_v37 = vpack.c.bf16 %v422_v30, %v421_v29  ;;  %v539_v29 = vld [vmem:[#allocation7 + $0x300] sm:$0xff]  ;;  %v429_v30 = vld [vmem:[%s6347_s30 + $0x390] sm:$0xff] }
  0xa9   : > { %5111 = vmatpush1.bf16.msra.mxu1 %v5110_v35  ;;  %v360_v35 = vld [vmem:[%s6347_s30 + $0x168] sm:$0xff] }
  0xaa   : > { %5207 = vmatpush1.bf16.msra.mxu0 %v5206_v38  ;;  %5112 = vmatprep.subr.bf16.mxu1 %v6137_v0  ;;  %v491_v38 = vld [vmem:[#allocation7 + $0x180] sm:$0xff]  ;;  %v5131_v44 = vpack.c.bf16 %v360_v35, %v359_v34  ;;  %v552_v34 = vld [vmem:[#allocation7 + $0x368] sm:$0xff]  ;;  %v969_v35 = vld [vmem:[%s8479_s2 + $0x70] sm:$0xff] }
  0xab   : > { %5208 = vmatprep.subr.bf16.mxu0 %v6137_v0 }
  0xac   : > { %1404 = vmatmul.mubr.f32.vlgmr.msra.gmra.mrb[0].mxu1 %v443_v40  ;;  %v423_v40 = vld [vmem:[%s6347_s30 + $0x360] sm:$0xff] }
  0xad   : > { %2174 = vmatmul.mubr.f32.vlgmr.msra.gmra.mrb[0].mxu0 %v447_v45  ;;  %5114 = vmatpush1.bf16.msra.mxu1 %v5113_v41  ;;  %v424_v41 = vld [vmem:[%s6347_s30 + $0x368] sm:$0xff] }
  0xae   : > { %1408 = vmatprep.mubr.f32.mxu1 %v452_v47  ;;  %2178 = vmatprep.mubr.f32.mxu0 %v456_v48  ;;  %v504_v45 = vld [vmem:[#allocation7 + $0x1e8] sm:$0xff]  ;;  %v5227_v47 = vpack.c.bf16 %v424_v41, %v423_v40  ;;  %v499_v48 = vld [vmem:[#allocation7 + $0x1c0] sm:$0xff] }
  0xaf   : > { %5210 = vmatpush1.bf16.msra.mxu0 %v5209_v49  ;;  %5115 = vmatprep.subr.bf16.mxu1 %v6137_v0  ;;  %v503_v49 = vld [vmem:[#allocation7 + $0x1e0] sm:$0xff]  ;;  %v556_v41 = vld [vmem:[#allocation7 + $0x388] sm:$0xff] }
  0xb0   : > { %1409 = vmatmul.mubr.f32.gmra.mrb[2].mxu1 %v451_v51  ;;  %5211 = vmatprep.subr.bf16.mxu0 %v6137_v0  ;;  %v512_v51 = vld [vmem:[#allocation7 + $0x228] sm:$0xff]  ;;  %v551_v40 = vld [vmem:[#allocation7 + $0x360] sm:$0xff] }
  0xb1   : > { %2179 = vmatmul.mubr.f32.gmra.mrb[2].mxu0 %v455_v54  ;;  %1413 = vmatprep.mubr.f32.mxu1 %v460_v55  ;;  %v362_v54 = vld [vmem:[%s6347_s30 + $0x178] sm:$0xff]  ;;  %v960_v55 = vld [vmem:[%s8479_s2 + $0x28] sm:$0xff] }
  0xb2   : > { %2183 = vmatprep.mubr.f32.mxu0 %v464_v59  ;;  %5117 = vmatpush1.bf16.msra.mxu1 %v5116_v56  ;;  %v507_v56 = vld [vmem:[#allocation7 + $0x200] sm:$0xff]  ;;  %v5134_v63 = vpack.c.bf16 %v362_v54, %v361_v53  ;;  %v973_v53 = vld [vmem:[%s8479_s2 + $0x90] sm:$0xff] }
  0xb3   : > { %5213 = vmatpush1.bf16.msra.mxu0 %v5212_v60  ;;  %5118 = vmatprep.subr.bf16.mxu1 %v6137_v0  ;;  %v511_v59 = vld [vmem:[#allocation7 + $0x220] sm:$0xff]  ;;  %v516_v60 = vld [vmem:[#allocation7 + $0x248] sm:$0xff] }
  0xb4   : > { %1414 = vmatmul.mubr.f32.gmra.mrb[4].mxu1 %v459_v61  ;;  %5214 = vmatprep.subr.bf16.mxu0 %v6137_v0  ;;  %v520_v61 = vld [vmem:[#allocation7 + $0x268] sm:$0xff] }
  0xb5   : > { %2184 = vmatmul.mubr.f32.gmra.mrb[4].mxu0 %v463_v1  ;;  %1418 = vmatprep.mubr.f32.mxu1 %v468_v2  ;;  %v962_v1 = vld [vmem:[%s8479_s2 + $0x38] sm:$0xff]  ;;  %v5230_v2 = vpack.c.bf16 %v426_v58, %v425_v57  ;;  %v563_v57 = vld [vmem:[#allocation7 + $0x3c0] sm:$0xff] }
  0xb6   : > { %2188 = vmatprep.mubr.f32.mxu0 %v472_v6  ;;  %5120 = vmatpush1.bf16.msra.mxu1 %v5119_v3  ;;  %v515_v3 = vld [vmem:[#allocation7 + $0x240] sm:$0xff]  ;;  %v528_v6 = vld [vmem:[#allocation7 + $0x2a8] sm:$0xff] }
  0xb7   : > { %5216 = vmatpush1.bf16.msra.mxu0 %v5215_v7  ;;  %5121 = vmatprep.subr.bf16.mxu1 %v6137_v0  ;;  %v963_v7 = vld [vmem:[%s8479_s2 + $0x40] sm:$0xff] }
  0xb8   : > { %1419 = vmatmul.mubr.f32.gmra.mrb[6].mxu1 %v467_v8  ;;  %5217 = vmatprep.subr.bf16.mxu0 %v6137_v0  ;;  %v363_v8 = vld [vmem:[%s6347_s30 + $0x180] sm:$0xff] }
  0xb9   : > { %2189 = vmatmul.mubr.f32.gmra.mrb[6].mxu0 %v471_v11  ;;  %1423 = vmatprep.mubr.f32.mxu1 %v476_v12  ;;  %v523_v11 = vld [vmem:[#allocation7 + $0x280] sm:$0xff] }
  0xba   : > { %2193 = vmatprep.mubr.f32.mxu0 %v480_v16  ;;  %5123 = vmatpush1.bf16.msra.mxu1 %v5122_v13  ;;  %v427_v12 = vld [vmem:[%s6347_s30 + $0x380] sm:$0xff]  ;;  %v428_v13 = vld [vmem:[%s6347_s30 + $0x388] sm:$0xff] }
  0xbb   : > { %5219 = vmatpush1.bf16.msra.mxu0 %v5218_v17  ;;  %5124 = vmatprep.subr.bf16.mxu1 %v6137_v0  ;;  %v536_v16 = vld [vmem:[#allocation7 + $0x2e8] sm:$0xff]  ;;  %v965_v17 = vld [vmem:[%s8479_s2 + $0x50] sm:$0xff]  ;;  %v5233_v20 = vpack.c.bf16 %v428_v13, %v427_v12  ;;  %v567_v58 = vld [vmem:[#allocation7 + $0x3e0] sm:$0xff] }
  0xbc   : > { %1424 = vmatmul.mubr.f32.gmra.mrb[8].mxu1 %v475_v18  ;;  %5220 = vmatprep.subr.bf16.mxu0 %v6137_v0  ;;  %v5137_v18 = vpack.c.bf16 %v364_v9, %v363_v8  ;;  %v977_v8 = vld [vmem:[%s8479_s2 + $0xb0] sm:$0xff]  ;;  %v579_v12 = vld [vmem:[#allocation7 + $0x440] sm:$0xff] }
  0xbd   : > { %2194 = vmatmul.mubr.f32.gmra.mrb[8].mxu0 %v479_v21  ;;  %1428 = vmatprep.mubr.f32.mxu1 %v484_v22  ;;  %v531_v21 = vld [vmem:[#allocation7 + $0x2c0] sm:$0xff] }
  0xbe   : > { %2198 = vmatprep.mubr.f32.mxu0 %v488_v26  ;;  %5126 = vmatpush1.bf16.msra.mxu1 %v5125_v23  ;;  %v535_v22 = vld [vmem:[#allocation7 + $0x2e0] sm:$0xff]  ;;  %v540_v23 = vld [vmem:[#allocation7 + $0x308] sm:$0xff]  ;;  %v365_v26 = vld [vmem:[%s6347_s30 + $0x190] sm:$0xff] }
  0xbf   : > { %5222 = vmatpush1.bf16.msra.mxu0 %v5221_v27  ;;  %5127 = vmatprep.subr.bf16.mxu1 %v6137_v0  ;;  %v366_v27 = vld [vmem:[%s6347_s30 + $0x198] sm:$0xff]  ;;  %v583_v13 = vld [vmem:[#allocation7 + $0x460] sm:$0xff] }
  0xc0   : > { %1429 = vmatmul.mubr.f32.gmra.mrb[10].mxu1 %v483_v28  ;;  %5223 = vmatprep.subr.bf16.mxu0 %v6137_v0  ;;  %v968_v28 = vld [vmem:[%s8479_s2 + $0x68] sm:$0xff] }
  0xc1   : > { %2199 = vmatmul.mubr.f32.gmra.mrb[10].mxu0 %v487_v31  ;;  %1433 = vmatprep.mubr.f32.mxu1 %v492_v32  ;;  %v430_v31 = vld [vmem:[%s6347_s30 + $0x398] sm:$0xff]  ;;  %v543_v32 = vld [vmem:[#allocation7 + $0x320] sm:$0xff] }
  0xc2   : > { %2203 = vmatprep.mubr.f32.mxu0 %v496_v36  ;;  %5129 = vmatpush1.bf16.msra.mxu1 %v5128_v33  ;;  %v548_v33 = vld [vmem:[#allocation7 + $0x348] sm:$0xff]  ;;  %v5140_v36 = vpack.c.bf16 %v366_v27, %v365_v26  ;;  %v981_v26 = vld [vmem:[%s8479_s2 + $0xd0] sm:$0xff] }
  0xc3   : > { %5225 = vmatpush1.bf16.msra.mxu0 %v5224_v37  ;;  %5130 = vmatprep.subr.bf16.mxu1 %v6137_v0  ;;  %v970_v37 = vld [vmem:[%s8479_s2 + $0x78] sm:$0xff] }
  0xc4   : > { %1434 = vmatmul.mubr.f32.gmra.mrb[12].mxu1 %v491_v38  ;;  %5226 = vmatprep.subr.bf16.mxu0 %v6137_v0  ;;  %v5236_v38 = vpack.c.bf16 %v430_v31, %v429_v30  ;;  %v595_v30 = vld [vmem:[#allocation7 + $0x4c0] sm:$0xff] }
  0xc5   : > { %2204 = vmatmul.mubr.f32.gmra.mrb[12].mxu0 %v495_v42  ;;  %1438 = vmatprep.mubr.f32.mxu1 %v500_v43  ;;  %v560_v42 = vld [vmem:[#allocation7 + $0x3a8] sm:$0xff]  ;;  %v971_v43 = vld [vmem:[%s8479_s2 + $0x80] sm:$0xff] }
  0xc6   : > { %2208 = vmatprep.mubr.f32.mxu0 %v504_v45  ;;  %5132 = vmatpush1.bf16.msra.mxu1 %v5131_v44  ;;  %v367_v44 = vld [vmem:[%s6347_s30 + $0x1a0] sm:$0xff]  ;;  %v368_v45 = vld [vmem:[%s6347_s30 + $0x1a8] sm:$0xff] }
  0xc7   : > { %5228 = vmatpush1.bf16.msra.mxu0 %v5227_v47  ;;  %1046 = vperm.xlu1 %5738, %v960_v55   ;;  %v555_v47 = vld [vmem:[#allocation7 + $0x380] sm:$0xff]  ;;  %v5143_v54 = vpack.c.bf16 %v368_v45, %v367_v44  ;;  %v974_v55 = vld [vmem:[%s8479_s2 + $0x98] sm:$0xff] }
  0xc8   : > { %1439 = vmatmul.mubr.f32.gmra.mrb[14].mxu1 %v499_v48  ;;  %5133 = vmatprep.subr.bf16.mxu1 %v6137_v0  ;;  %v431_v48 = vld [vmem:[%s6347_s30 + $0x3a0] sm:$0xff] }
  0xc9   : > { %2209 = vmatmul.mubr.f32.gmra.mrb[14].mxu0 %v503_v49  ;;  %1443 = vmatprep.mubr.f32.mxu1 %v508_v50  ;;  %v432_v49 = vld [vmem:[%s6347_s30 + $0x3a8] sm:$0xff]  ;;  %v559_v50 = vld [vmem:[#allocation7 + $0x3a0] sm:$0xff] }
  0xca   : > { %2213 = vmatprep.mubr.f32.mxu0 %v512_v51  ;;  %5229 = vmatprep.subr.bf16.mxu0 %v6137_v0  ;;  %v564_v51 = vld [vmem:[#allocation7 + $0x3c8] sm:$0xff]  ;;  %v599_v31 = vld [vmem:[#allocation7 + $0x4e0] sm:$0xff] }
  0xcb   : > { %1056 = vperm.xlu1 %5738, %v962_v1   ;;  %5135 = vmatpush1.bf16.msra.mxu1 %v5134_v63  ;;  %v370_v63 = vld [vmem:[%s6347_s30 + $0x1b8] sm:$0xff]  ;;  %v976_v1 = vld [vmem:[%s8479_s2 + $0xa8] sm:$0xff]  ;;  %v611_v44 = vld [vmem:[#allocation7 + $0x540] sm:$0xff] }
  0xcc   : > { %1444 = vmatmul.mubr.f32.gmra.mrb[16].mxu1 %v507_v56  ;;  %5231 = vmatpush1.bf16.msra.mxu0 %v5230_v2  ;;  %v5239_v56 = vpack.c.bf16 %v432_v49, %v431_v48  ;;  %v571_v2 = vld [vmem:[#allocation7 + $0x400] sm:$0xff]  ;;  %v5146_v9 = vpack.c.bf16 %v370_v63, %v369_v62  ;;  %v437_v48 = vld [vmem:[%s6347_s30 + $0x3d0] sm:$0xff]  ;;  %v438_v49 = vld [vmem:[%s6347_s30 + $0x3d8] sm:$0xff] }
  0xcd   : > { %2214 = vmatmul.mubr.f32.gmra.mrb[16].mxu0 %v511_v59  ;;  %1448 = vmatprep.mubr.f32.mxu1 %v516_v60  ;;  %v572_v59 = vld [vmem:[#allocation7 + $0x408] sm:$0xff]  ;;  %v615_v45 = vld [vmem:[#allocation7 + $0x560] sm:$0xff] }
  0xce   : > { %2218 = vmatprep.mubr.f32.mxu0 %v520_v61  ;;  %1061 = vperm.xlu0 %5737, %v963_v7   ;;  %v576_v60 = vld [vmem:[#allocation7 + $0x428] sm:$0xff]  ;;  %v975_v61 = vld [vmem:[%s8479_s2 + $0xa0] sm:$0xff] }
  0xcf   : > { %1066 = vperm.xlu1 %5738, %v964_v10   ;;  %5136 = vmatprep.subr.bf16.mxu1 %v6137_v0  ;;  %v584_v7 = vld [vmem:[#allocation7 + $0x468] sm:$0xff]  ;;  %v978_v10 = vld [vmem:[%s8479_s2 + $0xb8] sm:$0xff] }
  0xd0   : > { %1449 = vmatmul.mubr.f32.gmra.mrb[18].mxu1 %v515_v3  ;;  %5232 = vmatprep.subr.bf16.mxu0 %v6137_v0  ;;  %v433_v3 = vld [vmem:[%s6347_s30 + $0x3b0] sm:$0xff]  ;;  %v636_v62 = vld [vmem:[#allocation7 + $0x608] sm:$0xff] }
  0xd1   : > { %2219 = vmatmul.mubr.f32.gmra.mrb[18].mxu0 %v519_v4  ;;  %1453 = vmatprep.mubr.f32.mxu1 %v524_v5  ;;  %v434_v4 = vld [vmem:[%s6347_s30 + $0x3b8] sm:$0xff]  ;;  %v575_v5 = vld [vmem:[#allocation7 + $0x420] sm:$0xff]  ;;  %v640_v63 = vld [vmem:[#allocation7 + $0x628] sm:$0xff] }
  0xd2   : > { %2223 = vmatprep.mubr.f32.mxu0 %v528_v6  ;;  %1071 = vperm.xlu0 %5737, %v965_v17   ;;  %v580_v6 = vld [vmem:[#allocation7 + $0x448] sm:$0xff]  ;;  %v371_v17 = vld [vmem:[%s6347_s30 + $0x1c0] sm:$0xff] }
  0xd3   : > { %1076 = vperm.xlu1 %5738, %v966_v19   ;;  %5138 = vmatpush1.bf16.msra.mxu1 %v5137_v18  ;;  %v372_v18 = vld [vmem:[%s6347_s30 + $0x1c8] sm:$0xff] }
  0xd4   : > { %1454 = vmatmul.mubr.f32.gmra.mrb[20].mxu1 %v523_v11  ;;  %5234 = vmatpush1.bf16.msra.mxu0 %v5233_v20  ;;  %v5242_v11 = vpack.c.bf16 %v434_v4, %v433_v3  ;;  %v980_v19 = vld [vmem:[%s8479_s2 + $0xc8] sm:$0xff]  ;;  %v587_v20 = vld [vmem:[#allocation7 + $0x480] sm:$0xff]  ;;  %v5149_v27 = vpack.c.bf16 %v372_v18, %v371_v17 }
  0xd5   : > { %2224 = vmatmul.mubr.f32.gmra.mrb[20].mxu0 %v527_v14  ;;  %1458 = vmatprep.mubr.f32.mxu1 %v532_v15  ;;  %v588_v14 = vld [vmem:[#allocation7 + $0x488] sm:$0xff]  ;;  %v375_v3 = vld [vmem:[%s6347_s30 + $0x1e0] sm:$0xff] }
  0xd6   : > { %2228 = vmatprep.mubr.f32.mxu0 %v536_v16  ;;  %1081 = vperm.xlu0 %5737, %v967_v25   ;;  %v592_v15 = vld [vmem:[#allocation7 + $0x4a8] sm:$0xff]  ;;  %v979_v16 = vld [vmem:[%s8479_s2 + $0xc0] sm:$0xff] }
  0xd7   : > { %1086 = vperm.xlu1 %5738, %v968_v28   ;;  %5139 = vmatprep.subr.bf16.mxu1 %v6137_v0  ;;  %v600_v25 = vld [vmem:[#allocation7 + $0x4e8] sm:$0xff]  ;;  %v982_v28 = vld [vmem:[%s8479_s2 + $0xd8] sm:$0xff]  ;;  %v635_v4 = vld [vmem:[#allocation7 + $0x600] sm:$0xff] }
  0xd8   : > { %1459 = vmatmul.mubr.f32.gmra.mrb[22].mxu1 %v531_v21  ;;  %5235 = vmatprep.subr.bf16.mxu0 %v6137_v0  ;;  %v435_v21 = vld [vmem:[%s6347_s30 + $0x3c0] sm:$0xff]  ;;  %v656_v17 = vld [vmem:[#allocation7 + $0x6a8] sm:$0xff] }
  0xd9   : > { %2229 = vmatmul.mubr.f32.gmra.mrb[22].mxu0 %v535_v22  ;;  %1463 = vmatprep.mubr.f32.mxu1 %v540_v23  ;;  %v436_v22 = vld [vmem:[%s6347_s30 + $0x3c8] sm:$0xff]  ;;  %v591_v23 = vld [vmem:[#allocation7 + $0x4a0] sm:$0xff] }
  0xda   : > { %2233 = vmatprep.mubr.f32.mxu0 %v544_v24  ;;  %1091 = vperm.xlu0 %5737, %v969_v35   ;;  %v596_v24 = vld [vmem:[#allocation7 + $0x4c8] sm:$0xff]  ;;  %v995_v18 = vld [vmem:[%s8479_s2 + $0x140] sm:$0xff] }
  0xdb   : > { %1096 = vperm.xlu1 %5738, %v970_v37   ;;  %5141 = vmatpush1.bf16.msra.mxu1 %v5140_v36  ;;  %v984_v35 = vld [vmem:[%s8479_s2 + $0xe8] sm:$0xff]  ;;  %v373_v36 = vld [vmem:[%s6347_s30 + $0x1d0] sm:$0xff]  ;;  %v603_v37 = vld [vmem:[#allocation7 + $0x500] sm:$0xff] }
  0xdc   : > { %1464 = vmatmul.mubr.f32.gmra.mrb[24].mxu1 %v539_v29  ;;  %5237 = vmatpush1.bf16.msra.mxu0 %v5236_v38  ;;  %v5245_v29 = vpack.c.bf16 %v436_v22, %v435_v21  ;;  %v374_v38 = vld [vmem:[%s6347_s30 + $0x1d8] sm:$0xff]  ;;  %v651_v21 = vld [vmem:[#allocation7 + $0x680] sm:$0xff] }
  0xdd   : > { %2234 = vmatmul.mubr.f32.gmra.mrb[24].mxu0 %v543_v32  ;;  %1468 = vmatprep.mubr.f32.mxu1 %v548_v33  ;;  %v604_v32 = vld [vmem:[#allocation7 + $0x508] sm:$0xff]  ;;  %v655_v22 = vld [vmem:[#allocation7 + $0x6a0] sm:$0xff] }
  0xde   : > { %2238 = vmatprep.mubr.f32.mxu0 %v552_v34  ;;  %1101 = vperm.xlu0 %5737, %v971_v43   ;;  %v608_v33 = vld [vmem:[#allocation7 + $0x528] sm:$0xff]  ;;  %v983_v34 = vld [vmem:[%s8479_s2 + $0xe0] sm:$0xff]  ;;  %v986_v43 = vld [vmem:[%s8479_s2 + $0xf8] sm:$0xff] }
  0xdf   : > { %1106 = vperm.xlu1 %5738, %v972_v46   ;;  %5142 = vmatprep.subr.bf16.mxu1 %v6137_v0  ;;  %v5152_v46 = vpack.c.bf16 %v374_v38, %v373_v36  ;;  %v676_v36 = vld [vmem:[#allocation7 + $0x748] sm:$0xff]  ;;  %v1001_v38 = vld [vmem:[%s8479_s2 + $0x170] sm:$0xff] }
  0xe0   : > { %1469 = vmatmul.mubr.f32.gmra.mrb[26].mxu1 %v547_v39  ;;  %5238 = vmatprep.subr.bf16.mxu0 %v6137_v0  ;;  %v607_v39 = vld [vmem:[#allocation7 + $0x520] sm:$0xff] }
  0xe1   : > { %2239 = vmatmul.mubr.f32.gmra.mrb[26].mxu0 %v551_v40  ;;  %1473 = vmatprep.mubr.f32.mxu1 %v556_v41  ;;  %v612_v40 = vld [vmem:[#allocation7 + $0x548] sm:$0xff] }
  0xe2   : > { %2243 = vmatprep.mubr.f32.mxu0 %v560_v42  ;;  %1111 = vperm.xlu0 %5737, %v973_v53   ;;  %v616_v41 = vld [vmem:[#allocation7 + $0x568] sm:$0xff]  ;;  %v985_v42 = vld [vmem:[%s8479_s2 + $0xf0] sm:$0xff] }
  0xe3   : > { %1116 = vperm.xlu1 %5738, %v974_v55   ;;  %5144 = vmatpush1.bf16.msra.mxu1 %v5143_v54  ;;  %v988_v53 = vld [vmem:[%s8479_s2 + $0x108] sm:$0xff]  ;;  %v619_v54 = vld [vmem:[#allocation7 + $0x580] sm:$0xff] }
  0xe4   : > { %1474 = vmatmul.mubr.f32.gmra.mrb[28].mxu1 %v555_v47  ;;  %5240 = vmatpush1.bf16.msra.mxu0 %v5239_v56  ;;  %v620_v47 = vld [vmem:[#allocation7 + $0x588] sm:$0xff]  ;;  %v623_v55 = vld [vmem:[#allocation7 + $0x5a0] sm:$0xff] }
  0xe5   : > { %2244 = vmatmul.mubr.f32.gmra.mrb[28].mxu0 %v559_v50  ;;  %1478 = vmatprep.mubr.f32.mxu1 %v564_v51  ;;  %v624_v50 = vld [vmem:[#allocation7 + $0x5a8] sm:$0xff]  ;;  %v987_v51 = vld [vmem:[%s8479_s2 + $0x100] sm:$0xff] }
  0xe6   : > { %2248 = vmatprep.mubr.f32.mxu0 %v568_v52  ;;  %1121 = vperm.xlu0 %5737, %v975_v61   ;;  %v5248_v52 = vpack.c.bf16 %v438_v49, %v437_v48  ;;  %v628_v56 = vld [vmem:[#allocation7 + $0x5c8] sm:$0xff]  ;;  %v631_v61 = vld [vmem:[#allocation7 + $0x5e0] sm:$0xff] }
  0xe7   : > { %1126 = vperm.xlu1 %5738, %v976_v1   ;;  %5145 = vmatprep.subr.bf16.mxu1 %v6137_v0  ;;  %v991_v1 = vld [vmem:[%s8479_s2 + $0x120] sm:$0xff]  ;;  %v1004_v49 = vld [vmem:[%s8479_s2 + $0x188] sm:$0xff] }
  0xe8   : > { %1479 = vmatmul.mubr.f32.gmra.mrb[30].mxu1 %v563_v57  ;;  %5241 = vmatprep.subr.bf16.mxu0 %v6137_v0  ;;  %v632_v57 = vld [vmem:[#allocation7 + $0x5e8] sm:$0xff] }
  0xe9   : > { %2249 = vmatmul.mubr.f32.gmra.mrb[30].mxu0 %v567_v58  ;;  %1483 = vmatprep.mubr.f32.mxu1 %v572_v59  ;;  %v989_v58 = vld [vmem:[%s8479_s2 + $0x110] sm:$0xff]  ;;  %v990_v59 = vld [vmem:[%s8479_s2 + $0x118] sm:$0xff] }
  0xea   : > { %2253 = vmatprep.mubr.f32.mxu0 %v576_v60  ;;  %1131 = vperm.xlu0 %5737, %v977_v8   ;;  %v627_v60 = vld [vmem:[#allocation7 + $0x5c0] sm:$0xff]  ;;  %v648_v8 = vld [vmem:[#allocation7 + $0x668] sm:$0xff] }
  0xeb   : > { %1136 = vperm.xlu1 %5738, %v978_v10   ;;  %5147 = vmatpush1.bf16.msra.mxu1 %v5146_v9  ;;  %v993_v9 = vld [vmem:[%s8479_s2 + $0x130] sm:$0xff]  ;;  %v994_v10 = vld [vmem:[%s8479_s2 + $0x138] sm:$0xff] }
  0xec   : > { %1484 = vmatmul.mubr.f32.gmra.mrb[32].mxu1 %v571_v2  ;;  %5243 = vmatpush1.bf16.msra.mxu0 %v5242_v11  ;;  %v992_v2 = vld [vmem:[%s8479_s2 + $0x128] sm:$0xff]  ;;  %v643_v11 = vld [vmem:[#allocation7 + $0x640] sm:$0xff] }
  0xed   : > { %2254 = vmatmul.mubr.f32.gmra.mrb[32].mxu0 %v575_v5  ;;  %1488 = vmatprep.mubr.f32.mxu1 %v580_v6  ;;  %v376_v5 = vld [vmem:[%s6347_s30 + $0x1e8] sm:$0xff]  ;;  %v639_v6 = vld [vmem:[#allocation7 + $0x620] sm:$0xff] }
  0xee   : > { %2258 = vmatprep.mubr.f32.mxu0 %v584_v7  ;;  %1141 = vperm.xlu0 %5737, %v979_v16   ;;  %v644_v7 = vld [vmem:[#allocation7 + $0x648] sm:$0xff] }
  0xef   : > { %1146 = vperm.xlu1 %5738, %v980_v19   ;;  %5148 = vmatprep.subr.bf16.mxu1 %v6137_v0  ;;  %v440_v16 = vld [vmem:[%s6347_s30 + $0x3e8] sm:$0xff] }
  0xf0   : > { %1489 = vmatmul.mubr.f32.gmra.mrb[34].mxu1 %v579_v12  ;;  %5244 = vmatprep.subr.bf16.mxu0 %v6137_v0  ;;  %v647_v12 = vld [vmem:[#allocation7 + $0x660] sm:$0xff] }
  0xf1   : > { %2259 = vmatmul.mubr.f32.gmra.mrb[34].mxu0 %v583_v13  ;;  %1493 = vmatprep.mubr.f32.mxu1 %v588_v14  ;;  %v5155_v13 = vpack.c.bf16 %v376_v5, %v375_v3  ;;  %v652_v14 = vld [vmem:[#allocation7 + $0x688] sm:$0xff]  ;;  %v1009_v3 = vld [vmem:[%s8479_s2 + $0x1b0] sm:$0xff]  ;;  %v707_v5 = vld [vmem:[#allocation7 + $0x840] sm:$0xff] }
  0xf2   : > { %2263 = vmatprep.mubr.f32.mxu0 %v592_v15  ;;  %1151 = vperm.xlu0 %5737, %v981_v26   ;;  %v439_v15 = vld [vmem:[%s6347_s30 + $0x3e0] sm:$0xff]  ;;  %v998_v26 = vld [vmem:[%s8479_s2 + $0x158] sm:$0xff] }
  0xf3   : > { %1156 = vperm.xlu1 %5738, %v982_v28   ;;  %5150 = vmatpush1.bf16.msra.mxu1 %v5149_v27  ;;  %v5251_v19 = vpack.c.bf16 %v440_v16, %v439_v15  ;;  %v659_v27 = vld [vmem:[#allocation7 + $0x6c0] sm:$0xff]  ;;  %v1013_v15 = vld [vmem:[%s8479_s2 + $0x1d0] sm:$0xff]  ;;  %v1014_v16 = vld [vmem:[%s8479_s2 + $0x1d8] sm:$0xff] }
  0xf4   : > { %1494 = vmatmul.mubr.f32.gmra.mrb[36].mxu1 %v587_v20  ;;  %5246 = vmatpush1.bf16.msra.mxu0 %v5245_v29  ;;  %v996_v20 = vld [vmem:[%s8479_s2 + $0x148] sm:$0xff]  ;;  %v663_v28 = vld [vmem:[#allocation7 + $0x6e0] sm:$0xff] }
  0xf5   : > { %2264 = vmatmul.mubr.f32.gmra.mrb[36].mxu0 %v591_v23  ;;  %1498 = vmatprep.mubr.f32.mxu1 %v596_v24  ;;  %v660_v23 = vld [vmem:[#allocation7 + $0x6c8] sm:$0xff] }
  0xf6   : > { %2268 = vmatprep.mubr.f32.mxu0 %v600_v25  ;;  %1161 = vperm.xlu0 %5737, %v983_v34   ;;  %v664_v24 = vld [vmem:[#allocation7 + $0x6e8] sm:$0xff]  ;;  %v997_v25 = vld [vmem:[%s8479_s2 + $0x150] sm:$0xff]  ;;  %v378_v34 = vld [vmem:[%s6347_s30 + $0x1f8] sm:$0xff] }
  0xf7   : > { %1166 = vperm.xlu1 %5738, %v984_v35   ;;  %5151 = vmatprep.subr.bf16.mxu1 %v6137_v0  ;;  %v668_v29 = vld [vmem:[#allocation7 + $0x708] sm:$0xff]  ;;  %v671_v35 = vld [vmem:[#allocation7 + $0x720] sm:$0xff] }
  0xf8   : > { %1499 = vmatmul.mubr.f32.gmra.mrb[38].mxu1 %v595_v30  ;;  %5247 = vmatprep.subr.bf16.mxu0 %v6137_v0  ;;  %v672_v30 = vld [vmem:[#allocation7 + $0x728] sm:$0xff] }
  0xf9   : > { %2269 = vmatmul.mubr.f32.gmra.mrb[38].mxu0 %v599_v31  ;;  %1503 = vmatprep.mubr.f32.mxu1 %v604_v32  ;;  %v999_v31 = vld [vmem:[%s8479_s2 + $0x160] sm:$0xff]  ;;  %v1000_v32 = vld [vmem:[%s8479_s2 + $0x168] sm:$0xff] }
  0xfa   : > { %2273 = vmatprep.mubr.f32.mxu0 %v608_v33  ;;  %1171 = vperm.xlu0 %5737, %v985_v42   ;;  %v667_v33 = vld [vmem:[#allocation7 + $0x700] sm:$0xff] }
  0xfb   : > { %1176 = vperm.xlu1 %5738, %v986_v43   ;;  %5153 = vmatpush1.bf16.msra.mxu1 %v5152_v46  ;;  %v684_v43 = vld [vmem:[#allocation7 + $0x788] sm:$0xff] }
  0xfc   : > { %1504 = vmatmul.mubr.f32.gmra.mrb[40].mxu1 %v603_v37  ;;  %5154 = vmatprep.subr.bf16.mxu1 %v6137_v0  ;;  %v680_v37 = vld [vmem:[#allocation7 + $0x768] sm:$0xff] }
  0xfd   : > { %2274 = vmatmul.mubr.f32.gmra.mrb[40].mxu0 %v607_v39  ;;  %1508 = vmatprep.mubr.f32.mxu1 %v612_v40  ;;  %v1002_v39 = vld [vmem:[%s8479_s2 + $0x178] sm:$0xff]  ;;  %v675_v40 = vld [vmem:[#allocation7 + $0x740] sm:$0xff]  ;;  %v688_v46 = vld [vmem:[#allocation7 + $0x7a8] sm:$0xff] }
  0xfe   : > { %2278 = vmatprep.mubr.f32.mxu0 %v616_v41  ;;  %1181 = vperm.xlu0 %5737, %v987_v51   ;;  %v679_v41 = vld [vmem:[#allocation7 + $0x760] sm:$0xff] }
  0xff   : > { %1186 = vperm.xlu1 %5738, %v988_v53   ;;  %5249 = vmatpush1.bf16.msra.mxu0 %v5248_v52  ;;  %v687_v51 = vld [vmem:[#allocation7 + $0x7a0] sm:$0xff]  ;;  %v692_v52 = vld [vmem:[#allocation7 + $0x7c8] sm:$0xff] }
 0x100   : > { %1509 = vmatmul.mubr.f32.gmra.mrb[42].mxu1 %v611_v44  ;;  %5250 = vmatprep.subr.bf16.mxu0 %v6137_v0  ;;  %v441_v44 = vld [vmem:[%s6347_s30 + $0x3f0] sm:$0xff]  ;;  %v696_v53 = vld [vmem:[#allocation7 + $0x7e8] sm:$0xff] }
 0x101   : > { %2279 = vmatmul.mubr.f32.gmra.mrb[42].mxu0 %v615_v45  ;;  %1513 = vmatprep.mubr.f32.mxu1 %v620_v47  ;;  %v442_v45 = vld [vmem:[%s6347_s30 + $0x3f8] sm:$0xff]  ;;  %v1003_v47 = vld [vmem:[%s8479_s2 + $0x180] sm:$0xff] }
 0x102   : > { %2283 = vmatprep.mubr.f32.mxu0 %v624_v50  ;;  %1191 = vperm.xlu0 %5737, %v989_v58   ;;  %v5254_v48 = vpack.c.bf16 %v442_v45, %v441_v44  ;;  %v683_v50 = vld [vmem:[#allocation7 + $0x780] sm:$0xff]  ;;  %v700_v58 = vld [vmem:[#allocation7 + $0x808] sm:$0xff] }
 0x103   : > { %1196 = vperm.xlu1 %5738, %v990_v59   ;;  %5156 = vmatpush1.bf16.msra.mxu1 %v5155_v13  ;;  %v704_v59 = vld [vmem:[#allocation7 + $0x828] sm:$0xff]  ;;  %v2947_v44 = vld [vmem:[%s8480_s3 + $0x20] sm:$0xff] }
 0x104   : > { %1514 = vmatmul.mubr.f32.gmra.mrb[44].mxu1 %v619_v54  ;;  %5157 = vmatprep.subr.bf16.mxu1 %v6137_v0  ;;  %v1005_v54 = vld [vmem:[%s8479_s2 + $0x190] sm:$0xff]  ;;  %v724_v13 = vld [vmem:[#allocation7 + $0x8c8] sm:$0xff] }
 0x105   : > { %2284 = vmatmul.mubr.f32.gmra.mrb[44].mxu0 %v623_v55  ;;  %1518 = vmatprep.mubr.f32.mxu1 %v628_v56  ;;  %v1006_v55 = vld [vmem:[%s8479_s2 + $0x198] sm:$0xff]  ;;  %v691_v56 = vld [vmem:[#allocation7 + $0x7c0] sm:$0xff]  ;;  %v2948_v45 = vld [vmem:[%s8480_s3 + $0x28] sm:$0xff] }
 0x106   : > { %2288 = vmatprep.mubr.f32.mxu0 %v632_v57  ;;  %1201 = vperm.xlu0 %5737, %v991_v1   ;;  %v695_v57 = vld [vmem:[#allocation7 + $0x7e0] sm:$0xff]  ;;  %v708_v1 = vld [vmem:[#allocation7 + $0x848] sm:$0xff] }
 0x107   : > { %1206 = vperm.xlu1 %5738, %v992_v2   ;;  %5252 = vmatpush1.bf16.msra.mxu0 %v5251_v19  ;;  %v712_v2 = vld [vmem:[#allocation7 + $0x868] sm:$0xff] }
 0x108   : > { %1519 = vmatmul.mubr.f32.gmra.mrb[46].mxu1 %v627_v60  ;;  %5253 = vmatprep.subr.bf16.mxu0 %v6137_v0  ;;  %v377_v0 = vld [vmem:[%s6347_s30 + $0x1f0] sm:$0xff]  ;;  %v1007_v60 = vld [vmem:[%s8479_s2 + $0x1a0] sm:$0xff]  ;;  %v732_v19 = vld [vmem:[#allocation7 + $0x908] sm:$0xff] }
 0x109   : > { %2289 = vmatmul.mubr.f32.gmra.mrb[46].mxu0 %v631_v61  ;;  %1523 = vmatprep.mubr.f32.mxu1 %v636_v62  ;;  %v5158_v42 = vpack.c.bf16 %v378_v34, %v377_v0  ;;  %v1008_v61 = vld [vmem:[%s8479_s2 + $0x1a8] sm:$0xff]  ;;  %v699_v62 = vld [vmem:[#allocation7 + $0x800] sm:$0xff] }
 0x10a   : > { %2293 = vmatprep.mubr.f32.mxu0 %v640_v63  ;;  %1211 = vperm.xlu0 %5737, %v993_v9   ;;  %v703_v63 = vld [vmem:[#allocation7 + $0x820] sm:$0xff] }
 0x10b   : > { %1216 = vperm.xlu1 %5738, %v994_v10   ;;  %5159 = vmatpush1.bf16.msra.mxu1 %v5158_v42  ;;  %v1011_v9 = vld [vmem:[%s8479_s2 + $0x1c0] sm:$0xff]  ;;  %v1012_v10 = vld [vmem:[%s8479_s2 + $0x1c8] sm:$0xff] }
 0x10c   : > { %1524 = vmatmul.mubr.f32.gmra.mrb[48].mxu1 %v635_v4  ;;  %5255 = vmatpush1.bf16.msra.mxu0 %v5254_v48  ;;  %v1010_v4 = vld [vmem:[%s8479_s2 + $0x1b8] sm:$0xff]  ;;  %v2943_v0 = vld [vmem:[%s8480_s3] sm:$0xff]  ;;  %v764_v42 = vld [vmem:[#allocation7 + $0xa08] sm:$0xff] }
 0x10d   : > { %2294 = vmatmul.mubr.f32.gmra.mrb[48].mxu0 %v639_v6  ;;  %1528 = vmatprep.mubr.f32.mxu1 %v644_v7  ;;  %v711_v6 = vld [vmem:[#allocation7 + $0x860] sm:$0xff]  ;;  %v716_v7 = vld [vmem:[#allocation7 + $0x888] sm:$0xff] }
 0x10e   : > { %2298 = vmatprep.mubr.f32.mxu0 %v648_v8  ;;  %1221 = vperm.xlu0 %5737, %v995_v18   ;;  %v720_v8 = vld [vmem:[#allocation7 + $0x8a8] sm:$0xff]  ;;  %v727_v18 = vld [vmem:[#allocation7 + $0x8e0] sm:$0xff] }
 0x10f   : > { %1226 = vperm.xlu1 %5738, %v996_v20   ;;  %v736_v20 = vld [vmem:[#allocation7 + $0x928] sm:$0xff]  ;;  %v747_v34 = vld [vmem:[#allocation7 + $0x980] sm:$0xff] }
 0x110   : > { %1529 = vmatmul.mubr.f32.gmra.mrb[50].mxu1 %v643_v11  ;;  %v715_v11 = vld [vmem:[#allocation7 + $0x880] sm:$0xff]  ;;  %v772_v48 = vld [vmem:[#allocation7 + $0xa48] sm:$0xff] }
 0x111   : > { %2299 = vmatmul.mubr.f32.gmra.mrb[50].mxu0 %v647_v12  ;;  %1533 = vmatprep.mubr.f32.mxu1 %v652_v14  ;;  %v719_v12 = vld [vmem:[#allocation7 + $0x8a0] sm:$0xff]  ;;  %v728_v14 = vld [vmem:[#allocation7 + $0x8e8] sm:$0xff] }
 0x112   : > { %2303 = vmatprep.mubr.f32.mxu0 %v656_v17  ;;  %1231 = vperm.xlu0 %5737, %v997_v25   ;;  %v723_v17 = vld [vmem:[#allocation7 + $0x8c0] sm:$0xff]  ;;  %v740_v25 = vld [vmem:[#allocation7 + $0x948] sm:$0xff] }
 0x113   : > { %1236 = vperm.xlu1 %5738, %v998_v26   ;;  %v744_v26 = vld [vmem:[#allocation7 + $0x968] sm:$0xff] }
 0x114   : > { %1534 = vmatmul.mubr.f32.gmra.mrb[52].mxu1 %v651_v21  ;;  %v1015_v21 = vld [vmem:[%s8479_s2 + $0x1e0] sm:$0xff] }
 0x115   : > { %2304 = vmatmul.mubr.f32.gmra.mrb[52].mxu0 %v655_v22  ;;  %1538 = vmatprep.mubr.f32.mxu1 %v660_v23  ;;  %v1016_v22 = vld [vmem:[%s8479_s2 + $0x1e8] sm:$0xff]  ;;  %v731_v23 = vld [vmem:[#allocation7 + $0x900] sm:$0xff] }
 0x116   : > { %2308 = vmatprep.mubr.f32.mxu0 %v664_v24  ;;  %1241 = vperm.xlu0 %5737, %v999_v31   ;;  %v735_v24 = vld [vmem:[#allocation7 + $0x920] sm:$0xff]  ;;  %v748_v31 = vld [vmem:[#allocation7 + $0x988] sm:$0xff] }
 0x117   : > { %1246 = vperm.xlu1 %5738, %v1000_v32   ;;  %v752_v32 = vld [vmem:[#allocation7 + $0x9a8] sm:$0xff] }
 0x118   : > { %1539 = vmatmul.mubr.f32.gmra.mrb[54].mxu1 %v659_v27  ;;  %v1017_v27 = vld [vmem:[%s8479_s2 + $0x1f0] sm:$0xff] }
 0x119   : > { %2309 = vmatmul.mubr.f32.gmra.mrb[54].mxu0 %v663_v28  ;;  %1543 = vmatprep.mubr.f32.mxu1 %v668_v29  ;;  %v1018_v28 = vld [vmem:[%s8479_s2 + $0x1f8] sm:$0xff]  ;;  %v739_v29 = vld [vmem:[#allocation7 + $0x940] sm:$0xff] }
 0x11a   : > { %2313 = vmatprep.mubr.f32.mxu0 %v672_v30  ;;  %1251 = vperm.xlu0 %5737, %v1001_v38   ;;  %v743_v30 = vld [vmem:[#allocation7 + $0x960] sm:$0xff]  ;;  %v2945_v38 = vld [vmem:[%s8480_s3 + $0x10] sm:$0xff] }
 0x11b   : > { %1256 = vperm.xlu1 %5738, %v1002_v39   ;;  %v2946_v39 = vld [vmem:[%s8480_s3 + $0x18] sm:$0xff] }
 0x11c   : > { %1544 = vmatmul.mubr.f32.gmra.mrb[56].mxu1 %v667_v33  ;;  %v2944_v33 = vld [vmem:[%s8480_s3 + $0x8] sm:$0xff] }
 0x11d   : > { %2314 = vmatmul.mubr.f32.gmra.mrb[56].mxu0 %v671_v35  ;;  %1548 = vmatprep.mubr.f32.mxu1 %v676_v36  ;;  %v751_v35 = vld [vmem:[#allocation7 + $0x9a0] sm:$0xff]  ;;  %v756_v36 = vld [vmem:[#allocation7 + $0x9c8] sm:$0xff] }
 0x11e   : > { %2318 = vmatprep.mubr.f32.mxu0 %v680_v37  ;;  %1261 = vperm.xlu0 %5737, %v1003_v47   ;;  %v760_v37 = vld [vmem:[#allocation7 + $0x9e8] sm:$0xff]  ;;  %v767_v47 = vld [vmem:[#allocation7 + $0xa20] sm:$0xff] }
 0x11f   : > { %1266 = vperm.xlu1 %5738, %v1004_v49   ;;  %v776_v49 = vld [vmem:[#allocation7 + $0xa68] sm:$0xff] }
 0x120   : > { %1549 = vmatmul.mubr.f32.gmra.mrb[58].mxu1 %v675_v40  ;;  %v755_v40 = vld [vmem:[#allocation7 + $0x9c0] sm:$0xff] }
 0x121   : > { %2319 = vmatmul.mubr.f32.gmra.mrb[58].mxu0 %v679_v41  ;;  %1553 = vmatprep.mubr.f32.mxu1 %v684_v43  ;;  %v759_v41 = vld [vmem:[#allocation7 + $0x9e0] sm:$0xff]  ;;  %v768_v43 = vld [vmem:[#allocation7 + $0xa28] sm:$0xff] }
 0x122   : > { %2323 = vmatprep.mubr.f32.mxu0 %v688_v46  ;;  %1271 = vperm.xlu0 %5737, %v1005_v54   ;;  %v763_v46 = vld [vmem:[#allocation7 + $0xa00] sm:$0xff]  ;;  %v780_v54 = vld [vmem:[#allocation7 + $0xa88] sm:$0xff] }
 0x123   : > { %1276 = vperm.xlu1 %5738, %v1006_v55   ;;  %v784_v55 = vld [vmem:[#allocation7 + $0xaa8] sm:$0xff] }
 0x124   : > { %1554 = vmatmul.mubr.f32.gmra.mrb[60].mxu1 %v683_v50  ;;  %v2949_v50 = vld [vmem:[%s8480_s3 + $0x30] sm:$0xff] }
 0x125   : > { %2324 = vmatmul.mubr.f32.gmra.mrb[60].mxu0 %v687_v51  ;;  %1558 = vmatprep.mubr.f32.mxu1 %v692_v52  ;;  %v2950_v51 = vld [vmem:[%s8480_s3 + $0x38] sm:$0xff]  ;;  %v771_v52 = vld [vmem:[#allocation7 + $0xa40] sm:$0xff] }
 0x126   : > { %2328 = vmatprep.mubr.f32.mxu0 %v696_v53  ;;  %1281 = vperm.xlu0 %5737, %v1007_v60   ;;  %v775_v53 = vld [vmem:[#allocation7 + $0xa60] sm:$0xff]  ;;  %v788_v60 = vld [vmem:[#allocation7 + $0xac8] sm:$0xff] }
 0x127   : > { %1286 = vperm.xlu1 %5738, %v1008_v61   ;;  %v792_v61 = vld [vmem:[#allocation7 + $0xae8] sm:$0xff] }
 0x128   : > { %1559 = vmatmul.mubr.f32.gmra.mrb[62].mxu1 %v691_v56  ;;  %v2951_v56 = vld [vmem:[%s8480_s3 + $0x40] sm:$0xff] }
 0x129   : > { %2329 = vmatmul.mubr.f32.gmra.mrb[62].mxu0 %v695_v57  ;;  %1563 = vmatprep.mubr.f32.mxu1 %v700_v58  ;;  %v2952_v57 = vld [vmem:[%s8480_s3 + $0x48] sm:$0xff]  ;;  %v779_v58 = vld [vmem:[#allocation7 + $0xa80] sm:$0xff] }
 0x12a   : > { %2333 = vmatprep.mubr.f32.mxu0 %v704_v59  ;;  %1291 = vperm.xlu0 %5737, %v1009_v3   ;;  %v783_v59 = vld [vmem:[#allocation7 + $0xaa0] sm:$0xff]  ;;  %v796_v3 = vld [vmem:[#allocation7 + $0xb08] sm:$0xff] }
 0x12b   : > { %1296 = vperm.xlu1 %5738, %v1010_v4   ;;  %v800_v4 = vld [vmem:[#allocation7 + $0xb28] sm:$0xff] }
 0x12c   : > { %1564 = vmatmul.mubr.f32.gmra.mrb[64].mxu1 %v699_v62  ;;  %v2953_v62 = vld [vmem:[%s8480_s3 + $0x50] sm:$0xff] }
 0x12d   : > { %2334 = vmatmul.mubr.f32.gmra.mrb[64].mxu0 %v703_v63  ;;  %1568 = vmatprep.mubr.f32.mxu1 %v708_v1  ;;  %v2954_v63 = vld [vmem:[%s8480_s3 + $0x58] sm:$0xff]  ;;  %v787_v1 = vld [vmem:[#allocation7 + $0xac0] sm:$0xff] }
 0x12e   : > { %2338 = vmatprep.mubr.f32.mxu0 %v712_v2  ;;  %1301 = vperm.xlu0 %5737, %v1011_v9   ;;  %v791_v2 = vld [vmem:[#allocation7 + $0xae0] sm:$0xff]  ;;  %v804_v9 = vld [vmem:[#allocation7 + $0xb48] sm:$0xff] }
 0x12f   : > { %1306 = vperm.xlu1 %5738, %v1012_v10   ;;  %v808_v10 = vld [vmem:[#allocation7 + $0xb68] sm:$0xff] }
 0x130   : > { %1569 = vmatmul.mubr.f32.gmra.mrb[66].mxu1 %v707_v5  ;;  %v2955_v5 = vld [vmem:[%s8480_s3 + $0x60] sm:$0xff] }
 0x131   : > { %2339 = vmatmul.mubr.f32.gmra.mrb[66].mxu0 %v711_v6  ;;  %1573 = vmatprep.mubr.f32.mxu1 %v716_v7  ;;  %v2956_v6 = vld [vmem:[%s8480_s3 + $0x68] sm:$0xff]  ;;  %v795_v7 = vld [vmem:[#allocation7 + $0xb00] sm:$0xff] }
 0x132   : > { %2343 = vmatprep.mubr.f32.mxu0 %v720_v8  ;;  %1311 = vperm.xlu0 %5737, %v1013_v15   ;;  %v799_v8 = vld [vmem:[#allocation7 + $0xb20] sm:$0xff]  ;;  %v812_v15 = vld [vmem:[#allocation7 + $0xb88] sm:$0xff] }
 0x133   : > { %1316 = vperm.xlu1 %5738, %v1014_v16   ;;  %v816_v16 = vld [vmem:[#allocation7 + $0xba8] sm:$0xff] }
 0x134   : > { %1574 = vmatmul.mubr.f32.gmra.mrb[68].mxu1 %v715_v11  ;;  %v2957_v11 = vld [vmem:[%s8480_s3 + $0x70] sm:$0xff] }
 0x135   : > { %2344 = vmatmul.mubr.f32.gmra.mrb[68].mxu0 %v719_v12  ;;  %1578 = vmatprep.mubr.f32.mxu1 %v724_v13  ;;  %v2958_v12 = vld [vmem:[%s8480_s3 + $0x78] sm:$0xff]  ;;  %v803_v13 = vld [vmem:[#allocation7 + $0xb40] sm:$0xff] }
 0x136   : > { %2348 = vmatprep.mubr.f32.mxu0 %v728_v14  ;;  %1321 = vperm.xlu0 %5737, %v1015_v21   ;;  %v807_v14 = vld [vmem:[#allocation7 + $0xb60] sm:$0xff]  ;;  %v820_v21 = vld [vmem:[#allocation7 + $0xbc8] sm:$0xff] }
 0x137   : > { %1326 = vperm.xlu1 %5738, %v1016_v22   ;;  %v824_v22 = vld [vmem:[#allocation7 + $0xbe8] sm:$0xff] }
 0x138   : > { %1579 = vmatmul.mubr.f32.gmra.mrb[70].mxu1 %v723_v17  ;;  %v2959_v17 = vld [vmem:[%s8480_s3 + $0x80] sm:$0xff] }
 0x139   : > { %2349 = vmatmul.mubr.f32.gmra.mrb[70].mxu0 %v727_v18  ;;  %1583 = vmatprep.mubr.f32.mxu1 %v732_v19  ;;  %v2960_v18 = vld [vmem:[%s8480_s3 + $0x88] sm:$0xff]  ;;  %v811_v19 = vld [vmem:[#allocation7 + $0xb80] sm:$0xff] }
 0x13a   : > { %2353 = vmatprep.mubr.f32.mxu0 %v736_v20  ;;  %1331 = vperm.xlu0 %5737, %v1017_v27   ;;  %v815_v20 = vld [vmem:[#allocation7 + $0xba0] sm:$0xff]  ;;  %v828_v27 = vld [vmem:[#allocation7 + $0xc08] sm:$0xff] }
 0x13b   : > { %1336 = vperm.xlu1 %5738, %v1018_v28   ;;  %v832_v28 = vld [vmem:[#allocation7 + $0xc28] sm:$0xff] }
 0x13c   : > { %1584 = vmatmul.mubr.f32.gmra.mrb[72].mxu1 %v731_v23  ;;  %v2961_v23 = vld [vmem:[%s8480_s3 + $0x90] sm:$0xff] }
 0x13d   : > { %2354 = vmatmul.mubr.f32.gmra.mrb[72].mxu0 %v735_v24  ;;  %1588 = vmatprep.mubr.f32.mxu1 %v740_v25  ;;  %v2962_v24 = vld [vmem:[%s8480_s3 + $0x98] sm:$0xff]  ;;  %v819_v25 = vld [vmem:[#allocation7 + $0xbc0] sm:$0xff] }
 0x13e   : > { %2358 = vmatprep.mubr.f32.mxu0 %v744_v26  ;;  %3009 = vperm.xlu0 %5737, %v2943_v0   ;;  %v823_v26 = vld [vmem:[#allocation7 + $0xbe0] sm:$0xff]  ;;  %v836_v0 = vld [vmem:[#allocation7 + $0xc48] sm:$0xff] }
 0x13f   : > { %3014 = vperm.xlu1 %5738, %v2944_v33   ;;  %v6814_v33 = vpop.permute.xlu0 %1021 }
 0x140   : > { %1589 = vmatmul.mubr.f32.gmra.mrb[74].mxu1 %v739_v29  ;;  %v2963_v29 = vld [vmem:[%s8480_s3 + $0xa0] sm:$0xff] }
 0x141   : > { %2359 = vmatmul.mubr.f32.gmra.mrb[74].mxu0 %v743_v30  ;;  %1593 = vmatprep.mubr.f32.mxu1 %v748_v31  ;;  %v2964_v30 = vld [vmem:[%s8480_s3 + $0xa8] sm:$0xff]  ;;  %v827_v31 = vld [vmem:[#allocation7 + $0xc00] sm:$0xff] }
 0x142   : > { %2363 = vmatprep.mubr.f32.mxu0 %v752_v32  ;;  %3019 = vperm.xlu0 %5737, %v2945_v38   ;;  %v831_v32 = vld [vmem:[#allocation7 + $0xc20] sm:$0xff] }
 0x143   : > { %3024 = vperm.xlu1 %5738, %v2946_v39   ;;  %v835_v38 = vld [vmem:[#allocation7 + $0xc40] sm:$0xff] }
 0x144   : > { %1594 = vmatmul.mubr.f32.gmra.mrb[76].mxu1 %v747_v34  ;;  %v840_v34 = vld [vmem:[#allocation7 + $0xc68] sm:$0xff]  ;;  %v839_v39 = vld [vmem:[#allocation7 + $0xc60] sm:$0xff] }
 0x145   : > { %2364 = vmatmul.mubr.f32.gmra.mrb[76].mxu0 %v751_v35  ;;  %1598 = vmatprep.mubr.f32.mxu1 %v756_v36  ;;  %v6816_v35 = vpop.permute.xlu1 %1031  ;;  %v2965_v36 = vld [vmem:[%s8480_s3 + $0xb0] sm:$0xff] }
 0x146   : > { %2368 = vmatprep.mubr.f32.mxu0 %v760_v37  ;;  %3029 = vperm.xlu0 %5737, %v2947_v44   ;;  %v2966_v37 = vld [vmem:[%s8480_s3 + $0xb8] sm:$0xff]  ;;  %v2968_v44 = vld [vmem:[%s8480_s3 + $0xc8] sm:$0xff] }
 0x147   : > { %3034 = vperm.xlu1 %5738, %v2948_v45   ;;  %v843_v45 = vld [vmem:[#allocation7 + $0xc80] sm:$0xff] }
 0x148   : > { %1599 = vmatmul.mubr.f32.gmra.mrb[78].mxu1 %v755_v40  ;;  %v844_v40 = vld [vmem:[#allocation7 + $0xc88] sm:$0xff] }
 0x149   : > { %2369 = vmatmul.mubr.f32.gmra.mrb[78].mxu0 %v759_v41  ;;  %1603 = vmatprep.mubr.f32.mxu1 %v764_v42  ;;  %v848_v41 = vld [vmem:[#allocation7 + $0xca8] sm:$0xff]  ;;  %v2967_v42 = vld [vmem:[%s8480_s3 + $0xc0] sm:$0xff] }
 0x14a   : > { %2373 = vmatprep.mubr.f32.mxu0 %v768_v43  ;;  %3039 = vperm.xlu0 %5737, %v2949_v50   ;;  %v6827_v43 = vpop.permute.xlu0 %1026  ;;  %v2969_v50 = vld [vmem:[%s8480_s3 + $0xd0] sm:$0xff] }
 0x14b   : > { %3044 = vperm.xlu1 %5738, %v2950_v51   ;;  %v2970_v51 = vld [vmem:[%s8480_s3 + $0xd8] sm:$0xff] }
 0x14c   : > { %1604 = vmatmul.mubr.f32.gmra.mrb[80].mxu1 %v763_v46  ;;  %v6832_v46 = vpop.permute.xlu1 %1036 }
 0x14d   : > { %2374 = vmatmul.mubr.f32.gmra.mrb[80].mxu0 %v767_v47  ;;  %1608 = vmatprep.mubr.f32.mxu1 %v772_v48  ;;  %v847_v47 = vld [vmem:[#allocation7 + $0xca0] sm:$0xff]  ;;  %v852_v48 = vld [vmem:[#allocation7 + $0xcc8] sm:$0xff] }
 0x14e   : > { %2378 = vmatprep.mubr.f32.mxu0 %v776_v49  ;;  %3049 = vperm.xlu0 %5737, %v2951_v56   ;;  %v856_v49 = vld [vmem:[#allocation7 + $0xce8] sm:$0xff] }
 0x14f   : > { %3054 = vperm.xlu1 %5738, %v2952_v57   ;;  %v864_v56 = vld [vmem:[#allocation7 + $0xd28] sm:$0xff] }
 0x150   : > { %1609 = vmatmul.mubr.f32.gmra.mrb[82].mxu1 %v771_v52  ;;  %v851_v52 = vld [vmem:[#allocation7 + $0xcc0] sm:$0xff]  ;;  %v6842_v57 = vpop.permute.xlu1 %1046 }
 0x151   : > { %2379 = vmatmul.mubr.f32.gmra.mrb[82].mxu0 %v775_v53  ;;  %1613 = vmatprep.mubr.f32.mxu1 %v780_v54  ;;  %v855_v53 = vld [vmem:[#allocation7 + $0xce0] sm:$0xff]  ;;  %v860_v54 = vld [vmem:[#allocation7 + $0xd08] sm:$0xff] }
 0x152   : > { %2383 = vmatprep.mubr.f32.mxu0 %v784_v55  ;;  %3059 = vperm.xlu0 %5737, %v2953_v62   ;;  %v6840_v55 = vpop.permute.xlu0 %1041  ;;  %v868_v62 = vld [vmem:[#allocation7 + $0xd48] sm:$0xff] }
 0x153   : > { %3064 = vperm.xlu1 %5738, %v2954_v63   ;;  %v872_v63 = vld [vmem:[#allocation7 + $0xd68] sm:$0xff] }
 0x154   : > { %1614 = vmatmul.mubr.f32.gmra.mrb[84].mxu1 %v779_v58  ;;  %v2971_v58 = vld [vmem:[%s8480_s3 + $0xe0] sm:$0xff] }
 0x155   : > { %2384 = vmatmul.mubr.f32.gmra.mrb[84].mxu0 %v783_v59  ;;  %1618 = vmatprep.mubr.f32.mxu1 %v788_v60  ;;  %v2972_v59 = vld [vmem:[%s8480_s3 + $0xe8] sm:$0xff]  ;;  %v859_v60 = vld [vmem:[#allocation7 + $0xd00] sm:$0xff] }
 0x156   : > { %2388 = vmatprep.mubr.f32.mxu0 %v792_v61  ;;  %3069 = vperm.xlu0 %5737, %v2955_v5   ;;  %v863_v61 = vld [vmem:[#allocation7 + $0xd20] sm:$0xff]  ;;  %v6858_v5 = vpop.permute.xlu1 %1056 }
 0x157   : > { %3074 = vperm.xlu1 %5738, %v2956_v6   ;;  %v871_v6 = vld [vmem:[#allocation7 + $0xd60] sm:$0xff] }
 0x158   : > { %1619 = vmatmul.mubr.f32.gmra.mrb[86].mxu1 %v787_v1  ;;  %v2973_v1 = vld [vmem:[%s8480_s3 + $0xf0] sm:$0xff] }
 0x159   : > { %2389 = vmatmul.mubr.f32.gmra.mrb[86].mxu0 %v791_v2  ;;  %1623 = vmatprep.mubr.f32.mxu1 %v796_v3  ;;  %v6853_v2 = vpop.permute.xlu0 %1051  ;;  %v2974_v3 = vld [vmem:[%s8480_s3 + $0xf8] sm:$0xff] }
 0x15a   : > { %2393 = vmatprep.mubr.f32.mxu0 %v800_v4  ;;  %3079 = vperm.xlu0 %5737, %v2957_v11   ;;  %v867_v4 = vld [vmem:[#allocation7 + $0xd40] sm:$0xff] }
 0x15b   : > { %3084 = vperm.xlu1 %5738, %v2958_v12   ;;  %v875_v11 = vld [vmem:[#allocation7 + $0xd80] sm:$0xff] }
 0x15c   : > { %1624 = vmatmul.mubr.f32.gmra.mrb[88].mxu1 %v795_v7  ;;  %v876_v7 = vld [vmem:[#allocation7 + $0xd88] sm:$0xff]  ;;  %v879_v12 = vld [vmem:[#allocation7 + $0xda0] sm:$0xff] }
 0x15d   : > { %2394 = vmatmul.mubr.f32.gmra.mrb[88].mxu0 %v799_v8  ;;  %1628 = vmatprep.mubr.f32.mxu1 %v804_v9  ;;  %v880_v8 = vld [vmem:[#allocation7 + $0xda8] sm:$0xff]  ;;  %v2975_v9 = vld [vmem:[%s8480_s3 + $0x100] sm:$0xff] }
 0x15e   : > { %2398 = vmatprep.mubr.f32.mxu0 %v808_v10  ;;  %3089 = vperm.xlu0 %5737, %v2959_v17   ;;  %v2976_v10 = vld [vmem:[%s8480_s3 + $0x108] sm:$0xff]  ;;  %v2977_v17 = vld [vmem:[%s8480_s3 + $0x110] sm:$0xff] }
 0x15f   : > { %3094 = vperm.xlu1 %5738, %v2960_v18   ;;  %v2978_v18 = vld [vmem:[%s8480_s3 + $0x118] sm:$0xff] }
 0x160   : > { %1629 = vmatmul.mubr.f32.gmra.mrb[90].mxu1 %v803_v13  ;;  %v884_v13 = vld [vmem:[#allocation7 + $0xdc8] sm:$0xff] }
 0x161   : > { %2399 = vmatmul.mubr.f32.gmra.mrb[90].mxu0 %v807_v14  ;;  %1633 = vmatprep.mubr.f32.mxu1 %v812_v15  ;;  %v6866_v14 = vpop.permute.xlu0 %1061  ;;  %v888_v15 = vld [vmem:[#allocation7 + $0xde8] sm:$0xff] }
 0x162   : > { %2403 = vmatprep.mubr.f32.mxu0 %v816_v16  ;;  %3099 = vperm.xlu0 %5737, %v2961_v23   ;;  %v6868_v16 = vpop.permute.xlu1 %1066  ;;  %v2979_v23 = vld [vmem:[%s8480_s3 + $0x120] sm:$0xff] }
 0x163   : > { %3104 = vperm.xlu1 %5738, %v2962_v24  }
 0x164   : > { %1634 = vmatmul.mubr.f32.gmra.mrb[92].mxu1 %v811_v19  ;;  %v883_v19 = vld [vmem:[#allocation7 + $0xdc0] sm:$0xff] }
 0x165   : > { %2404 = vmatmul.mubr.f32.gmra.mrb[92].mxu0 %v815_v20  ;;  %1638 = vmatprep.mubr.f32.mxu1 %v820_v21  ;;  %v887_v20 = vld [vmem:[#allocation7 + $0xde0] sm:$0xff]  ;;  %v892_v21 = vld [vmem:[#allocation7 + $0xe08] sm:$0xff]  ;;  %v6879_v24 = vpop.permute.xlu0 %1071 }
 0x166   : > { %2408 = vmatprep.mubr.f32.mxu0 %v824_v22  ;;  %3109 = vperm.xlu0 %5737, %v2963_v29   ;;  %v896_v22 = vld [vmem:[#allocation7 + $0xe28] sm:$0xff] }
 0x167   : > { %3114 = vperm.xlu1 %5738, %v2964_v30   ;;  %v900_v29 = vld [vmem:[#allocation7 + $0xe48] sm:$0xff] }
 0x168   : > { %1639 = vmatmul.mubr.f32.gmra.mrb[94].mxu1 %v819_v25  ;;  %v2980_v25 = vld [vmem:[%s8480_s3 + $0x128] sm:$0xff] }
 0x169   : > { %2409 = vmatmul.mubr.f32.gmra.mrb[94].mxu0 %v823_v26  ;;  %1643 = vmatprep.mubr.f32.mxu1 %v828_v27  ;;  %v891_v26 = vld [vmem:[#allocation7 + $0xe00] sm:$0xff]  ;;  %v6884_v27 = vpop.permute.xlu1 %1076  ;;  %v904_v30 = vld [vmem:[#allocation7 + $0xe68] sm:$0xff] }
 0x16a   : > { %2413 = vmatprep.mubr.f32.mxu0 %v832_v28  ;;  %3119 = vperm.xlu0 %5737, %v2965_v36   ;;  %v895_v28 = vld [vmem:[#allocation7 + $0xe20] sm:$0xff] }
 0x16b   : > { %3124 = vperm.xlu1 %5738, %v2966_v37   ;;  %v5746_v37 = vld [vmem:[%s6347_s30 + $0x8] sm:$0xff] }
 0x16c   : > { %1644 = vmatmul.mubr.f32.gmra.mrb[96].mxu1 %v827_v31  ;;  %v2981_v31 = vld [vmem:[%s8480_s3 + $0x130] sm:$0xff] }
 0x16d   : > { %2414 = vmatmul.mubr.f32.gmra.mrb[96].mxu0 %v831_v32  ;;  %1648 = vmatprep.mubr.f32.mxu1 %v836_v0  ;;  %v2982_v32 = vld [vmem:[%s8480_s3 + $0x138] sm:$0xff]  ;;  %v899_v0 = vld [vmem:[#allocation7 + $0xe40] sm:$0xff] }
 0x16e   : > { %2418 = vmatprep.mubr.f32.mxu0 %v840_v34  ;;  %3129 = vperm.xlu0 %5737, %v2967_v42   ;;  %v5745_v34 = vld [vmem:[%s6347_s30] sm:$0xff]  ;;  %v912_v42 = vld [vmem:[#allocation7 + $0xea8] sm:$0xff] }
 0x16f   : > { %3134 = vperm.xlu1 %5738, %v2968_v44   ;;  %v3479_v36 = vmul.f32 %v5745_v34, %v5745_v34  ;;  %v6896_v44 = vpop.permute.xlu1 %1086  ;;  %v939_v34 = vld [vmem:[#allocation7 + $0xf80] sm:$0xff] }
 0x170   : > { %1649 = vmatmul.mubr.f32.gmra.mrb[98].mxu1 %v835_v38  ;;  %v3480_v38 = vmul.f32 %v5746_v37, %v5746_v37 }
 0x171   : > { %2419 = vmatmul.mubr.f32.gmra.mrb[98].mxu0 %v839_v39  ;;  %1653 = vmatprep.mubr.f32.mxu1 %v844_v40  ;;  %v903_v39 = vld [vmem:[#allocation7 + $0xe60] sm:$0xff]  ;;  %v908_v40 = vld [vmem:[#allocation7 + $0xe88] sm:$0xff] }
 0x172   : > { %2423 = vmatprep.mubr.f32.mxu0 %v848_v41  ;;  %3139 = vperm.xlu0 %5737, %v2969_v50   ;;  %v6894_v41 = vpop.permute.xlu0 %1081  ;;  %v5747_v50 = vld [vmem:[%s6347_s30 + $0x10] sm:$0xff] }
 0x173   : > { %3144 = vperm.xlu1 %5738, %v2970_v51   ;;  %v3481_v51 = vmul.f32 %v5747_v50, %v5747_v50  ;;  %v5752_v50 = vld [vmem:[%s6347_s30 + $0x38] sm:$0xff] }
 0x174   : > { %1654 = vmatmul.mubr.f32.gmra.mrb[100].mxu1 %v843_v45  ;;  %v2983_v45 = vld [vmem:[%s8480_s3 + $0x140] sm:$0xff] }
 0x175   : > { %2424 = vmatmul.mubr.f32.gmra.mrb[100].mxu0 %v847_v47  ;;  %1658 = vmatprep.mubr.f32.mxu1 %v852_v48  ;;  %v2984_v47 = vld [vmem:[%s8480_s3 + $0x148] sm:$0xff]  ;;  %v907_v48 = vld [vmem:[#allocation7 + $0xe80] sm:$0xff] }
 0x176   : > { %2428 = vmatprep.mubr.f32.mxu0 %v856_v49  ;;  %3149 = vperm.xlu0 %5737, %v2971_v58   ;;  %v3607_v49 = vadd.f32 %v3480_v38, %v3479_v36  ;;  %v6908_v58 = vpop.permute.xlu0 %1091  ;;  %v5751_v38 = vld [vmem:[%s6347_s30 + $0x30] sm:$0xff] }
 0x177   : > { %3154 = vperm.xlu1 %5738, %v2972_v59   ;;  %v2986_v59 = vld [vmem:[%s8480_s3 + $0x158] sm:$0xff] }
 0x178   : > { %1659 = vmatmul.mubr.f32.gmra.mrb[102].mxu1 %v851_v52  ;;  %v911_v52 = vld [vmem:[#allocation7 + $0xea0] sm:$0xff] }
 0x179   : > { %2429 = vmatmul.mubr.f32.gmra.mrb[102].mxu0 %v855_v53  ;;  %1663 = vmatprep.mubr.f32.mxu1 %v860_v54  ;;  %v916_v53 = vld [vmem:[#allocation7 + $0xec8] sm:$0xff] }
 0x17a   : > { %2433 = vmatprep.mubr.f32.mxu0 %v864_v56  ;;  %3159 = vperm.xlu0 %5737, %v2973_v1   ;;  %v920_v54 = vld [vmem:[#allocation7 + $0xee8] sm:$0xff]  ;;  %v2985_v56 = vld [vmem:[%s8480_s3 + $0x150] sm:$0xff]  ;;  %v3608_v1 = vadd.f32 %v3607_v49, %v3481_v51  ;;  %v947_v49 = vld [vmem:[#allocation7 + $0xfc0] sm:$0xff]  ;;  %v3486_v51 = vmul.f32 %v5752_v50, %v5752_v50 }
 0x17b   : > { %3164 = vperm.xlu1 %5738, %v2974_v3   ;;  %v919_v3 = vld [vmem:[#allocation7 + $0xee0] sm:$0xff] }
 0x17c   : > { %1664 = vmatmul.mubr.f32.gmra.mrb[104].mxu1 %v859_v60  ;;  %v915_v60 = vld [vmem:[#allocation7 + $0xec0] sm:$0xff] }
 0x17d   : > { %2434 = vmatmul.mubr.f32.gmra.mrb[104].mxu0 %v863_v61  ;;  %1668 = vmatprep.mubr.f32.mxu1 %v868_v62  ;;  %v6913_v61 = vpop.permute.xlu1 %1096  ;;  %v5748_v62 = vld [vmem:[%s6347_s30 + $0x18] sm:$0xff] }
 0x17e   : > { %2438 = vmatprep.mubr.f32.mxu0 %v872_v63  ;;  %3169 = vperm.xlu0 %5737, %v2975_v9   ;;  %v3482_v63 = vmul.f32 %v5748_v62, %v5748_v62  ;;  %v923_v9 = vld [vmem:[#allocation7 + $0xf00] sm:$0xff] }
 0x17f   : > { %3174 = vperm.xlu1 %5738, %v2976_v10   ;;  %v2995_v62 = vld [vmem:[%s8480_s3 + $0x1a0] sm:$0xff] }
 0x180   : > { %1669 = vmatmul.mubr.f32.gmra.mrb[106].mxu1 %v867_v4  ;;  %v924_v4 = vld [vmem:[#allocation7 + $0xf08] sm:$0xff]  ;;  %v3609_v10 = vadd.f32 %v3608_v1, %v3482_v63  ;;  %v445_v1 = vld [vmem:[#allocation7 + $0x10] sm:$0xff] }
 0x181   : > { %2439 = vmatmul.mubr.f32.gmra.mrb[106].mxu0 %v871_v6  ;;  %1673 = vmatprep.mubr.f32.mxu1 %v876_v7  ;;  %v928_v6 = vld [vmem:[#allocation7 + $0xf28] sm:$0xff]  ;;  %v2987_v7 = vld [vmem:[%s8480_s3 + $0x160] sm:$0xff] }
 0x182   : > { %2443 = vmatprep.mubr.f32.mxu0 %v880_v8  ;;  %3179 = vperm.xlu0 %5737, %v2977_v17   ;;  %v2988_v8 = vld [vmem:[%s8480_s3 + $0x168] sm:$0xff]  ;;  %v6923_v17 = vpop.permute.xlu0 %1101 }
 0x183   : > { %3184 = vperm.xlu1 %5738, %v2978_v18   ;;  %v936_v18 = vld [vmem:[#allocation7 + $0xf68] sm:$0xff] }
 0x184   : > { %1674 = vmatmul.mubr.f32.gmra.mrb[108].mxu1 %v875_v11  ;;  %v5749_v11 = vld [vmem:[%s6347_s30 + $0x20] sm:$0xff]  ;;  %v2996_v63 = vld [vmem:[%s8480_s3 + $0x1a8] sm:$0xff] }
 0x185   : > { %2444 = vmatmul.mubr.f32.gmra.mrb[108].mxu0 %v879_v12  ;;  %1678 = vmatprep.mubr.f32.mxu1 %v884_v13  ;;  %v3483_v12 = vmul.f32 %v5749_v11, %v5749_v11  ;;  %v927_v13 = vld [vmem:[#allocation7 + $0xf20] sm:$0xff] }
 0x186   : > { %2448 = vmatprep.mubr.f32.mxu0 %v888_v15  ;;  %3189 = vperm.xlu0 %5737, %v2979_v23   ;;  %v932_v15 = vld [vmem:[#allocation7 + $0xf48] sm:$0xff] }
 0x187   : > { %3194 = vperm.xlu1 %5738, %v2980_v25   ;;  %v5750_v23 = vld [vmem:[%s6347_s30 + $0x28] sm:$0xff] }
 0x188   : > { %1679 = vmatmul.mubr.f32.gmra.mrb[110].mxu1 %v883_v19  ;;  %v6925_v19 = vpop.permute.xlu1 %1106  ;;  %v3484_v25 = vmul.f32 %v5750_v23, %v5750_v23  ;;  %v462_v23 = vld [vmem:[#allocation7 + $0x98] sm:$0xff] }
 0x189   : > { %2449 = vmatmul.mubr.f32.gmra.mrb[110].mxu0 %v887_v20  ;;  %1683 = vmatprep.mubr.f32.mxu1 %v892_v21  ;;  %v2989_v20 = vld [vmem:[%s8480_s3 + $0x170] sm:$0xff]  ;;  %v2990_v21 = vld [vmem:[%s8480_s3 + $0x178] sm:$0xff] }
 0x18a   : > { %2453 = vmatprep.mubr.f32.mxu0 %v896_v22  ;;  %3199 = vperm.xlu0 %5737, %v2981_v31   ;;  %v931_v22 = vld [vmem:[#allocation7 + $0xf40] sm:$0xff] }
 0x18b   : > { %3204 = vperm.xlu1 %5738, %v2982_v32   ;;  %v2991_v31 = vld [vmem:[%s8480_s3 + $0x180] sm:$0xff]  ;;  %v6937_v32 = vpop.permute.xlu0 %1111 }
 0x18c   : > { %1684 = vmatmul.mubr.f32.gmra.mrb[112].mxu1 %v891_v26  ;;  %v3610_v26 = vadd.f32 %v3609_v10, %v3483_v12  ;;  %v6942_v36 = vpop.permute.xlu1 %1116  ;;  %v2997_v10 = vld [vmem:[%s8480_s3 + $0x1b0] sm:$0xff]  ;;  %v2998_v12 = vld [vmem:[%s8480_s3 + $0x1b8] sm:$0xff] }
 0x18d   : > { %2454 = vmatmul.mubr.f32.gmra.mrb[112].mxu0 %v895_v28  ;;  %1688 = vmatprep.mubr.f32.mxu1 %v900_v29  ;;  %v935_v28 = vld [vmem:[#allocation7 + $0xf60] sm:$0xff]  ;;  %v940_v29 = vld [vmem:[#allocation7 + $0xf88] sm:$0xff] }
 0x18e   : > { %2458 = vmatprep.mubr.f32.mxu0 %v904_v30  ;;  %3209 = vperm.xlu0 %5737, %v2983_v45   ;;  %v944_v30 = vld [vmem:[#allocation7 + $0xfa8] sm:$0xff]  ;;  %v3611_v37 = vadd.f32 %v3610_v26, %v3484_v25  ;;  %v466_v25 = vld [vmem:[#allocation7 + $0xb8] sm:$0xff]  ;;  %v2999_v26 = vld [vmem:[%s8480_s3 + $0x1c0] sm:$0xff] }
 0x18f   : > { %3214 = vperm.xlu1 %5738, %v2984_v47   ;;  %v952_v45 = vld [vmem:[#allocation7 + $0xfe8] sm:$0xff]  ;;  %v2993_v47 = vld [vmem:[%s8480_s3 + $0x190] sm:$0xff] }
 0x190   : > { %1689 = vmatmul.mubr.f32.gmra.mrb[114].mxu1 %v899_v0  ;;  %v2992_v0 = vld [vmem:[%s8480_s3 + $0x188] sm:$0xff] }
 0x191   : > { %2459 = vmatmul.mubr.f32.gmra.mrb[114].mxu0 %v903_v39  ;;  %1693 = vmatprep.mubr.f32.mxu1 %v908_v40  ;;  %v3485_v39 = vmul.f32 %v5751_v38, %v5751_v38  ;;  %v943_v40 = vld [vmem:[#allocation7 + $0xfa0] sm:$0xff] }
 0x192   : > { %2463 = vmatprep.mubr.f32.mxu0 %v912_v42  ;;  %3219 = vperm.xlu0 %5737, %v2985_v56   ;;  %v948_v42 = vld [vmem:[#allocation7 + $0xfc8] sm:$0xff]  ;;  %v6952_v56 = vpop.permute.xlu0 %1121 }
 0x193   : > { %3224 = vperm.xlu1 %5738, %v2986_v59   ;;  %v450_v59 = vld [vmem:[#allocation7 + $0x38] sm:$0xff] }
 0x194   : > { %1694 = vmatmul.mubr.f32.gmra.mrb[116].mxu1 %v907_v48  ;;  %v2994_v48 = vld [vmem:[%s8480_s3 + $0x198] sm:$0xff] }
 0x195   : > { %2464 = vmatmul.mubr.f32.gmra.mrb[116].mxu0 %v911_v52  ;;  %1698 = vmatprep.mubr.f32.mxu1 %v916_v53  ;;  %v3612_v52 = vadd.f32 %v3611_v37, %v3485_v39  ;;  %v951_v53 = vld [vmem:[#allocation7 + $0xfe0] sm:$0xff]  ;;  %v470_v37 = vld [vmem:[#allocation7 + $0xd8] sm:$0xff] }
 0x196   : > { %2468 = vmatprep.mubr.f32.mxu0 %v920_v54  ;;  %3229 = vperm.xlu0 %5737, %v2987_v7   ;;  %v446_v54 = vld [vmem:[#allocation7 + $0x18] sm:$0xff]  ;;  %v449_v7 = vld [vmem:[#allocation7 + $0x30] sm:$0xff]  ;;  %v6966_v11 = vpop.permute.xlu0 %1131 }
 0x197   : > { %3234 = vperm.xlu1 %5738, %v2988_v8   ;;  %v454_v8 = vld [vmem:[#allocation7 + $0x58] sm:$0xff] }
 0x198   : > { %1699 = vmatmul.mubr.f32.gmra.mrb[118].mxu1 %v915_v60  ;;  %v6954_v60 = vpop.permute.xlu1 %1126  ;;  %v474_v39 = vld [vmem:[#allocation7 + $0xf8] sm:$0xff] }
 0x199   : > { %2469 = vmatmul.mubr.f32.gmra.mrb[118].mxu0 %v919_v3  ;;  %1703 = vmatprep.mubr.f32.mxu1 %v924_v4  ;;  %v3613_v3 = vadd.f32 %v3612_v52, %v3486_v51  ;;  %v5753_v4 = vld [vmem:[%s6347_s30 + $0x40] sm:$0xff]  ;;  %v473_v51 = vld [vmem:[#allocation7 + $0xf0] sm:$0xff]  ;;  %v478_v52 = vld [vmem:[#allocation7 + $0x118] sm:$0xff] }
 0x19a   : > { %2473 = vmatprep.mubr.f32.mxu0 %v928_v6  ;;  %3239 = vperm.xlu0 %5737, %v2989_v20   ;;  %v3487_v6 = vmul.f32 %v5753_v4, %v5753_v4  ;;  %v6981_v38 = vpop.permute.xlu0 %1141  ;;  %v5757_v4 = vld [vmem:[%s6347_s30 + $0x60] sm:$0xff] }
 0x19b   : > { %3244 = vperm.xlu1 %5738, %v2990_v21  }
 0x19c   : > { %1704 = vmatmul.mubr.f32.gmra.mrb[120].mxu1 %v923_v9  ;;  %v458_v9 = vld [vmem:[#allocation7 + $0x78] sm:$0xff]  ;;  %v3614_v21 = vadd.f32 %v3613_v3, %v3487_v6  ;;  %v3491_v6 = vmul.f32 %v5757_v4, %v5757_v4 }
 0x19d   : > { %2474 = vmatmul.mubr.f32.gmra.mrb[120].mxu0 %v927_v13  ;;  %1708 = vmatprep.mubr.f32.mxu1 %v932_v15  ;;  %v453_v13 = vld [vmem:[#allocation7 + $0x50] sm:$0xff]  ;;  %v6971_v15 = vpop.permute.xlu1 %1136  ;;  %v522_v4 = vld [vmem:[#allocation7 + $0x278] sm:$0xff] }
 0x19e   : > { %2478 = vmatprep.mubr.f32.mxu0 %v936_v18  ;;  %3249 = vperm.xlu0 %5737, %v2991_v31   ;;  %v5754_v18 = vld [vmem:[%s6347_s30 + $0x48] sm:$0xff]  ;;  %v5755_v31 = vld [vmem:[%s6347_s30 + $0x50] sm:$0xff] }
 0x19f   : > { %3254 = vperm.xlu1 %5738, %v2992_v0   ;;  %v3488_v20 = vmul.f32 %v5754_v18, %v5754_v18  ;;  %v3489_v0 = vmul.f32 %v5755_v31, %v5755_v31  ;;  %v5758_v18 = vld [vmem:[%s6347_s30 + $0x68] sm:$0xff]  ;;  %v5759_v31 = vld [vmem:[%s6347_s30 + $0x70] sm:$0xff] }
 0x1a0   : > { %1709 = vmatmul.mubr.f32.gmra.mrb[122].mxu1 %v931_v22  ;;  %v457_v22 = vld [vmem:[#allocation7 + $0x70] sm:$0xff] }
 0x1a1   : > { %2479 = vmatmul.mubr.f32.gmra.mrb[122].mxu0 %v935_v28  ;;  %1713 = vmatprep.mubr.f32.mxu1 %v940_v29  ;;  %v3000_v28 = vld [vmem:[%s8480_s3 + $0x1c8] sm:$0xff]  ;;  %v461_v29 = vld [vmem:[#allocation7 + $0x90] sm:$0xff] }
 0x1a2   : > { %2483 = vmatprep.mubr.f32.mxu0 %v944_v30  ;;  %3259 = vperm.xlu0 %5737, %v2993_v47   ;;  %v3615_v30 = vadd.f32 %v3614_v21, %v3488_v20  ;;  %v469_v47 = vld [vmem:[#allocation7 + $0xd0] sm:$0xff]  ;;  %v3492_v20 = vmul.f32 %v5758_v18, %v5758_v18 }
 0x1a3   : > { %3264 = vperm.xlu1 %5738, %v2994_v48   ;;  %v5756_v48 = vld [vmem:[%s6347_s30 + $0x58] sm:$0xff]  ;;  %v525_v18 = vld [vmem:[#allocation7 + $0x290] sm:$0xff] }
 0x1a4   : > { %1714 = vmatmul.mubr.f32.gmra.mrb[124].mxu1 %v939_v34  ;;  %v465_v34 = vld [vmem:[#allocation7 + $0xb0] sm:$0xff]  ;;  %v3616_v50 = vadd.f32 %v3615_v30, %v3489_v0  ;;  %v3493_v0 = vmul.f32 %v5759_v31, %v5759_v31  ;;  %v5764_v31 = vld [vmem:[%s6347_s30 + $0x98] sm:$0xff] }
 0x1a5   : > { %2484 = vmatmul.mubr.f32.gmra.mrb[124].mxu0 %v943_v40  ;;  %1718 = vmatprep.mubr.f32.mxu1 %v948_v42  ;;  %v6983_v40 = vpop.permute.xlu1 %1146  ;;  %v3001_v42 = vld [vmem:[%s8480_s3 + $0x1d0] sm:$0xff] }
 0x1a6   : > { %2488 = vmatprep.mubr.f32.mxu0 %v952_v45  ;;  %3269 = vperm.xlu0 %5737, %v2995_v62   ;;  %v3002_v45 = vld [vmem:[%s8480_s3 + $0x1d8] sm:$0xff]  ;;  %v3004_v62 = vld [vmem:[%s8480_s3 + $0x1e8] sm:$0xff] }
 0x1a7   : > { %3274 = vperm.xlu1 %5738, %v2996_v63   ;;  %v477_v63 = vld [vmem:[#allocation7 + $0x110] sm:$0xff] }
 0x1a8   : > { %1719 = vmatmul.mubr.f32.gmra.mrb[126].mxu1 %v947_v49  ;;  %v3490_v49 = vmul.f32 %v5756_v48, %v5756_v48 }
 0x1a9   : > { %2489 = vmatmul.mubr.f32.gmra.mrb[126].mxu0 %v951_v53  ;;  %1788 = vmatprep.mubr.f32.mxu1 %v446_v54  ;;  %v482_v53 = vld [vmem:[#allocation7 + $0x138] sm:$0xff]  ;;  %v3003_v54 = vld [vmem:[%s8480_s3 + $0x1e0] sm:$0xff] }
 0x1aa   : > { %2558 = vmatprep.mubr.f32.mxu0 %v450_v59  ;;  %3279 = vperm.xlu0 %5737, %v2997_v10   ;;  %v6995_v59 = vpop.permute.xlu0 %1151  ;;  %v3617_v3 = vadd.f32 %v3616_v50, %v3490_v49  ;;  %v3005_v10 = vld [vmem:[%s8480_s3 + $0x1f0] sm:$0xff]  ;;  %v510_v50 = vld [vmem:[#allocation7 + $0x218] sm:$0xff] }
 0x1ab   : > { %3284 = vperm.xlu1 %5738, %v2998_v12   ;;  %v3006_v12 = vld [vmem:[%s8480_s3 + $0x1f8] sm:$0xff]  ;;  %v505_v49 = vld [vmem:[#allocation7 + $0x1f0] sm:$0xff] }
 0x1ac   : > { %1789 = vmatmul.mubr.f32.vlgmr.msra.gmra.mrb[0].mxu1 %v445_v1  ;;  %v7000_v1 = vpop.permute.xlu1 %1156  ;;  %v3618_v21 = vadd.f32 %v3617_v3, %v3491_v6  ;;  %v518_v3 = vld [vmem:[#allocation7 + $0x258] sm:$0xff]  ;;  %v517_v6 = vld [vmem:[#allocation7 + $0x250] sm:$0xff] }
 0x1ad   : > { %2559 = vmatmul.mubr.f32.vlgmr.msra.gmra.mrb[0].mxu0 %v449_v7  ;;  %1793 = vmatprep.mubr.f32.mxu1 %v454_v8  ;;  %v481_v7 = vld [vmem:[#allocation7 + $0x130] sm:$0xff]  ;;  %v486_v8 = vld [vmem:[#allocation7 + $0x158] sm:$0xff] }
 0x1ae   : > { %2563 = vmatprep.mubr.f32.mxu0 %v458_v9  ;;  %3289 = vperm.xlu0 %5737, %v2999_v26   ;;  %v490_v9 = vld [vmem:[#allocation7 + $0x178] sm:$0xff]  ;;  %v3619_v30 = vadd.f32 %v3618_v21, %v3492_v20  ;;  %v5763_v21 = vld [vmem:[%s6347_s30 + $0x90] sm:$0xff] }
 0x1af   : > { %3294 = vperm.xlu1 %5738, %v3000_v28   ;;  %v498_v28 = vld [vmem:[#allocation7 + $0x1b8] sm:$0xff] }
 0x1b0   : > { %1794 = vmatmul.mubr.f32.gmra.mrb[2].mxu1 %v453_v13  ;;  %v485_v13 = vld [vmem:[#allocation7 + $0x150] sm:$0xff]  ;;  %v7012_v26 = vpop.permute.xlu1 %1166  ;;  %v3620_v48 = vadd.f32 %v3619_v30, %v3493_v0  ;;  %v3498_v0 = vmul.f32 %v5764_v31, %v5764_v31 }
 0x1b1   : > { %2564 = vmatmul.mubr.f32.gmra.mrb[2].mxu0 %v457_v22  ;;  %1798 = vmatprep.mubr.f32.mxu1 %v462_v23  ;;  %v7010_v22 = vpop.permute.xlu0 %1161  ;;  %v489_v23 = vld [vmem:[#allocation7 + $0x170] sm:$0xff] }
 0x1b2   : > { %2568 = vmatprep.mubr.f32.mxu0 %v466_v25  ;;  %3299 = vperm.xlu0 %5737, %v3001_v42   ;;  %v494_v25 = vld [vmem:[#allocation7 + $0x198] sm:$0xff]  ;;  %v501_v42 = vld [vmem:[#allocation7 + $0x1d0] sm:$0xff] }
 0x1b3   : > { %3304 = vperm.xlu1 %5738, %v3002_v45   ;;  %v5760_v45 = vld [vmem:[%s6347_s30 + $0x78] sm:$0xff]  ;;  %v533_v30 = vld [vmem:[#allocation7 + $0x2d0] sm:$0xff] }
 0x1b4   : > { %1799 = vmatmul.mubr.f32.gmra.mrb[4].mxu1 %v461_v29  ;;  %v493_v29 = vld [vmem:[#allocation7 + $0x190] sm:$0xff] }
 0x1b5   : > { %2569 = vmatmul.mubr.f32.gmra.mrb[4].mxu0 %v465_v34  ;;  %1803 = vmatprep.mubr.f32.mxu1 %v470_v37  ;;  %v497_v34 = vld [vmem:[#allocation7 + $0x1b0] sm:$0xff]  ;;  %v502_v37 = vld [vmem:[#allocation7 + $0x1d8] sm:$0xff] }
 0x1b6   : > { %2573 = vmatprep.mubr.f32.mxu0 %v474_v39  ;;  %3309 = vperm.xlu0 %5737, %v3003_v54   ;;  %v506_v39 = vld [vmem:[#allocation7 + $0x1f8] sm:$0xff]  ;;  %v5761_v54 = vld [vmem:[%s6347_s30 + $0x80] sm:$0xff]  ;;  %v573_v31 = vld [vmem:[#allocation7 + $0x410] sm:$0xff] }
 0x1b7   : > { %3314 = vperm.xlu1 %5738, %v3004_v62   ;;  %v3495_v62 = vmul.f32 %v5761_v54, %v5761_v54  ;;  %v5766_v54 = vld [vmem:[%s6347_s30 + $0xa8] sm:$0xff] }
 0x1b8   : > { %1804 = vmatmul.mubr.f32.gmra.mrb[6].mxu1 %v469_v47  ;;  %v3494_v47 = vmul.f32 %v5760_v45, %v5760_v45  ;;  %v541_v45 = vld [vmem:[#allocation7 + $0x310] sm:$0xff] }
 0x1b9   : > { %2574 = vmatmul.mubr.f32.gmra.mrb[6].mxu0 %v473_v51  ;;  %1808 = vmatprep.mubr.f32.mxu1 %v478_v52  ;;  %v514_v51 = vld [vmem:[#allocation7 + $0x238] sm:$0xff]  ;;  %v509_v52 = vld [vmem:[#allocation7 + $0x210] sm:$0xff] }
 0x1ba   : > { %2578 = vmatprep.mubr.f32.mxu0 %v482_v53  ;;  %3319 = vperm.xlu0 %5737, %v3005_v10   ;;  %v3621_v53 = vadd.f32 %v3620_v48, %v3494_v47  ;;  %v521_v10 = vld [vmem:[#allocation7 + $0x270] sm:$0xff]  ;;  %v5765_v48 = vld [vmem:[%s6347_s30 + $0xa0] sm:$0xff] }
 0x1bb   : > { %3324 = vperm.xlu1 %5738, %v3006_v12   ;;  %v526_v12 = vld [vmem:[#allocation7 + $0x298] sm:$0xff] }
 0x1bc   : > { %1809 = vmatmul.mubr.f32.gmra.mrb[8].mxu1 %v477_v63  ;;  %v513_v63 = vld [vmem:[#allocation7 + $0x230] sm:$0xff] }
 0x1bd   : > { %2579 = vmatmul.mubr.f32.gmra.mrb[8].mxu0 %v481_v7  ;;  %1813 = vmatprep.mubr.f32.mxu1 %v486_v8  ;;  %v5762_v7 = vld [vmem:[%s6347_s30 + $0x88] sm:$0xff] }
 0x1be   : > { %2583 = vmatprep.mubr.f32.mxu0 %v490_v9  ;;  %v3496_v8 = vmul.f32 %v5762_v7, %v5762_v7  ;;  %v3622_v9 = vadd.f32 %v3621_v53, %v3495_v62  ;;  %v549_v53 = vld [vmem:[#allocation7 + $0x350] sm:$0xff]  ;;  %v3500_v62 = vmul.f32 %v5766_v54, %v5766_v54 }
 0x1bf   : > { %v557_v7 = vld [vmem:[#allocation7 + $0x390] sm:$0xff] }
 0x1c0   : > { %1814 = vmatmul.mubr.f32.gmra.mrb[10].mxu1 %v485_v13  ;;  %v530_v13 = vld [vmem:[#allocation7 + $0x2b8] sm:$0xff]  ;;  %v3623_v20 = vadd.f32 %v3622_v9, %v3496_v8  ;;  %v5767_v9 = vld [vmem:[%s6347_s30 + $0xb0] sm:$0xff] }
 0x1c1   : > { %2584 = vmatmul.mubr.f32.gmra.mrb[10].mxu0 %v489_v23  ;;  %1818 = vmatprep.mubr.f32.mxu1 %v494_v25  ;;  %v3497_v23 = vmul.f32 %v5763_v21, %v5763_v21  ;;  %v529_v25 = vld [vmem:[#allocation7 + $0x2b0] sm:$0xff]  ;;  %v5768_v21 = vld [vmem:[%s6347_s30 + $0xb8] sm:$0xff] }
 0x1c2   : > { %2588 = vmatprep.mubr.f32.mxu0 %v498_v28  ;;  %v534_v28 = vld [vmem:[#allocation7 + $0x2d8] sm:$0xff]  ;;  %v589_v54 = vld [vmem:[#allocation7 + $0x490] sm:$0xff] }
 0x1c4   : > { %1819 = vmatmul.mubr.f32.gmra.mrb[12].mxu1 %v493_v29  ;;  %v538_v29 = vld [vmem:[#allocation7 + $0x2f8] sm:$0xff] }
 0x1c5   : > { %2589 = vmatmul.mubr.f32.gmra.mrb[12].mxu0 %v497_v34  ;;  %1823 = vmatprep.mubr.f32.mxu1 %v502_v37  ;;  %v3624_v34 = vadd.f32 %v3623_v20, %v3497_v23  ;;  %v537_v37 = vld [vmem:[#allocation7 + $0x2f0] sm:$0xff]  ;;  %v3502_v23 = vmul.f32 %v5768_v21, %v5768_v21 }
 0x1c6   : > { %2593 = vmatprep.mubr.f32.mxu0 %v506_v39  ;;  %v542_v39 = vld [vmem:[#allocation7 + $0x318] sm:$0xff]  ;;  %v565_v20 = vld [vmem:[#allocation7 + $0x3d0] sm:$0xff] }
 0x1c7   : > { %v3625_v47 = vadd.f32 %v3624_v34, %v3498_v0  ;;  %v5769_v34 = vld [vmem:[%s6347_s30 + $0xc0] sm:$0xff]  ;;  %v605_v21 = vld [vmem:[#allocation7 + $0x510] sm:$0xff] }
 0x1c8   : > { %1824 = vmatmul.mubr.f32.gmra.mrb[14].mxu1 %v501_v42  ;;  %v546_v42 = vld [vmem:[#allocation7 + $0x338] sm:$0xff] }
 0x1c9   : > { %2594 = vmatmul.mubr.f32.gmra.mrb[14].mxu0 %v505_v49  ;;  %1828 = vmatprep.mubr.f32.mxu1 %v510_v50  ;;  %v3499_v49 = vmul.f32 %v5765_v48, %v5765_v48  ;;  %v545_v50 = vld [vmem:[#allocation7 + $0x330] sm:$0xff]  ;;  %v5770_v48 = vld [vmem:[%s6347_s30 + $0xc8] sm:$0xff] }
 0x1ca   : > { %2598 = vmatprep.mubr.f32.mxu0 %v514_v51  ;;  %v550_v51 = vld [vmem:[#allocation7 + $0x358] sm:$0xff] }
 0x1cc   : > { %1829 = vmatmul.mubr.f32.gmra.mrb[16].mxu1 %v509_v52  ;;  %v554_v52 = vld [vmem:[#allocation7 + $0x378] sm:$0xff] }
 0x1cd   : > { %2599 = vmatmul.mubr.f32.gmra.mrb[16].mxu0 %v513_v63  ;;  %1833 = vmatprep.mubr.f32.mxu1 %v518_v3  ;;  %v3626_v63 = vadd.f32 %v3625_v47, %v3499_v49  ;;  %v553_v3 = vld [vmem:[#allocation7 + $0x370] sm:$0xff]  ;;  %v3504_v49 = vmul.f32 %v5770_v48, %v5770_v48 }
 0x1ce   : > { %2603 = vmatprep.mubr.f32.mxu0 %v522_v4  ;;  %v558_v4 = vld [vmem:[#allocation7 + $0x398] sm:$0xff]  ;;  %v581_v47 = vld [vmem:[#allocation7 + $0x450] sm:$0xff] }
 0x1cf   : > { %v3627_v8 = vadd.f32 %v3626_v63, %v3500_v62  ;;  %v5771_v63 = vld [vmem:[%s6347_s30 + $0xd0] sm:$0xff] }
 0x1d0   : > { %1834 = vmatmul.mubr.f32.gmra.mrb[18].mxu1 %v517_v6  ;;  %v562_v6 = vld [vmem:[#allocation7 + $0x3b8] sm:$0xff]  ;;  %v621_v48 = vld [vmem:[#allocation7 + $0x590] sm:$0xff] }
 0x1d1   : > { %2604 = vmatmul.mubr.f32.gmra.mrb[18].mxu0 %v521_v10  ;;  %1838 = vmatprep.mubr.f32.mxu1 %v526_v12  ;;  %v3501_v10 = vmul.f32 %v5767_v9, %v5767_v9  ;;  %v561_v12 = vld [vmem:[#allocation7 + $0x3b0] sm:$0xff]  ;;  %v5772_v9 = vld [vmem:[%s6347_s30 + $0xd8] sm:$0xff] }
 0x1d2   : > { %2608 = vmatprep.mubr.f32.mxu0 %v530_v13  ;;  %v566_v13 = vld [vmem:[#allocation7 + $0x3d8] sm:$0xff] }
 0x1d4   : > { %1839 = vmatmul.mubr.f32.gmra.mrb[20].mxu1 %v525_v18  ;;  %v570_v18 = vld [vmem:[#allocation7 + $0x3f8] sm:$0xff] }
 0x1d5   : > { %2609 = vmatmul.mubr.f32.gmra.mrb[20].mxu0 %v529_v25  ;;  %1843 = vmatprep.mubr.f32.mxu1 %v534_v28  ;;  %v3628_v25 = vadd.f32 %v3627_v8, %v3501_v10  ;;  %v569_v28 = vld [vmem:[#allocation7 + $0x3f0] sm:$0xff]  ;;  %v3506_v10 = vmul.f32 %v5772_v9, %v5772_v9 }
 0x1d6   : > { %2613 = vmatprep.mubr.f32.mxu0 %v538_v29  ;;  %v574_v29 = vld [vmem:[#allocation7 + $0x418] sm:$0xff]  ;;  %v597_v8 = vld [vmem:[#allocation7 + $0x4d0] sm:$0xff] }
 0x1d7   : > { %v3629_v0 = vadd.f32 %v3628_v25, %v3502_v23  ;;  %v5773_v25 = vld [vmem:[%s6347_s30 + $0xe0] sm:$0xff]  ;;  %v637_v9 = vld [vmem:[#allocation7 + $0x610] sm:$0xff] }
 0x1d8   : > { %1844 = vmatmul.mubr.f32.gmra.mrb[22].mxu1 %v533_v30  ;;  %v578_v30 = vld [vmem:[#allocation7 + $0x438] sm:$0xff] }
 0x1d9   : > { %2614 = vmatmul.mubr.f32.gmra.mrb[22].mxu0 %v537_v37  ;;  %1848 = vmatprep.mubr.f32.mxu1 %v542_v39  ;;  %v3503_v37 = vmul.f32 %v5769_v34, %v5769_v34  ;;  %v577_v39 = vld [vmem:[#allocation7 + $0x430] sm:$0xff]  ;;  %v5774_v34 = vld [vmem:[%s6347_s30 + $0xe8] sm:$0xff] }
 0x1da   : > { %2618 = vmatprep.mubr.f32.mxu0 %v546_v42  ;;  %v582_v42 = vld [vmem:[#allocation7 + $0x458] sm:$0xff] }
 0x1dc   : > { %1849 = vmatmul.mubr.f32.gmra.mrb[24].mxu1 %v541_v45  ;;  %v586_v45 = vld [vmem:[#allocation7 + $0x478] sm:$0xff] }
 0x1dd   : > { %2619 = vmatmul.mubr.f32.gmra.mrb[24].mxu0 %v545_v50  ;;  %1853 = vmatprep.mubr.f32.mxu1 %v550_v51  ;;  %v3630_v50 = vadd.f32 %v3629_v0, %v3503_v37  ;;  %v585_v51 = vld [vmem:[#allocation7 + $0x470] sm:$0xff]  ;;  %v3508_v37 = vmul.f32 %v5774_v34, %v5774_v34 }
 0x1de   : > { %2623 = vmatprep.mubr.f32.mxu0 %v554_v52  ;;  %v590_v52 = vld [vmem:[#allocation7 + $0x498] sm:$0xff]  ;;  %v613_v0 = vld [vmem:[#allocation7 + $0x550] sm:$0xff] }
 0x1df   : > { %v3631_v62 = vadd.f32 %v3630_v50, %v3504_v49  ;;  %v5775_v50 = vld [vmem:[%s6347_s30 + $0xf0] sm:$0xff] }
 0x1e0   : > { %1854 = vmatmul.mubr.f32.gmra.mrb[26].mxu1 %v549_v53  ;;  %v594_v53 = vld [vmem:[#allocation7 + $0x4b8] sm:$0xff]  ;;  %v653_v34 = vld [vmem:[#allocation7 + $0x690] sm:$0xff] }
 0x1e1   : > { %2624 = vmatmul.mubr.f32.gmra.mrb[26].mxu0 %v553_v3  ;;  %1858 = vmatprep.mubr.f32.mxu1 %v558_v4  ;;  %v3505_v3 = vmul.f32 %v5771_v63, %v5771_v63  ;;  %v593_v4 = vld [vmem:[#allocation7 + $0x4b0] sm:$0xff]  ;;  %v5776_v63 = vld [vmem:[%s6347_s30 + $0xf8] sm:$0xff] }
 0x1e2   : > { %2628 = vmatprep.mubr.f32.mxu0 %v562_v6  ;;  %v598_v6 = vld [vmem:[#allocation7 + $0x4d8] sm:$0xff] }
 0x1e4   : > { %1859 = vmatmul.mubr.f32.gmra.mrb[28].mxu1 %v557_v7  ;;  %v602_v7 = vld [vmem:[#allocation7 + $0x4f8] sm:$0xff] }
 0x1e5   : > { %2629 = vmatmul.mubr.f32.gmra.mrb[28].mxu0 %v561_v12  ;;  %1863 = vmatprep.mubr.f32.mxu1 %v566_v13  ;;  %v3632_v12 = vadd.f32 %v3631_v62, %v3505_v3  ;;  %v601_v13 = vld [vmem:[#allocation7 + $0x4f0] sm:$0xff]  ;;  %v3510_v3 = vmul.f32 %v5776_v63, %v5776_v63 }
 0x1e6   : > { %2633 = vmatprep.mubr.f32.mxu0 %v570_v18  ;;  %v606_v18 = vld [vmem:[#allocation7 + $0x518] sm:$0xff]  ;;  %v629_v62 = vld [vmem:[#allocation7 + $0x5d0] sm:$0xff] }
 0x1e7   : > { %v3633_v23 = vadd.f32 %v3632_v12, %v3506_v10  ;;  %v5777_v10 = vld [vmem:[%s6347_s30 + $0x100] sm:$0xff]  ;;  %v669_v63 = vld [vmem:[#allocation7 + $0x710] sm:$0xff] }
 0x1e8   : > { %1864 = vmatmul.mubr.f32.gmra.mrb[30].mxu1 %v565_v20  ;;  %v610_v20 = vld [vmem:[#allocation7 + $0x538] sm:$0xff]  ;;  %v3511_v12 = vmul.f32 %v5777_v10, %v5777_v10  ;;  %v677_v10 = vld [vmem:[#allocation7 + $0x750] sm:$0xff] }
 0x1e9   : > { %2634 = vmatmul.mubr.f32.gmra.mrb[30].mxu0 %v569_v28  ;;  %1868 = vmatprep.mubr.f32.mxu1 %v574_v29  ;;  %v3507_v28 = vmul.f32 %v5773_v25, %v5773_v25  ;;  %v609_v29 = vld [vmem:[#allocation7 + $0x530] sm:$0xff]  ;;  %v5778_v25 = vld [vmem:[%s6347_s30 + $0x108] sm:$0xff] }
 0x1ea   : > { %2638 = vmatprep.mubr.f32.mxu0 %v578_v30  ;;  %v614_v30 = vld [vmem:[#allocation7 + $0x558] sm:$0xff] }
 0x1ec   : > { %1869 = vmatmul.mubr.f32.gmra.mrb[32].mxu1 %v573_v31  ;;  %v618_v31 = vld [vmem:[#allocation7 + $0x578] sm:$0xff] }
 0x1ed   : > { %2639 = vmatmul.mubr.f32.gmra.mrb[32].mxu0 %v577_v39  ;;  %1873 = vmatprep.mubr.f32.mxu1 %v582_v42  ;;  %v3634_v39 = vadd.f32 %v3633_v23, %v3507_v28  ;;  %v617_v42 = vld [vmem:[#allocation7 + $0x570] sm:$0xff]  ;;  %v3512_v28 = vmul.f32 %v5778_v25, %v5778_v25  ;;  %v7038_v25 = vpop.permute.xlu0 %1171 }
 0x1ee   : > { %2643 = vmatprep.mubr.f32.mxu0 %v586_v45  ;;  %v622_v45 = vld [vmem:[#allocation7 + $0x598] sm:$0xff]  ;;  %v645_v23 = vld [vmem:[#allocation7 + $0x650] sm:$0xff] }
 0x1ef   : > { %v3635_v49 = vadd.f32 %v3634_v39, %v3508_v37  ;;  %v5779_v37 = vld [vmem:[%s6347_s30 + $0x110] sm:$0xff] }
 0x1f0   : > { %1874 = vmatmul.mubr.f32.gmra.mrb[34].mxu1 %v581_v47  ;;  %v626_v47 = vld [vmem:[#allocation7 + $0x5b8] sm:$0xff]  ;;  %v3513_v39 = vmul.f32 %v5779_v37, %v5779_v37  ;;  %v7041_v37 = vpop.permute.xlu1 %1176 }
 0x1f1   : > { %2644 = vmatmul.mubr.f32.gmra.mrb[34].mxu0 %v585_v51  ;;  %1878 = vmatprep.mubr.f32.mxu1 %v590_v52  ;;  %v3509_v51 = vmul.f32 %v5775_v50, %v5775_v50  ;;  %v625_v52 = vld [vmem:[#allocation7 + $0x5b0] sm:$0xff]  ;;  %v5780_v50 = vld [vmem:[%s6347_s30 + $0x118] sm:$0xff] }
 0x1f2   : > { %2648 = vmatprep.mubr.f32.mxu0 %v594_v53  ;;  %v630_v53 = vld [vmem:[#allocation7 + $0x5d8] sm:$0xff] }
 0x1f4   : > { %1879 = vmatmul.mubr.f32.gmra.mrb[36].mxu1 %v589_v54  ;;  %v634_v54 = vld [vmem:[#allocation7 + $0x5f8] sm:$0xff] }
 0x1f5   : > { %2649 = vmatmul.mubr.f32.gmra.mrb[36].mxu0 %v593_v4  ;;  %1883 = vmatprep.mubr.f32.mxu1 %v598_v6  ;;  %v3636_v4 = vadd.f32 %v3635_v49, %v3509_v51  ;;  %v633_v6 = vld [vmem:[#allocation7 + $0x5f0] sm:$0xff]  ;;  %v3514_v51 = vmul.f32 %v5780_v50, %v5780_v50  ;;  %v702_v50 = vld [vmem:[#allocation7 + $0x818] sm:$0xff] }
 0x1f6   : > { %2653 = vmatprep.mubr.f32.mxu0 %v602_v7  ;;  %v638_v7 = vld [vmem:[#allocation7 + $0x618] sm:$0xff]  ;;  %v661_v49 = vld [vmem:[#allocation7 + $0x6d0] sm:$0xff] }
 0x1f8   : > { %1884 = vmatmul.mubr.f32.gmra.mrb[38].mxu1 %v597_v8  ;;  %v642_v8 = vld [vmem:[#allocation7 + $0x638] sm:$0xff] }
 0x1f9   : > { %2654 = vmatmul.mubr.f32.gmra.mrb[38].mxu0 %v601_v13  ;;  %1888 = vmatprep.mubr.f32.mxu1 %v606_v18  ;;  %v3637_v13 = vadd.f32 %v3636_v4, %v3510_v3  ;;  %v641_v18 = vld [vmem:[#allocation7 + $0x630] sm:$0xff]  ;;  %v5781_v3 = vld [vmem:[%s6347_s30 + $0x120] sm:$0xff] }
 0x1fa   : > { %2658 = vmatprep.mubr.f32.mxu0 %v610_v20  ;;  %v646_v20 = vld [vmem:[#allocation7 + $0x658] sm:$0xff]  ;;  %v3515_v4 = vmul.f32 %v5781_v3, %v5781_v3 }
 0x1fc   : > { %1889 = vmatmul.mubr.f32.gmra.mrb[40].mxu1 %v605_v21  ;;  %v650_v21 = vld [vmem:[#allocation7 + $0x678] sm:$0xff] }
 0x1fd   : > { %2659 = vmatmul.mubr.f32.gmra.mrb[40].mxu0 %v609_v29  ;;  %1893 = vmatprep.mubr.f32.mxu1 %v614_v30  ;;  %v3638_v29 = vadd.f32 %v3637_v13, %v3511_v12  ;;  %v649_v30 = vld [vmem:[#allocation7 + $0x670] sm:$0xff]  ;;  %v5782_v12 = vld [vmem:[%s6347_s30 + $0x128] sm:$0xff] }
 0x1fe   : > { %2663 = vmatprep.mubr.f32.mxu0 %v618_v31  ;;  %v654_v31 = vld [vmem:[#allocation7 + $0x698] sm:$0xff]  ;;  %v3516_v13 = vmul.f32 %v5782_v12, %v5782_v12 }
 0x200   : > { %1894 = vmatmul.mubr.f32.gmra.mrb[42].mxu1 %v613_v0  ;;  %v658_v0 = vld [vmem:[#allocation7 + $0x6b8] sm:$0xff] }
 0x201   : > { %2664 = vmatmul.mubr.f32.gmra.mrb[42].mxu0 %v617_v42  ;;  %1898 = vmatprep.mubr.f32.mxu1 %v622_v45  ;;  %v3639_v42 = vadd.f32 %v3638_v29, %v3512_v28  ;;  %v657_v45 = vld [vmem:[#allocation7 + $0x6b0] sm:$0xff] }
 0x202   : > { %2668 = vmatprep.mubr.f32.mxu0 %v626_v47  ;;  %v662_v47 = vld [vmem:[#allocation7 + $0x6d8] sm:$0xff]  ;;  %v685_v28 = vld [vmem:[#allocation7 + $0x790] sm:$0xff] }
 0x203   : > { %v5783_v29 = vld [vmem:[%s6347_s30 + $0x130] sm:$0xff] }
 0x204   : > { %1899 = vmatmul.mubr.f32.gmra.mrb[44].mxu1 %v621_v48  ;;  %v666_v48 = vld [vmem:[#allocation7 + $0x6f8] sm:$0xff] }
 0x205   : > { %2669 = vmatmul.mubr.f32.gmra.mrb[44].mxu0 %v625_v52  ;;  %1903 = vmatprep.mubr.f32.mxu1 %v630_v53  ;;  %v3640_v52 = vadd.f32 %v3639_v42, %v3513_v39  ;;  %v665_v53 = vld [vmem:[#allocation7 + $0x6f0] sm:$0xff]  ;;  %v698_v39 = vld [vmem:[#allocation7 + $0x7f8] sm:$0xff] }
 0x206   : > { %2673 = vmatprep.mubr.f32.mxu0 %v634_v54  ;;  %v670_v54 = vld [vmem:[#allocation7 + $0x718] sm:$0xff]  ;;  %v693_v42 = vld [vmem:[#allocation7 + $0x7d0] sm:$0xff] }
 0x208   : > { %1904 = vmatmul.mubr.f32.gmra.mrb[46].mxu1 %v629_v62  ;;  %v674_v62 = vld [vmem:[#allocation7 + $0x738] sm:$0xff] }
 0x209   : > { %2674 = vmatmul.mubr.f32.gmra.mrb[46].mxu0 %v633_v6  ;;  %1908 = vmatprep.mubr.f32.mxu1 %v638_v7  ;;  %v3641_v6 = vadd.f32 %v3640_v52, %v3514_v51  ;;  %v673_v7 = vld [vmem:[#allocation7 + $0x730] sm:$0xff]  ;;  %v7044_v51 = vpop.permute.xlu0 %1181  ;;  %v706_v52 = vld [vmem:[#allocation7 + $0x838] sm:$0xff] }
 0x20a   : > { %2678 = vmatprep.mubr.f32.mxu0 %v642_v8  ;;  %v678_v8 = vld [vmem:[#allocation7 + $0x758] sm:$0xff] }
 0x20c   : > { %1909 = vmatmul.mubr.f32.gmra.mrb[48].mxu1 %v637_v9  ;;  %v682_v9 = vld [vmem:[#allocation7 + $0x778] sm:$0xff] }
 0x20d   : > { %2679 = vmatmul.mubr.f32.gmra.mrb[48].mxu0 %v641_v18  ;;  %1913 = vmatprep.mubr.f32.mxu1 %v646_v20  ;;  %v3642_v18 = vadd.f32 %v3641_v6, %v3515_v4  ;;  %v681_v20 = vld [vmem:[#allocation7 + $0x770] sm:$0xff]  ;;  %v710_v6 = vld [vmem:[#allocation7 + $0x858] sm:$0xff] }
 0x20e   : > { %2683 = vmatprep.mubr.f32.mxu0 %v650_v21  ;;  %v686_v21 = vld [vmem:[#allocation7 + $0x798] sm:$0xff]  ;;  %v705_v4 = vld [vmem:[#allocation7 + $0x830] sm:$0xff] }
 0x210   : > { %1914 = vmatmul.mubr.f32.gmra.mrb[50].mxu1 %v645_v23  ;;  %v690_v23 = vld [vmem:[#allocation7 + $0x7b8] sm:$0xff] }
 0x211   : > { %2684 = vmatmul.mubr.f32.gmra.mrb[50].mxu0 %v649_v30  ;;  %1918 = vmatprep.mubr.f32.mxu1 %v654_v31  ;;  %v3517_v30 = vmul.f32 %v5783_v29, %v5783_v29  ;;  %v3643_v31 = vadd.f32 %v3642_v18, %v3516_v13  ;;  %v713_v18 = vld [vmem:[#allocation7 + $0x870] sm:$0xff] }
 0x212   : > { %2688 = vmatprep.mubr.f32.mxu0 %v658_v0  ;;  %v689_v0 = vld [vmem:[#allocation7 + $0x7b0] sm:$0xff] }
 0x213   : > { %v5787_v29 = vld [vmem:[%s6347_s30 + $0x150] sm:$0xff] }
 0x214   : > { %1919 = vmatmul.mubr.f32.gmra.mrb[52].mxu1 %v653_v34  ;;  %v694_v34 = vld [vmem:[#allocation7 + $0x7d8] sm:$0xff] }
 0x215   : > { %2689 = vmatmul.mubr.f32.gmra.mrb[52].mxu0 %v657_v45  ;;  %1923 = vmatprep.mubr.f32.mxu1 %v662_v47  ;;  %v5784_v45 = vld [vmem:[%s6347_s30 + $0x138] sm:$0xff] }
 0x216   : > { %2693 = vmatprep.mubr.f32.mxu0 %v666_v48  ;;  %v3518_v47 = vmul.f32 %v5784_v45, %v5784_v45  ;;  %v3644_v48 = vadd.f32 %v3643_v31, %v3517_v30  ;;  %v3521_v30 = vmul.f32 %v5787_v29, %v5787_v29  ;;  %v745_v29 = vld [vmem:[#allocation7 + $0x970] sm:$0xff] }
 0x218   : > { %1924 = vmatmul.mubr.f32.gmra.mrb[54].mxu1 %v661_v49  ;;  %v697_v49 = vld [vmem:[#allocation7 + $0x7f0] sm:$0xff]  ;;  %v3645_v3 = vadd.f32 %v3644_v48, %v3518_v47  ;;  %v5788_v48 = vld [vmem:[%s6347_s30 + $0x158] sm:$0xff] }
 0x219   : > { %2694 = vmatmul.mubr.f32.gmra.mrb[54].mxu0 %v665_v53  ;;  %1928 = vmatprep.mubr.f32.mxu1 %v670_v54  ;;  %v7046_v53 = vpop.permute.xlu1 %1186  ;;  %v701_v54 = vld [vmem:[#allocation7 + $0x810] sm:$0xff] }
 0x21a   : > { %2698 = vmatprep.mubr.f32.mxu0 %v674_v62  ;;  %v5785_v62 = vld [vmem:[%s6347_s30 + $0x140] sm:$0xff]  ;;  %v725_v47 = vld [vmem:[#allocation7 + $0x8d0] sm:$0xff] }
 0x21c   : > { %1929 = vmatmul.mubr.f32.gmra.mrb[56].mxu1 %v669_v63  ;;  %v3519_v63 = vmul.f32 %v5785_v62, %v5785_v62  ;;  %v738_v62 = vld [vmem:[#allocation7 + $0x938] sm:$0xff] }
 0x21d   : > { %2699 = vmatmul.mubr.f32.gmra.mrb[56].mxu0 %v673_v7  ;;  %1933 = vmatprep.mubr.f32.mxu1 %v678_v8  ;;  %v714_v7 = vld [vmem:[#allocation7 + $0x878] sm:$0xff]  ;;  %v7049_v8 = vpop.permute.xlu0 %1191 }
 0x21e   : > { %2703 = vmatprep.mubr.f32.mxu0 %v682_v9  ;;  %v709_v9 = vld [vmem:[#allocation7 + $0x850] sm:$0xff]  ;;  %v3646_v13 = vadd.f32 %v3645_v3, %v3519_v63 }
 0x21f   : > { %v733_v3 = vld [vmem:[#allocation7 + $0x910] sm:$0xff] }
 0x220   : > { %1934 = vmatmul.mubr.f32.gmra.mrb[58].mxu1 %v677_v10  ;;  %v5786_v10 = vld [vmem:[%s6347_s30 + $0x148] sm:$0xff] }
 0x221   : > { %2704 = vmatmul.mubr.f32.gmra.mrb[58].mxu0 %v681_v20  ;;  %1938 = vmatprep.mubr.f32.mxu1 %v686_v21  ;;  %v3520_v12 = vmul.f32 %v5786_v10, %v5786_v10  ;;  %v718_v20 = vld [vmem:[#allocation7 + $0x898] sm:$0xff]  ;;  %v7052_v21 = vpop.permute.xlu1 %1196 }
 0x222   : > { %2708 = vmatprep.mubr.f32.mxu0 %v690_v23  ;;  %v722_v23 = vld [vmem:[#allocation7 + $0x8b8] sm:$0xff] }
 0x223   : > { %v3647_v31 = vadd.f32 %v3646_v13, %v3520_v12  ;;  %v742_v10 = vld [vmem:[#allocation7 + $0x958] sm:$0xff] }
 0x224   : > { %1939 = vmatmul.mubr.f32.gmra.mrb[60].mxu1 %v685_v28  ;;  %v717_v28 = vld [vmem:[#allocation7 + $0x890] sm:$0xff]  ;;  %v746_v13 = vld [vmem:[#allocation7 + $0x978] sm:$0xff] }
 0x225   : > { %2709 = vmatmul.mubr.f32.gmra.mrb[60].mxu0 %v689_v0  ;;  %1943 = vmatprep.mubr.f32.mxu1 %v694_v34  ;;  %v721_v0 = vld [vmem:[#allocation7 + $0x8b0] sm:$0xff]  ;;  %v726_v34 = vld [vmem:[#allocation7 + $0x8d8] sm:$0xff]  ;;  %v7057_v45 = vpop.permute.xlu1 %1206 }
 0x226   : > { %2713 = vmatprep.mubr.f32.mxu0 %v698_v39  ;;  %v7055_v39 = vpop.permute.xlu0 %1201 }
 0x228   : > { %1944 = vmatmul.mubr.f32.gmra.mrb[62].mxu1 %v693_v42  ;;  %v730_v42 = vld [vmem:[#allocation7 + $0x8f8] sm:$0xff] }
 0x229   : > { %2714 = vmatmul.mubr.f32.gmra.mrb[62].mxu0 %v697_v49  ;;  %1948 = vmatprep.mubr.f32.mxu1 %v702_v50  ;;  %v3522_v49 = vmul.f32 %v5788_v48, %v5788_v48  ;;  %v3648_v50 = vadd.f32 %v3647_v31, %v3521_v30  ;;  %v7063_v12 = vpop.permute.xlu1 %1216  ;;  %v750_v30 = vld [vmem:[#allocation7 + $0x998] sm:$0xff] }
 0x22a   : > { %2718 = vmatprep.mubr.f32.mxu0 %v706_v52  ;;  %v729_v52 = vld [vmem:[#allocation7 + $0x8f0] sm:$0xff]  ;;  %v7060_v63 = vpop.permute.xlu0 %1211 }
 0x22c   : > { %1949 = vmatmul.mubr.f32.gmra.mrb[64].mxu1 %v701_v54  ;;  %v734_v54 = vld [vmem:[#allocation7 + $0x918] sm:$0xff] }
 0x22d   : > { %2719 = vmatmul.mubr.f32.gmra.mrb[64].mxu0 %v705_v4  ;;  %1953 = vmatprep.mubr.f32.mxu1 %v710_v6  ;;  %v5789_v4 = vld [vmem:[%s6347_s30 + $0x160] sm:$0xff] }
 0x22e   : > { %2723 = vmatprep.mubr.f32.mxu0 %v714_v7  ;;  %v3523_v6 = vmul.f32 %v5789_v4, %v5789_v4  ;;  %v3649_v7 = vadd.f32 %v3648_v50, %v3522_v49  ;;  %v7066_v31 = vpop.permute.xlu0 %1221  ;;  %v753_v50 = vld [vmem:[#allocation7 + $0x9b0] sm:$0xff]  ;;  %v5792_v4 = vld [vmem:[%s6347_s30 + $0x178] sm:$0xff] }
 0x22f   : > { %8513 = vst [vmem:[#allocation17_spill] sm:$0xff] %v7066_v31 }
 0x230   : > { %1954 = vmatmul.mubr.f32.gmra.mrb[66].mxu1 %v709_v9  ;;  %v737_v9 = vld [vmem:[#allocation7 + $0x930] sm:$0xff] }
 0x231   : > { %2724 = vmatmul.mubr.f32.gmra.mrb[66].mxu0 %v713_v18  ;;  %1958 = vmatprep.mubr.f32.mxu1 %v718_v20  ;;  %v741_v18 = vld [vmem:[#allocation7 + $0x950] sm:$0xff]  ;;  %v5790_v20 = vld [vmem:[%s6347_s30 + $0x168] sm:$0xff] }
 0x232   : > { %2728 = vmatprep.mubr.f32.mxu0 %v722_v23  ;;  %v3524_v23 = vmul.f32 %v5790_v20, %v5790_v20  ;;  %v765_v20 = vld [vmem:[#allocation7 + $0xa10] sm:$0xff] }
 0x234   : > { %1959 = vmatmul.mubr.f32.gmra.mrb[68].mxu1 %v717_v28  ;;  %v3650_v28 = vadd.f32 %v3649_v7, %v3523_v6  ;;  %v3526_v6 = vmul.f32 %v5792_v4, %v5792_v4  ;;  %v782_v4 = vld [vmem:[#allocation7 + $0xa98] sm:$0xff] }
 0x235   : > { %2729 = vmatmul.mubr.f32.gmra.mrb[68].mxu0 %v721_v0  ;;  %1963 = vmatprep.mubr.f32.mxu1 %v726_v34  ;;  %v754_v0 = vld [vmem:[#allocation7 + $0x9b8] sm:$0xff]  ;;  %v7068_v34 = vpop.permute.xlu1 %1226 }
 0x236   : > { %2733 = vmatprep.mubr.f32.mxu0 %v730_v42  ;;  %8514 = vst [vmem:[#allocation18_spill] sm:$0xff] %v7068_v34  ;;  %v749_v42 = vld [vmem:[#allocation7 + $0x990] sm:$0xff]  ;;  %v3651_v49 = vadd.f32 %v3650_v28, %v3524_v23  ;;  %v5793_v23 = vld [vmem:[%s6347_s30 + $0x180] sm:$0xff] }
 0x237   : > { %v3527_v28 = vmul.f32 %v5793_v23, %v5793_v23  ;;  %v785_v23 = vld [vmem:[#allocation7 + $0xab0] sm:$0xff] }
 0x238   : > { %1964 = vmatmul.mubr.f32.gmra.mrb[70].mxu1 %v725_v47  ;;  %v5791_v47 = vld [vmem:[%s6347_s30 + $0x170] sm:$0xff] }
 0x239   : > { %2734 = vmatmul.mubr.f32.gmra.mrb[70].mxu0 %v729_v52  ;;  %1968 = vmatprep.mubr.f32.mxu1 %v734_v54  ;;  %v3525_v48 = vmul.f32 %v5791_v47, %v5791_v47  ;;  %v758_v52 = vld [vmem:[#allocation7 + $0x9d8] sm:$0xff] }
 0x23a   : > { %2738 = vmatprep.mubr.f32.mxu0 %v738_v62  ;;  %v762_v54 = vld [vmem:[#allocation7 + $0x9f8] sm:$0xff]  ;;  %v7071_v62 = vpop.permute.xlu0 %1231 }
 0x23b   : > { %8515 = vst [vmem:[#allocation19_spill] sm:$0xff] %v7071_v62  ;;  %v3652_v7 = vadd.f32 %v3651_v49, %v3525_v48  ;;  %v778_v47 = vld [vmem:[#allocation7 + $0xa78] sm:$0xff]  ;;  %v773_v49 = vld [vmem:[#allocation7 + $0xa50] sm:$0xff] }
 0x23c   : > { %1969 = vmatmul.mubr.f32.gmra.mrb[72].mxu1 %v733_v3  ;;  %v757_v3 = vld [vmem:[#allocation7 + $0x9d0] sm:$0xff]  ;;  %v898_v62 = vld [vmem:[#allocation7 + $0xe38] sm:$0xff] }
 0x23d   : > { %2739 = vmatmul.mubr.f32.gmra.mrb[72].mxu0 %v737_v9  ;;  %1973 = vmatprep.mubr.f32.mxu1 %v742_v10  ;;  %v761_v9 = vld [vmem:[#allocation7 + $0x9f0] sm:$0xff]  ;;  %v766_v10 = vld [vmem:[#allocation7 + $0xa18] sm:$0xff] }
 0x23e   : > { %2743 = vmatprep.mubr.f32.mxu0 %v746_v13  ;;  %v7074_v13 = vpop.permute.xlu1 %1236 }
 0x23f   : > { %8516 = vst [vmem:[#allocation20_spill] sm:$0xff] %v7074_v13 }
 0x240   : > { %1974 = vmatmul.mubr.f32.gmra.mrb[74].mxu1 %v741_v18  ;;  %v770_v18 = vld [vmem:[#allocation7 + $0xa38] sm:$0xff] }
 0x241   : > { %2744 = vmatmul.mubr.f32.gmra.mrb[74].mxu0 %v745_v29  ;;  %1978 = vmatprep.mubr.f32.mxu1 %v750_v30  ;;  %v3653_v29 = vadd.f32 %v3652_v7, %v3526_v6  ;;  %v769_v30 = vld [vmem:[#allocation7 + $0xa30] sm:$0xff]  ;;  %v786_v6 = vld [vmem:[#allocation7 + $0xab8] sm:$0xff] }
 0x242   : > { %2748 = vmatprep.mubr.f32.mxu0 %v754_v0  ;;  %v774_v0 = vld [vmem:[#allocation7 + $0xa58] sm:$0xff]  ;;  %v7079_v48 = vpop.permute.xlu1 %1246 }
 0x243   : > { %8518 = vst [vmem:[#allocation22_spill] sm:$0xff] %v7079_v48 }
 0x244   : > { %1979 = vmatmul.mubr.f32.gmra.mrb[76].mxu1 %v749_v42  ;;  %v7077_v42 = vpop.permute.xlu0 %1241 }
 0x245   : > { %2749 = vmatmul.mubr.f32.gmra.mrb[76].mxu0 %v753_v50  ;;  %1983 = vmatprep.mubr.f32.mxu1 %v758_v52  ;;  %8517 = vst [vmem:[#allocation21_spill] sm:$0xff] %v7077_v42  ;;  %v5794_v50 = vld [vmem:[%s6347_s30 + $0x188] sm:$0xff] }
 0x246   : > { %2753 = vmatprep.mubr.f32.mxu0 %v762_v54  ;;  %v3528_v52 = vmul.f32 %v5794_v50, %v5794_v50  ;;  %v3654_v54 = vadd.f32 %v3653_v29, %v3527_v28  ;;  %v794_v28 = vld [vmem:[#allocation7 + $0xaf8] sm:$0xff]  ;;  %v789_v29 = vld [vmem:[#allocation7 + $0xad0] sm:$0xff] }
 0x248   : > { %1984 = vmatmul.mubr.f32.gmra.mrb[78].mxu1 %v757_v3  ;;  %v777_v3 = vld [vmem:[#allocation7 + $0xa70] sm:$0xff]  ;;  %v7082_v7 = vpop.permute.xlu0 %1251 }
 0x249   : > { %2754 = vmatmul.mubr.f32.gmra.mrb[78].mxu0 %v761_v9  ;;  %1988 = vmatprep.mubr.f32.mxu1 %v766_v10  ;;  %8519 = vst [vmem:[#allocation23_spill] sm:$0xff] %v7082_v7  ;;  %v781_v9 = vld [vmem:[#allocation7 + $0xa90] sm:$0xff] }
 0x24a   : > { %2758 = vmatprep.mubr.f32.mxu0 %v770_v18  ;;  %v5795_v10 = vld [vmem:[%s6347_s30 + $0x190] sm:$0xff] }
 0x24b   : > { %v3529_v18 = vmul.f32 %v5795_v10, %v5795_v10 }
 0x24c   : > { %1989 = vmatmul.mubr.f32.gmra.mrb[80].mxu1 %v765_v20  ;;  %v3655_v20 = vadd.f32 %v3654_v54, %v3528_v52  ;;  %v7088_v7 = vpop.permute.xlu0 %1261  ;;  %v802_v52 = vld [vmem:[#allocation7 + $0xb38] sm:$0xff] }
 0x24d   : > { %2759 = vmatmul.mubr.f32.gmra.mrb[80].mxu0 %v769_v30  ;;  %1993 = vmatprep.mubr.f32.mxu1 %v774_v0  ;;  %v790_v30 = vld [vmem:[#allocation7 + $0xad8] sm:$0xff]  ;;  %v7085_v0 = vpop.permute.xlu1 %1256  ;;  %8521 = vst [vmem:[#allocation25_spill] sm:$0xff] %v7088_v7 }
 0x24e   : > { %2763 = vmatprep.mubr.f32.mxu0 %v778_v47  ;;  %8520 = vst [vmem:[#allocation24_spill] sm:$0xff] %v7085_v0  ;;  %v5796_v47 = vld [vmem:[%s6347_s30 + $0x198] sm:$0xff]  ;;  %v3656_v50 = vadd.f32 %v3655_v20, %v3529_v18 }
 0x24f   : > { %v810_v18 = vld [vmem:[#allocation7 + $0xb78] sm:$0xff] }
 0x250   : > { %1994 = vmatmul.mubr.f32.gmra.mrb[82].mxu1 %v773_v49  ;;  %v3530_v49 = vmul.f32 %v5796_v47, %v5796_v47  ;;  %v806_v47 = vld [vmem:[#allocation7 + $0xb58] sm:$0xff]  ;;  %v7093_v20 = vpop.permute.xlu0 %1271 }
 0x251   : > { %2764 = vmatmul.mubr.f32.gmra.mrb[82].mxu0 %v777_v3  ;;  %1998 = vmatprep.mubr.f32.mxu1 %v782_v4  ;;  %v793_v3 = vld [vmem:[#allocation7 + $0xaf0] sm:$0xff]  ;;  %v798_v4 = vld [vmem:[#allocation7 + $0xb18] sm:$0xff]  ;;  %v7090_v54 = vpop.permute.xlu1 %1266  ;;  %8523 = vst [vmem:[#allocation27_spill] sm:$0xff] %v7093_v20 }
 0x252   : > { %2768 = vmatprep.mubr.f32.mxu0 %v786_v6  ;;  %8522 = vst [vmem:[#allocation26_spill] sm:$0xff] %v7090_v54  ;;  %v797_v6 = vld [vmem:[#allocation7 + $0xb10] sm:$0xff] }
 0x254   : > { %1999 = vmatmul.mubr.f32.gmra.mrb[84].mxu1 %v781_v9  ;;  %v5797_v9 = vld [vmem:[%s6347_s30 + $0x1a0] sm:$0xff]  ;;  %v7099_v20 = vpop.permute.xlu0 %1281 }
 0x255   : > { %2769 = vmatmul.mubr.f32.gmra.mrb[84].mxu0 %v785_v23  ;;  %2003 = vmatprep.mubr.f32.mxu1 %v790_v30  ;;  %v3531_v10 = vmul.f32 %v5797_v9, %v5797_v9  ;;  %v3657_v23 = vadd.f32 %v3656_v50, %v3530_v49  ;;  %v801_v30 = vld [vmem:[#allocation7 + $0xb30] sm:$0xff]  ;;  %v7096_v0 = vpop.permute.xlu1 %1276  ;;  %v818_v49 = vld [vmem:[#allocation7 + $0xbb8] sm:$0xff]  ;;  %8525 = vst [vmem:[#allocation29_spill] sm:$0xff] %v7099_v20 }
 0x256   : > { %2773 = vmatprep.mubr.f32.mxu0 %v794_v28  ;;  %v805_v28 = vld [vmem:[#allocation7 + $0xb50] sm:$0xff]  ;;  %8524 = vst [vmem:[#allocation28_spill] sm:$0xff] %v7096_v0 }
 0x257   : > { %v3658_v7 = vadd.f32 %v3657_v23, %v3531_v10  ;;  %v813_v50 = vld [vmem:[#allocation7 + $0xb90] sm:$0xff]  ;;  %v826_v10 = vld [vmem:[#allocation7 + $0xbf8] sm:$0xff] }
 0x258   : > { %2004 = vmatmul.mubr.f32.gmra.mrb[86].mxu1 %v789_v29  ;;  %v5798_v29 = vld [vmem:[%s6347_s30 + $0x1a8] sm:$0xff] }
 0x259   : > { %2774 = vmatmul.mubr.f32.gmra.mrb[86].mxu0 %v793_v3  ;;  %2008 = vmatprep.mubr.f32.mxu1 %v798_v4  ;;  %v3532_v54 = vmul.f32 %v5798_v29, %v5798_v29  ;;  %v809_v3 = vld [vmem:[#allocation7 + $0xb70] sm:$0xff]  ;;  %v814_v4 = vld [vmem:[#allocation7 + $0xb98] sm:$0xff]  ;;  %v7101_v23 = vpop.permute.xlu1 %1286 }
 0x25a   : > { %2778 = vmatprep.mubr.f32.mxu0 %v802_v52  ;;  %v5799_v52 = vld [vmem:[%s6347_s30 + $0x1b0] sm:$0xff]  ;;  %8526 = vst [vmem:[#allocation30_spill] sm:$0xff] %v7101_v23 }
 0x25b   : > { %v3659_v9 = vadd.f32 %v3658_v7, %v3532_v54  ;;  %v834_v7 = vld [vmem:[#allocation7 + $0xc38] sm:$0xff]  ;;  %v7104_v54 = vpop.permute.xlu0 %1291 }
 0x25c   : > { %2009 = vmatmul.mubr.f32.gmra.mrb[88].mxu1 %v797_v6  ;;  %v3533_v6 = vmul.f32 %v5799_v52, %v5799_v52  ;;  %v830_v52 = vld [vmem:[#allocation7 + $0xc18] sm:$0xff]  ;;  %8527 = vst [vmem:[#allocation31_spill] sm:$0xff] %v7104_v54 }
 0x25d   : > { %2779 = vmatmul.mubr.f32.gmra.mrb[88].mxu0 %v801_v30  ;;  %2013 = vmatprep.mubr.f32.mxu1 %v806_v47  ;;  %v817_v30 = vld [vmem:[#allocation7 + $0xbb0] sm:$0xff]  ;;  %v822_v47 = vld [vmem:[#allocation7 + $0xbd8] sm:$0xff]  ;;  %v7107_v0 = vpop.permute.xlu1 %1296 }
 0x25e   : > { %2783 = vmatprep.mubr.f32.mxu0 %v810_v18  ;;  %v821_v18 = vld [vmem:[#allocation7 + $0xbd0] sm:$0xff]  ;;  %8528 = vst [vmem:[#allocation32_spill] sm:$0xff] %v7107_v0 }
 0x25f   : > { %v7110_v54 = vpop.permute.xlu0 %1301 }
 0x260   : > { %2014 = vmatmul.mubr.f32.gmra.mrb[90].mxu1 %v805_v28  ;;  %v5800_v28 = vld [vmem:[%s6347_s30 + $0x1b8] sm:$0xff]  ;;  %8529 = vst [vmem:[#allocation33_spill] sm:$0xff] %v7110_v54 }
 0x261   : > { %2784 = vmatmul.mubr.f32.gmra.mrb[90].mxu0 %v809_v3  ;;  %2018 = vmatprep.mubr.f32.mxu1 %v814_v4  ;;  %v3534_v29 = vmul.f32 %v5800_v28, %v5800_v28  ;;  %v3660_v3 = vadd.f32 %v3659_v9, %v3533_v6  ;;  %v825_v4 = vld [vmem:[#allocation7 + $0xbf0] sm:$0xff]  ;;  %v842_v6 = vld [vmem:[#allocation7 + $0xc78] sm:$0xff] }
 0x262   : > { %2788 = vmatprep.mubr.f32.mxu0 %v818_v49  ;;  %v829_v49 = vld [vmem:[#allocation7 + $0xc10] sm:$0xff] }
 0x263   : > { %v3661_v20 = vadd.f32 %v3660_v3, %v3534_v29  ;;  %v837_v9 = vld [vmem:[#allocation7 + $0xc50] sm:$0xff]  ;;  %v850_v29 = vld [vmem:[#allocation7 + $0xcb8] sm:$0xff]  ;;  %v7112_v3 = vpop.permute.xlu1 %1306 }
 0x264   : > { %2019 = vmatmul.mubr.f32.gmra.mrb[92].mxu1 %v813_v50  ;;  %v5801_v50 = vld [vmem:[%s6347_s30 + $0x1c0] sm:$0xff]  ;;  %8530 = vst [vmem:[#allocation34_spill] sm:$0xff] %v7112_v3 }
 0x265   : > { %2789 = vmatmul.mubr.f32.gmra.mrb[92].mxu0 %v817_v30  ;;  %2023 = vmatprep.mubr.f32.mxu1 %v822_v47  ;;  %v3535_v23 = vmul.f32 %v5801_v50, %v5801_v50  ;;  %v833_v30 = vld [vmem:[#allocation7 + $0xc30] sm:$0xff]  ;;  %v838_v47 = vld [vmem:[#allocation7 + $0xc58] sm:$0xff] }
 0x266   : > { %2793 = vmatprep.mubr.f32.mxu0 %v826_v10  ;;  %v5802_v10 = vld [vmem:[%s6347_s30 + $0x1c8] sm:$0xff] }
 0x267   : > { %v3662_v28 = vadd.f32 %v3661_v20, %v3535_v23  ;;  %v858_v20 = vld [vmem:[#allocation7 + $0xcf8] sm:$0xff]  ;;  %v7115_v23 = vpop.permute.xlu0 %1311  ;;  %v7118_v0 = vpop.permute.xlu1 %1316 }
 0x268   : > { %2024 = vmatmul.mubr.f32.gmra.mrb[94].mxu1 %v821_v18  ;;  %v3536_v18 = vmul.f32 %v5802_v10, %v5802_v10  ;;  %v854_v10 = vld [vmem:[#allocation7 + $0xcd8] sm:$0xff]  ;;  %8531 = vst [vmem:[#allocation35_spill] sm:$0xff] %v7115_v23  ;;  %8532 = vst [vmem:[#allocation36_spill] sm:$0xff] %v7118_v0 }
 0x269   : > { %2794 = vmatmul.mubr.f32.gmra.mrb[94].mxu0 %v825_v4  ;;  %2028 = vmatprep.mubr.f32.mxu1 %v830_v52  ;;  %v841_v4 = vld [vmem:[#allocation7 + $0xc70] sm:$0xff]  ;;  %v846_v52 = vld [vmem:[#allocation7 + $0xc98] sm:$0xff] }
 0x26a   : > { %2798 = vmatprep.mubr.f32.mxu0 %v834_v7  ;;  %v845_v7 = vld [vmem:[#allocation7 + $0xc90] sm:$0xff] }
 0x26b   : > { %v7121_v23 = vpop.permute.xlu0 %1321 }
 0x26c   : > { %2029 = vmatmul.mubr.f32.gmra.mrb[96].mxu1 %v829_v49  ;;  %v5803_v49 = vld [vmem:[%s6347_s30 + $0x1d0] sm:$0xff]  ;;  %8533 = vst [vmem:[#allocation37_spill] sm:$0xff] %v7121_v23 }
 0x26d   : > { %2799 = vmatmul.mubr.f32.gmra.mrb[96].mxu0 %v833_v30  ;;  %2033 = vmatprep.mubr.f32.mxu1 %v838_v47  ;;  %v3537_v50 = vmul.f32 %v5803_v49, %v5803_v49  ;;  %v3663_v30 = vadd.f32 %v3662_v28, %v3536_v18  ;;  %v849_v47 = vld [vmem:[#allocation7 + $0xcb0] sm:$0xff]  ;;  %v866_v18 = vld [vmem:[#allocation7 + $0xd38] sm:$0xff] }
 0x26e   : > { %2803 = vmatprep.mubr.f32.mxu0 %v842_v6  ;;  %v853_v6 = vld [vmem:[#allocation7 + $0xcd0] sm:$0xff] }
 0x26f   : > { %v3664_v54 = vadd.f32 %v3663_v30, %v3537_v50  ;;  %v861_v28 = vld [vmem:[#allocation7 + $0xd10] sm:$0xff]  ;;  %v874_v50 = vld [vmem:[#allocation7 + $0xd78] sm:$0xff]  ;;  %v7123_v30 = vpop.permute.xlu1 %1326 }
 0x270   : > { %2034 = vmatmul.mubr.f32.gmra.mrb[98].mxu1 %v837_v9  ;;  %v5804_v9 = vld [vmem:[%s6347_s30 + $0x1d8] sm:$0xff]  ;;  %8534 = vst [vmem:[#allocation38_spill] sm:$0xff] %v7123_v30 }
 0x271   : > { %2804 = vmatmul.mubr.f32.gmra.mrb[98].mxu0 %v841_v4  ;;  %2038 = vmatprep.mubr.f32.mxu1 %v846_v52  ;;  %v3538_v3 = vmul.f32 %v5804_v9, %v5804_v9  ;;  %v857_v4 = vld [vmem:[#allocation7 + $0xcf0] sm:$0xff]  ;;  %v862_v52 = vld [vmem:[#allocation7 + $0xd18] sm:$0xff] }
 0x272   : > { %2808 = vmatprep.mubr.f32.mxu0 %v850_v29  ;;  %v5805_v29 = vld [vmem:[%s6347_s30 + $0x1e0] sm:$0xff] }
 0x273   : > { %v3665_v49 = vadd.f32 %v3664_v54, %v3538_v3  ;;  %v882_v3 = vld [vmem:[#allocation7 + $0xdb8] sm:$0xff]  ;;  %v7130_v42 = vpop.permute.xlu1 %1336 }
 0x274   : > { %2039 = vmatmul.mubr.f32.gmra.mrb[100].mxu1 %v845_v7  ;;  %v3539_v7 = vmul.f32 %v5805_v29, %v5805_v29  ;;  %v878_v29 = vld [vmem:[#allocation7 + $0xd98] sm:$0xff]  ;;  %8536 = vst [vmem:[#allocation40_spill] sm:$0xff] %v7130_v42 }
 0x275   : > { %2809 = vmatmul.mubr.f32.gmra.mrb[100].mxu0 %v849_v47  ;;  %2043 = vmatprep.mubr.f32.mxu1 %v854_v10  ;;  %v865_v47 = vld [vmem:[#allocation7 + $0xd30] sm:$0xff]  ;;  %v870_v10 = vld [vmem:[#allocation7 + $0xd58] sm:$0xff] }
 0x276   : > { %2813 = vmatprep.mubr.f32.mxu0 %v858_v20  ;;  %v869_v20 = vld [vmem:[#allocation7 + $0xd50] sm:$0xff] }
 0x278   : > { %2044 = vmatmul.mubr.f32.gmra.mrb[102].mxu1 %v853_v6  ;;  %v5806_v6 = vld [vmem:[%s6347_s30 + $0x1e8] sm:$0xff] }
 0x279   : > { %2814 = vmatmul.mubr.f32.gmra.mrb[102].mxu0 %v857_v4  ;;  %2048 = vmatprep.mubr.f32.mxu1 %v862_v52  ;;  %v3540_v9 = vmul.f32 %v5806_v6, %v5806_v6  ;;  %v3666_v4 = vadd.f32 %v3665_v49, %v3539_v7  ;;  %v873_v52 = vld [vmem:[#allocation7 + $0xd70] sm:$0xff] }
 0x27a   : > { %2818 = vmatprep.mubr.f32.mxu0 %v866_v18  ;;  %v881_v49 = vld [vmem:[#allocation7 + $0xdb0] sm:$0xff] }
 0x27b   : > { %v3667_v48 = vadd.f32 %v3666_v4, %v3540_v9 }
 0x27c   : > { %2049 = vmatmul.mubr.f32.gmra.mrb[104].mxu1 %v861_v28  ;;  %v7127_v28 = vpop.permute.xlu0 %1331 }
 0x27d   : > { %2819 = vmatmul.mubr.f32.gmra.mrb[104].mxu0 %v865_v47  ;;  %2053 = vmatprep.mubr.f32.mxu1 %v870_v10  ;;  %8535 = vst [vmem:[#allocation39_spill] sm:$0xff] %v7127_v28  ;;  %v877_v47 = vld [vmem:[#allocation7 + $0xd90] sm:$0xff] }
 0x27e   : > { %2823 = vmatprep.mubr.f32.mxu0 %v874_v50  ;;  %v5807_v10 = vld [vmem:[%s6347_s30 + $0x1f0] sm:$0xff]  ;;  %v886_v50 = vld [vmem:[#allocation7 + $0xdd8] sm:$0xff] }
 0x27f   : > { %v1790_v54 = vpop.f32.mrb[0].mxu1  ;;  %v3541_v6 = vmul.f32 %v5807_v10, %v5807_v10  ;;  %v894_v10 = vld [vmem:[#allocation7 + $0xe18] sm:$0xff] }
 0x280   : > { %v5256_v18 = vadd.f32 %v1790_v54, %v6814_v33  ;;  %v2560_v0 = vpop.f32.mrb[0].mxu0  ;;  %v1792_v23 = vpop.f32.mrb[1].mxu1  ;;  %2054 = vmatmul.mubr.f32.gmra.mrb[106].mxu1 %v869_v20  ;;  %v890_v54 = vld [vmem:[#allocation7 + $0xdf8] sm:$0xff] }
 0x281   : > { %v2562_v30 = vpop.f32.mrb[1].mxu0  ;;  %2824 = vmatmul.mubr.f32.gmra.mrb[106].mxu0 %v873_v52  ;;  %2058 = vmatprep.mubr.f32.mxu1 %v878_v29  ;;  %v885_v52 = vld [vmem:[#allocation7 + $0xdd0] sm:$0xff]  ;;  %v5808_v29 = vld [vmem:[%s6347_s30 + $0x1f8] sm:$0xff]  ;;  %v3010_v42 = vpop.permute.xlu0 %3009 }
 0x282   : > { %v5257_v7 = vadd.f32 %v5256_v18, %v2560_v0  ;;  %2828 = vmatprep.mubr.f32.mxu0 %v882_v3  ;;  %v3542_v9 = vmul.f32 %v5808_v29, %v5808_v29  ;;  %v3668_v0 = vadd.f32 %v3667_v48, %v3541_v6  ;;  %v889_v18 = vld [vmem:[#allocation7 + $0xdf0] sm:$0xff]  ;;  %v902_v29 = vld [vmem:[#allocation7 + $0xe58] sm:$0xff] }
 0x283   : > { %v1795_v33 = vpop.f32.mrb[2].mxu1  ;;  %v893_v48 = vld [vmem:[#allocation7 + $0xe10] sm:$0xff] }
 0x284   : > { %v5258_v23 = vadd.f32 %v1795_v33, %v6827_v43  ;;  %v2565_v20 = vpop.f32.mrb[2].mxu0  ;;  %v1797_v28 = vpop.f32.mrb[3].mxu1  ;;  %2059 = vmatmul.mubr.f32.gmra.mrb[108].mxu1 %v877_v47  ;;  %v2879_v4 = vmax.f32 %v5257_v7, 0.0  ;;  %v3669_v6 = vadd.f32 %v3668_v0, %v3542_v9  ;;  %v5810_v9 = vld [vmem:[%s6347_s30 + $0x208] sm:$0xff] }
 0x285   : > { %v2567_v30 = vpop.f32.mrb[3].mxu0  ;;  %2829 = vmatmul.mubr.f32.gmra.mrb[108].mxu0 %v881_v49  ;;  %2063 = vmatprep.mubr.f32.mxu1 %v886_v50  ;;  %v5809_v49 = vld [vmem:[%s6347_s30 + $0x200] sm:$0xff]  ;;  %v3544_v0 = vmul.f32 %v5810_v9, %v5810_v9 }
 0x286   : > { %v5259_v3 = vadd.f32 %v5258_v23, %v2565_v20  ;;  %2833 = vmatprep.mubr.f32.mxu0 %v890_v54  ;;  %v3543_v50 = vmul.f32 %v5809_v49, %v5809_v49  ;;  %v3015_v30 = vpop.permute.xlu1 %3014  ;;  %v3327_v7 = vmul.f32 %v3010_v42, %v2879_v4  ;;  %v897_v20 = vld [vmem:[#allocation7 + $0xe30] sm:$0xff] }
 0x287   : > { %v1800_v13 = vpop.f32.mrb[4].mxu1  ;;  %v901_v42 = vld [vmem:[#allocation7 + $0xe50] sm:$0xff] }
 0x288   : > { %v2880_v43 = vmax.f32 %v5259_v3, 0.0  ;;  %v5260_v28 = vadd.f32 %v1800_v13, %v6816_v35  ;;  %v2570_v47 = vpop.f32.mrb[4].mxu0  ;;  %v1802_v33 = vpop.f32.mrb[5].mxu1  ;;  %2064 = vmatmul.mubr.f32.gmra.mrb[110].mxu1 %v885_v52  ;;  %v906_v35 = vld [vmem:[#allocation7 + $0xe78] sm:$0xff] }
 0x289   : > { %v2572_v34 = vpop.f32.mrb[5].mxu0  ;;  %2834 = vmatmul.mubr.f32.gmra.mrb[110].mxu0 %v889_v18  ;;  %2068 = vmatprep.mubr.f32.mxu1 %v894_v10 }
 0x28a   : > { %v3328_v54 = vmul.f32 %v3015_v30, %v2880_v43  ;;  %v5261_v23 = vadd.f32 %v5260_v28, %v2570_v47  ;;  %2838 = vmatprep.mubr.f32.mxu0 %v898_v62  ;;  %v3020_v34 = vpop.permute.xlu0 %3019  ;;  %v3670_v62 = vadd.f32 %v3669_v6, %v3543_v50  ;;  %v905_v43 = vld [vmem:[#allocation7 + $0xe70] sm:$0xff]  ;;  %v910_v28 = vld [vmem:[#allocation7 + $0xe98] sm:$0xff] }
 0x28b   : > { %v1805_v3 = vpop.f32.mrb[6].mxu1  ;;  %v914_v30 = vld [vmem:[#allocation7 + $0xeb8] sm:$0xff]  ;;  %v909_v50 = vld [vmem:[#allocation7 + $0xe90] sm:$0xff] }
 0x28c   : > { %v3391_v13 = vadd.f32 %v3328_v54, %v3327_v7  ;;  %v2881_v33 = vmax.f32 %v5261_v23, 0.0  ;;  %v5262_v52 = vadd.f32 %v1805_v3, %v6832_v46  ;;  %v2575_v49 = vpop.f32.mrb[6].mxu0  ;;  %v1807_v31 = vpop.f32.mrb[7].mxu1  ;;  %2069 = vmatmul.mubr.f32.gmra.mrb[112].mxu1 %v893_v48  ;;  %v5811_v6 = vld [vmem:[%s6347_s30 + $0x210] sm:$0xff]  ;;  %v3671_v3 = vadd.f32 %v3670_v62, %v3544_v0  ;;  %v5812_v62 = vld [vmem:[%s6347_s30 + $0x218] sm:$0xff] }
 0x28d   : > { %v2577_v18 = vpop.f32.mrb[7].mxu0  ;;  %2839 = vmatmul.mubr.f32.gmra.mrb[112].mxu0 %v897_v20  ;;  %2073 = vmatprep.mubr.f32.mxu1 %v902_v29  ;;  %v3025_v23 = vpop.permute.xlu1 %3024  ;;  %v3545_v29 = vmul.f32 %v5811_v6, %v5811_v6  ;;  %v917_v0 = vld [vmem:[#allocation7 + $0xed0] sm:$0xff] }
 0x28e   : > { %v3329_v4 = vmul.f32 %v3020_v34, %v2881_v33  ;;  %v5263_v10 = vadd.f32 %v5262_v52, %v2575_v49  ;;  %2843 = vmatprep.mubr.f32.mxu0 %v906_v35  ;;  %v913_v52 = vld [vmem:[#allocation7 + $0xeb0] sm:$0xff]  ;;  %v922_v34 = vld [vmem:[#allocation7 + $0xef8] sm:$0xff] }
 0x28f   : > { %v1810_v47 = vpop.f32.mrb[8].mxu1 }
 0x290   : > { %v3392_v46 = vadd.f32 %v3391_v13, %v3329_v4  ;;  %v2882_v7 = vmax.f32 %v5263_v10, 0.0  ;;  %v5264_v31 = vadd.f32 %v1810_v47, %v6840_v55  ;;  %v2580_v48 = vpop.f32.mrb[8].mxu0  ;;  %v1812_v54 = vpop.f32.mrb[9].mxu1  ;;  %2074 = vmatmul.mubr.f32.gmra.mrb[114].mxu1 %v901_v42  ;;  %v918_v13 = vld [vmem:[#allocation7 + $0xed8] sm:$0xff]  ;;  %v3672_v47 = vadd.f32 %v3671_v3, %v3545_v29  ;;  %v925_v29 = vld [vmem:[#allocation7 + $0xf10] sm:$0xff]  ;;  %v5813_v3 = vld [vmem:[%s6347_s30 + $0x220] sm:$0xff] }
 0x291   : > { %v2582_v20 = vpop.f32.mrb[9].mxu0  ;;  %2844 = vmatmul.mubr.f32.gmra.mrb[114].mxu0 %v905_v43  ;;  %2078 = vmatprep.mubr.f32.mxu1 %v910_v28  ;;  %v3030_v10 = vpop.permute.xlu0 %3029  ;;  %v3546_v28 = vmul.f32 %v5812_v62, %v5812_v62  ;;  %v930_v54 = vld [vmem:[#allocation7 + $0xf38] sm:$0xff] }
 0x292   : > { %v3330_v35 = vmul.f32 %v3025_v23, %v2882_v7  ;;  %v5265_v33 = vadd.f32 %v5264_v31, %v2580_v48  ;;  %2848 = vmatprep.mubr.f32.mxu0 %v914_v30  ;;  %v921_v31 = vld [vmem:[#allocation7 + $0xef0] sm:$0xff] }
 0x293   : > { %v1815_v49 = vpop.f32.mrb[10].mxu1 }
 0x294   : > { %v3393_v55 = vadd.f32 %v3392_v46, %v3330_v35  ;;  %v2883_v18 = vmax.f32 %v5265_v33, 0.0  ;;  %v5266_v42 = vadd.f32 %v1815_v49, %v6842_v57  ;;  %v2585_v9 = vpop.f32.mrb[10].mxu0  ;;  %v1817_v4 = vpop.f32.mrb[11].mxu1  ;;  %2079 = vmatmul.mubr.f32.gmra.mrb[116].mxu1 %v909_v50  ;;  %v926_v46 = vld [vmem:[#allocation7 + $0xf18] sm:$0xff] }
 0x295   : > { %v2587_v43 = vpop.f32.mrb[11].mxu0  ;;  %2849 = vmatmul.mubr.f32.gmra.mrb[116].mxu0 %v913_v52  ;;  %2083 = vmatprep.mubr.f32.mxu1 %v918_v13  ;;  %v3035_v35 = vpop.permute.xlu1 %3034  ;;  %v3547_v52 = vmul.f32 %v5813_v3, %v5813_v3  ;;  %v3673_v13 = vadd.f32 %v3672_v47, %v3546_v28  ;;  %v933_v28 = vld [vmem:[#allocation7 + $0xf50] sm:$0xff]  ;;  %v5814_v47 = vld [vmem:[%s6347_s30 + $0x228] sm:$0xff] }
 0x296   : > { %v3331_v30 = vmul.f32 %v3030_v10, %v2883_v18  ;;  %v5267_v7 = vadd.f32 %v5266_v42, %v2585_v9  ;;  %2853 = vmatprep.mubr.f32.mxu0 %v922_v34  ;;  %v929_v18 = vld [vmem:[#allocation7 + $0xf30] sm:$0xff]  ;;  %v938_v9 = vld [vmem:[#allocation7 + $0xf78] sm:$0xff]  ;;  %v3040_v62 = vpop.permute.xlu0 %3039 }
 0x297   : > { %v1820_v48 = vpop.f32.mrb[12].mxu1 }
 0x298   : > { %v3394_v57 = vadd.f32 %v3393_v55, %v3331_v30  ;;  %v2884_v23 = vmax.f32 %v5267_v7, 0.0  ;;  %v5268_v20 = vadd.f32 %v1820_v48, %v6853_v2  ;;  %v2590_v50 = vpop.f32.mrb[12].mxu0  ;;  %v1822_v6 = vpop.f32.mrb[13].mxu1  ;;  %2084 = vmatmul.mubr.f32.gmra.mrb[118].mxu1 %v917_v0  ;;  %v934_v55 = vld [vmem:[#allocation7 + $0xf58] sm:$0xff]  ;;  %v3548_v7 = vmul.f32 %v5814_v47, %v5814_v47  ;;  %v949_v47 = vld [vmem:[#allocation7 + $0xfd0] sm:$0xff] }
 0x299   : > { %v2592_v33 = vpop.f32.mrb[13].mxu0  ;;  %2854 = vmatmul.mubr.f32.gmra.mrb[118].mxu0 %v921_v31  ;;  %2088 = vmatprep.mubr.f32.mxu1 %v926_v46  ;;  %v3674_v31 = vadd.f32 %v3673_v13, %v3547_v52  ;;  %v941_v52 = vld [vmem:[#allocation7 + $0xf90] sm:$0xff] }
 0x29a   : > { %v3332_v49 = vmul.f32 %v3035_v35, %v2884_v23  ;;  %v5269_v34 = vadd.f32 %v5268_v20, %v2590_v50  ;;  %2858 = vmatprep.mubr.f32.mxu0 %v930_v54  ;;  %v937_v54 = vld [vmem:[#allocation7 + $0xf70] sm:$0xff]  ;;  %v946_v20 = vld [vmem:[#allocation7 + $0xfb8] sm:$0xff] }
 0x29b   : > { %v1825_v42 = vpop.f32.mrb[14].mxu1  ;;  %v5815_v13 = vld [vmem:[%s6347_s30 + $0x230] sm:$0xff] }
 0x29c   : > { %v3395_v2 = vadd.f32 %v3394_v57, %v3332_v49  ;;  %v2885_v4 = vmax.f32 %v5269_v34, 0.0  ;;  %v5270_v10 = vadd.f32 %v1825_v42, %v6858_v5  ;;  %v2595_v43 = vpop.f32.mrb[14].mxu0  ;;  %v1827_v0 = vpop.f32.mrb[15].mxu1  ;;  %2089 = vmatmul.mubr.f32.gmra.mrb[120].mxu1 %v925_v29  ;;  %v942_v57 = vld [vmem:[#allocation7 + $0xf98] sm:$0xff]  ;;  %v3549_v49 = vmul.f32 %v5815_v13, %v5815_v13  ;;  %v945_v42 = vld [vmem:[#allocation7 + $0xfb0] sm:$0xff] }
 0x29d   : > { %v2597_v30 = vpop.f32.mrb[15].mxu0  ;;  %2859 = vmatmul.mubr.f32.gmra.mrb[120].mxu0 %v929_v18  ;;  %2093 = vmatprep.mubr.f32.mxu1 %v934_v55  ;;  %v3045_v29 = vpop.permute.xlu1 %3044  ;;  %v3675_v34 = vadd.f32 %v3674_v31, %v3548_v7  ;;  %v5816_v7 = vld [vmem:[%s6347_s30 + $0x238] sm:$0xff] }
 0x29e   : > { %v3333_v46 = vmul.f32 %v3040_v62, %v2885_v4  ;;  %v5271_v48 = vadd.f32 %v5270_v10, %v2595_v43  ;;  %2863 = vmatprep.mubr.f32.mxu0 %v938_v9  ;;  %v950_v9 = vld [vmem:[#allocation7 + $0xfd8] sm:$0xff]  ;;  %v3050_v30 = vpop.permute.xlu0 %3049  ;;  %v3550_v31 = vmul.f32 %v5816_v7, %v5816_v7 }
 0x29f   : > { %v1830_v23 = vpop.f32.mrb[16].mxu1  ;;  %v954_v4 = vld [vmem:[#allocation7 + $0xff8] sm:$0xff] }
 0x2a0   : > { %v3396_v5 = vadd.f32 %v3395_v2, %v3333_v46  ;;  %v2886_v50 = vmax.f32 %v5271_v48, 0.0  ;;  %v5272_v6 = vadd.f32 %v1830_v23, %v6866_v14  ;;  %v2600_v35 = vpop.f32.mrb[16].mxu0  ;;  %v1832_v33 = vpop.f32.mrb[17].mxu1  ;;  %2094 = vmatmul.mubr.f32.gmra.mrb[122].mxu1 %v933_v28  ;;  %v3676_v46 = vadd.f32 %v3675_v34, %v3549_v49 }
 0x2a1   : > { %v2602_v3 = vpop.f32.mrb[17].mxu0  ;;  %2864 = vmatmul.mubr.f32.gmra.mrb[122].mxu0 %v937_v54  ;;  %2098 = vmatprep.mubr.f32.mxu1 %v942_v57  ;;  %v953_v57 = vld [vmem:[#allocation7 + $0xff0] sm:$0xff] }
 0x2a2   : > { %v3334_v18 = vmul.f32 %v3045_v29, %v2886_v50  ;;  %v5273_v55 = vadd.f32 %v5272_v6, %v2600_v35  ;;  %2868 = vmatprep.mubr.f32.mxu0 %v946_v20  ;;  %v3055_v35 = vpop.permute.xlu1 %3054  ;;  %v5817_v29 = vld [vmem:[%s6347_s30 + $0x240] sm:$0xff] }
 0x2a3   : > { %v1835_v2 = vpop.f32.mrb[18].mxu1  ;;  %v3551_v3 = vmul.f32 %v5817_v29, %v5817_v29 }
 0x2a4   : > { %v3397_v14 = vadd.f32 %v3396_v5, %v3334_v18  ;;  %v2887_v10 = vmax.f32 %v5273_v55, 0.0  ;;  %v5274_v43 = vadd.f32 %v1835_v2, %v6868_v16  ;;  %v2605_v0 = vpop.f32.mrb[18].mxu0  ;;  %v1837_v62 = vpop.f32.mrb[19].mxu1  ;;  %2099 = vmatmul.mubr.f32.gmra.mrb[124].mxu1 %v941_v52  ;;  %v3677_v52 = vadd.f32 %v3676_v46, %v3550_v31 }
 0x2a5   : > { %v2607_v28 = vpop.f32.mrb[19].mxu0  ;;  %2869 = vmatmul.mubr.f32.gmra.mrb[124].mxu0 %v945_v42  ;;  %2103 = vmatprep.mubr.f32.mxu1 %v950_v9 }
 0x2a6   : > { %v3335_v48 = vmul.f32 %v3050_v30, %v2887_v10  ;;  %v5275_v54 = vadd.f32 %v5274_v43, %v2605_v0  ;;  %2873 = vmatprep.mubr.f32.mxu0 %v954_v4  ;;  %v3678_v43 = vadd.f32 %v3677_v52, %v3551_v3  ;;  %v5820_v52 = vld [vmem:[%s6347_s30 + $0x258] sm:$0xff] }
 0x2a7   : > { %v1840_v23 = vpop.f32.mrb[20].mxu1 }
 0x2a8   : > { %v3398_v20 = vadd.f32 %v3397_v14, %v3335_v48  ;;  %v2888_v5 = vmax.f32 %v5275_v54, 0.0  ;;  %v5276_v16 = vadd.f32 %v1840_v23, %v6879_v24  ;;  %v2610_v50 = vpop.f32.mrb[20].mxu0  ;;  %v1842_v6 = vpop.f32.mrb[21].mxu1  ;;  %2104 = vmatmul.mubr.f32.gmra.mrb[126].mxu1 %v949_v47  ;;  %v5818_v14 = vld [vmem:[%s6347_s30 + $0x248] sm:$0xff]  ;;  %v5819_v54 = vld [vmem:[%s6347_s30 + $0x250] sm:$0xff] }
 0x2a9   : > { %v2612_v33 = vpop.f32.mrb[21].mxu0  ;;  %2874 = vmatmul.mubr.f32.gmra.mrb[126].mxu0 %v953_v57  ;;  %v3060_v24 = vpop.permute.xlu0 %3059  ;;  %v3552_v10 = vmul.f32 %v5818_v14, %v5818_v14  ;;  %v3553_v57 = vmul.f32 %v5819_v54, %v5819_v54  ;;  %v5822_v54 = vld [vmem:[%s6347_s30 + $0x268] sm:$0xff] }
 0x2aa   : > { %v3336_v13 = vmul.f32 %v3055_v35, %v2888_v5  ;;  %v5277_v49 = vadd.f32 %v5276_v16, %v2610_v50  ;;  %v3065_v48 = vpop.permute.xlu1 %3064 }
 0x2ab   : > { %v1845_v34 = vpop.f32.mrb[22].mxu1  ;;  %v3679_v23 = vadd.f32 %v3678_v43, %v3552_v10  ;;  %v5821_v10 = vld [vmem:[%s6347_s30 + $0x260] sm:$0xff] }
 0x2ac   : > { %v3399_v18 = vadd.f32 %v3398_v20, %v3336_v13  ;;  %v2889_v55 = vmax.f32 %v5277_v49, 0.0  ;;  %v5278_v42 = vadd.f32 %v1845_v34, %v6884_v27  ;;  %v2615_v9 = vpop.f32.mrb[22].mxu0  ;;  %v1847_v2 = vpop.f32.mrb[23].mxu1  ;;  %v3554_v13 = vmul.f32 %v5820_v52, %v5820_v52 }
 0x2ad   : > { %v2617_v4 = vpop.f32.mrb[23].mxu0  ;;  %v3070_v3 = vpop.permute.xlu0 %3069  ;;  %v3680_v49 = vadd.f32 %v3679_v23, %v3553_v57  ;;  %v3555_v43 = vmul.f32 %v5821_v10, %v5821_v10  ;;  %v3556_v57 = vmul.f32 %v5822_v54, %v5822_v54 }
 0x2ae   : > { %v3337_v0 = vmul.f32 %v3060_v24, %v2889_v55  ;;  %v5279_v62 = vadd.f32 %v5278_v42, %v2615_v9  ;;  %v3075_v14 = vpop.permute.xlu1 %3074 }
 0x2af   : > { %v1850_v30 = vpop.f32.mrb[24].mxu1 }
 0x2b0   : > { %v3400_v28 = vadd.f32 %v3399_v18, %v3337_v0  ;;  %v2890_v47 = vmax.f32 %v5279_v62, 0.0  ;;  %v5280_v7 = vadd.f32 %v1850_v30, %v6894_v41  ;;  %v2620_v31 = vpop.f32.mrb[24].mxu0  ;;  %v1852_v46 = vpop.f32.mrb[25].mxu1  ;;  %v3681_v0 = vadd.f32 %v3680_v49, %v3554_v13 }
 0x2b1   : > { %v2622_v27 = vpop.f32.mrb[25].mxu0 }
 0x2b2   : > { %v3338_v20 = vmul.f32 %v3065_v48, %v2890_v47  ;;  %v5281_v5 = vadd.f32 %v5280_v7, %v2620_v31  ;;  %v3080_v27 = vpop.permute.xlu0 %3079  ;;  %v3682_v23 = vadd.f32 %v3681_v0, %v3555_v43 }
 0x2b3   : > { %v1855_v16 = vpop.f32.mrb[26].mxu1 }
 0x2b4   : > { %v3401_v50 = vadd.f32 %v3400_v28, %v3338_v20  ;;  %v2891_v6 = vmax.f32 %v5281_v5, 0.0  ;;  %v5282_v35 = vadd.f32 %v1855_v16, %v6896_v44  ;;  %v2625_v33 = vpop.f32.mrb[26].mxu0  ;;  %v1857_v29 = vpop.f32.mrb[27].mxu1  ;;  %v3683_v13 = vadd.f32 %v3682_v23, %v3556_v57 }
 0x2b5   : > { %v2627_v41 = vpop.f32.mrb[27].mxu0 }
 0x2b6   : > { %v3339_v34 = vmul.f32 %v3070_v3, %v2891_v6  ;;  %v5283_v18 = vadd.f32 %v5282_v35, %v2625_v33  ;;  %v3085_v3 = vpop.permute.xlu1 %3084  ;;  %v5823_v41 = vld [vmem:[%s6347_s30 + $0x270] sm:$0xff] }
 0x2b7   : > { %v1860_v55 = vpop.f32.mrb[28].mxu1  ;;  %v3557_v52 = vmul.f32 %v5823_v41, %v5823_v41 }
 0x2b8   : > { %v3402_v42 = vadd.f32 %v3401_v50, %v3339_v34  ;;  %v2892_v9 = vmax.f32 %v5283_v18, 0.0  ;;  %v5284_v2 = vadd.f32 %v1860_v55, %v6908_v58  ;;  %v2630_v24 = vpop.f32.mrb[28].mxu0  ;;  %v1862_v4 = vpop.f32.mrb[29].mxu1 }
 0x2b9   : > { %v2632_v44 = vpop.f32.mrb[29].mxu0  ;;  %v3090_v4 = vpop.permute.xlu0 %3089  ;;  %v3684_v10 = vadd.f32 %v3683_v13, %v3557_v52 }
 0x2ba   : > { %v3340_v62 = vmul.f32 %v3075_v14, %v2892_v9  ;;  %v5285_v30 = vadd.f32 %v5284_v2, %v2630_v24  ;;  %v5824_v14 = vld [vmem:[%s6347_s30 + $0x278] sm:$0xff] }
 0x2bb   : > { %v1865_v28 = vpop.f32.mrb[30].mxu1  ;;  %v3558_v44 = vmul.f32 %v5824_v14, %v5824_v14 }
 0x2bc   : > { %v3403_v47 = vadd.f32 %v3402_v42, %v3340_v62  ;;  %v2893_v7 = vmax.f32 %v5285_v30, 0.0  ;;  %v5286_v31 = vadd.f32 %v1865_v28, %v6913_v61  ;;  %v2635_v46 = vpop.f32.mrb[30].mxu0  ;;  %v1867_v48 = vpop.f32.mrb[31].mxu1 }
 0x2bd   : > { %v2637_v58 = vpop.f32.mrb[31].mxu0  ;;  %v5825_v48 = vld [vmem:[%s6347_s30 + $0x280] sm:$0xff] }
 0x2be   : > { %v3341_v20 = vmul.f32 %v3080_v27, %v2893_v7  ;;  %v5287_v5 = vadd.f32 %v5286_v31, %v2635_v46  ;;  %v3095_v46 = vpop.permute.xlu1 %3094  ;;  %v3559_v27 = vmul.f32 %v5825_v48, %v5825_v48  ;;  %v3685_v58 = vadd.f32 %v3684_v10, %v3558_v44 }
 0x2bf   : > { %v1870_v16 = vpop.f32.mrb[32].mxu1 }
 0x2c0   : > { %v3404_v50 = vadd.f32 %v3403_v47, %v3341_v20  ;;  %v2894_v6 = vmax.f32 %v5287_v5, 0.0  ;;  %v5288_v35 = vadd.f32 %v1870_v16, %v6923_v17  ;;  %v2640_v33 = vpop.f32.mrb[32].mxu0  ;;  %v1872_v29 = vpop.f32.mrb[33].mxu1 }
 0x2c1   : > { %v2642_v61 = vpop.f32.mrb[33].mxu0 }
 0x2c2   : > { %v3342_v49 = vmul.f32 %v3085_v3, %v2894_v6  ;;  %v5289_v34 = vadd.f32 %v5288_v35, %v2640_v33  ;;  %v3100_v35 = vpop.permute.xlu0 %3099  ;;  %v5826_v33 = vld [vmem:[%s6347_s30 + $0x288] sm:$0xff]  ;;  %v3686_v3 = vadd.f32 %v3685_v58, %v3559_v27 }
 0x2c3   : > { %v1875_v18 = vpop.f32.mrb[34].mxu1  ;;  %v3560_v29 = vmul.f32 %v5826_v33, %v5826_v33 }
 0x2c4   : > { %v3405_v55 = vadd.f32 %v3404_v50, %v3342_v49  ;;  %v2895_v42 = vmax.f32 %v5289_v34, 0.0  ;;  %v5290_v9 = vadd.f32 %v1875_v18, %v6925_v19  ;;  %v2645_v2 = vpop.f32.mrb[34].mxu0  ;;  %v1877_v24 = vpop.f32.mrb[35].mxu1 }
 0x2c5   : > { %v2647_v17 = vpop.f32.mrb[35].mxu0  ;;  %v3687_v24 = vadd.f32 %v3686_v3, %v3560_v29 }
 0x2c6   : > { %v3343_v43 = vmul.f32 %v3090_v4, %v2895_v42  ;;  %v5291_v0 = vadd.f32 %v5290_v9, %v2645_v2  ;;  %v3105_v42 = vpop.permute.xlu1 %3104  ;;  %v5827_v9 = vld [vmem:[%s6347_s30 + $0x290] sm:$0xff] }
 0x2c7   : > { %v1880_v62 = vpop.f32.mrb[36].mxu1  ;;  %v3561_v2 = vmul.f32 %v5827_v9, %v5827_v9 }
 0x2c8   : > { %v3406_v30 = vadd.f32 %v3405_v55, %v3343_v43  ;;  %v2896_v28 = vmax.f32 %v5291_v0, 0.0  ;;  %v5292_v47 = vadd.f32 %v1880_v62, %v6937_v32  ;;  %v2650_v7 = vpop.f32.mrb[36].mxu0  ;;  %v1882_v31 = vpop.f32.mrb[37].mxu1 }
 0x2c9   : > { %v2652_v19 = vpop.f32.mrb[37].mxu0 }
 0x2ca   : > { %v3344_v54 = vmul.f32 %v3095_v46, %v2896_v28  ;;  %v5293_v57 = vadd.f32 %v5292_v47, %v2650_v7  ;;  %v5828_v28 = vld [vmem:[%s6347_s30 + $0x298] sm:$0xff]  ;;  %v3688_v7 = vadd.f32 %v3687_v24, %v3561_v2 }
 0x2cb   : > { %v1885_v23 = vpop.f32.mrb[38].mxu1  ;;  %v3562_v47 = vmul.f32 %v5828_v28, %v5828_v28 }
 0x2cc   : > { %v3407_v20 = vadd.f32 %v3406_v30, %v3344_v54  ;;  %v2897_v5 = vmax.f32 %v5293_v57, 0.0  ;;  %v5294_v16 = vadd.f32 %v1885_v23, %v6942_v36  ;;  %v2655_v50 = vpop.f32.mrb[38].mxu0  ;;  %v1887_v6 = vpop.f32.mrb[39].mxu1 }
 0x2cd   : > { %v2657_v32 = vpop.f32.mrb[39].mxu0  ;;  %v3110_v30 = vpop.permute.xlu0 %3109 }
 0x2ce   : > { %v3345_v61 = vmul.f32 %v3100_v35, %v2897_v5  ;;  %v5295_v41 = vadd.f32 %v5294_v16, %v2655_v50  ;;  %v3115_v23 = vpop.permute.xlu1 %3114  ;;  %v3689_v16 = vadd.f32 %v3688_v7, %v3562_v47 }
 0x2cf   : > { %v1890_v52 = vpop.f32.mrb[40].mxu1 }
 0x2d0   : > { %v3408_v13 = vadd.f32 %v3407_v20, %v3345_v61  ;;  %v2898_v49 = vmax.f32 %v5295_v41, 0.0  ;;  %v5296_v34 = vadd.f32 %v1890_v52, %v6952_v56  ;;  %v2660_v18 = vpop.f32.mrb[40].mxu0  ;;  %v1892_v55 = vpop.f32.mrb[41].mxu1  ;;  %v5829_v20 = vld [vmem:[%s6347_s30 + $0x2a0] sm:$0xff]  ;;  %v5830_v52 = vld [vmem:[%s6347_s30 + $0x2a8] sm:$0xff] }
 0x2d1   : > { %v2662_v36 = vpop.f32.mrb[41].mxu0  ;;  %v3563_v5 = vmul.f32 %v5829_v20, %v5829_v20  ;;  %v3120_v41 = vpop.permute.xlu0 %3119 }
 0x2d2   : > { %v3346_v4 = vmul.f32 %v3105_v42, %v2898_v49  ;;  %v5297_v17 = vadd.f32 %v5296_v34, %v2660_v18 }
 0x2d3   : > { %v1895_v14 = vpop.f32.mrb[42].mxu1  ;;  %v3690_v49 = vadd.f32 %v3689_v16, %v3563_v5  ;;  %v5833_v16 = vld [vmem:[%s6347_s30 + $0x2c0] sm:$0xff] }
 0x2d4   : > { %v3409_v44 = vadd.f32 %v3408_v13, %v3346_v4  ;;  %v2899_v10 = vmax.f32 %v5297_v17, 0.0  ;;  %v5298_v43 = vadd.f32 %v1895_v14, %v6954_v60  ;;  %v2665_v0 = vpop.f32.mrb[42].mxu0  ;;  %v1897_v62 = vpop.f32.mrb[43].mxu1  ;;  %v3564_v13 = vmul.f32 %v5830_v52, %v5830_v52  ;;  %v5831_v17 = vld [vmem:[%s6347_s30 + $0x2b0] sm:$0xff] }
 0x2d5   : > { %v2667_v56 = vpop.f32.mrb[43].mxu0  ;;  %v3125_v4 = vpop.permute.xlu1 %3124  ;;  %v3565_v14 = vmul.f32 %v5831_v17, %v5831_v17  ;;  %v5835_v17 = vld [vmem:[%s6347_s30 + $0x2d0] sm:$0xff] }
 0x2d6   : > { %v3347_v31 = vmul.f32 %v3110_v30, %v2899_v10  ;;  %v5299_v46 = vadd.f32 %v5298_v43, %v2665_v0  ;;  %v3130_v7 = vpop.permute.xlu0 %3129 }
 0x2d7   : > { %v1900_v19 = vpop.f32.mrb[44].mxu1 }
 0x2d8   : > { %v3410_v48 = vadd.f32 %v3409_v44, %v3347_v31  ;;  %v2900_v27 = vmax.f32 %v5299_v46, 0.0  ;;  %v5300_v58 = vadd.f32 %v1900_v19, %v6966_v11  ;;  %v2670_v54 = vpop.f32.mrb[44].mxu0  ;;  %v1902_v57 = vpop.f32.mrb[45].mxu1  ;;  %v3691_v44 = vadd.f32 %v3690_v49, %v3564_v13  ;;  %v5832_v31 = vld [vmem:[%s6347_s30 + $0x2b8] sm:$0xff]  ;;  %v5834_v13 = vld [vmem:[%s6347_s30 + $0x2c8] sm:$0xff] }
 0x2d9   : > { %v2672_v60 = vpop.f32.mrb[45].mxu0  ;;  %v3566_v46 = vmul.f32 %v5832_v31, %v5832_v31  ;;  %v3135_v5 = vpop.permute.xlu1 %3134  ;;  %v3568_v49 = vmul.f32 %v5834_v13, %v5834_v13 }
 0x2da   : > { %v3348_v50 = vmul.f32 %v3115_v23, %v2900_v27  ;;  %v5301_v6 = vadd.f32 %v5300_v58, %v2670_v54  ;;  %v3692_v19 = vadd.f32 %v3691_v44, %v3565_v14  ;;  %v3140_v52 = vpop.permute.xlu0 %3139  ;;  %v3569_v14 = vmul.f32 %v5835_v17, %v5835_v17 }
 0x2db   : > { %v1905_v35 = vpop.f32.mrb[46].mxu1 }
 0x2dc   : > { %v3411_v32 = vadd.f32 %v3410_v48, %v3348_v50  ;;  %v2901_v33 = vmax.f32 %v5301_v6, 0.0  ;;  %v5302_v29 = vadd.f32 %v1905_v35, %v6971_v15  ;;  %v2675_v3 = vpop.f32.mrb[46].mxu0  ;;  %v1907_v61 = vpop.f32.mrb[47].mxu1  ;;  %v3567_v50 = vmul.f32 %v5833_v16, %v5833_v16 }
 0x2dd   : > { %v2677_v11 = vpop.f32.mrb[47].mxu0  ;;  %v3693_v6 = vadd.f32 %v3692_v19, %v3566_v46 }
 0x2de   : > { %v3349_v34 = vmul.f32 %v3120_v41, %v2901_v33  ;;  %v5303_v18 = vadd.f32 %v5302_v29, %v2675_v3 }
 0x2df   : > { %v1910_v55 = vpop.f32.mrb[48].mxu1 }
 0x2e0   : > { %v3412_v42 = vadd.f32 %v3411_v32, %v3349_v34  ;;  %v2902_v36 = vmax.f32 %v5303_v18, 0.0  ;;  %v5304_v9 = vadd.f32 %v1910_v55, %v6981_v38  ;;  %v2680_v2 = vpop.f32.mrb[48].mxu0  ;;  %v1912_v24 = vpop.f32.mrb[49].mxu1  ;;  %v3694_v34 = vadd.f32 %v3693_v6, %v3567_v50 }
 0x2e1   : > { %v2682_v15 = vpop.f32.mrb[49].mxu0 }
 0x2e2   : > { %v3350_v10 = vmul.f32 %v3125_v4, %v2902_v36  ;;  %v5305_v43 = vadd.f32 %v5304_v9, %v2680_v2  ;;  %v3145_v15 = vpop.permute.xlu1 %3144  ;;  %v3695_v44 = vadd.f32 %v3694_v34, %v3568_v49 }
 0x2e3   : > { %v1915_v0 = vpop.f32.mrb[50].mxu1 }
 0x2e4   : > { %v3413_v62 = vadd.f32 %v3412_v42, %v3350_v10  ;;  %v2903_v30 = vmax.f32 %v5305_v43, 0.0  ;;  %v5306_v56 = vadd.f32 %v1915_v0, %v6983_v40  ;;  %v2685_v28 = vpop.f32.mrb[50].mxu0  ;;  %v1917_v47 = vpop.f32.mrb[51].mxu1  ;;  %v3696_v46 = vadd.f32 %v3695_v44, %v3569_v14 }
 0x2e5   : > { %v2687_v38 = vpop.f32.mrb[51].mxu0 }
 0x2e6   : > { %v3351_v48 = vmul.f32 %v3130_v7, %v2903_v30  ;;  %v5307_v27 = vadd.f32 %v5306_v56, %v2685_v28  ;;  %v3150_v7 = vpop.permute.xlu0 %3149  ;;  %v5836_v38 = vld [vmem:[%s6347_s30 + $0x2d8] sm:$0xff] }
 0x2e7   : > { %v1920_v58 = vpop.f32.mrb[52].mxu1  ;;  %v3570_v31 = vmul.f32 %v5836_v38, %v5836_v38 }
 0x2e8   : > { %v3414_v54 = vadd.f32 %v3413_v62, %v3351_v48  ;;  %v2904_v57 = vmax.f32 %v5307_v27, 0.0  ;;  %v5308_v23 = vadd.f32 %v1920_v58, %v6995_v59  ;;  %v2690_v60 = vpop.f32.mrb[52].mxu0  ;;  %v1922_v20 = vpop.f32.mrb[53].mxu1 }
 0x2e9   : > { %v2692_v40 = vpop.f32.mrb[53].mxu0  ;;  %v3155_v20 = vpop.permute.xlu1 %3154  ;;  %v3697_v16 = vadd.f32 %v3696_v46, %v3570_v31 }
 0x2ea   : > { %v3352_v35 = vmul.f32 %v3135_v5, %v2904_v57  ;;  %v5309_v32 = vadd.f32 %v5308_v23, %v2690_v60  ;;  %v5837_v5 = vld [vmem:[%s6347_s30 + $0x2e0] sm:$0xff] }
 0x2eb   : > { %v1925_v33 = vpop.f32.mrb[54].mxu1  ;;  %v3571_v40 = vmul.f32 %v5837_v5, %v5837_v5 }
 0x2ec   : > { %v3415_v29 = vadd.f32 %v3414_v54, %v3352_v35  ;;  %v2905_v3 = vmax.f32 %v5309_v32, 0.0  ;;  %v5310_v61 = vadd.f32 %v1925_v33, %v7000_v1  ;;  %v2695_v41 = vpop.f32.mrb[54].mxu0  ;;  %v1927_v11 = vpop.f32.mrb[55].mxu1 }
 0x2ed   : > { %v2697_v59 = vpop.f32.mrb[55].mxu0  ;;  %v5838_v11 = vld [vmem:[%s6347_s30 + $0x2e8] sm:$0xff] }
 0x2ee   : > { %v3353_v18 = vmul.f32 %v3140_v52, %v2905_v3  ;;  %v5311_v55 = vadd.f32 %v5310_v61, %v2695_v41  ;;  %v3160_v41 = vpop.permute.xlu0 %3159  ;;  %v3572_v52 = vmul.f32 %v5838_v11, %v5838_v11  ;;  %v3698_v59 = vadd.f32 %v3697_v16, %v3571_v40 }
 0x2ef   : > { %v1930_v42 = vpop.f32.mrb[56].mxu1 }
 0x2f0   : > { %v3416_v36 = vadd.f32 %v3415_v29, %v3353_v18  ;;  %v2906_v9 = vmax.f32 %v5311_v55, 0.0  ;;  %v5312_v2 = vadd.f32 %v1930_v42, %v7010_v22  ;;  %v2700_v24 = vpop.f32.mrb[56].mxu0  ;;  %v1932_v4 = vpop.f32.mrb[57].mxu1 }
 0x2f1   : > { %v2702_v1 = vpop.f32.mrb[57].mxu0 }
 0x2f2   : > { %v3354_v10 = vmul.f32 %v3145_v15, %v2906_v9  ;;  %v5313_v43 = vadd.f32 %v5312_v2, %v2700_v24  ;;  %v3165_v2 = vpop.permute.xlu1 %3164  ;;  %v5839_v24 = vld [vmem:[%s6347_s30 + $0x2f0] sm:$0xff]  ;;  %v3699_v15 = vadd.f32 %v3698_v59, %v3572_v52 }
 0x2f3   : > { %v1935_v0 = vpop.f32.mrb[58].mxu1  ;;  %v3573_v4 = vmul.f32 %v5839_v24, %v5839_v24 }
 0x2f4   : > { %v3417_v62 = vadd.f32 %v3416_v36, %v3354_v10  ;;  %v2907_v30 = vmax.f32 %v5313_v43, 0.0  ;;  %v5314_v56 = vadd.f32 %v1935_v0, %v7012_v26  ;;  %v2705_v28 = vpop.f32.mrb[58].mxu0  ;;  %v1937_v47 = vpop.f32.mrb[59].mxu1 }
 0x2f5   : > { %v2707_v22 = vpop.f32.mrb[59].mxu0  ;;  %v3700_v47 = vadd.f32 %v3699_v15, %v3573_v4 }
 0x2f6   : > { %v3355_v19 = vmul.f32 %v3150_v7, %v2907_v30  ;;  %v5315_v48 = vadd.f32 %v5314_v56, %v2705_v28  ;;  %v3170_v30 = vpop.permute.xlu0 %3169  ;;  %v7198_v56 = vld [vmem:[%s6347_s30 + $0x2f8] sm:$0xff] }
 0x2f7   : > { %v1940_v27 = vpop.f32.mrb[60].mxu1  ;;  %v3574_v28 = vmul.f32 %v7198_v56, %v7198_v56 }
 0x2f8   : > { %v3418_v58 = vadd.f32 %v3417_v62, %v3355_v19  ;;  %v2908_v54 = vmax.f32 %v5315_v48, 0.0  ;;  %v5316_v57 = vadd.f32 %v1940_v27, %v7038_v25  ;;  %v2710_v23 = vpop.f32.mrb[60].mxu0  ;;  %v1942_v60 = vpop.f32.mrb[61].mxu1 }
 0x2f9   : > { %v2712_v26 = vpop.f32.mrb[61].mxu0  ;;  %v3175_v27 = vpop.permute.xlu1 %3174 }
 0x2fa   : > { %v3356_v50 = vmul.f32 %v3155_v20, %v2908_v54  ;;  %v5317_v6 = vadd.f32 %v5316_v57, %v2710_v23  ;;  %v3701_v54 = vadd.f32 %v3700_v47, %v3574_v28  ;;  %v7204_v57 = vld [vmem:[%s6347_s30 + $0x300] sm:$0xff] }
 0x2fb   : > { %v1945_v35 = vpop.f32.mrb[62].mxu1  ;;  %v3575_v23 = vmul.f32 %v7204_v57, %v7204_v57 }
 0x2fc   : > { %v3419_v32 = vadd.f32 %v3418_v58, %v3356_v50  ;;  %v2909_v33 = vmax.f32 %v5317_v6, 0.0  ;;  %v5318_v29 = vadd.f32 %v1945_v35, %v7041_v37  ;;  %v2715_v3 = vpop.f32.mrb[62].mxu0  ;;  %v1947_v61 = vpop.f32.mrb[63].mxu1 }
 0x2fd   : > { %v2717_v25 = vpop.f32.mrb[63].mxu0  ;;  %v3180_v6 = vpop.permute.xlu0 %3179 }
 0x2fe   : > { %v3357_v13 = vmul.f32 %v3160_v41, %v2909_v33  ;;  %v5319_v49 = vadd.f32 %v5318_v29, %v2715_v3  ;;  %v3702_v29 = vadd.f32 %v3701_v54, %v3575_v23 }
 0x2ff   : > { %v1950_v34 = vpop.f32.mrb[64].mxu1 }
 0x300   : > { %v3420_v18 = vadd.f32 %v3419_v32, %v3357_v13  ;;  %v2910_v55 = vmax.f32 %v5319_v49, 0.0  ;;  %v5320_v42 = vadd.f32 %v1950_v34, %v7044_v51  ;;  %v2720_v36 = vpop.f32.mrb[64].mxu0  ;;  %v1952_v9 = vpop.f32.mrb[65].mxu1  ;;  %v7210_v32 = vld [vmem:[%s6347_s30 + $0x308] sm:$0xff] }
 0x301   : > { %v2722_v37 = vpop.f32.mrb[65].mxu0  ;;  %v3576_v33 = vmul.f32 %v7210_v32, %v7210_v32  ;;  %v3185_v13 = vpop.permute.xlu1 %3184 }
 0x302   : > { %v3358_v1 = vmul.f32 %v3165_v2, %v2910_v55  ;;  %v5321_v17 = vadd.f32 %v5320_v42, %v2720_v36  ;;  %v3190_v15 = vpop.permute.xlu0 %3189 }
 0x303   : > { %v1955_v14 = vpop.f32.mrb[66].mxu1  ;;  %v3703_v34 = vadd.f32 %v3702_v29, %v3576_v33 }
 0x304   : > { %v3421_v44 = vadd.f32 %v3420_v18, %v3358_v1  ;;  %v2911_v10 = vmax.f32 %v5321_v17, 0.0  ;;  %v5322_v43 = vadd.f32 %v1955_v14, %v7046_v53  ;;  %v2725_v0 = vpop.f32.mrb[66].mxu0  ;;  %v1957_v62 = vpop.f32.mrb[67].mxu1  ;;  %v7216_v18 = vld [vmem:[%s6347_s30 + $0x310] sm:$0xff]  ;;  %v7222_v17 = vld [vmem:[%s6347_s30 + $0x318] sm:$0xff] }
 0x305   : > { %v2727_v51 = vpop.f32.mrb[67].mxu0  ;;  %v3577_v55 = vmul.f32 %v7216_v18, %v7216_v18  ;;  %v3578_v14 = vmul.f32 %v7222_v17, %v7222_v17  ;;  %v3195_v47 = vpop.permute.xlu1 %3194 }
 0x306   : > { %v3359_v7 = vmul.f32 %v3170_v30, %v2911_v10  ;;  %v5323_v22 = vadd.f32 %v5322_v43, %v2725_v0  ;;  %v3200_v23 = vpop.permute.xlu0 %3199 }
 0x307   : > { %v1960_v38 = vpop.f32.mrb[68].mxu1 }
 0x308   : > { %v3422_v31 = vadd.f32 %v3421_v44, %v3359_v7  ;;  %v2912_v46 = vmax.f32 %v5323_v22, 0.0  ;;  %v5324_v19 = vadd.f32 %v1960_v38, %v7049_v8  ;;  %v2730_v48 = vpop.f32.mrb[68].mxu0  ;;  %v1962_v53 = vpop.f32.mrb[69].mxu1  ;;  %v3704_v44 = vadd.f32 %v3703_v34, %v3577_v55  ;;  %v7228_v38 = vld [vmem:[%s6347_s30 + $0x320] sm:$0xff]  ;;  %v8538_v34 = vld [vmem:[#allocation18_spill] sm:$0xff] }
 0x309   : > { %v2732_v58 = vpop.f32.mrb[69].mxu0 }
 0x30a   : > { %v3360_v60 = vmul.f32 %v3175_v27, %v2912_v46  ;;  %v5325_v20 = vadd.f32 %v5324_v19, %v2730_v48  ;;  %v3705_v22 = vadd.f32 %v3704_v44, %v3578_v14 }
 0x30b   : > { %v1965_v26 = vpop.f32.mrb[70].mxu1 }
 0x30c   : > { %v3423_v5 = vadd.f32 %v3422_v31, %v3360_v60  ;;  %v2913_v40 = vmax.f32 %v5325_v20, 0.0  ;;  %v5326_v16 = vadd.f32 %v1965_v26, %v7052_v21  ;;  %v2735_v50 = vpop.f32.mrb[70].mxu0  ;;  %v1967_v8 = vpop.f32.mrb[71].mxu1  ;;  %v3579_v31 = vmul.f32 %v7228_v38, %v7228_v38  ;;  %v7234_v20 = vld [vmem:[%s6347_s30 + $0x328] sm:$0xff] }
 0x30d   : > { %v2737_v35 = vpop.f32.mrb[71].mxu0  ;;  %v3580_v26 = vmul.f32 %v7234_v20, %v7234_v20 }
 0x30e   : > { %v3361_v3 = vmul.f32 %v3180_v6, %v2913_v40  ;;  %v5327_v61 = vadd.f32 %v5326_v16, %v2735_v50  ;;  %v8537_v35 = vld [vmem:[#allocation17_spill] sm:$0xff] }
 0x30f   : > { %v1970_v41 = vpop.f32.mrb[72].mxu1 }
 0x310   : > { %v3424_v25 = vadd.f32 %v3423_v5, %v3361_v3  ;;  %v2914_v11 = vmax.f32 %v5327_v61, 0.0  ;;  %v5328_v52 = vadd.f32 %v1970_v41, %v7055_v39  ;;  %v2740_v59 = vpop.f32.mrb[72].mxu0  ;;  %v1972_v21 = vpop.f32.mrb[73].mxu1  ;;  %v3706_v5 = vadd.f32 %v3705_v22, %v3579_v31 }
 0x311   : > { %v2742_v49 = vpop.f32.mrb[73].mxu0  ;;  %v3205_v3 = vpop.permute.xlu1 %3204 }
 0x312   : > { %v3362_v42 = vmul.f32 %v3185_v13, %v2914_v11  ;;  %v5329_v36 = vadd.f32 %v5328_v52, %v2740_v59  ;;  %v3707_v41 = vadd.f32 %v3706_v5, %v3580_v26 }
 0x313   : > { %v1975_v9 = vpop.f32.mrb[74].mxu1 }
 0x314   : > { %v3425_v2 = vadd.f32 %v3424_v25, %v3362_v42  ;;  %v2915_v37 = vmax.f32 %v5329_v36, 0.0  ;;  %v5330_v24 = vadd.f32 %v1975_v9, %v7057_v45  ;;  %v2745_v4 = vpop.f32.mrb[74].mxu0  ;;  %v1977_v39 = vpop.f32.mrb[75].mxu1  ;;  %v7240_v25 = vld [vmem:[%s6347_s30 + $0x330] sm:$0xff] }
 0x315   : > { %v2747_v1 = vpop.f32.mrb[75].mxu0  ;;  %v3581_v11 = vmul.f32 %v7240_v25, %v7240_v25  ;;  %v3210_v9 = vpop.permute.xlu0 %3209 }
 0x316   : > { %v3363_v10 = vmul.f32 %v3190_v15, %v2915_v37  ;;  %v5331_v43 = vadd.f32 %v5330_v24, %v2745_v4  ;;  %v7246_v37 = vld [vmem:[%s6347_s30 + $0x338] sm:$0xff] }
 0x317   : > { %v1980_v0 = vpop.f32.mrb[76].mxu1  ;;  %v3582_v24 = vmul.f32 %v7246_v37, %v7246_v37  ;;  %v3708_v4 = vadd.f32 %v3707_v41, %v3581_v11  ;;  %v7264_v41 = vld [vmem:[%s6347_s30 + $0x350] sm:$0xff] }
 0x318   : > { %v3426_v62 = vadd.f32 %v3425_v2, %v3363_v10  ;;  %v2916_v30 = vmax.f32 %v5331_v43, 0.0  ;;  %v5332_v51 = vadd.f32 %v1980_v0, %v7060_v63  ;;  %v2750_v28 = vpop.f32.mrb[76].mxu0  ;;  %v1982_v45 = vpop.f32.mrb[77].mxu1  ;;  %v8539_v10 = vld [vmem:[#allocation19_spill] sm:$0xff]  ;;  %v3585_v11 = vmul.f32 %v7264_v41, %v7264_v41 }
 0x319   : > { %v2752_v7 = vpop.f32.mrb[77].mxu0  ;;  %v7252_v45 = vld [vmem:[%s6347_s30 + $0x340] sm:$0xff] }
 0x31a   : > { %v3364_v46 = vmul.f32 %v3195_v47, %v2916_v30  ;;  %v5333_v19 = vadd.f32 %v5332_v51, %v2750_v28  ;;  %v3215_v30 = vpop.permute.xlu1 %3214  ;;  %v3709_v28 = vadd.f32 %v3708_v4, %v3582_v24  ;;  %v3583_v47 = vmul.f32 %v7252_v45, %v7252_v45  ;;  %v7270_v24 = vld [vmem:[%s6347_s30 + $0x358] sm:$0xff] }
 0x31b   : > { %v1985_v48 = vpop.f32.mrb[78].mxu1  ;;  %v3586_v4 = vmul.f32 %v7270_v24, %v7270_v24 }
 0x31c   : > { %v3427_v53 = vadd.f32 %v3426_v62, %v3364_v46  ;;  %v2917_v27 = vmax.f32 %v5333_v19, 0.0  ;;  %v5334_v58 = vadd.f32 %v1985_v48, %v7063_v12  ;;  %v2755_v54 = vpop.f32.mrb[78].mxu0  ;;  %v1987_v63 = vpop.f32.mrb[79].mxu1  ;;  %v8540_v48 = vld [vmem:[#allocation20_spill] sm:$0xff]  ;;  %v3710_v26 = vadd.f32 %v3709_v28, %v3583_v47 }
 0x31d   : > { %v2757_v60 = vpop.f32.mrb[79].mxu0 }
 0x31e   : > { %v3365_v40 = vmul.f32 %v3200_v23, %v2917_v27  ;;  %v5335_v16 = vadd.f32 %v5334_v58, %v2755_v54  ;;  %v3220_v54 = vpop.permute.xlu0 %3219  ;;  %v7258_v23 = vld [vmem:[%s6347_s30 + $0x348] sm:$0xff] }
 0x31f   : > { %v1990_v50 = vpop.f32.mrb[80].mxu1  ;;  %v3584_v60 = vmul.f32 %v7258_v23, %v7258_v23 }
 0x320   : > { %v3428_v8 = vadd.f32 %v3427_v53, %v3365_v40  ;;  %v2918_v6 = vmax.f32 %v5335_v16, 0.0  ;;  %v5336_v33 = vadd.f32 %v1990_v50, %v8537_v35  ;;  %v2760_v29 = vpop.f32.mrb[80].mxu0  ;;  %v1992_v12 = vpop.f32.mrb[81].mxu1 }
 0x321   : > { %v2762_v61 = vpop.f32.mrb[81].mxu0  ;;  %v3225_v12 = vpop.permute.xlu1 %3224 }
 0x322   : > { %v3366_v52 = vmul.f32 %v3205_v3, %v2918_v6  ;;  %v5337_v59 = vadd.f32 %v5336_v33, %v2760_v29  ;;  %v8541_v6 = vld [vmem:[#allocation21_spill] sm:$0xff]  ;;  %v3711_v61 = vadd.f32 %v3710_v26, %v3584_v60 }
 0x323   : > { %v1995_v21 = vpop.f32.mrb[82].mxu1 }
 0x324   : > { %v3429_v13 = vadd.f32 %v3428_v8, %v3366_v52  ;;  %v2919_v49 = vmax.f32 %v5337_v59, 0.0  ;;  %v5338_v55 = vadd.f32 %v1995_v21, %v8538_v34  ;;  %v2765_v42 = vpop.f32.mrb[82].mxu0  ;;  %v1997_v36 = vpop.f32.mrb[83].mxu1  ;;  %v8542_v34 = vld [vmem:[#allocation22_spill] sm:$0xff] }
 0x325   : > { %v2767_v2 = vpop.f32.mrb[83].mxu0 }
 0x326   : > { %v3367_v39 = vmul.f32 %v3210_v9, %v2919_v49  ;;  %v5339_v15 = vadd.f32 %v5338_v55, %v2765_v42  ;;  %v3230_v9 = vpop.permute.xlu0 %3229 }
 0x327   : > { %v2000_v1 = vpop.f32.mrb[84].mxu1 }
 0x328   : > { %v3430_v14 = vadd.f32 %v3429_v13, %v3367_v39  ;;  %v2920_v44 = vmax.f32 %v5339_v15, 0.0  ;;  %v5340_v43 = vadd.f32 %v2000_v1, %v8539_v10  ;;  %v2770_v0 = vpop.f32.mrb[84].mxu0  ;;  %v2002_v62 = vpop.f32.mrb[85].mxu1  ;;  %v3712_v39 = vadd.f32 %v3711_v61, %v3585_v11 }
 0x329   : > { %v2772_v51 = vpop.f32.mrb[85].mxu0 }
 0x32a   : > { %v3368_v7 = vmul.f32 %v3215_v30, %v2920_v44  ;;  %v5341_v22 = vadd.f32 %v5340_v43, %v2770_v0  ;;  %v8543_v43 = vld [vmem:[#allocation23_spill] sm:$0xff]  ;;  %v3235_v51 = vpop.permute.xlu1 %3234  ;;  %v3713_v47 = vadd.f32 %v3712_v39, %v3586_v4  ;;  %v3240_v60 = vpop.permute.xlu0 %3239 }
 0x32b   : > { %v2005_v31 = vpop.f32.mrb[86].mxu1 }
 0x32c   : > { %v3431_v46 = vadd.f32 %v3430_v14, %v3368_v7  ;;  %v2921_v19 = vmax.f32 %v5341_v22, 0.0  ;;  %v5342_v53 = vadd.f32 %v2005_v31, %v8540_v48  ;;  %v2775_v27 = vpop.f32.mrb[86].mxu0  ;;  %v2007_v58 = vpop.f32.mrb[87].mxu1  ;;  %v7276_v7 = vld [vmem:[%s6347_s30 + $0x360] sm:$0xff] }
 0x32d   : > { %v2777_v63 = vpop.f32.mrb[87].mxu0  ;;  %v3587_v22 = vmul.f32 %v7276_v7, %v7276_v7 }
 0x32e   : > { %v3369_v5 = vmul.f32 %v3220_v54, %v2921_v19  ;;  %v5343_v40 = vadd.f32 %v5342_v53, %v2775_v27  ;;  %v8544_v27 = vld [vmem:[#allocation24_spill] sm:$0xff]  ;;  %v3245_v11 = vpop.permute.xlu1 %3244 }
 0x32f   : > { %v2010_v16 = vpop.f32.mrb[88].mxu1 }
 0x330   : > { %v3432_v50 = vadd.f32 %v3431_v46, %v3369_v5  ;;  %v2922_v8 = vmax.f32 %v5343_v40, 0.0  ;;  %v5344_v35 = vadd.f32 %v2010_v16, %v8541_v6  ;;  %v2780_v33 = vpop.f32.mrb[88].mxu0  ;;  %v2012_v29 = vpop.f32.mrb[89].mxu1  ;;  %v7282_v5 = vld [vmem:[%s6347_s30 + $0x368] sm:$0xff]  ;;  %v3714_v16 = vadd.f32 %v3713_v47, %v3587_v22 }
 0x331   : > { %v2782_v3 = vpop.f32.mrb[89].mxu0  ;;  %v3588_v40 = vmul.f32 %v7282_v5, %v7282_v5  ;;  %v8545_v29 = vld [vmem:[#allocation25_spill] sm:$0xff] }
 0x332   : > { %v3370_v52 = vmul.f32 %v3225_v12, %v2922_v8  ;;  %v5345_v59 = vadd.f32 %v5344_v35, %v2780_v33 }
 0x333   : > { %v2015_v21 = vpop.f32.mrb[90].mxu1 }
 0x334   : > { %v3433_v13 = vadd.f32 %v3432_v50, %v3370_v52  ;;  %v2923_v49 = vmax.f32 %v5345_v59, 0.0  ;;  %v5346_v55 = vadd.f32 %v2015_v21, %v8542_v34  ;;  %v2785_v42 = vpop.f32.mrb[90].mxu0  ;;  %v2017_v36 = vpop.f32.mrb[91].mxu1  ;;  %v3715_v59 = vadd.f32 %v3714_v16, %v3588_v40  ;;  %v7288_v21 = vld [vmem:[%s6347_s30 + $0x370] sm:$0xff]  ;;  %v8548_v40 = vld [vmem:[#allocation28_spill] sm:$0xff] }
 0x335   : > { %v2787_v2 = vpop.f32.mrb[91].mxu0 }
 0x336   : > { %v3371_v15 = vmul.f32 %v3230_v9, %v2923_v49  ;;  %v5347_v1 = vadd.f32 %v5346_v55, %v2785_v42  ;;  %v8546_v9 = vld [vmem:[#allocation26_spill] sm:$0xff] }
 0x337   : > { %v2020_v14 = vpop.f32.mrb[92].mxu1 }
 0x338   : > { %v3434_v44 = vadd.f32 %v3433_v13, %v3371_v15  ;;  %v2924_v10 = vmax.f32 %v5347_v1, 0.0  ;;  %v5348_v0 = vadd.f32 %v2020_v14, %v8543_v43  ;;  %v2790_v62 = vpop.f32.mrb[92].mxu0  ;;  %v2022_v30 = vpop.f32.mrb[93].mxu1  ;;  %v3589_v13 = vmul.f32 %v7288_v21, %v7288_v21  ;;  %v7294_v14 = vld [vmem:[%s6347_s30 + $0x378] sm:$0xff] }
 0x339   : > { %v2792_v28 = vpop.f32.mrb[93].mxu0  ;;  %v3250_v15 = vpop.permute.xlu0 %3249 }
 0x33a   : > { %v3372_v31 = vmul.f32 %v3235_v51, %v2924_v10  ;;  %v5349_v46 = vadd.f32 %v5348_v0, %v2790_v62  ;;  %v3716_v10 = vadd.f32 %v3715_v59, %v3589_v13  ;;  %v8547_v28 = vld [vmem:[#allocation27_spill] sm:$0xff]  ;;  %v8549_v13 = vld [vmem:[#allocation29_spill] sm:$0xff] }
 0x33b   : > { %v2025_v19 = vpop.f32.mrb[94].mxu1 }
 0x33c   : > { %v3435_v48 = vadd.f32 %v3434_v44, %v3372_v31  ;;  %v2925_v53 = vmax.f32 %v5349_v46, 0.0  ;;  %v5350_v58 = vadd.f32 %v2025_v19, %v8544_v27  ;;  %v2795_v54 = vpop.f32.mrb[94].mxu0  ;;  %v2027_v63 = vpop.f32.mrb[95].mxu1  ;;  %v3590_v44 = vmul.f32 %v7294_v14, %v7294_v14 }
 0x33d   : > { %v2797_v26 = vpop.f32.mrb[95].mxu0  ;;  %v3255_v46 = vpop.permute.xlu1 %3254 }
 0x33e   : > { %v3373_v50 = vmul.f32 %v3240_v60, %v2925_v53  ;;  %v5351_v8 = vadd.f32 %v5350_v58, %v2795_v54  ;;  %v7300_v53 = vld [vmem:[%s6347_s30 + $0x380] sm:$0xff] }
 0x33f   : > { %v2030_v6 = vpop.f32.mrb[96].mxu1  ;;  %v3591_v27 = vmul.f32 %v7300_v53, %v7300_v53 }
 0x340   : > { %v3436_v35 = vadd.f32 %v3435_v48, %v3373_v50  ;;  %v2926_v33 = vmax.f32 %v5351_v8, 0.0  ;;  %v5352_v12 = vadd.f32 %v2030_v6, %v8545_v29  ;;  %v2800_v3 = vpop.f32.mrb[96].mxu0  ;;  %v2032_v61 = vpop.f32.mrb[97].mxu1  ;;  %v3717_v48 = vadd.f32 %v3716_v10, %v3590_v44 }
 0x341   : > { %v2802_v52 = vpop.f32.mrb[97].mxu0  ;;  %v3260_v6 = vpop.permute.xlu0 %3259 }
 0x342   : > { %v3374_v49 = vmul.f32 %v3245_v11, %v2926_v33  ;;  %v5353_v34 = vadd.f32 %v5352_v12, %v2800_v3  ;;  %v7306_v33 = vld [vmem:[%s6347_s30 + $0x388] sm:$0xff]  ;;  %v3718_v12 = vadd.f32 %v3717_v48, %v3591_v27 }
 0x343   : > { %v2035_v55 = vpop.f32.mrb[98].mxu1  ;;  %v3592_v29 = vmul.f32 %v7306_v33, %v7306_v33 }
 0x344   : > { %v3437_v42 = vadd.f32 %v3436_v35, %v3374_v49  ;;  %v2927_v36 = vmax.f32 %v5353_v34, 0.0  ;;  %v5354_v2 = vadd.f32 %v2035_v55, %v8546_v9  ;;  %v2805_v4 = vpop.f32.mrb[98].mxu0  ;;  %v2037_v39 = vpop.f32.mrb[99].mxu1 }
 0x345   : > { %v2807_v1 = vpop.f32.mrb[99].mxu0  ;;  %v3719_v9 = vadd.f32 %v3718_v12, %v3592_v29 }
 0x346   : > { %v3375_v43 = vmul.f32 %v3250_v15, %v2927_v36  ;;  %v5355_v0 = vadd.f32 %v5354_v2, %v2805_v4  ;;  %v7312_v2 = vld [vmem:[%s6347_s30 + $0x390] sm:$0xff] }
 0x347   : > { %v2040_v62 = vpop.f32.mrb[100].mxu1  ;;  %v3593_v4 = vmul.f32 %v7312_v2, %v7312_v2 }
 0x348   : > { %v3438_v30 = vadd.f32 %v3437_v42, %v3375_v43  ;;  %v2928_v51 = vmax.f32 %v5355_v0, 0.0  ;;  %v5356_v47 = vadd.f32 %v2040_v62, %v8547_v28  ;;  %v2810_v22 = vpop.f32.mrb[100].mxu0  ;;  %v2042_v31 = vpop.f32.mrb[101].mxu1  ;;  %v8550_v43 = vld [vmem:[#allocation30_spill] sm:$0xff] }
 0x349   : > { %v2812_v19 = vpop.f32.mrb[101].mxu0  ;;  %v3265_v42 = vpop.permute.xlu1 %3264  ;;  %v3720_v31 = vadd.f32 %v3719_v9, %v3593_v4 }
 0x34a   : > { %v3376_v58 = vmul.f32 %v3255_v46, %v2928_v51  ;;  %v5357_v54 = vadd.f32 %v5356_v47, %v2810_v22  ;;  %v3270_v51 = vpop.permute.xlu0 %3269  ;;  %v7318_v47 = vld [vmem:[%s6347_s30 + $0x398] sm:$0xff] }
 0x34b   : > { %v2045_v63 = vpop.f32.mrb[102].mxu1  ;;  %v3594_v22 = vmul.f32 %v7318_v47, %v7318_v47 }
 0x34c   : > { %v3439_v60 = vadd.f32 %v3438_v30, %v3376_v58  ;;  %v2929_v26 = vmax.f32 %v5357_v54, 0.0  ;;  %v5358_v16 = vadd.f32 %v2045_v63, %v8548_v40  ;;  %v2815_v50 = vpop.f32.mrb[102].mxu0  ;;  %v2047_v8 = vpop.f32.mrb[103].mxu1  ;;  %v8551_v54 = vld [vmem:[#allocation31_spill] sm:$0xff] }
 0x34d   : > { %v2817_v35 = vpop.f32.mrb[103].mxu0  ;;  %v3275_v40 = vpop.permute.xlu1 %3274  ;;  %v7324_v8 = vld [vmem:[%s6347_s30 + $0x3a0] sm:$0xff] }
 0x34e   : > { %v3377_v3 = vmul.f32 %v3260_v6, %v2929_v26  ;;  %v5359_v61 = vadd.f32 %v5358_v16, %v2815_v50  ;;  %v3721_v50 = vadd.f32 %v3720_v31, %v3594_v22  ;;  %v3595_v6 = vmul.f32 %v7324_v8, %v7324_v8 }
 0x34f   : > { %v2050_v11 = vpop.f32.mrb[104].mxu1 }
 0x350   : > { %v3440_v52 = vadd.f32 %v3439_v60, %v3377_v3  ;;  %v2930_v59 = vmax.f32 %v5359_v61, 0.0  ;;  %v5360_v49 = vadd.f32 %v2050_v11, %v8549_v13  ;;  %v2820_v34 = vpop.f32.mrb[104].mxu0  ;;  %v2052_v55 = vpop.f32.mrb[105].mxu1  ;;  %v8552_v11 = vld [vmem:[#allocation32_spill] sm:$0xff] }
 0x351   : > { %v2822_v36 = vpop.f32.mrb[105].mxu0  ;;  %v7330_v55 = vld [vmem:[%s6347_s30 + $0x3a8] sm:$0xff] }
 0x352   : > { %v3378_v39 = vmul.f32 %v3265_v42, %v2930_v59  ;;  %v5361_v15 = vadd.f32 %v5360_v49, %v2820_v34  ;;  %v3280_v49 = vpop.permute.xlu0 %3279  ;;  %v3596_v42 = vmul.f32 %v7330_v55, %v7330_v55  ;;  %v3722_v36 = vadd.f32 %v3721_v50, %v3595_v6 }
 0x353   : > { %v2055_v1 = vpop.f32.mrb[106].mxu1 }
 0x354   : > { %v3441_v44 = vadd.f32 %v3440_v52, %v3378_v39  ;;  %v2931_v10 = vmax.f32 %v5361_v15, 0.0  ;;  %v5362_v0 = vadd.f32 %v2055_v1, %v8550_v43  ;;  %v2825_v62 = vpop.f32.mrb[106].mxu0  ;;  %v2057_v30 = vpop.f32.mrb[107].mxu1 }
 0x355   : > { %v2827_v28 = vpop.f32.mrb[107].mxu0 }
 0x356   : > { %v3379_v46 = vmul.f32 %v3270_v51, %v2931_v10  ;;  %v5363_v19 = vadd.f32 %v5362_v0, %v2825_v62  ;;  %v3285_v62 = vpop.permute.xlu1 %3284  ;;  %v3723_v51 = vadd.f32 %v3722_v36, %v3596_v42  ;;  %v7336_v28 = vld [vmem:[%s6347_s30 + $0x3b0] sm:$0xff]  ;;  %v7348_v36 = vld [vmem:[%s6347_s30 + $0x3c0] sm:$0xff] }
 0x357   : > { %v2060_v48 = vpop.f32.mrb[108].mxu1  ;;  %v3597_v22 = vmul.f32 %v7336_v28, %v7336_v28 }
 0x358   : > { %v3442_v27 = vadd.f32 %v3441_v44, %v3379_v46  ;;  %v2932_v58 = vmax.f32 %v5363_v19, 0.0  ;;  %v5364_v63 = vadd.f32 %v2060_v48, %v8551_v54  ;;  %v2830_v60 = vpop.f32.mrb[108].mxu0  ;;  %v2062_v26 = vpop.f32.mrb[109].mxu1  ;;  %v8553_v44 = vld [vmem:[#allocation33_spill] sm:$0xff] }
 0x359   : > { %v2832_v16 = vpop.f32.mrb[109].mxu0  ;;  %v3290_v26 = vpop.permute.xlu0 %3289  ;;  %v3724_v6 = vadd.f32 %v3723_v51, %v3597_v22  ;;  %v7354_v22 = vld [vmem:[%s6347_s30 + $0x3c8] sm:$0xff] }
 0x35a   : > { %v3380_v35 = vmul.f32 %v3275_v40, %v2932_v58  ;;  %v5365_v29 = vadd.f32 %v5364_v63, %v2830_v60  ;;  %v8554_v58 = vld [vmem:[#allocation34_spill] sm:$0xff]  ;;  %v7342_v16 = vld [vmem:[%s6347_s30 + $0x3b8] sm:$0xff] }
 0x35b   : > { %v2065_v12 = vpop.f32.mrb[110].mxu1  ;;  %v3598_v50 = vmul.f32 %v7342_v16, %v7342_v16 }
 0x35c   : > { %v3443_v3 = vadd.f32 %v3442_v27, %v3380_v35  ;;  %v2933_v61 = vmax.f32 %v5365_v29, 0.0  ;;  %v5366_v52 = vadd.f32 %v2065_v12, %v8552_v11  ;;  %v2835_v59 = vpop.f32.mrb[110].mxu0  ;;  %v2067_v13 = vpop.f32.mrb[111].mxu1  ;;  %v8555_v11 = vld [vmem:[#allocation35_spill] sm:$0xff] }
 0x35d   : > { %v2837_v34 = vpop.f32.mrb[111].mxu0  ;;  %v3725_v42 = vadd.f32 %v3724_v6, %v3598_v50 }
 0x35e   : > { %v3381_v9 = vmul.f32 %v3280_v49, %v2933_v61  ;;  %v5367_v4 = vadd.f32 %v5366_v52, %v2835_v59  ;;  %v3295_v49 = vpop.permute.xlu1 %3294 }
 0x35f   : > { %v2070_v39 = vpop.f32.mrb[112].mxu1 }
 0x360   : > { %v3444_v15 = vadd.f32 %v3443_v3, %v3381_v9  ;;  %v2934_v1 = vmax.f32 %v5367_v4, 0.0  ;;  %v5368_v10 = vadd.f32 %v2070_v39, %v8553_v44  ;;  %v2840_v43 = vpop.f32.mrb[112].mxu0  ;;  %v2072_v0 = vpop.f32.mrb[113].mxu1  ;;  %v3599_v9 = vmul.f32 %v7348_v36, %v7348_v36 }
 0x361   : > { %v2842_v30 = vpop.f32.mrb[113].mxu0 }
 0x362   : > { %v3382_v31 = vmul.f32 %v3285_v62, %v2934_v1  ;;  %v5369_v46 = vadd.f32 %v5368_v10, %v2840_v43  ;;  %v8556_v10 = vld [vmem:[#allocation36_spill] sm:$0xff]  ;;  %v3300_v30 = vpop.permute.xlu0 %3299  ;;  %v3305_v50 = vpop.permute.xlu1 %3304 }
 0x363   : > { %v2075_v19 = vpop.f32.mrb[114].mxu1 }
 0x364   : > { %v3445_v48 = vadd.f32 %v3444_v15, %v3382_v31  ;;  %v2935_v27 = vmax.f32 %v5369_v46, 0.0  ;;  %v5370_v54 = vadd.f32 %v2075_v19, %v8554_v58  ;;  %v2845_v63 = vpop.f32.mrb[114].mxu0  ;;  %v2077_v60 = vpop.f32.mrb[115].mxu1  ;;  %v3600_v31 = vmul.f32 %v7354_v22, %v7354_v22 }
 0x365   : > { %v2847_v40 = vpop.f32.mrb[115].mxu0  ;;  %v3726_v46 = vadd.f32 %v3725_v42, %v3599_v9 }
 0x366   : > { %v3383_v35 = vmul.f32 %v3290_v26, %v2935_v27  ;;  %v5371_v29 = vadd.f32 %v5370_v54, %v2845_v63  ;;  %v8557_v63 = vld [vmem:[#allocation37_spill] sm:$0xff]  ;;  %v3310_v9 = vpop.permute.xlu0 %3309 }
 0x367   : > { %v2080_v12 = vpop.f32.mrb[116].mxu1 }
 0x368   : > { %v3446_v3 = vadd.f32 %v3445_v48, %v3383_v35  ;;  %v2936_v61 = vmax.f32 %v5371_v29, 0.0  ;;  %v5372_v52 = vadd.f32 %v2080_v12, %v8555_v11  ;;  %v2850_v59 = vpop.f32.mrb[116].mxu0  ;;  %v2082_v13 = vpop.f32.mrb[117].mxu1  ;;  %v3727_v35 = vadd.f32 %v3726_v46, %v3600_v31  ;;  %v7360_v29 = vld [vmem:[%s6347_s30 + $0x3d0] sm:$0xff] }
 0x369   : > { %v2852_v34 = vpop.f32.mrb[117].mxu0  ;;  %v3601_v12 = vmul.f32 %v7360_v29, %v7360_v29  ;;  %v8558_v13 = vld [vmem:[#allocation38_spill] sm:$0xff] }
 0x36a   : > { %v3384_v4 = vmul.f32 %v3295_v49, %v2936_v61  ;;  %v5373_v39 = vadd.f32 %v5372_v52, %v2850_v59 }
 0x36b   : > { %v2085_v15 = vpop.f32.mrb[118].mxu1 }
 0x36c   : > { %v3447_v1 = vadd.f32 %v3446_v3, %v3384_v4  ;;  %v2937_v44 = vmax.f32 %v5373_v39, 0.0  ;;  %v5374_v43 = vadd.f32 %v2085_v15, %v8556_v10  ;;  %v2855_v0 = vpop.f32.mrb[118].mxu0  ;;  %v2087_v62 = vpop.f32.mrb[119].mxu1  ;;  %v7366_v39 = vld [vmem:[%s6347_s30 + $0x3d8] sm:$0xff] }
 0x36d   : > { %v2857_v51 = vpop.f32.mrb[119].mxu0  ;;  %v3602_v15 = vmul.f32 %v7366_v39, %v7366_v39 }
 0x36e   : > { %v3385_v19 = vmul.f32 %v3300_v30, %v2937_v44  ;;  %v5375_v48 = vadd.f32 %v5374_v43, %v2855_v0  ;;  %v8559_v30 = vld [vmem:[#allocation39_spill] sm:$0xff] }
 0x36f   : > { %v2090_v27 = vpop.f32.mrb[120].mxu1 }
 0x370   : > { %v3448_v58 = vadd.f32 %v3447_v1, %v3385_v19  ;;  %v2938_v54 = vmax.f32 %v5375_v48, 0.0  ;;  %v5376_v60 = vadd.f32 %v2090_v27, %v8557_v63  ;;  %v2860_v26 = vpop.f32.mrb[120].mxu0  ;;  %v2092_v40 = vpop.f32.mrb[121].mxu1  ;;  %v3728_v1 = vadd.f32 %v3727_v35, %v3601_v12 }
 0x371   : > { %v2862_v6 = vpop.f32.mrb[121].mxu0  ;;  %v3315_v19 = vpop.permute.xlu1 %3314 }
 0x372   : > { %v3386_v3 = vmul.f32 %v3305_v50, %v2938_v54  ;;  %v5377_v61 = vadd.f32 %v5376_v60, %v2860_v26  ;;  %v3729_v27 = vadd.f32 %v3728_v1, %v3602_v15  ;;  %v8560_v6 = vld [vmem:[#allocation40_spill] sm:$0xff]  ;;  %v7383_v1 = vld [vmem:[%s6347_s30 + $0x3f0] sm:$0xff] }
 0x373   : > { %v2095_v11 = vpop.f32.mrb[122].mxu1 }
 0x374   : > { %v3449_v52 = vadd.f32 %v3448_v58, %v3386_v3  ;;  %v2939_v59 = vmax.f32 %v5377_v61, 0.0  ;;  %v5378_v49 = vadd.f32 %v2095_v11, %v8558_v13  ;;  %v2865_v34 = vpop.f32.mrb[122].mxu0  ;;  %v2097_v42 = vpop.f32.mrb[123].mxu1  ;;  %v7372_v58 = vld [vmem:[%s6347_s30 + $0x3e0] sm:$0xff] }
 0x375   : > { %v2867_v4 = vpop.f32.mrb[123].mxu0  ;;  %v3603_v54 = vmul.f32 %v7372_v58, %v7372_v58  ;;  %v3320_v61 = vpop.permute.xlu0 %3319 }
 0x376   : > { %v3387_v44 = vmul.f32 %v3310_v9, %v2939_v59  ;;  %v5379_v10 = vadd.f32 %v5378_v49, %v2865_v34  ;;  %v3325_v4 = vpop.permute.xlu1 %3324 }
 0x377   : > { %v2100_v43 = vpop.f32.mrb[124].mxu1  ;;  %v3730_v13 = vadd.f32 %v3729_v27, %v3603_v54 }
 0x378   : > { %v3450_v0 = vadd.f32 %v3449_v52, %v3387_v44  ;;  %v2940_v62 = vmax.f32 %v5379_v10, 0.0  ;;  %v5380_v51 = vadd.f32 %v2100_v43, %v8559_v30  ;;  %v2870_v31 = vpop.f32.mrb[124].mxu0  ;;  %v2102_v46 = vpop.f32.mrb[125].mxu1  ;;  %v7378_v52 = vld [vmem:[%s6347_s30 + $0x3e8] sm:$0xff]  ;;  %v3605_v44 = vmul.f32 %v7383_v1, %v7383_v1 }
 0x379   : > { %v2872_v48 = vpop.f32.mrb[125].mxu0  ;;  %v3604_v59 = vmul.f32 %v7378_v52, %v7378_v52 }
 0x37a   : > { %v3388_v63 = vmul.f32 %v3315_v19, %v2940_v62  ;;  %v5381_v60 = vadd.f32 %v5380_v51, %v2870_v31 }
 0x37b   : > { %v2105_v26 = vpop.f32.mrb[126].mxu1  ;;  %v3731_v15 = vadd.f32 %v3730_v13, %v3604_v59 }
 0x37c   : > { %v3451_v40 = vadd.f32 %v3450_v0, %v3388_v63  ;;  %v2941_v50 = vmax.f32 %v5381_v60, 0.0  ;;  %v5382_v35 = vadd.f32 %v2105_v26, %v8560_v6  ;;  %v2875_v12 = vpop.f32.mrb[126].mxu0  ;;  %v2107_v3 = vpop.f32.mrb[127].mxu1  ;;  %v7388_v0 = vld [vmem:[%s6347_s30 + $0x3f8] sm:$0xff]  ;;  %v3461_v63 = vstv %s3460_s10 }
 0x37d   : > { %v2877_v11 = vpop.f32.mrb[127].mxu0  ;;  %v3606_v62 = vmul.f32 %v7388_v0, %v7388_v0  ;;  %v3732_v30 = vadd.f32 %v3731_v15, %v3605_v44 }
 0x37e   : > { %v3389_v49 = vmul.f32 %v3320_v61, %v2941_v50  ;;  %v5383_v34 = vadd.f32 %v5382_v35, %v2875_v12 }
 0x37f   : > { %v3733_v46 = vadd.f32 %v3732_v30, %v3606_v62 }
 0x380   : > { %v3452_v42 = vadd.f32 %v3451_v40, %v3389_v49  ;;  %v2942_v9 = vmax.f32 %v5383_v34, 0.0 }
 0x381   : > { %v3734_v27 = vrot.slane %v3733_v46, 4 }
 0x382   : > { %v3390_v10 = vmul.f32 %v3325_v4, %v2942_v9 }
 0x383   : > { %v3735_v26 = vadd.f32 %v3734_v27, %v3733_v46  ;;  %v5873_v46 = vld [vmem:[%s6347_s30] sm:$0xff] }
 0x384   : > { %v3453_v43 = vadd.f32 %v3452_v42, %v3390_v10 }
 0x385   : > { %v3736_v6 = vrot.slane %v3735_v26, 2 }
 0x386   : > { %v3454_v51 = vrot.slane %v3453_v43, 4 }
 0x387   : > { %v3737_v3 = vadd.f32 %v3736_v6, %v3735_v26  ;;  %v5878_v6 = vld [vmem:[%s6347_s30 + $0x28] sm:$0xff] }
 0x388   : > { %v3455_v31 = vadd.f32 %v3454_v51, %v3453_v43 }
 0x389   : > { %v3738_v61 = vrot.slane %v3737_v3, 1 }
 0x38a   : > { %v3456_v19 = vrot.slane %v3455_v31, 2 }
 0x38b   : > { %v3739_v11 = vadd.f32 %v3738_v61, %v3737_v3  ;;  %v5880_v61 = vld [vmem:[%s6347_s30 + $0x38] sm:$0xff] }
 0x38c   : > { %v3457_v48 = vadd.f32 %v3456_v19, %v3455_v31 }
 0x38d   : > { %v3740_v49 = vmax.f32 %v3739_v11, 1e-24 }
 0x38e   : > { %v3458_v54 = vrot.slane %v3457_v48, 1 }
 0x390   : > { %v3459_v60 = vadd.f32 %v3458_v54, %v3457_v48  ;;  %v5874_v48 = vld [vmem:[%s6347_s30 + $0x8] sm:$0xff]  ;;  %v5875_v54 = vld [vmem:[%s6347_s30 + $0x10] sm:$0xff] }
 0x392   : > { %v3462_v40 = vadd.f32 %v3461_v63, %v3459_v60  ;;  %v5876_v60 = vld [vmem:[%s6347_s30 + $0x18] sm:$0xff] }
 0x394   : > { %v3464_v50 = vand.u32 2147483647, %v3462_v40  ;;  %v3463_v10 = vmax.f32 %v3462_v40, 0.0  ;;  %v5877_v40 = vld [vmem:[%s6347_s30 + $0x20] sm:$0xff] }
 0x396   : > { %v3465_v35 = vsub.f32 0.0, %v3464_v50 }
 0x398   : > { %v3466_v12 = vmul.f32 1.442695, %v3465_v35 }
 0x39a   : > { %5739 = vpow2.f32 %v3466_v12  ;;  %v5879_v12 = vld [vmem:[%s6347_s30 + $0x30] sm:$0xff] }
 0x3a4   : > { %v5740_v59 = vpop.eup %5739 }
 0x3a5   : > { %v3468_v13 = vadd.f32 1.0, %v5740_v59  ;;  %v3471_v34 = vmul.f32 -0.5, %v5740_v59  ;;  %v3474_v9 = vand.u32 2147483647, %v5740_v59 }
 0x3a7   : > { %5741 = vlog2.f32 %v3468_v13  ;;  %v3472_v42 = vadd.f32 1.0, %v3471_v34  ;;  %vm3475_vm0 = vcmp.lt.f32.partialorder %v3474_v9, 0.0004427343 }
 0x3a8   : > { %5743 = vrsqrt.f32 %v3740_v49  ;;  %v5882_v49 = vld [vmem:[%s6347_s30 + $0x48] sm:$0xff] }
 0x3a9   : > { %v3473_v44 = vmul.f32 %v5740_v59, %v3472_v42  ;;  %v5881_v59 = vld [vmem:[%s6347_s30 + $0x40] sm:$0xff]  ;;  %v5883_v42 = vld [vmem:[%s6347_s30 + $0x50] sm:$0xff] }
 0x3b1   : > { %v5742_v4 = vpop.eup %5741 }
 0x3b2   : > { %v3470_v15 = vmul.f32 0.6931472, %v5742_v4  ;;  %v5744_v43 = vpop.eup %5743  ;;  %v5884_v4 = vld [vmem:[%s6347_s30 + $0x58] sm:$0xff] }
 0x3b4   : > { %v3476_v62 = vsel %vm3475_vm0, %v3473_v44, %v3470_v15  ;;  %v5885_v44 = vld [vmem:[%s6347_s30 + $0x60] sm:$0xff] }
 0x3b5   : > { %v3477_v30 = vadd.f32 %v3476_v62, %v3463_v10 }
 0x3b7   : > { %3478 = vst [vmem:[%s302_s17] sm:$0x1] %v3477_v30  ;;  %v3742_v51 = vmul.f32 %v5744_v43, %v3477_v30  ;;  %v5886_v43 = vld [vmem:[%s6347_s30 + $0x68] sm:$0xff]  ;;  %v5887_v30 = vld [vmem:[%s6347_s30 + $0x70] sm:$0xff] }
 0x3b9   : > { %v7395_v31 = vmul.f32 0.00390625, %v3742_v51 }
 0x3bb   : > { %v7399_v19 = vmul.f32 %v5873_v46, %v7395_v31  ;;  %v7403_v27 = vmul.f32 %v5874_v48, %v7395_v31  ;;  %v7407_v63 = vmul.f32 %v5875_v54, %v7395_v31  ;;  %v7411_v26 = vmul.f32 %v5876_v60, %v7395_v31  ;;  %v5888_v46 = vld [vmem:[%s6347_s30 + $0x78] sm:$0xff]  ;;  %v5889_v54 = vld [vmem:[%s6347_s30 + $0x80] sm:$0xff] }
 0x3bc   : > { %v7415_v50 = vmul.f32 %v5877_v40, %v7395_v31  ;;  %v7419_v35 = vmul.f32 %v5878_v6, %v7395_v31  ;;  %v7423_v3 = vmul.f32 %v5879_v12, %v7395_v31  ;;  %v7427_v11 = vmul.f32 %v5880_v61, %v7395_v31  ;;  %v5890_v40 = vld [vmem:[%s6347_s30 + $0x88] sm:$0xff]  ;;  %v5891_v12 = vld [vmem:[%s6347_s30 + $0x90] sm:$0xff] }
 0x3bd   : > { %v7431_v13 = vmul.f32 %v5881_v59, %v7395_v31  ;;  %v7435_v34 = vmul.f32 %v5882_v49, %v7395_v31  ;;  %v7439_v9 = vmul.f32 %v5883_v42, %v7395_v31  ;;  %v7443_v15 = vmul.f32 %v5884_v4, %v7395_v31  ;;  %v5892_v59 = vld [vmem:[%s6347_s30 + $0x98] sm:$0xff]  ;;  %v5893_v42 = vld [vmem:[%s6347_s30 + $0xa0] sm:$0xff] }
 0x3be   : > { %v7447_v10 = vmul.f32 %v5885_v44, %v7395_v31  ;;  %v7451_v62 = vmul.f32 %v5886_v43, %v7395_v31  ;;  %v7455_v51 = vmul.f32 %v5887_v30, %v7395_v31  ;;  %v7459_v48 = vmul.f32 %v5888_v46, %v7395_v31  ;;  %v5894_v44 = vld [vmem:[%s6347_s30 + $0xa8] sm:$0xff]  ;;  %v5895_v30 = vld [vmem:[%s6347_s30 + $0xb0] sm:$0xff] }
 0x3bf   : > { %v7463_v60 = vmul.f32 %v5889_v54, %v7395_v31  ;;  %v7467_v6 = vmul.f32 %v5890_v40, %v7395_v31  ;;  %v7471_v61 = vmul.f32 %v5891_v12, %v7395_v31  ;;  %v7475_v49 = vmul.f32 %v5892_v59, %v7395_v31  ;;  %v5896_v54 = vld [vmem:[%s6347_s30 + $0xb8] sm:$0xff]  ;;  %v5897_v12 = vld [vmem:[%s6347_s30 + $0xc0] sm:$0xff] }
 0x3c0   : > { %v7479_v4 = vmul.f32 %v5893_v42, %v7395_v31  ;;  %v7483_v43 = vmul.f32 %v5894_v44, %v7395_v31  ;;  %v7487_v46 = vmul.f32 %v5895_v30, %v7395_v31  ;;  %v7491_v40 = vmul.f32 %v5896_v54, %v7395_v31  ;;  %v5898_v42 = vld [vmem:[%s6347_s30 + $0xc8] sm:$0xff] }
 0x3c1   : > { %8561 = vst [vmem:[#allocation17_spill] sm:$0xff] %v7475_v49  ;;  %v7495_v59 = vmul.f32 %v5897_v12, %v7395_v31  ;;  %v7499_v44 = vmul.f32 %v5898_v42, %v7395_v31  ;;  %v5963_v49 = vld [vmem:[%s6347_s30 + $0x2d0] sm:$0xff] }
 0x3c2   : > { %8562 = vst [vmem:[#allocation18_spill] sm:$0xff] %v7479_v4  ;;  %8563 = vst [vmem:[#allocation19_spill] sm:$0xff] %v7483_v43  ;;  %v5899_v43 = vld [vmem:[%s6347_s30 + $0xd0] sm:$0xff] }
 0x3c3   : > { %8564 = vst [vmem:[#allocation20_spill] sm:$0xff] %v7487_v46  ;;  %8565 = vst [vmem:[#allocation21_spill] sm:$0xff] %v7491_v40  ;;  %v7503_v30 = vmul.f32 %v5899_v43, %v7395_v31  ;;  %v5900_v46 = vld [vmem:[%s6347_s30 + $0xd8] sm:$0xff]  ;;  %v5901_v40 = vld [vmem:[%s6347_s30 + $0xe0] sm:$0xff] }
 0x3c4   : > { %8566 = vst [vmem:[#allocation22_spill] sm:$0xff] %v7495_v59  ;;  %8567 = vst [vmem:[#allocation23_spill] sm:$0xff] %v7499_v44  ;;  %v7507_v54 = vmul.f32 %v5900_v46, %v7395_v31  ;;  %v7511_v12 = vmul.f32 %v5901_v40, %v7395_v31  ;;  %v5902_v59 = vld [vmem:[%s6347_s30 + $0xe8] sm:$0xff]  ;;  %v5903_v44 = vld [vmem:[%s6347_s30 + $0xf0] sm:$0xff] }
 0x3c5   : > { %8568 = vst [vmem:[#allocation24_spill] sm:$0xff] %v7503_v30  ;;  %v7515_v42 = vmul.f32 %v5902_v59, %v7395_v31  ;;  %v7519_v43 = vmul.f32 %v5903_v44, %v7395_v31  ;;  %v5904_v30 = vld [vmem:[%s6347_s30 + $0xf8] sm:$0xff] }
 0x3c6   : > { %8569 = vst [vmem:[#allocation25_spill] sm:$0xff] %v7507_v54  ;;  %8570 = vst [vmem:[#allocation26_spill] sm:$0xff] %v7511_v12  ;;  %v7523_v46 = vmul.f32 %v5904_v30, %v7395_v31  ;;  %v5905_v54 = vld [vmem:[%s6347_s30 + $0x100] sm:$0xff]  ;;  %v5906_v12 = vld [vmem:[%s6347_s30 + $0x108] sm:$0xff] }
 0x3c7   : > { %8571 = vst [vmem:[#allocation27_spill] sm:$0xff] %v7515_v42  ;;  %8572 = vst [vmem:[#allocation28_spill] sm:$0xff] %v7519_v43  ;;  %v7527_v40 = vmul.f32 %v5905_v54, %v7395_v31  ;;  %v7531_v59 = vmul.f32 %v5906_v12, %v7395_v31  ;;  %v5907_v42 = vld [vmem:[%s6347_s30 + $0x110] sm:$0xff]  ;;  %v5908_v43 = vld [vmem:[%s6347_s30 + $0x118] sm:$0xff] }
 0x3c8   : > { %8573 = vst [vmem:[#allocation29_spill] sm:$0xff] %v7523_v46  ;;  %v7535_v44 = vmul.f32 %v5907_v42, %v7395_v31  ;;  %v7539_v30 = vmul.f32 %v5908_v43, %v7395_v31  ;;  %v5909_v46 = vld [vmem:[%s6347_s30 + $0x120] sm:$0xff] }
 0x3c9   : > { %8574 = vst [vmem:[#allocation30_spill] sm:$0xff] %v7527_v40  ;;  %8575 = vst [vmem:[#allocation31_spill] sm:$0xff] %v7531_v59  ;;  %v7543_v54 = vmul.f32 %v5909_v46, %v7395_v31  ;;  %v5910_v40 = vld [vmem:[%s6347_s30 + $0x128] sm:$0xff]  ;;  %v5911_v59 = vld [vmem:[%s6347_s30 + $0x130] sm:$0xff] }
 0x3ca   : > { %8576 = vst [vmem:[#allocation32_spill] sm:$0xff] %v7535_v44  ;;  %8577 = vst [vmem:[#allocation33_spill] sm:$0xff] %v7539_v30  ;;  %v7547_v12 = vmul.f32 %v5910_v40, %v7395_v31  ;;  %v7551_v42 = vmul.f32 %v5911_v59, %v7395_v31  ;;  %v5912_v44 = vld [vmem:[%s6347_s30 + $0x138] sm:$0xff]  ;;  %v5913_v30 = vld [vmem:[%s6347_s30 + $0x140] sm:$0xff] }
 0x3cb   : > { %8578 = vst [vmem:[#allocation34_spill] sm:$0xff] %v7543_v54  ;;  %v7555_v43 = vmul.f32 %v5912_v44, %v7395_v31  ;;  %v7559_v46 = vmul.f32 %v5913_v30, %v7395_v31  ;;  %v5914_v54 = vld [vmem:[%s6347_s30 + $0x148] sm:$0xff] }
 0x3cc   : > { %8579 = vst [vmem:[#allocation35_spill] sm:$0xff] %v7547_v12  ;;  %8580 = vst [vmem:[#allocation36_spill] sm:$0xff] %v7551_v42  ;;  %v7563_v40 = vmul.f32 %v5914_v54, %v7395_v31  ;;  %v5915_v12 = vld [vmem:[%s6347_s30 + $0x150] sm:$0xff]  ;;  %v5916_v42 = vld [vmem:[%s6347_s30 + $0x158] sm:$0xff] }
 0x3cd   : > { %8581 = vst [vmem:[#allocation37_spill] sm:$0xff] %v7555_v43  ;;  %8582 = vst [vmem:[#allocation38_spill] sm:$0xff] %v7559_v46  ;;  %v7567_v59 = vmul.f32 %v5915_v12, %v7395_v31  ;;  %v7571_v44 = vmul.f32 %v5916_v42, %v7395_v31  ;;  %v5917_v43 = vld [vmem:[%s6347_s30 + $0x160] sm:$0xff]  ;;  %v5918_v46 = vld [vmem:[%s6347_s30 + $0x168] sm:$0xff] }
 0x3ce   : > { %8583 = vst [vmem:[#allocation39_spill] sm:$0xff] %v7563_v40  ;;  %v7575_v30 = vmul.f32 %v5917_v43, %v7395_v31  ;;  %v7579_v54 = vmul.f32 %v5918_v46, %v7395_v31  ;;  %v5919_v40 = vld [vmem:[%s6347_s30 + $0x170] sm:$0xff] }
 0x3cf   : > { %8584 = vst [vmem:[#allocation40_spill] sm:$0xff] %v7567_v59  ;;  %8585 = vst [vmem:[#allocation41_spill] sm:$0xff] %v7571_v44  ;;  %v7583_v12 = vmul.f32 %v5919_v40, %v7395_v31  ;;  %v5920_v59 = vld [vmem:[%s6347_s30 + $0x178] sm:$0xff]  ;;  %v5921_v44 = vld [vmem:[%s6347_s30 + $0x180] sm:$0xff] }
 0x3d0   : > { %8586 = vst [vmem:[#allocation42_spill] sm:$0xff] %v7575_v30  ;;  %8587 = vst [vmem:[#allocation43_spill] sm:$0xff] %v7579_v54  ;;  %v7587_v42 = vmul.f32 %v5920_v59, %v7395_v31  ;;  %v7591_v43 = vmul.f32 %v5921_v44, %v7395_v31  ;;  %v5922_v30 = vld [vmem:[%s6347_s30 + $0x188] sm:$0xff]  ;;  %v5923_v54 = vld [vmem:[%s6347_s30 + $0x190] sm:$0xff] }
 0x3d1   : > { %8588 = vst [vmem:[#allocation44_spill] sm:$0xff] %v7583_v12  ;;  %v7595_v46 = vmul.f32 %v5922_v30, %v7395_v31  ;;  %v7599_v40 = vmul.f32 %v5923_v54, %v7395_v31  ;;  %v5924_v12 = vld [vmem:[%s6347_s30 + $0x198] sm:$0xff] }
 0x3d2   : > { %8589 = vst [vmem:[#allocation45_spill] sm:$0xff] %v7587_v42  ;;  %8590 = vst [vmem:[#allocation46_spill] sm:$0xff] %v7591_v43  ;;  %v7603_v59 = vmul.f32 %v5924_v12, %v7395_v31  ;;  %v5925_v42 = vld [vmem:[%s6347_s30 + $0x1a0] sm:$0xff]  ;;  %v5926_v43 = vld [vmem:[%s6347_s30 + $0x1a8] sm:$0xff] }
 0x3d3   : > { %8591 = vst [vmem:[#allocation47_spill] sm:$0xff] %v7595_v46  ;;  %8592 = vst [vmem:[#allocation48_spill] sm:$0xff] %v7599_v40  ;;  %v7607_v44 = vmul.f32 %v5925_v42, %v7395_v31  ;;  %v7611_v30 = vmul.f32 %v5926_v43, %v7395_v31  ;;  %v5927_v46 = vld [vmem:[%s6347_s30 + $0x1b0] sm:$0xff]  ;;  %v5928_v40 = vld [vmem:[%s6347_s30 + $0x1b8] sm:$0xff] }
 0x3d4   : > { %8593 = vst [vmem:[#allocation49_spill] sm:$0xff] %v7603_v59  ;;  %v7615_v54 = vmul.f32 %v5927_v46, %v7395_v31  ;;  %v7619_v12 = vmul.f32 %v5928_v40, %v7395_v31  ;;  %v5929_v59 = vld [vmem:[%s6347_s30 + $0x1c0] sm:$0xff] }
 0x3d5   : > { %8594 = vst [vmem:[#allocation50_spill] sm:$0xff] %v7607_v44  ;;  %8595 = vst [vmem:[#allocation51_spill] sm:$0xff] %v7611_v30  ;;  %v7623_v42 = vmul.f32 %v5929_v59, %v7395_v31  ;;  %v5930_v44 = vld [vmem:[%s6347_s30 + $0x1c8] sm:$0xff]  ;;  %v5931_v30 = vld [vmem:[%s6347_s30 + $0x1d0] sm:$0xff] }
 0x3d6   : > { %8596 = vst [vmem:[#allocation52_spill] sm:$0xff] %v7615_v54  ;;  %8597 = vst [vmem:[#allocation53_spill] sm:$0xff] %v7619_v12  ;;  %v7627_v43 = vmul.f32 %v5930_v44, %v7395_v31  ;;  %v7631_v46 = vmul.f32 %v5931_v30, %v7395_v31  ;;  %v5932_v54 = vld [vmem:[%s6347_s30 + $0x1d8] sm:$0xff]  ;;  %v5933_v12 = vld [vmem:[%s6347_s30 + $0x1e0] sm:$0xff] }
 0x3d7   : > { %8598 = vst [vmem:[#allocation54_spill] sm:$0xff] %v7623_v42  ;;  %v7635_v40 = vmul.f32 %v5932_v54, %v7395_v31  ;;  %v7639_v59 = vmul.f32 %v5933_v12, %v7395_v31  ;;  %v5934_v42 = vld [vmem:[%s6347_s30 + $0x1e8] sm:$0xff] }
 0x3d8   : > { %8599 = vst [vmem:[#allocation55_spill] sm:$0xff] %v7627_v43  ;;  %8600 = vst [vmem:[#allocation56_spill] sm:$0xff] %v7631_v46  ;;  %v7643_v44 = vmul.f32 %v5934_v42, %v7395_v31  ;;  %v5935_v43 = vld [vmem:[%s6347_s30 + $0x1f0] sm:$0xff]  ;;  %v5936_v46 = vld [vmem:[%s6347_s30 + $0x1f8] sm:$0xff] }
 0x3d9   : > { %8601 = vst [vmem:[#allocation57_spill] sm:$0xff] %v7635_v40  ;;  %8602 = vst [vmem:[#allocation58_spill] sm:$0xff] %v7639_v59  ;;  %v7647_v30 = vmul.f32 %v5935_v43, %v7395_v31  ;;  %v7651_v54 = vmul.f32 %v5936_v46, %v7395_v31  ;;  %v5937_v40 = vld [vmem:[%s6347_s30 + $0x200] sm:$0xff]  ;;  %v5938_v59 = vld [vmem:[%s6347_s30 + $0x208] sm:$0xff] }
 0x3da   : > { %8603 = vst [vmem:[#allocation59_spill] sm:$0xff] %v7643_v44  ;;  %v7655_v12 = vmul.f32 %v5937_v40, %v7395_v31  ;;  %v7659_v42 = vmul.f32 %v5938_v59, %v7395_v31  ;;  %v5939_v44 = vld [vmem:[%s6347_s30 + $0x210] sm:$0xff] }
 0x3db   : > { %8604 = vst [vmem:[#allocation60_spill] sm:$0xff] %v7647_v30  ;;  %8605 = vst [vmem:[#allocation61_spill] sm:$0xff] %v7651_v54  ;;  %v7663_v43 = vmul.f32 %v5939_v44, %v7395_v31  ;;  %v5940_v30 = vld [vmem:[%s6347_s30 + $0x218] sm:$0xff]  ;;  %v5941_v54 = vld [vmem:[%s6347_s30 + $0x220] sm:$0xff] }
 0x3dc   : > { %8606 = vst [vmem:[#allocation62_spill] sm:$0xff] %v7655_v12  ;;  %8607 = vst [vmem:[#allocation63_spill] sm:$0xff] %v7659_v42  ;;  %v7667_v46 = vmul.f32 %v5940_v30, %v7395_v31  ;;  %v7671_v40 = vmul.f32 %v5941_v54, %v7395_v31  ;;  %v5942_v12 = vld [vmem:[%s6347_s30 + $0x228] sm:$0xff]  ;;  %v5943_v42 = vld [vmem:[%s6347_s30 + $0x230] sm:$0xff] }
 0x3dd   : > { %8608 = vst [vmem:[#allocation64_spill] sm:$0xff] %v7663_v43  ;;  %v7675_v59 = vmul.f32 %v5942_v12, %v7395_v31  ;;  %v7679_v44 = vmul.f32 %v5943_v42, %v7395_v31  ;;  %v5944_v43 = vld [vmem:[%s6347_s30 + $0x238] sm:$0xff] }
 0x3de   : > { %8609 = vst [vmem:[#allocation65_spill] sm:$0xff] %v7667_v46  ;;  %8610 = vst [vmem:[#allocation66_spill] sm:$0xff] %v7671_v40  ;;  %v7683_v30 = vmul.f32 %v5944_v43, %v7395_v31  ;;  %v5945_v46 = vld [vmem:[%s6347_s30 + $0x240] sm:$0xff]  ;;  %v5946_v40 = vld [vmem:[%s6347_s30 + $0x248] sm:$0xff] }
 0x3df   : > { %8611 = vst [vmem:[#allocation67_spill] sm:$0xff] %v7675_v59  ;;  %8612 = vst [vmem:[#allocation68_spill] sm:$0xff] %v7679_v44  ;;  %v7687_v54 = vmul.f32 %v5945_v46, %v7395_v31  ;;  %v7691_v12 = vmul.f32 %v5946_v40, %v7395_v31  ;;  %v5947_v59 = vld [vmem:[%s6347_s30 + $0x250] sm:$0xff]  ;;  %v5948_v44 = vld [vmem:[%s6347_s30 + $0x258] sm:$0xff] }
 0x3e0   : > { %8613 = vst [vmem:[#allocation69_spill] sm:$0xff] %v7683_v30  ;;  %v7695_v42 = vmul.f32 %v5947_v59, %v7395_v31  ;;  %v7699_v43 = vmul.f32 %v5948_v44, %v7395_v31  ;;  %v5949_v30 = vld [vmem:[%s6347_s30 + $0x260] sm:$0xff] }
 0x3e1   : > { %8614 = vst [vmem:[#allocation70_spill] sm:$0xff] %v7687_v54  ;;  %8615 = vst [vmem:[#allocation71_spill] sm:$0xff] %v7691_v12  ;;  %v7703_v46 = vmul.f32 %v5949_v30, %v7395_v31  ;;  %v5950_v54 = vld [vmem:[%s6347_s30 + $0x268] sm:$0xff]  ;;  %v5951_v12 = vld [vmem:[%s6347_s30 + $0x270] sm:$0xff] }
 0x3e2   : > { %8616 = vst [vmem:[#allocation72_spill] sm:$0xff] %v7695_v42  ;;  %8617 = vst [vmem:[#allocation73_spill] sm:$0xff] %v7699_v43  ;;  %v7707_v40 = vmul.f32 %v5950_v54, %v7395_v31  ;;  %v7711_v59 = vmul.f32 %v5951_v12, %v7395_v31  ;;  %v5952_v42 = vld [vmem:[%s6347_s30 + $0x278] sm:$0xff]  ;;  %v5953_v43 = vld [vmem:[%s6347_s30 + $0x280] sm:$0xff] }
 0x3e3   : > { %8618 = vst [vmem:[#allocation74_spill] sm:$0xff] %v7703_v46  ;;  %v7715_v44 = vmul.f32 %v5952_v42, %v7395_v31  ;;  %v7719_v30 = vmul.f32 %v5953_v43, %v7395_v31  ;;  %v5954_v46 = vld [vmem:[%s6347_s30 + $0x288] sm:$0xff] }
 0x3e4   : > { %8619 = vst [vmem:[#allocation75_spill] sm:$0xff] %v7707_v40  ;;  %8620 = vst [vmem:[#allocation76_spill] sm:$0xff] %v7711_v59  ;;  %v7723_v54 = vmul.f32 %v5954_v46, %v7395_v31  ;;  %v5955_v40 = vld [vmem:[%s6347_s30 + $0x290] sm:$0xff]  ;;  %v5956_v59 = vld [vmem:[%s6347_s30 + $0x298] sm:$0xff] }
 0x3e5   : > { %8621 = vst [vmem:[#allocation77_spill] sm:$0xff] %v7715_v44  ;;  %8622 = vst [vmem:[#allocation78_spill] sm:$0xff] %v7719_v30  ;;  %v7727_v12 = vmul.f32 %v5955_v40, %v7395_v31  ;;  %v7731_v42 = vmul.f32 %v5956_v59, %v7395_v31  ;;  %v5957_v44 = vld [vmem:[%s6347_s30 + $0x2a0] sm:$0xff]  ;;  %v5958_v30 = vld [vmem:[%s6347_s30 + $0x2a8] sm:$0xff] }
 0x3e6   : > { %8623 = vst [vmem:[#allocation79_spill] sm:$0xff] %v7723_v54  ;;  %v7735_v43 = vmul.f32 %v5957_v44, %v7395_v31  ;;  %v7739_v46 = vmul.f32 %v5958_v30, %v7395_v31  ;;  %v5959_v54 = vld [vmem:[%s6347_s30 + $0x2b0] sm:$0xff]  ;;  %v5961_v59 = vld [vmem:[%s6347_s30 + $0x2c0] sm:$0xff]  ;;  %v5962_v44 = vld [vmem:[%s6347_s30 + $0x2c8] sm:$0xff]  ;;  %v7759_v30 = vmul.f32 %v5963_v49, %v7395_v31  ;;  %v7779_v49 = vmul.f32 %v7198_v56, %v7395_v31 }
 0x3e7   : > { %8624 = vst [vmem:[#allocation80_spill] sm:$0xff] %v7727_v12  ;;  %8625 = vst [vmem:[#allocation81_spill] sm:$0xff] %v7731_v42  ;;  %v7743_v40 = vmul.f32 %v5959_v54, %v7395_v31  ;;  %v5960_v12 = vld [vmem:[%s6347_s30 + $0x2b8] sm:$0xff]  ;;  %v7751_v42 = vmul.f32 %v5961_v59, %v7395_v31  ;;  %v7799_v56 = vmul.f32 %v7228_v38, %v7395_v31 }
 0x3e8   : > { %8626 = vst [vmem:[#allocation82_spill] sm:$0xff] %v7735_v43  ;;  %8627 = vst [vmem:[#allocation83_spill] sm:$0xff] %v7739_v46  ;;  %v7747_v4 = vmul.f32 %v5960_v12, %v7395_v31  ;;  %v7755_v43 = vmul.f32 %v5962_v44, %v7395_v31  ;;  %v5964_v46 = vld [vmem:[%s6347_s30 + $0x2d8] sm:$0xff]  ;;  %v7819_v38 = vmul.f32 %v7258_v23, %v7395_v31 }
 0x3e9   : > { %8628 = vst [vmem:[#allocation84_spill] sm:$0xff] %v7743_v40  ;;  %8630 = vst [vmem:[#allocation86_spill] sm:$0xff] %v7751_v42  ;;  %v7763_v54 = vmul.f32 %v5964_v46, %v7395_v31  ;;  %v5965_v40 = vld [vmem:[%s6347_s30 + $0x2e0] sm:$0xff]  ;;  %v5967_v42 = vld [vmem:[%s6347_s30 + $0x2f0] sm:$0xff]  ;;  %v7783_v46 = vmul.f32 %v7204_v57, %v7395_v31  ;;  %v7803_v57 = vmul.f32 %v7234_v20, %v7395_v31 }
 0x3ea   : > { %8629 = vst [vmem:[#allocation85_spill] sm:$0xff] %v7747_v4  ;;  %v7767_v12 = vmul.f32 %v5965_v40, %v7395_v31  ;;  %v5966_v4 = vld [vmem:[%s6347_s30 + $0x2e8] sm:$0xff]  ;;  %v7775_v44 = vmul.f32 %v5967_v42, %v7395_v31  ;;  %v7787_v40 = vmul.f32 %v7210_v32, %v7395_v31  ;;  %v7795_v42 = vmul.f32 %v7222_v17, %v7395_v31 }
 0x3eb   : > { %v7771_v59 = vmul.f32 %v5966_v4, %v7395_v31  ;;  %v7791_v4 = vmul.f32 %v7216_v18, %v7395_v31  ;;  %v7807_v32 = vmul.f32 %v7240_v25, %v7395_v31  ;;  %v7811_v18 = vmul.f32 %v7246_v37, %v7395_v31 }
 0x3ec   : > { %v7815_v17 = vmul.f32 %v7252_v45, %v7395_v31  ;;  %v7823_v20 = vmul.f32 %v7264_v41, %v7395_v31  ;;  %v7827_v25 = vmul.f32 %v7270_v24, %v7395_v31  ;;  %v7831_v37 = vmul.f32 %v7276_v7, %v7395_v31 }
 0x3ed   : > { %v7835_v45 = vmul.f32 %v7282_v5, %v7395_v31  ;;  %v7839_v23 = vmul.f32 %v7288_v21, %v7395_v31  ;;  %v7843_v41 = vmul.f32 %v7294_v14, %v7395_v31  ;;  %v7847_v24 = vmul.f32 %v7300_v53, %v7395_v31 }
 0x3ee   : > { %v7851_v7 = vmul.f32 %v7306_v33, %v7395_v31  ;;  %v7855_v5 = vmul.f32 %v7312_v2, %v7395_v31  ;;  %v7859_v21 = vmul.f32 %v7318_v47, %v7395_v31  ;;  %v7863_v14 = vmul.f32 %v7324_v8, %v7395_v31 }
 0x3ef   : > { %v7867_v53 = vmul.f32 %v7330_v55, %v7395_v31  ;;  %v7871_v33 = vmul.f32 %v7336_v28, %v7395_v31  ;;  %v7875_v2 = vmul.f32 %v7342_v16, %v7395_v31  ;;  %v7879_v47 = vmul.f32 %v7348_v36, %v7395_v31  ;;  %3875 = sbr.rel (%p5057_p13) target bundleno = 1078 (0x436), region = 52 }
 0x3f0   : > { %v7883_v8 = vmul.f32 %v7354_v22, %v7395_v31  ;;  %v7887_v55 = vmul.f32 %v7360_v29, %v7395_v31  ;;  %v7891_v28 = vmul.f32 %v7366_v39, %v7395_v31  ;;  %v7895_v16 = vmul.f32 %v7372_v58, %v7395_v31 }
 0x3f1   : > { %8631 = vst [vmem:[#allocation87_spill] sm:$0xff] %v7875_v2  ;;  %8632 = vst [vmem:[#allocation88_spill] sm:$0xff] %v7879_v47  ;;  %v7899_v36 = vmul.f32 %v7378_v52, %v7395_v31  ;;  %v7903_v22 = vmul.f32 %v7383_v1, %v7395_v31  ;;  %v7907_v29 = vmul.f32 %v7388_v0, %v7395_v31  ;;  %v6139_v39 = vmov (!%p5057_p13), 0.0  }
 0x3f2   : > { %8633 = vst [vmem:[#allocation89_spill] sm:$0xff] %v7883_v8  ;;  %8634 = vst [vmem:[#allocation90_spill] sm:$0xff] %v7887_v55 }
 0x3f3   : > { %8635 = vst [vmem:[#allocation91_spill] sm:$0xff] %v7891_v28  ;;  %8636 = vst [vmem:[#allocation92_spill] sm:$0xff] %v7895_v16 }
 0x3f4   : > { %8637 = vst [vmem:[#allocation93_spill] sm:$0xff] %v7899_v36  ;;  %8638 = vst [vmem:[#allocation94_spill] sm:$0xff] %v7903_v22 }
 0x3f5   : > { %8639 = vst [vmem:[#allocation95_spill] sm:$0xff] %v7907_v29  ;;  %3876 = vst [vmem:[#allocation2] sm:$0xff] (!%p5057_p13), %v6139_v39 }
 0x3f6   : > { %3877 = vst [vmem:[#allocation2 + $0x8] sm:$0xff] %v6139_v39  ;;  %3878 = vst [vmem:[#allocation2 + $0x10] sm:$0xff] %v6139_v39 }
 0x3f7   : > { %3879 = vst [vmem:[#allocation2 + $0x18] sm:$0xff] %v6139_v39  ;;  %3880 = vst [vmem:[#allocation2 + $0x20] sm:$0xff] %v6139_v39 }
 0x3f8   : > { %3881 = vst [vmem:[#allocation2 + $0x28] sm:$0xff] %v6139_v39  ;;  %3882 = vst [vmem:[#allocation2 + $0x30] sm:$0xff] %v6139_v39 }
 0x3f9   : > { %3883 = vst [vmem:[#allocation2 + $0x38] sm:$0xff] %v6139_v39  ;;  %3884 = vst [vmem:[#allocation2 + $0x40] sm:$0xff] %v6139_v39 }
 0x3fa   : > { %3885 = vst [vmem:[#allocation2 + $0x48] sm:$0xff] %v6139_v39  ;;  %3886 = vst [vmem:[#allocation2 + $0x50] sm:$0xff] %v6139_v39 }
 0x3fb   : > { %3887 = vst [vmem:[#allocation2 + $0x58] sm:$0xff] %v6139_v39  ;;  %3888 = vst [vmem:[#allocation2 + $0x60] sm:$0xff] %v6139_v39 }
 0x3fc   : > { %3889 = vst [vmem:[#allocation2 + $0x68] sm:$0xff] %v6139_v39  ;;  %3890 = vst [vmem:[#allocation2 + $0x70] sm:$0xff] %v6139_v39 }
 0x3fd   : > { %3891 = vst [vmem:[#allocation2 + $0x78] sm:$0xff] %v6139_v39  ;;  %3892 = vst [vmem:[#allocation2 + $0x80] sm:$0xff] %v6139_v39 }
 0x3fe   : > { %3893 = vst [vmem:[#allocation2 + $0x88] sm:$0xff] %v6139_v39  ;;  %3894 = vst [vmem:[#allocation2 + $0x90] sm:$0xff] %v6139_v39 }
 0x3ff   : > { %3895 = vst [vmem:[#allocation2 + $0x98] sm:$0xff] %v6139_v39  ;;  %3896 = vst [vmem:[#allocation2 + $0xa0] sm:$0xff] %v6139_v39 }
 0x400   : > { %3897 = vst [vmem:[#allocation2 + $0xa8] sm:$0xff] %v6139_v39  ;;  %3898 = vst [vmem:[#allocation2 + $0xb0] sm:$0xff] %v6139_v39 }
 0x401   : > { %3899 = vst [vmem:[#allocation2 + $0xb8] sm:$0xff] %v6139_v39  ;;  %3900 = vst [vmem:[#allocation2 + $0xc0] sm:$0xff] %v6139_v39 }
 0x402   : > { %3901 = vst [vmem:[#allocation2 + $0xc8] sm:$0xff] %v6139_v39  ;;  %3902 = vst [vmem:[#allocation2 + $0xd0] sm:$0xff] %v6139_v39 }
 0x403   : > { %3903 = vst [vmem:[#allocation2 + $0xd8] sm:$0xff] %v6139_v39  ;;  %3904 = vst [vmem:[#allocation2 + $0xe0] sm:$0xff] %v6139_v39 }
 0x404   : > { %3905 = vst [vmem:[#allocation2 + $0xe8] sm:$0xff] %v6139_v39  ;;  %3906 = vst [vmem:[#allocation2 + $0xf0] sm:$0xff] %v6139_v39 }
 0x405   : > { %3907 = vst [vmem:[#allocation2 + $0xf8] sm:$0xff] %v6139_v39  ;;  %3908 = vst [vmem:[#allocation2 + $0x100] sm:$0xff] %v6139_v39 }
 0x406   : > { %3909 = vst [vmem:[#allocation2 + $0x108] sm:$0xff] %v6139_v39  ;;  %3910 = vst [vmem:[#allocation2 + $0x110] sm:$0xff] %v6139_v39 }
 0x407   : > { %3911 = vst [vmem:[#allocation2 + $0x118] sm:$0xff] %v6139_v39  ;;  %3912 = vst [vmem:[#allocation2 + $0x120] sm:$0xff] %v6139_v39 }
 0x408   : > { %3913 = vst [vmem:[#allocation2 + $0x128] sm:$0xff] %v6139_v39  ;;  %3914 = vst [vmem:[#allocation2 + $0x130] sm:$0xff] %v6139_v39 }
 0x409   : > { %3915 = vst [vmem:[#allocation2 + $0x138] sm:$0xff] %v6139_v39  ;;  %3916 = vst [vmem:[#allocation2 + $0x140] sm:$0xff] %v6139_v39 }
 0x40a   : > { %3917 = vst [vmem:[#allocation2 + $0x148] sm:$0xff] %v6139_v39  ;;  %3918 = vst [vmem:[#allocation2 + $0x150] sm:$0xff] %v6139_v39 }
 0x40b   : > { %3919 = vst [vmem:[#allocation2 + $0x158] sm:$0xff] %v6139_v39  ;;  %3920 = vst [vmem:[#allocation2 + $0x160] sm:$0xff] %v6139_v39 }
 0x40c   : > { %3921 = vst [vmem:[#allocation2 + $0x168] sm:$0xff] %v6139_v39  ;;  %3922 = vst [vmem:[#allocation2 + $0x170] sm:$0xff] %v6139_v39 }
 0x40d   : > { %3923 = vst [vmem:[#allocation2 + $0x178] sm:$0xff] %v6139_v39  ;;  %3924 = vst [vmem:[#allocation2 + $0x180] sm:$0xff] %v6139_v39 }
 0x40e   : > { %3925 = vst [vmem:[#allocation2 + $0x188] sm:$0xff] %v6139_v39  ;;  %3926 = vst [vmem:[#allocation2 + $0x190] sm:$0xff] %v6139_v39 }
 0x40f   : > { %3927 = vst [vmem:[#allocation2 + $0x198] sm:$0xff] %v6139_v39  ;;  %3928 = vst [vmem:[#allocation2 + $0x1a0] sm:$0xff] %v6139_v39 }
 0x410   : > { %3929 = vst [vmem:[#allocation2 + $0x1a8] sm:$0xff] %v6139_v39  ;;  %3930 = vst [vmem:[#allocation2 + $0x1b0] sm:$0xff] %v6139_v39 }
 0x411   : > { %3931 = vst [vmem:[#allocation2 + $0x1b8] sm:$0xff] %v6139_v39  ;;  %3932 = vst [vmem:[#allocation2 + $0x1c0] sm:$0xff] %v6139_v39 }
 0x412   : > { %3933 = vst [vmem:[#allocation2 + $0x1c8] sm:$0xff] %v6139_v39  ;;  %3934 = vst [vmem:[#allocation2 + $0x1d0] sm:$0xff] %v6139_v39 }
 0x413   : > { %3935 = vst [vmem:[#allocation2 + $0x1d8] sm:$0xff] %v6139_v39  ;;  %3936 = vst [vmem:[#allocation2 + $0x1e0] sm:$0xff] %v6139_v39 }
 0x414   : > { %3937 = vst [vmem:[#allocation2 + $0x1e8] sm:$0xff] %v6139_v39  ;;  %3938 = vst [vmem:[#allocation2 + $0x1f0] sm:$0xff] %v6139_v39 }
 0x415   : > { %3939 = vst [vmem:[#allocation2 + $0x1f8] sm:$0xff] %v6139_v39  ;;  %3940 = vst [vmem:[#allocation2 + $0x200] sm:$0xff] %v6139_v39 }
 0x416   : > { %3941 = vst [vmem:[#allocation2 + $0x208] sm:$0xff] %v6139_v39  ;;  %3942 = vst [vmem:[#allocation2 + $0x210] sm:$0xff] %v6139_v39 }
 0x417   : > { %3943 = vst [vmem:[#allocation2 + $0x218] sm:$0xff] %v6139_v39  ;;  %3944 = vst [vmem:[#allocation2 + $0x220] sm:$0xff] %v6139_v39 }
 0x418   : > { %3945 = vst [vmem:[#allocation2 + $0x228] sm:$0xff] %v6139_v39  ;;  %3946 = vst [vmem:[#allocation2 + $0x230] sm:$0xff] %v6139_v39 }
 0x419   : > { %3947 = vst [vmem:[#allocation2 + $0x238] sm:$0xff] %v6139_v39  ;;  %3948 = vst [vmem:[#allocation2 + $0x240] sm:$0xff] %v6139_v39 }
 0x41a   : > { %3949 = vst [vmem:[#allocation2 + $0x248] sm:$0xff] %v6139_v39  ;;  %3950 = vst [vmem:[#allocation2 + $0x250] sm:$0xff] %v6139_v39 }
 0x41b   : > { %3951 = vst [vmem:[#allocation2 + $0x258] sm:$0xff] %v6139_v39  ;;  %3952 = vst [vmem:[#allocation2 + $0x260] sm:$0xff] %v6139_v39 }
 0x41c   : > { %3953 = vst [vmem:[#allocation2 + $0x268] sm:$0xff] %v6139_v39  ;;  %3954 = vst [vmem:[#allocation2 + $0x270] sm:$0xff] %v6139_v39 }
 0x41d   : > { %3955 = vst [vmem:[#allocation2 + $0x278] sm:$0xff] %v6139_v39  ;;  %3956 = vst [vmem:[#allocation2 + $0x280] sm:$0xff] %v6139_v39 }
 0x41e   : > { %3957 = vst [vmem:[#allocation2 + $0x288] sm:$0xff] %v6139_v39  ;;  %3958 = vst [vmem:[#allocation2 + $0x290] sm:$0xff] %v6139_v39 }
 0x41f   : > { %3959 = vst [vmem:[#allocation2 + $0x298] sm:$0xff] %v6139_v39  ;;  %3960 = vst [vmem:[#allocation2 + $0x2a0] sm:$0xff] %v6139_v39 }
 0x420   : > { %3961 = vst [vmem:[#allocation2 + $0x2a8] sm:$0xff] %v6139_v39  ;;  %3962 = vst [vmem:[#allocation2 + $0x2b0] sm:$0xff] %v6139_v39 }
 0x421   : > { %3963 = vst [vmem:[#allocation2 + $0x2b8] sm:$0xff] %v6139_v39  ;;  %3964 = vst [vmem:[#allocation2 + $0x2c0] sm:$0xff] %v6139_v39 }
 0x422   : > { %3965 = vst [vmem:[#allocation2 + $0x2c8] sm:$0xff] %v6139_v39  ;;  %3966 = vst [vmem:[#allocation2 + $0x2d0] sm:$0xff] %v6139_v39 }
 0x423   : > { %3967 = vst [vmem:[#allocation2 + $0x2d8] sm:$0xff] %v6139_v39  ;;  %3968 = vst [vmem:[#allocation2 + $0x2e0] sm:$0xff] %v6139_v39 }
 0x424   : > { %3969 = vst [vmem:[#allocation2 + $0x2e8] sm:$0xff] %v6139_v39  ;;  %3970 = vst [vmem:[#allocation2 + $0x2f0] sm:$0xff] %v6139_v39 }
 0x425   : > { %3971 = vst [vmem:[#allocation2 + $0x2f8] sm:$0xff] %v6139_v39  ;;  %3972 = vst [vmem:[#allocation2 + $0x300] sm:$0xff] %v6139_v39 }
 0x426   : > { %3973 = vst [vmem:[#allocation2 + $0x308] sm:$0xff] %v6139_v39  ;;  %3974 = vst [vmem:[#allocation2 + $0x310] sm:$0xff] %v6139_v39 }
 0x427   : > { %3975 = vst [vmem:[#allocation2 + $0x318] sm:$0xff] %v6139_v39  ;;  %3976 = vst [vmem:[#allocation2 + $0x320] sm:$0xff] %v6139_v39 }
 0x428   : > { %3977 = vst [vmem:[#allocation2 + $0x328] sm:$0xff] %v6139_v39  ;;  %3978 = vst [vmem:[#allocation2 + $0x330] sm:$0xff] %v6139_v39 }
 0x429   : > { %3979 = vst [vmem:[#allocation2 + $0x338] sm:$0xff] %v6139_v39  ;;  %3980 = vst [vmem:[#allocation2 + $0x340] sm:$0xff] %v6139_v39 }
 0x42a   : > { %3981 = vst [vmem:[#allocation2 + $0x348] sm:$0xff] %v6139_v39  ;;  %3982 = vst [vmem:[#allocation2 + $0x350] sm:$0xff] %v6139_v39 }
 0x42b   : > { %3983 = vst [vmem:[#allocation2 + $0x358] sm:$0xff] %v6139_v39  ;;  %3984 = vst [vmem:[#allocation2 + $0x360] sm:$0xff] %v6139_v39 }
 0x42c   : > { %3985 = vst [vmem:[#allocation2 + $0x368] sm:$0xff] %v6139_v39  ;;  %3986 = vst [vmem:[#allocation2 + $0x370] sm:$0xff] %v6139_v39 }
 0x42d   : > { %3987 = vst [vmem:[#allocation2 + $0x378] sm:$0xff] %v6139_v39  ;;  %3988 = vst [vmem:[#allocation2 + $0x380] sm:$0xff] %v6139_v39 }
 0x42e   : > { %3989 = vst [vmem:[#allocation2 + $0x388] sm:$0xff] %v6139_v39  ;;  %3990 = vst [vmem:[#allocation2 + $0x390] sm:$0xff] %v6139_v39 }
 0x42f   : > { %3991 = vst [vmem:[#allocation2 + $0x398] sm:$0xff] %v6139_v39  ;;  %3992 = vst [vmem:[#allocation2 + $0x3a0] sm:$0xff] %v6139_v39 }
 0x430   : > { %3993 = vst [vmem:[#allocation2 + $0x3a8] sm:$0xff] %v6139_v39  ;;  %3994 = vst [vmem:[#allocation2 + $0x3b0] sm:$0xff] %v6139_v39 }
 0x431   : > { %3995 = vst [vmem:[#allocation2 + $0x3b8] sm:$0xff] %v6139_v39  ;;  %3996 = vst [vmem:[#allocation2 + $0x3c0] sm:$0xff] %v6139_v39 }
 0x432   : > { %3997 = vst [vmem:[#allocation2 + $0x3c8] sm:$0xff] %v6139_v39  ;;  %3998 = vst [vmem:[#allocation2 + $0x3d0] sm:$0xff] %v6139_v39 }
 0x433   : > { %3999 = vst [vmem:[#allocation2 + $0x3d8] sm:$0xff] %v6139_v39  ;;  %4000 = vst [vmem:[#allocation2 + $0x3e0] sm:$0xff] %v6139_v39 }
 0x434   : > { %4001 = vst [vmem:[#allocation2 + $0x3e8] sm:$0xff] %v6139_v39  ;;  %4002 = vst [vmem:[#allocation2 + $0x3f0] sm:$0xff] %v6139_v39 }
 0x435   : > { %4003 = vst [vmem:[#allocation2 + $0x3f8] sm:$0xff] %v6139_v39 }
 0x436 PF: > { %v4007_v22 = vld [vmem:[#allocation2 + $0x18] sm:$0xff]  ;;  %v4008_v36 = vld [vmem:[#allocation2 + $0x20] sm:$0xff]  ;;  %v4009_v16 = vld [vmem:[#allocation2 + $0x28] sm:$0xff]  ;;  %p5058_p5 = scmp.ne.s32.totalorder %s6112_s26, 1 }
 0x437   : > { %v4135_v28 = vadd.f32 %v4007_v22, %v7411_v26  ;;  %v4136_v55 = vadd.f32 %v4008_v36, %v7415_v50  ;;  %v4137_v8 = vadd.f32 %v4009_v16, %v7419_v35  ;;  %v4010_v39 = vld [vmem:[#allocation2 + $0x30] sm:$0xff]  ;;  %v4011_v47 = vld [vmem:[#allocation2 + $0x38] sm:$0xff]  ;;  %v4012_v2 = vld [vmem:[#allocation2 + $0x40] sm:$0xff]  ;;  %vm4776_vm1 = vcmask (!%p5058_p5), 7168  }
 0x438   : > { %v4016_v16 = vld [vmem:[#allocation2 + $0x60] sm:$0xff]  ;;  %v4017_v36 = vld [vmem:[#allocation2 + $0x68] sm:$0xff]  ;;  %v4018_v22 = vld [vmem:[#allocation2 + $0x70] sm:$0xff] }
 0x439   : > { %4263 = vst [vmem:[#allocation2 + $0x18] sm:$0xff] %v4135_v28  ;;  %4264 = vst [vmem:[#allocation2 + $0x20] sm:$0xff] %v4136_v55  ;;  %v4022_v55 = vld [vmem:[#allocation2 + $0x90] sm:$0xff]  ;;  %v4023_v28 = vld [vmem:[#allocation2 + $0x98] sm:$0xff] }
 0x43a   : > { %4265 = vst [vmem:[#allocation2 + $0x28] sm:$0xff] %v4137_v8  ;;  %v4021_v8 = vld [vmem:[#allocation2 + $0x88] sm:$0xff] }
 0x43c   : > { %v4004_v58 = vld [vmem:[#allocation2] sm:$0xff] }
 0x43d   : > { %v4005_v52 = vld [vmem:[#allocation2 + $0x8] sm:$0xff]  ;;  %v4006_v1 = vld [vmem:[#allocation2 + $0x10] sm:$0xff]  ;;  %v4132_v0 = vadd.f32 %v4004_v58, %v7399_v19  ;;  %v4138_v19 = vadd.f32 %v4010_v39, %v7423_v3  ;;  %v4144_v3 = vadd.f32 %v4016_v16, %v7447_v10  ;;  %v4150_v10 = vadd.f32 %v4022_v55, %v7471_v61 }
 0x43e   : > { %v4133_v31 = vadd.f32 %v4005_v52, %v7403_v27  ;;  %v4134_v29 = vadd.f32 %v4006_v1, %v7407_v63  ;;  %v4139_v27 = vadd.f32 %v4011_v47, %v7427_v11  ;;  %v4140_v63 = vadd.f32 %v4012_v2, %v7431_v13  ;;  %v4013_v58 = vld [vmem:[#allocation2 + $0x48] sm:$0xff]  ;;  %v4014_v52 = vld [vmem:[#allocation2 + $0x50] sm:$0xff]  ;;  %v4015_v1 = vld [vmem:[#allocation2 + $0x58] sm:$0xff] }
 0x43f   : > { %4260 = vst [vmem:[#allocation2] sm:$0xff] %v4132_v0  ;;  %v4141_v26 = vadd.f32 %v4013_v58, %v7435_v34  ;;  %v4142_v50 = vadd.f32 %v4014_v52, %v7439_v9  ;;  %v4143_v35 = vadd.f32 %v4015_v1, %v7443_v15  ;;  %4266 = vst [vmem:[#allocation2 + $0x30] sm:$0xff] %v4138_v19  ;;  %v4019_v2 = vld [vmem:[#allocation2 + $0x78] sm:$0xff]  ;;  %v4020_v47 = vld [vmem:[#allocation2 + $0x80] sm:$0xff] }
 0x440   : > { %4261 = vst [vmem:[#allocation2 + $0x8] sm:$0xff] %v4133_v31  ;;  %4262 = vst [vmem:[#allocation2 + $0x10] sm:$0xff] %v4134_v29  ;;  %v4145_v11 = vadd.f32 %v4017_v36, %v7451_v62  ;;  %v4146_v13 = vadd.f32 %v4018_v22, %v7455_v51  ;;  %v4147_v34 = vadd.f32 %v4019_v2, %v7459_v48  ;;  %v4024_v29 = vld [vmem:[#allocation2 + $0xa0] sm:$0xff]  ;;  %v8641_v0 = vld [vmem:[#allocation18_spill] sm:$0xff] }
 0x441   : > { %4267 = vst [vmem:[#allocation2 + $0x38] sm:$0xff] %v4139_v27  ;;  %4268 = vst [vmem:[#allocation2 + $0x40] sm:$0xff] %v4140_v63  ;;  %v4148_v9 = vadd.f32 %v4020_v47, %v7463_v60  ;;  %v4149_v15 = vadd.f32 %v4021_v8, %v7467_v6  ;;  %v8640_v62 = vld [vmem:[#allocation17_spill] sm:$0xff]  ;;  %v4152_v31 = vadd.f32 %v4024_v29, %v8641_v0  ;;  %v4026_v19 = vld [vmem:[#allocation2 + $0xb0] sm:$0xff] }
 0x442   : > { %4269 = vst [vmem:[#allocation2 + $0x48] sm:$0xff] %v4141_v26  ;;  %4270 = vst [vmem:[#allocation2 + $0x50] sm:$0xff] %v4142_v50  ;;  %v4151_v51 = vadd.f32 %v4023_v28, %v8640_v62  ;;  %v4025_v39 = vld [vmem:[#allocation2 + $0xa8] sm:$0xff]  ;;  %v4027_v27 = vld [vmem:[#allocation2 + $0xb8] sm:$0xff] }
 0x443   : > { %4271 = vst [vmem:[#allocation2 + $0x58] sm:$0xff] %v4143_v35  ;;  %4272 = vst [vmem:[#allocation2 + $0x60] sm:$0xff] %v4144_v3  ;;  %v8642_v48 = vld [vmem:[#allocation19_spill] sm:$0xff]  ;;  %v8643_v6 = vld [vmem:[#allocation20_spill] sm:$0xff] }
 0x444   : > { %4273 = vst [vmem:[#allocation2 + $0x68] sm:$0xff] %v4145_v11  ;;  %4274 = vst [vmem:[#allocation2 + $0x70] sm:$0xff] %v4146_v13  ;;  %v4153_v60 = vadd.f32 %v4025_v39, %v8642_v48  ;;  %v4154_v63 = vadd.f32 %v4026_v19, %v8643_v6  ;;  %v8644_v58 = vld [vmem:[#allocation21_spill] sm:$0xff]  ;;  %v4030_v50 = vld [vmem:[#allocation2 + $0xd0] sm:$0xff] }
 0x445   : > { %4275 = vst [vmem:[#allocation2 + $0x78] sm:$0xff] %v4147_v34  ;;  %4276 = vst [vmem:[#allocation2 + $0x80] sm:$0xff] %v4148_v9  ;;  %v4155_v52 = vadd.f32 %v4027_v27, %v8644_v58  ;;  %v4028_v1 = vld [vmem:[#allocation2 + $0xc0] sm:$0xff]  ;;  %v4029_v26 = vld [vmem:[#allocation2 + $0xc8] sm:$0xff] }
 0x446   : > { %4277 = vst [vmem:[#allocation2 + $0x88] sm:$0xff] %v4149_v15  ;;  %4278 = vst [vmem:[#allocation2 + $0x90] sm:$0xff] %v4150_v10  ;;  %v8645_v61 = vld [vmem:[#allocation22_spill] sm:$0xff]  ;;  %v8646_v16 = vld [vmem:[#allocation23_spill] sm:$0xff] }
 0x447   : > { %4279 = vst [vmem:[#allocation2 + $0x98] sm:$0xff] %v4151_v51  ;;  %4280 = vst [vmem:[#allocation2 + $0xa0] sm:$0xff] %v4152_v31  ;;  %v4156_v35 = vadd.f32 %v4028_v1, %v8645_v61  ;;  %v4157_v36 = vadd.f32 %v4029_v26, %v8646_v16  ;;  %v8647_v22 = vld [vmem:[#allocation24_spill] sm:$0xff]  ;;  %v4033_v2 = vld [vmem:[#allocation2 + $0xe8] sm:$0xff] }
 0x448   : > { %v4158_v3 = vadd.f32 %v4030_v50, %v8647_v22  ;;  %v4031_v11 = vld [vmem:[#allocation2 + $0xd8] sm:$0xff]  ;;  %v4032_v13 = vld [vmem:[#allocation2 + $0xe0] sm:$0xff]  ;;  %4281 = vst [vmem:[#allocation2 + $0xa8] sm:$0xff] %v4153_v60  ;;  %4282 = vst [vmem:[#allocation2 + $0xb0] sm:$0xff] %v4154_v63 }
 0x449   : > { %4283 = vst [vmem:[#allocation2 + $0xb8] sm:$0xff] %v4155_v52  ;;  %v8648_v47 = vld [vmem:[#allocation25_spill] sm:$0xff]  ;;  %v8649_v34 = vld [vmem:[#allocation26_spill] sm:$0xff]  ;;  %v8650_v15 = vld [vmem:[#allocation27_spill] sm:$0xff] }
 0x44a   : > { %v4159_v8 = vadd.f32 %v4031_v11, %v8648_v47  ;;  %v4160_v9 = vadd.f32 %v4032_v13, %v8649_v34  ;;  %v4161_v55 = vadd.f32 %v4033_v2, %v8650_v15  ;;  %v4034_v28 = vld [vmem:[#allocation2 + $0xf0] sm:$0xff]  ;;  %v4035_v29 = vld [vmem:[#allocation2 + $0xf8] sm:$0xff]  ;;  %v4036_v10 = vld [vmem:[#allocation2 + $0x100] sm:$0xff]  ;;  %4284 = vst [vmem:[#allocation2 + $0xc0] sm:$0xff] %v4156_v35 }
 0x44b   : > { %4285 = vst [vmem:[#allocation2 + $0xc8] sm:$0xff] %v4157_v36  ;;  %4286 = vst [vmem:[#allocation2 + $0xd0] sm:$0xff] %v4158_v3  ;;  %v8651_v62 = vld [vmem:[#allocation28_spill] sm:$0xff]  ;;  %v8652_v0 = vld [vmem:[#allocation29_spill] sm:$0xff] }
 0x44c   : > { %v4162_v51 = vadd.f32 %v4034_v28, %v8651_v62  ;;  %v4163_v31 = vadd.f32 %v4035_v29, %v8652_v0  ;;  %v8653_v39 = vld [vmem:[#allocation30_spill] sm:$0xff]  ;;  %v4039_v60 = vld [vmem:[#allocation2 + $0x118] sm:$0xff]  ;;  %4287 = vst [vmem:[#allocation2 + $0xd8] sm:$0xff] %v4159_v8  ;;  %4288 = vst [vmem:[#allocation2 + $0xe0] sm:$0xff] %v4160_v9 }
 0x44d   : > { %v4164_v19 = vadd.f32 %v4036_v10, %v8653_v39  ;;  %v4037_v27 = vld [vmem:[#allocation2 + $0x108] sm:$0xff]  ;;  %v4038_v48 = vld [vmem:[#allocation2 + $0x110] sm:$0xff]  ;;  %4289 = vst [vmem:[#allocation2 + $0xe8] sm:$0xff] %v4161_v55  ;;  %v8655_v58 = vld [vmem:[#allocation32_spill] sm:$0xff] }
 0x44e   : > { %v8654_v6 = vld [vmem:[#allocation31_spill] sm:$0xff]  ;;  %v4166_v52 = vadd.f32 %v4038_v48, %v8655_v58  ;;  %v8656_v1 = vld [vmem:[#allocation33_spill] sm:$0xff]  ;;  %4290 = vst [vmem:[#allocation2 + $0xf0] sm:$0xff] %v4162_v51  ;;  %4291 = vst [vmem:[#allocation2 + $0xf8] sm:$0xff] %v4163_v31 }
 0x44f   : > { %v4165_v63 = vadd.f32 %v4037_v27, %v8654_v6  ;;  %v4167_v26 = vadd.f32 %v4039_v60, %v8656_v1  ;;  %v4040_v50 = vld [vmem:[#allocation2 + $0x120] sm:$0xff]  ;;  %v4041_v61 = vld [vmem:[#allocation2 + $0x128] sm:$0xff]  ;;  %v4042_v35 = vld [vmem:[#allocation2 + $0x130] sm:$0xff]  ;;  %4292 = vst [vmem:[#allocation2 + $0x100] sm:$0xff] %v4164_v19 }
 0x450   : > { %v8657_v16 = vld [vmem:[#allocation34_spill] sm:$0xff]  ;;  %v8658_v22 = vld [vmem:[#allocation35_spill] sm:$0xff]  ;;  %v8659_v11 = vld [vmem:[#allocation36_spill] sm:$0xff]  ;;  %4294 = vst [vmem:[#allocation2 + $0x110] sm:$0xff] %v4166_v52 }
 0x451   : > { %v4168_v36 = vadd.f32 %v4040_v50, %v8657_v16  ;;  %v4169_v3 = vadd.f32 %v4041_v61, %v8658_v22  ;;  %v4170_v13 = vadd.f32 %v4042_v35, %v8659_v11  ;;  %v4043_v2 = vld [vmem:[#allocation2 + $0x138] sm:$0xff]  ;;  %v4044_v47 = vld [vmem:[#allocation2 + $0x140] sm:$0xff]  ;;  %v4045_v8 = vld [vmem:[#allocation2 + $0x148] sm:$0xff]  ;;  %4293 = vst [vmem:[#allocation2 + $0x108] sm:$0xff] %v4165_v63 }
 0x452   : > { %4295 = vst [vmem:[#allocation2 + $0x118] sm:$0xff] %v4167_v26  ;;  %v8660_v34 = vld [vmem:[#allocation37_spill] sm:$0xff]  ;;  %v8661_v15 = vld [vmem:[#allocation38_spill] sm:$0xff]  ;;  %v8662_v28 = vld [vmem:[#allocation39_spill] sm:$0xff] }
 0x453   : > { %v4171_v9 = vadd.f32 %v4043_v2, %v8660_v34  ;;  %v4172_v55 = vadd.f32 %v4044_v47, %v8661_v15  ;;  %v4173_v29 = vadd.f32 %v4045_v8, %v8662_v28  ;;  %v4046_v10 = vld [vmem:[#allocation2 + $0x150] sm:$0xff]  ;;  %v4047_v62 = vld [vmem:[#allocation2 + $0x158] sm:$0xff]  ;;  %v4048_v51 = vld [vmem:[#allocation2 + $0x160] sm:$0xff]  ;;  %4296 = vst [vmem:[#allocation2 + $0x120] sm:$0xff] %v4168_v36 }
 0x454   : > { %4297 = vst [vmem:[#allocation2 + $0x128] sm:$0xff] %v4169_v3  ;;  %4298 = vst [vmem:[#allocation2 + $0x130] sm:$0xff] %v4170_v13  ;;  %v8663_v0 = vld [vmem:[#allocation40_spill] sm:$0xff]  ;;  %v8664_v39 = vld [vmem:[#allocation41_spill] sm:$0xff] }
 0x455   : > { %v4174_v31 = vadd.f32 %v4046_v10, %v8663_v0  ;;  %v4175_v19 = vadd.f32 %v4047_v62, %v8664_v39  ;;  %v8665_v27 = vld [vmem:[#allocation42_spill] sm:$0xff]  ;;  %v4051_v63 = vld [vmem:[#allocation2 + $0x178] sm:$0xff]  ;;  %4299 = vst [vmem:[#allocation2 + $0x138] sm:$0xff] %v4171_v9  ;;  %4300 = vst [vmem:[#allocation2 + $0x140] sm:$0xff] %v4172_v55 }
 0x456   : > { %v4176_v48 = vadd.f32 %v4048_v51, %v8665_v27  ;;  %v4049_v60 = vld [vmem:[#allocation2 + $0x168] sm:$0xff]  ;;  %v4050_v6 = vld [vmem:[#allocation2 + $0x170] sm:$0xff]  ;;  %4301 = vst [vmem:[#allocation2 + $0x148] sm:$0xff] %v4173_v29  ;;  %v8667_v1 = vld [vmem:[#allocation44_spill] sm:$0xff] }
 0x457   : > { %v8666_v58 = vld [vmem:[#allocation43_spill] sm:$0xff]  ;;  %v4178_v26 = vadd.f32 %v4050_v6, %v8667_v1  ;;  %v8668_v50 = vld [vmem:[#allocation45_spill] sm:$0xff]  ;;  %4302 = vst [vmem:[#allocation2 + $0x150] sm:$0xff] %v4174_v31  ;;  %4303 = vst [vmem:[#allocation2 + $0x158] sm:$0xff] %v4175_v19 }
 0x458   : > { %v4177_v52 = vadd.f32 %v4049_v60, %v8666_v58  ;;  %v4179_v61 = vadd.f32 %v4051_v63, %v8668_v50  ;;  %v4052_v35 = vld [vmem:[#allocation2 + $0x180] sm:$0xff]  ;;  %v4053_v16 = vld [vmem:[#allocation2 + $0x188] sm:$0xff]  ;;  %v4054_v36 = vld [vmem:[#allocation2 + $0x190] sm:$0xff]  ;;  %4304 = vst [vmem:[#allocation2 + $0x160] sm:$0xff] %v4176_v48 }
 0x459   : > { %v8669_v22 = vld [vmem:[#allocation46_spill] sm:$0xff]  ;;  %v8670_v11 = vld [vmem:[#allocation47_spill] sm:$0xff]  ;;  %v8671_v2 = vld [vmem:[#allocation48_spill] sm:$0xff]  ;;  %4306 = vst [vmem:[#allocation2 + $0x170] sm:$0xff] %v4178_v26 }
 0x45a   : > { %v4180_v3 = vadd.f32 %v4052_v35, %v8669_v22  ;;  %v4181_v13 = vadd.f32 %v4053_v16, %v8670_v11  ;;  %v4182_v47 = vadd.f32 %v4054_v36, %v8671_v2  ;;  %v4055_v8 = vld [vmem:[#allocation2 + $0x198] sm:$0xff]  ;;  %v4056_v34 = vld [vmem:[#allocation2 + $0x1a0] sm:$0xff]  ;;  %v4057_v9 = vld [vmem:[#allocation2 + $0x1a8] sm:$0xff]  ;;  %4305 = vst [vmem:[#allocation2 + $0x168] sm:$0xff] %v4177_v52 }
 0x45b   : > { %4307 = vst [vmem:[#allocation2 + $0x178] sm:$0xff] %v4179_v61  ;;  %v8672_v15 = vld [vmem:[#allocation49_spill] sm:$0xff]  ;;  %v8673_v28 = vld [vmem:[#allocation50_spill] sm:$0xff]  ;;  %v8674_v10 = vld [vmem:[#allocation51_spill] sm:$0xff] }
 0x45c   : > { %v4183_v55 = vadd.f32 %v4055_v8, %v8672_v15  ;;  %v4184_v29 = vadd.f32 %v4056_v34, %v8673_v28  ;;  %v4185_v62 = vadd.f32 %v4057_v9, %v8674_v10  ;;  %v4058_v51 = vld [vmem:[#allocation2 + $0x1b0] sm:$0xff]  ;;  %v4059_v0 = vld [vmem:[#allocation2 + $0x1b8] sm:$0xff]  ;;  %v4060_v31 = vld [vmem:[#allocation2 + $0x1c0] sm:$0xff]  ;;  %4308 = vst [vmem:[#allocation2 + $0x180] sm:$0xff] %v4180_v3 }
 0x45d   : > { %4309 = vst [vmem:[#allocation2 + $0x188] sm:$0xff] %v4181_v13  ;;  %4310 = vst [vmem:[#allocation2 + $0x190] sm:$0xff] %v4182_v47  ;;  %v8675_v39 = vld [vmem:[#allocation52_spill] sm:$0xff]  ;;  %v8676_v27 = vld [vmem:[#allocation53_spill] sm:$0xff] }
 0x45e   : > { %v4186_v19 = vadd.f32 %v4058_v51, %v8675_v39  ;;  %v4187_v48 = vadd.f32 %v4059_v0, %v8676_v27  ;;  %v8677_v60 = vld [vmem:[#allocation54_spill] sm:$0xff]  ;;  %v4063_v52 = vld [vmem:[#allocation2 + $0x1d8] sm:$0xff]  ;;  %4311 = vst [vmem:[#allocation2 + $0x198] sm:$0xff] %v4183_v55  ;;  %4312 = vst [vmem:[#allocation2 + $0x1a0] sm:$0xff] %v4184_v29 }
 0x45f   : > { %v4188_v6 = vadd.f32 %v4060_v31, %v8677_v60  ;;  %v4061_v63 = vld [vmem:[#allocation2 + $0x1c8] sm:$0xff]  ;;  %v4062_v58 = vld [vmem:[#allocation2 + $0x1d0] sm:$0xff]  ;;  %4313 = vst [vmem:[#allocation2 + $0x1a8] sm:$0xff] %v4185_v62  ;;  %v8679_v50 = vld [vmem:[#allocation56_spill] sm:$0xff] }
 0x460   : > { %v8678_v1 = vld [vmem:[#allocation55_spill] sm:$0xff]  ;;  %v4190_v61 = vadd.f32 %v4062_v58, %v8679_v50  ;;  %v8680_v35 = vld [vmem:[#allocation57_spill] sm:$0xff]  ;;  %4314 = vst [vmem:[#allocation2 + $0x1b0] sm:$0xff] %v4186_v19  ;;  %4315 = vst [vmem:[#allocation2 + $0x1b8] sm:$0xff] %v4187_v48 }
 0x461   : > { %v4189_v26 = vadd.f32 %v4061_v63, %v8678_v1  ;;  %v4191_v16 = vadd.f32 %v4063_v52, %v8680_v35  ;;  %v4064_v36 = vld [vmem:[#allocation2 + $0x1e0] sm:$0xff]  ;;  %v4065_v22 = vld [vmem:[#allocation2 + $0x1e8] sm:$0xff]  ;;  %v4066_v3 = vld [vmem:[#allocation2 + $0x1f0] sm:$0xff]  ;;  %4316 = vst [vmem:[#allocation2 + $0x1c0] sm:$0xff] %v4188_v6 }
 0x462   : > { %v8681_v11 = vld [vmem:[#allocation58_spill] sm:$0xff]  ;;  %v8682_v2 = vld [vmem:[#allocation59_spill] sm:$0xff]  ;;  %v8683_v8 = vld [vmem:[#allocation60_spill] sm:$0xff]  ;;  %4318 = vst [vmem:[#allocation2 + $0x1d0] sm:$0xff] %v4190_v61 }
 0x463   : > { %v4192_v13 = vadd.f32 %v4064_v36, %v8681_v11  ;;  %v4193_v47 = vadd.f32 %v4065_v22, %v8682_v2  ;;  %v4194_v34 = vadd.f32 %v4066_v3, %v8683_v8  ;;  %v4067_v9 = vld [vmem:[#allocation2 + $0x1f8] sm:$0xff]  ;;  %v4068_v15 = vld [vmem:[#allocation2 + $0x200] sm:$0xff]  ;;  %v4069_v55 = vld [vmem:[#allocation2 + $0x208] sm:$0xff]  ;;  %4317 = vst [vmem:[#allocation2 + $0x1c8] sm:$0xff] %v4189_v26 }
 0x464   : > { %4319 = vst [vmem:[#allocation2 + $0x1d8] sm:$0xff] %v4191_v16  ;;  %v8684_v28 = vld [vmem:[#allocation61_spill] sm:$0xff]  ;;  %v8685_v10 = vld [vmem:[#allocation62_spill] sm:$0xff]  ;;  %v8686_v51 = vld [vmem:[#allocation63_spill] sm:$0xff] }
 0x465   : > { %v4195_v29 = vadd.f32 %v4067_v9, %v8684_v28  ;;  %v4196_v62 = vadd.f32 %v4068_v15, %v8685_v10  ;;  %v4197_v0 = vadd.f32 %v4069_v55, %v8686_v51  ;;  %v4070_v31 = vld [vmem:[#allocation2 + $0x210] sm:$0xff]  ;;  %v4071_v39 = vld [vmem:[#allocation2 + $0x218] sm:$0xff]  ;;  %v4072_v19 = vld [vmem:[#allocation2 + $0x220] sm:$0xff]  ;;  %4320 = vst [vmem:[#allocation2 + $0x1e0] sm:$0xff] %v4192_v13 }
 0x466   : > { %4321 = vst [vmem:[#allocation2 + $0x1e8] sm:$0xff] %v4193_v47  ;;  %4322 = vst [vmem:[#allocation2 + $0x1f0] sm:$0xff] %v4194_v34  ;;  %v8687_v27 = vld [vmem:[#allocation64_spill] sm:$0xff]  ;;  %v8688_v60 = vld [vmem:[#allocation65_spill] sm:$0xff] }
 0x467   : > { %v4198_v48 = vadd.f32 %v4070_v31, %v8687_v27  ;;  %v4199_v6 = vadd.f32 %v4071_v39, %v8688_v60  ;;  %v8689_v63 = vld [vmem:[#allocation66_spill] sm:$0xff]  ;;  %v4075_v26 = vld [vmem:[#allocation2 + $0x238] sm:$0xff]  ;;  %4323 = vst [vmem:[#allocation2 + $0x1f8] sm:$0xff] %v4195_v29  ;;  %4324 = vst [vmem:[#allocation2 + $0x200] sm:$0xff] %v4196_v62 }
 0x468   : > { %v4200_v58 = vadd.f32 %v4072_v19, %v8689_v63  ;;  %v4073_v52 = vld [vmem:[#allocation2 + $0x228] sm:$0xff]  ;;  %v4074_v1 = vld [vmem:[#allocation2 + $0x230] sm:$0xff]  ;;  %4325 = vst [vmem:[#allocation2 + $0x208] sm:$0xff] %v4197_v0  ;;  %v8691_v35 = vld [vmem:[#allocation68_spill] sm:$0xff] }
 0x469   : > { %v8690_v50 = vld [vmem:[#allocation67_spill] sm:$0xff]  ;;  %v4202_v16 = vadd.f32 %v4074_v1, %v8691_v35  ;;  %v8692_v36 = vld [vmem:[#allocation69_spill] sm:$0xff]  ;;  %4326 = vst [vmem:[#allocation2 + $0x210] sm:$0xff] %v4198_v48  ;;  %4327 = vst [vmem:[#allocation2 + $0x218] sm:$0xff] %v4199_v6 }
 0x46a   : > { %v4201_v61 = vadd.f32 %v4073_v52, %v8690_v50  ;;  %v4203_v22 = vadd.f32 %v4075_v26, %v8692_v36  ;;  %v4076_v3 = vld [vmem:[#allocation2 + $0x240] sm:$0xff]  ;;  %v4077_v11 = vld [vmem:[#allocation2 + $0x248] sm:$0xff]  ;;  %v4078_v13 = vld [vmem:[#allocation2 + $0x250] sm:$0xff]  ;;  %4328 = vst [vmem:[#allocation2 + $0x220] sm:$0xff] %v4200_v58 }
 0x46b   : > { %v8693_v2 = vld [vmem:[#allocation70_spill] sm:$0xff]  ;;  %v8694_v8 = vld [vmem:[#allocation71_spill] sm:$0xff]  ;;  %v8695_v9 = vld [vmem:[#allocation72_spill] sm:$0xff]  ;;  %4330 = vst [vmem:[#allocation2 + $0x230] sm:$0xff] %v4202_v16 }
 0x46c   : > { %v4204_v47 = vadd.f32 %v4076_v3, %v8693_v2  ;;  %v4205_v34 = vadd.f32 %v4077_v11, %v8694_v8  ;;  %v4206_v15 = vadd.f32 %v4078_v13, %v8695_v9  ;;  %v4079_v55 = vld [vmem:[#allocation2 + $0x258] sm:$0xff]  ;;  %v4080_v28 = vld [vmem:[#allocation2 + $0x260] sm:$0xff]  ;;  %v4081_v29 = vld [vmem:[#allocation2 + $0x268] sm:$0xff]  ;;  %4329 = vst [vmem:[#allocation2 + $0x228] sm:$0xff] %v4201_v61 }
 0x46d   : > { %4331 = vst [vmem:[#allocation2 + $0x238] sm:$0xff] %v4203_v22  ;;  %v8696_v10 = vld [vmem:[#allocation73_spill] sm:$0xff]  ;;  %v8697_v51 = vld [vmem:[#allocation74_spill] sm:$0xff]  ;;  %v8698_v31 = vld [vmem:[#allocation75_spill] sm:$0xff] }
 0x46e   : > { %v4207_v62 = vadd.f32 %v4079_v55, %v8696_v10  ;;  %v4208_v0 = vadd.f32 %v4080_v28, %v8697_v51  ;;  %v4209_v39 = vadd.f32 %v4081_v29, %v8698_v31  ;;  %v4082_v19 = vld [vmem:[#allocation2 + $0x270] sm:$0xff]  ;;  %v4083_v27 = vld [vmem:[#allocation2 + $0x278] sm:$0xff]  ;;  %v4084_v48 = vld [vmem:[#allocation2 + $0x280] sm:$0xff]  ;;  %4332 = vst [vmem:[#allocation2 + $0x240] sm:$0xff] %v4204_v47 }
 0x46f   : > { %4333 = vst [vmem:[#allocation2 + $0x248] sm:$0xff] %v4205_v34  ;;  %4334 = vst [vmem:[#allocation2 + $0x250] sm:$0xff] %v4206_v15  ;;  %v8699_v60 = vld [vmem:[#allocation76_spill] sm:$0xff]  ;;  %v8700_v63 = vld [vmem:[#allocation77_spill] sm:$0xff] }
 0x470   : > { %v4210_v6 = vadd.f32 %v4082_v19, %v8699_v60  ;;  %v4211_v58 = vadd.f32 %v4083_v27, %v8700_v63  ;;  %v8701_v52 = vld [vmem:[#allocation78_spill] sm:$0xff]  ;;  %v4087_v61 = vld [vmem:[#allocation2 + $0x298] sm:$0xff]  ;;  %4335 = vst [vmem:[#allocation2 + $0x258] sm:$0xff] %v4207_v62  ;;  %4336 = vst [vmem:[#allocation2 + $0x260] sm:$0xff] %v4208_v0 }
 0x471   : > { %v4212_v1 = vadd.f32 %v4084_v48, %v8701_v52  ;;  %v4085_v26 = vld [vmem:[#allocation2 + $0x288] sm:$0xff]  ;;  %v4086_v50 = vld [vmem:[#allocation2 + $0x290] sm:$0xff]  ;;  %4337 = vst [vmem:[#allocation2 + $0x268] sm:$0xff] %v4209_v39  ;;  %v8703_v36 = vld [vmem:[#allocation80_spill] sm:$0xff] }
 0x472   : > { %v8702_v35 = vld [vmem:[#allocation79_spill] sm:$0xff]  ;;  %v4214_v22 = vadd.f32 %v4086_v50, %v8703_v36  ;;  %v8704_v3 = vld [vmem:[#allocation81_spill] sm:$0xff]  ;;  %4338 = vst [vmem:[#allocation2 + $0x270] sm:$0xff] %v4210_v6  ;;  %4339 = vst [vmem:[#allocation2 + $0x278] sm:$0xff] %v4211_v58 }
 0x473   : > { %v4213_v16 = vadd.f32 %v4085_v26, %v8702_v35  ;;  %v4215_v11 = vadd.f32 %v4087_v61, %v8704_v3  ;;  %v4088_v13 = vld [vmem:[#allocation2 + $0x2a0] sm:$0xff]  ;;  %v4089_v2 = vld [vmem:[#allocation2 + $0x2a8] sm:$0xff]  ;;  %v4090_v47 = vld [vmem:[#allocation2 + $0x2b0] sm:$0xff]  ;;  %4340 = vst [vmem:[#allocation2 + $0x280] sm:$0xff] %v4212_v1 }
 0x474   : > { %v8705_v8 = vld [vmem:[#allocation82_spill] sm:$0xff]  ;;  %v8706_v9 = vld [vmem:[#allocation83_spill] sm:$0xff]  ;;  %v8707_v55 = vld [vmem:[#allocation84_spill] sm:$0xff]  ;;  %4342 = vst [vmem:[#allocation2 + $0x290] sm:$0xff] %v4214_v22 }
 0x475   : > { %v4216_v34 = vadd.f32 %v4088_v13, %v8705_v8  ;;  %v4217_v15 = vadd.f32 %v4089_v2, %v8706_v9  ;;  %v4218_v28 = vadd.f32 %v4090_v47, %v8707_v55  ;;  %v4091_v29 = vld [vmem:[#allocation2 + $0x2b8] sm:$0xff]  ;;  %v4092_v10 = vld [vmem:[#allocation2 + $0x2c0] sm:$0xff]  ;;  %v4093_v62 = vld [vmem:[#allocation2 + $0x2c8] sm:$0xff]  ;;  %4341 = vst [vmem:[#allocation2 + $0x288] sm:$0xff] %v4213_v16 }
 0x476   : > { %4343 = vst [vmem:[#allocation2 + $0x298] sm:$0xff] %v4215_v11  ;;  %v8708_v51 = vld [vmem:[#allocation85_spill] sm:$0xff]  ;;  %v8709_v31 = vld [vmem:[#allocation86_spill] sm:$0xff]  ;;  %v4221_v19 = vadd.f32 %v4093_v62, %v7755_v43  ;;  %v4095_v48 = vld [vmem:[#allocation2 + $0x2d8] sm:$0xff] }
 0x477   : > { %v4219_v0 = vadd.f32 %v4091_v29, %v8708_v51  ;;  %v4220_v39 = vadd.f32 %v4092_v10, %v8709_v31  ;;  %v4094_v27 = vld [vmem:[#allocation2 + $0x2d0] sm:$0xff]  ;;  %v4096_v60 = vld [vmem:[#allocation2 + $0x2e0] sm:$0xff]  ;;  %4344 = vst [vmem:[#allocation2 + $0x2a0] sm:$0xff] %v4216_v34  ;;  %4345 = vst [vmem:[#allocation2 + $0x2a8] sm:$0xff] %v4217_v15  ;;  %v4223_v63 = vadd.f32 %v4095_v48, %v7763_v54 }
 0x478   : > { %4346 = vst [vmem:[#allocation2 + $0x2b0] sm:$0xff] %v4218_v28  ;;  %v4222_v6 = vadd.f32 %v4094_v27, %v7759_v30  ;;  %v4224_v58 = vadd.f32 %v4096_v60, %v7767_v12  ;;  %v4097_v52 = vld [vmem:[#allocation2 + $0x2e8] sm:$0xff]  ;;  %v4098_v1 = vld [vmem:[#allocation2 + $0x2f0] sm:$0xff]  ;;  %v4099_v26 = vld [vmem:[#allocation2 + $0x2f8] sm:$0xff] }
 0x479   : > { %4347 = vst [vmem:[#allocation2 + $0x2b8] sm:$0xff] %v4219_v0  ;;  %4348 = vst [vmem:[#allocation2 + $0x2c0] sm:$0xff] %v4220_v39  ;;  %v4225_v43 = vadd.f32 %v4097_v52, %v7771_v59  ;;  %v4226_v50 = vadd.f32 %v4098_v1, %v7775_v44  ;;  %v4227_v61 = vadd.f32 %v4099_v26, %v7779_v49  ;;  %v4100_v35 = vld [vmem:[#allocation2 + $0x300] sm:$0xff]  ;;  %v4101_v16 = vld [vmem:[#allocation2 + $0x308] sm:$0xff] }
 0x47a   : > { %4349 = vst [vmem:[#allocation2 + $0x2c8] sm:$0xff] %v4221_v19  ;;  %v4102_v36 = vld [vmem:[#allocation2 + $0x310] sm:$0xff]  ;;  %4350 = vst [vmem:[#allocation2 + $0x2d0] sm:$0xff] %v4222_v6  ;;  %v4228_v30 = vadd.f32 %v4100_v35, %v7783_v46  ;;  %v4229_v54 = vadd.f32 %v4101_v16, %v7787_v40  ;;  %v4103_v22 = vld [vmem:[#allocation2 + $0x318] sm:$0xff] }
 0x47b   : > { %4351 = vst [vmem:[#allocation2 + $0x2d8] sm:$0xff] %v4223_v63  ;;  %4352 = vst [vmem:[#allocation2 + $0x2e0] sm:$0xff] %v4224_v58  ;;  %v4230_v12 = vadd.f32 %v4102_v36, %v7791_v4  ;;  %v4104_v3 = vld [vmem:[#allocation2 + $0x320] sm:$0xff]  ;;  %v4105_v11 = vld [vmem:[#allocation2 + $0x328] sm:$0xff]  ;;  %v4231_v59 = vadd.f32 %v4103_v22, %v7795_v42 }
 0x47c   : > { %4353 = vst [vmem:[#allocation2 + $0x2e8] sm:$0xff] %v4225_v43  ;;  %4354 = vst [vmem:[#allocation2 + $0x2f0] sm:$0xff] %v4226_v50  ;;  %v4232_v44 = vadd.f32 %v4104_v3, %v7799_v56  ;;  %v4233_v49 = vadd.f32 %v4105_v11, %v7803_v57  ;;  %v4106_v13 = vld [vmem:[#allocation2 + $0x330] sm:$0xff]  ;;  %v4107_v2 = vld [vmem:[#allocation2 + $0x338] sm:$0xff] }
 0x47d   : > { %4355 = vst [vmem:[#allocation2 + $0x2f8] sm:$0xff] %v4227_v61  ;;  %v4108_v47 = vld [vmem:[#allocation2 + $0x340] sm:$0xff]  ;;  %4356 = vst [vmem:[#allocation2 + $0x300] sm:$0xff] %v4228_v30  ;;  %v4234_v46 = vadd.f32 %v4106_v13, %v7807_v32  ;;  %v4235_v40 = vadd.f32 %v4107_v2, %v7811_v18  ;;  %v4109_v8 = vld [vmem:[#allocation2 + $0x348] sm:$0xff] }
 0x47e   : > { %4357 = vst [vmem:[#allocation2 + $0x308] sm:$0xff] %v4229_v54  ;;  %4358 = vst [vmem:[#allocation2 + $0x310] sm:$0xff] %v4230_v12  ;;  %v4236_v4 = vadd.f32 %v4108_v47, %v7815_v17  ;;  %v4110_v34 = vld [vmem:[#allocation2 + $0x350] sm:$0xff]  ;;  %v4111_v9 = vld [vmem:[#allocation2 + $0x358] sm:$0xff]  ;;  %v4237_v42 = vadd.f32 %v4109_v8, %v7819_v38 }
 0x47f   : > { %4359 = vst [vmem:[#allocation2 + $0x318] sm:$0xff] %v4231_v59  ;;  %4360 = vst [vmem:[#allocation2 + $0x320] sm:$0xff] %v4232_v44  ;;  %v4238_v56 = vadd.f32 %v4110_v34, %v7823_v20  ;;  %v4239_v57 = vadd.f32 %v4111_v9, %v7827_v25  ;;  %v4112_v15 = vld [vmem:[#allocation2 + $0x360] sm:$0xff]  ;;  %v4113_v55 = vld [vmem:[#allocation2 + $0x368] sm:$0xff] }
 0x480   : > { %4361 = vst [vmem:[#allocation2 + $0x328] sm:$0xff] %v4233_v49  ;;  %v4114_v28 = vld [vmem:[#allocation2 + $0x370] sm:$0xff]  ;;  %4362 = vst [vmem:[#allocation2 + $0x330] sm:$0xff] %v4234_v46  ;;  %v4240_v32 = vadd.f32 %v4112_v15, %v7831_v37  ;;  %v4241_v18 = vadd.f32 %v4113_v55, %v7835_v45  ;;  %v4115_v29 = vld [vmem:[#allocation2 + $0x378] sm:$0xff] }
 0x481   : > { %4363 = vst [vmem:[#allocation2 + $0x338] sm:$0xff] %v4235_v40  ;;  %4364 = vst [vmem:[#allocation2 + $0x340] sm:$0xff] %v4236_v4  ;;  %v4242_v17 = vadd.f32 %v4114_v28, %v7839_v23  ;;  %v4116_v10 = vld [vmem:[#allocation2 + $0x380] sm:$0xff]  ;;  %v4117_v62 = vld [vmem:[#allocation2 + $0x388] sm:$0xff]  ;;  %v4243_v38 = vadd.f32 %v4115_v29, %v7843_v41 }
 0x482   : > { %4365 = vst [vmem:[#allocation2 + $0x348] sm:$0xff] %v4237_v42  ;;  %4366 = vst [vmem:[#allocation2 + $0x350] sm:$0xff] %v4238_v56  ;;  %v4244_v20 = vadd.f32 %v4116_v10, %v7847_v24  ;;  %v4245_v25 = vadd.f32 %v4117_v62, %v7851_v7  ;;  %v4118_v51 = vld [vmem:[#allocation2 + $0x390] sm:$0xff]  ;;  %v4119_v0 = vld [vmem:[#allocation2 + $0x398] sm:$0xff] }
 0x483   : > { %4367 = vst [vmem:[#allocation2 + $0x358] sm:$0xff] %v4239_v57  ;;  %v4120_v31 = vld [vmem:[#allocation2 + $0x3a0] sm:$0xff]  ;;  %4368 = vst [vmem:[#allocation2 + $0x360] sm:$0xff] %v4240_v32  ;;  %v4246_v37 = vadd.f32 %v4118_v51, %v7855_v5  ;;  %v4247_v45 = vadd.f32 %v4119_v0, %v7859_v21  ;;  %v4121_v39 = vld [vmem:[#allocation2 + $0x3a8] sm:$0xff] }
 0x484   : > { %4369 = vst [vmem:[#allocation2 + $0x368] sm:$0xff] %v4241_v18  ;;  %4370 = vst [vmem:[#allocation2 + $0x370] sm:$0xff] %v4242_v17  ;;  %v4248_v23 = vadd.f32 %v4120_v31, %v7863_v14  ;;  %v4122_v19 = vld [vmem:[#allocation2 + $0x3b0] sm:$0xff]  ;;  %v4123_v27 = vld [vmem:[#allocation2 + $0x3b8] sm:$0xff]  ;;  %v4249_v41 = vadd.f32 %v4121_v39, %v7867_v53 }
 0x485   : > { %4371 = vst [vmem:[#allocation2 + $0x378] sm:$0xff] %v4243_v38  ;;  %4372 = vst [vmem:[#allocation2 + $0x380] sm:$0xff] %v4244_v20  ;;  %v4250_v24 = vadd.f32 %v4122_v19, %v7871_v33  ;;  %v8710_v7 = vld [vmem:[#allocation87_spill] sm:$0xff]  ;;  %v4124_v60 = vld [vmem:[#allocation2 + $0x3c0] sm:$0xff] }
 0x486   : > { %4373 = vst [vmem:[#allocation2 + $0x388] sm:$0xff] %v4245_v25  ;;  %v4251_v48 = vadd.f32 %v4123_v27, %v8710_v7  ;;  %v4125_v6 = vld [vmem:[#allocation2 + $0x3c8] sm:$0xff]  ;;  %v4126_v63 = vld [vmem:[#allocation2 + $0x3d0] sm:$0xff]  ;;  %4374 = vst [vmem:[#allocation2 + $0x390] sm:$0xff] %v4246_v37 }
 0x487   : > { %4375 = vst [vmem:[#allocation2 + $0x398] sm:$0xff] %v4247_v45  ;;  %4376 = vst [vmem:[#allocation2 + $0x3a0] sm:$0xff] %v4248_v23  ;;  %v8711_v5 = vld [vmem:[#allocation88_spill] sm:$0xff]  ;;  %v8712_v14 = vld [vmem:[#allocation89_spill] sm:$0xff] }
 0x488   : > { %v4252_v21 = vadd.f32 %v4124_v60, %v8711_v5  ;;  %v4253_v58 = vadd.f32 %v4125_v6, %v8712_v14  ;;  %v8713_v52 = vld [vmem:[#allocation90_spill] sm:$0xff]  ;;  %v4127_v26 = vld [vmem:[#allocation2 + $0x3d8] sm:$0xff]  ;;  %v4128_v43 = vld [vmem:[#allocation2 + $0x3e0] sm:$0xff]  ;;  %4377 = vst [vmem:[#allocation2 + $0x3a8] sm:$0xff] %v4249_v41 }
 0x489   : > { %v4254_v1 = vadd.f32 %v4126_v63, %v8713_v52  ;;  %v4129_v50 = vld [vmem:[#allocation2 + $0x3e8] sm:$0xff]  ;;  %4378 = vst [vmem:[#allocation2 + $0x3b0] sm:$0xff] %v4250_v24  ;;  %4379 = vst [vmem:[#allocation2 + $0x3b8] sm:$0xff] %v4251_v48  ;;  %v8714_v53 = vld [vmem:[#allocation91_spill] sm:$0xff]  ;;  %4391 = sbr.rel (%p5058_p5) target bundleno = 1561 (0x619), region = 56 }
 0x48a   : > { %v4255_v33 = vadd.f32 %v4127_v26, %v8714_v53  ;;  %v8715_v61 = vld [vmem:[#allocation92_spill] sm:$0xff]  ;;  %v8716_v16 = vld [vmem:[#allocation93_spill] sm:$0xff]  ;;  %v4130_v30 = vld [vmem:[#allocation2 + $0x3f0] sm:$0xff]  ;;  %4380 = vst [vmem:[#allocation2 + $0x3c0] sm:$0xff] %v4252_v21 }
 0x48b   : > { %v4256_v35 = vadd.f32 %v4128_v43, %v8715_v61  ;;  %v4257_v36 = vadd.f32 %v4129_v50, %v8716_v16  ;;  %v4131_v54 = vld [vmem:[#allocation2 + $0x3f8] sm:$0xff]  ;;  %4381 = vst [vmem:[#allocation2 + $0x3c8] sm:$0xff] %v4253_v58  ;;  %4382 = vst [vmem:[#allocation2 + $0x3d0] sm:$0xff] %v4254_v1  ;;  %v8717_v12 = vld [vmem:[#allocation94_spill] sm:$0xff] }
 0x48c   : > { %v4258_v22 = vadd.f32 %v4130_v30, %v8717_v12  ;;  %v8718_v3 = vld [vmem:[#allocation95_spill] sm:$0xff]  ;;  %4383 = vst [vmem:[#allocation2 + $0x3d8] sm:$0xff] %v4255_v33  ;;  %v4392_v44 = vld [vmem:[#allocation2] sm:$0xff] (!%p5058_p5)  ;;  %v4393_v13 = vld [vmem:[#allocation2 + $0x8] sm:$0xff] (!%p5058_p5) }
 0x48d   : > { %v4259_v11 = vadd.f32 %v4131_v54, %v8718_v3  ;;  %4384 = vst [vmem:[#allocation2 + $0x3e0] sm:$0xff] %v4256_v35  ;;  %4385 = vst [vmem:[#allocation2 + $0x3e8] sm:$0xff] %v4257_v36  ;;  %v4394_v59 = vld [vmem:[#allocation2 + $0x10] sm:$0xff] (!%p5058_p5)  ;;  %4520 = vadd.xlane.f32.xlu0 (!%p5058_p5), %v4392_v44  ;;  %v4395_v49 = vld [vmem:[#allocation2 + $0x18] sm:$0xff] (!%p5058_p5) }
 0x48e   : > { %4386 = vst [vmem:[#allocation2 + $0x3f0] sm:$0xff] %v4258_v22  ;;  %4524 = vadd.xlane.f32.xlu1 (!%p5058_p5), %v4394_v59  ;;  %v4397_v2 = vld [vmem:[#allocation2 + $0x28] sm:$0xff] (!%p5058_p5)  ;;  %v4396_v47 = vld [vmem:[#allocation2 + $0x20] sm:$0xff] (!%p5058_p5)  ;;  %v4399_v46 = vld [vmem:[#allocation2 + $0x38] sm:$0xff] (!%p5058_p5) }
 0x48f   : > { %4387 = vst [vmem:[#allocation2 + $0x3f8] sm:$0xff] %v4259_v11  ;;  %v4398_v40 = vld [vmem:[#allocation2 + $0x30] sm:$0xff] (!%p5058_p5)  ;;  %v4401_v4 = vld [vmem:[#allocation2 + $0x48] sm:$0xff] (!%p5058_p5)  ;;  %v4400_v8 = vld [vmem:[#allocation2 + $0x40] sm:$0xff] (!%p5058_p5) }
 0x490   : > { %v4403_v34 = vld [vmem:[#allocation2 + $0x58] sm:$0xff]  ;;  %v4402_v9 = vld [vmem:[#allocation2 + $0x50] sm:$0xff]  ;;  %v4405_v42 = vld [vmem:[#allocation2 + $0x68] sm:$0xff] }
 0x491   : > { %4522 = vadd.xlane.f32.xlu0 %v4393_v13  ;;  %v4404_v56 = vld [vmem:[#allocation2 + $0x60] sm:$0xff]  ;;  %v4407_v57 = vld [vmem:[#allocation2 + $0x78] sm:$0xff]  ;;  %v4406_v15 = vld [vmem:[#allocation2 + $0x70] sm:$0xff] }
 0x492   : > { %4526 = vadd.xlane.f32.xlu1 %v4395_v49  ;;  %v4409_v55 = vld [vmem:[#allocation2 + $0x88] sm:$0xff]  ;;  %v4408_v28 = vld [vmem:[#allocation2 + $0x80] sm:$0xff]  ;;  %v4411_v32 = vld [vmem:[#allocation2 + $0x98] sm:$0xff] }
 0x493   : > { %v4410_v18 = vld [vmem:[#allocation2 + $0x90] sm:$0xff]  ;;  %v4413_v17 = vld [vmem:[#allocation2 + $0xa8] sm:$0xff]  ;;  %v4412_v29 = vld [vmem:[#allocation2 + $0xa0] sm:$0xff] }
 0x494   : > { %v4415_v10 = vld [vmem:[#allocation2 + $0xb8] sm:$0xff]  ;;  %v4414_v62 = vld [vmem:[#allocation2 + $0xb0] sm:$0xff]  ;;  %v4417_v38 = vld [vmem:[#allocation2 + $0xc8] sm:$0xff] }
 0x495   : > { %4528 = vadd.xlane.f32.xlu0 %v4396_v47  ;;  %v4416_v20 = vld [vmem:[#allocation2 + $0xc0] sm:$0xff]  ;;  %v4419_v25 = vld [vmem:[#allocation2 + $0xd8] sm:$0xff]  ;;  %v4418_v51 = vld [vmem:[#allocation2 + $0xd0] sm:$0xff] }
 0x496   : > { %4530 = vadd.xlane.f32.xlu1 %v4397_v2  ;;  %v4421_v0 = vld [vmem:[#allocation2 + $0xe8] sm:$0xff]  ;;  %v4420_v31 = vld [vmem:[#allocation2 + $0xe0] sm:$0xff]  ;;  %v4423_v37 = vld [vmem:[#allocation2 + $0xf8] sm:$0xff] }
 0x497   : > { %v4422_v45 = vld [vmem:[#allocation2 + $0xf0] sm:$0xff]  ;;  %v4425_v23 = vld [vmem:[#allocation2 + $0x108] sm:$0xff]  ;;  %v4424_v39 = vld [vmem:[#allocation2 + $0x100] sm:$0xff] }
 0x498   : > { %v4427_v19 = vld [vmem:[#allocation2 + $0x118] sm:$0xff]  ;;  %v4426_v27 = vld [vmem:[#allocation2 + $0x110] sm:$0xff]  ;;  %v4429_v41 = vld [vmem:[#allocation2 + $0x128] sm:$0xff] }
 0x499   : > { %4532 = vadd.xlane.f32.xlu0 %v4398_v40  ;;  %v4428_v24 = vld [vmem:[#allocation2 + $0x120] sm:$0xff]  ;;  %v4431_v7 = vld [vmem:[#allocation2 + $0x138] sm:$0xff]  ;;  %v4430_v48 = vld [vmem:[#allocation2 + $0x130] sm:$0xff] }
 0x49a   : > { %4534 = vadd.xlane.f32.xlu1 %v4399_v46  ;;  %v4433_v60 = vld [vmem:[#allocation2 + $0x148] sm:$0xff]  ;;  %v4432_v6 = vld [vmem:[#allocation2 + $0x140] sm:$0xff]  ;;  %v4435_v63 = vld [vmem:[#allocation2 + $0x158] sm:$0xff] }
 0x49b   : > { %v4434_v5 = vld [vmem:[#allocation2 + $0x150] sm:$0xff]  ;;  %v4437_v21 = vld [vmem:[#allocation2 + $0x168] sm:$0xff]  ;;  %v4436_v14 = vld [vmem:[#allocation2 + $0x160] sm:$0xff] }
 0x49c   : > { %v4439_v58 = vld [vmem:[#allocation2 + $0x178] sm:$0xff]  ;;  %v4438_v52 = vld [vmem:[#allocation2 + $0x170] sm:$0xff]  ;;  %v4441_v1 = vld [vmem:[#allocation2 + $0x188] sm:$0xff] }
 0x49d   : > { %4536 = vadd.xlane.f32.xlu0 %v4400_v8  ;;  %v4440_v26 = vld [vmem:[#allocation2 + $0x180] sm:$0xff]  ;;  %v4443_v43 = vld [vmem:[#allocation2 + $0x198] sm:$0xff]  ;;  %v4442_v50 = vld [vmem:[#allocation2 + $0x190] sm:$0xff] }
 0x49e   : > { %4538 = vadd.xlane.f32.xlu1 %v4401_v4  ;;  %v4445_v53 = vld [vmem:[#allocation2 + $0x1a8] sm:$0xff]  ;;  %v4444_v33 = vld [vmem:[#allocation2 + $0x1a0] sm:$0xff]  ;;  %v4447_v61 = vld [vmem:[#allocation2 + $0x1b8] sm:$0xff] }
 0x49f   : > { %v4446_v35 = vld [vmem:[#allocation2 + $0x1b0] sm:$0xff]  ;;  %v4449_v16 = vld [vmem:[#allocation2 + $0x1c8] sm:$0xff]  ;;  %v4448_v36 = vld [vmem:[#allocation2 + $0x1c0] sm:$0xff] }
 0x4a0   : > { %v4451_v30 = vld [vmem:[#allocation2 + $0x1d8] sm:$0xff]  ;;  %v4450_v54 = vld [vmem:[#allocation2 + $0x1d0] sm:$0xff]  ;;  %v4453_v12 = vld [vmem:[#allocation2 + $0x1e8] sm:$0xff] }
 0x4a1   : > { %4540 = vadd.xlane.f32.xlu0 %v4402_v9  ;;  %v4452_v22 = vld [vmem:[#allocation2 + $0x1e0] sm:$0xff]  ;;  %v4455_v3 = vld [vmem:[#allocation2 + $0x1f8] sm:$0xff]  ;;  %v4454_v11 = vld [vmem:[#allocation2 + $0x1f0] sm:$0xff] }
 0x4a2   : > { %4542 = vadd.xlane.f32.xlu1 %v4403_v34  ;;  %v4457_v59 = vld [vmem:[#allocation2 + $0x208] sm:$0xff]  ;;  %v4456_v44 = vld [vmem:[#allocation2 + $0x200] sm:$0xff]  ;;  %v4459_v49 = vld [vmem:[#allocation2 + $0x218] sm:$0xff] }
 0x4a3   : > { %v4458_v13 = vld [vmem:[#allocation2 + $0x210] sm:$0xff]  ;;  %v4461_v2 = vld [vmem:[#allocation2 + $0x228] sm:$0xff]  ;;  %v4460_v47 = vld [vmem:[#allocation2 + $0x220] sm:$0xff] }
 0x4a4   : > { %v4463_v46 = vld [vmem:[#allocation2 + $0x238] sm:$0xff]  ;;  %v4462_v40 = vld [vmem:[#allocation2 + $0x230] sm:$0xff]  ;;  %v4465_v34 = vld [vmem:[#allocation2 + $0x248] sm:$0xff] }
 0x4a5   : > { %4544 = vadd.xlane.f32.xlu0 %v4404_v56  ;;  %v4464_v9 = vld [vmem:[#allocation2 + $0x240] sm:$0xff] }
 0x4a6   : > { %4546 = vadd.xlane.f32.xlu1 %v4405_v42 }
 0x4a9   : > { %4548 = vadd.xlane.f32.xlu0 %v4406_v15  ;;  %v4466_v15 = vld [vmem:[#allocation2 + $0x250] sm:$0xff] }
 0x4aa   : > { %4550 = vadd.xlane.f32.xlu1 %v4407_v57  ;;  %v4467_v57 = vld [vmem:[#allocation2 + $0x258] sm:$0xff] }
 0x4ad   : > { %4552 = vadd.xlane.f32.xlu0 %v4408_v28 }
 0x4ae   : > { %4554 = vadd.xlane.f32.xlu1 %v4409_v55 }
 0x4b1   : > { %4556 = vadd.xlane.f32.xlu0 %v4410_v18  ;;  %v4468_v18 = vld [vmem:[#allocation2 + $0x260] sm:$0xff] }
 0x4b2   : > { %4558 = vadd.xlane.f32.xlu1 %v4411_v32  ;;  %v4469_v32 = vld [vmem:[#allocation2 + $0x268] sm:$0xff] }
 0x4b5   : > { %4560 = vadd.xlane.f32.xlu0 %v4412_v29 }
 0x4b6   : > { %4562 = vadd.xlane.f32.xlu1 %v4413_v17 }
 0x4b9   : > { %4564 = vadd.xlane.f32.xlu0 %v4414_v62  ;;  %v4470_v62 = vld [vmem:[#allocation2 + $0x270] sm:$0xff] }
 0x4ba   : > { %4566 = vadd.xlane.f32.xlu1 %v4415_v10  ;;  %v4471_v10 = vld [vmem:[#allocation2 + $0x278] sm:$0xff] }
 0x4bd   : > { %4568 = vadd.xlane.f32.xlu0 %v4416_v20 }
 0x4be   : > { %4570 = vadd.xlane.f32.xlu1 %v4417_v38 }
 0x4c1   : > { %4572 = vadd.xlane.f32.xlu0 %v4418_v51  ;;  %v4472_v51 = vld [vmem:[#allocation2 + $0x280] sm:$0xff] }
 0x4c2   : > { %4574 = vadd.xlane.f32.xlu1 %v4419_v25  ;;  %v4473_v25 = vld [vmem:[#allocation2 + $0x288] sm:$0xff] }
 0x4c5   : > { %4576 = vadd.xlane.f32.xlu0 %v4420_v31 }
 0x4c6   : > { %4578 = vadd.xlane.f32.xlu1 %v4421_v0 }
 0x4c9   : > { %4580 = vadd.xlane.f32.xlu0 %v4422_v45  ;;  %v4474_v45 = vld [vmem:[#allocation2 + $0x290] sm:$0xff] }
 0x4ca   : > { %4582 = vadd.xlane.f32.xlu1 %v4423_v37  ;;  %v4475_v37 = vld [vmem:[#allocation2 + $0x298] sm:$0xff] }
 0x4cd   : > { %4584 = vadd.xlane.f32.xlu0 %v4424_v39 }
 0x4ce   : > { %4586 = vadd.xlane.f32.xlu1 %v4425_v23 }
 0x4d1   : > { %4588 = vadd.xlane.f32.xlu0 %v4426_v27  ;;  %v4476_v27 = vld [vmem:[#allocation2 + $0x2a0] sm:$0xff] }
 0x4d2   : > { %4590 = vadd.xlane.f32.xlu1 %v4427_v19  ;;  %v4477_v19 = vld [vmem:[#allocation2 + $0x2a8] sm:$0xff] }
 0x4d5   : > { %4592 = vadd.xlane.f32.xlu0 %v4428_v24 }
 0x4d6   : > { %4594 = vadd.xlane.f32.xlu1 %v4429_v41 }
 0x4d9   : > { %4596 = vadd.xlane.f32.xlu0 %v4430_v48  ;;  %v4478_v48 = vld [vmem:[#allocation2 + $0x2b0] sm:$0xff] }
 0x4da   : > { %4598 = vadd.xlane.f32.xlu1 %v4431_v7  ;;  %v4479_v7 = vld [vmem:[#allocation2 + $0x2b8] sm:$0xff] }
 0x4dd   : > { %4600 = vadd.xlane.f32.xlu0 %v4432_v6 }
 0x4de   : > { %4602 = vadd.xlane.f32.xlu1 %v4433_v60 }
 0x4e1   : > { %4604 = vadd.xlane.f32.xlu0 %v4434_v5  ;;  %v4480_v5 = vld [vmem:[#allocation2 + $0x2c0] sm:$0xff] }
 0x4e2   : > { %4606 = vadd.xlane.f32.xlu1 %v4435_v63  ;;  %v4481_v63 = vld [vmem:[#allocation2 + $0x2c8] sm:$0xff] }
 0x4e5   : > { %4608 = vadd.xlane.f32.xlu0 %v4436_v14 }
 0x4e6   : > { %4610 = vadd.xlane.f32.xlu1 %v4437_v21 }
 0x4e9   : > { %4612 = vadd.xlane.f32.xlu0 %v4438_v52  ;;  %v4482_v52 = vld [vmem:[#allocation2 + $0x2d0] sm:$0xff] }
 0x4ea   : > { %4614 = vadd.xlane.f32.xlu1 %v4439_v58  ;;  %v4483_v58 = vld [vmem:[#allocation2 + $0x2d8] sm:$0xff] }
 0x4ed   : > { %4616 = vadd.xlane.f32.xlu0 %v4440_v26 }
 0x4ee   : > { %4618 = vadd.xlane.f32.xlu1 %v4441_v1 }
 0x4f1   : > { %4620 = vadd.xlane.f32.xlu0 %v4442_v50  ;;  %v4484_v50 = vld [vmem:[#allocation2 + $0x2e0] sm:$0xff] }
 0x4f2   : > { %4622 = vadd.xlane.f32.xlu1 %v4443_v43  ;;  %v4485_v43 = vld [vmem:[#allocation2 + $0x2e8] sm:$0xff] }
 0x4f5   : > { %4624 = vadd.xlane.f32.xlu0 %v4444_v33 }
 0x4f6   : > { %4626 = vadd.xlane.f32.xlu1 %v4445_v53 }
 0x4f9   : > { %4628 = vadd.xlane.f32.xlu0 %v4446_v35  ;;  %v4486_v35 = vld [vmem:[#allocation2 + $0x2f0] sm:$0xff] }
 0x4fa   : > { %4630 = vadd.xlane.f32.xlu1 %v4447_v61  ;;  %v4487_v61 = vld [vmem:[#allocation2 + $0x2f8] sm:$0xff] }
 0x4fd   : > { %4632 = vadd.xlane.f32.xlu0 %v4448_v36 }
 0x4fe   : > { %4634 = vadd.xlane.f32.xlu1 %v4449_v16 }
 0x501   : > { %4636 = vadd.xlane.f32.xlu0 %v4450_v54  ;;  %v4488_v54 = vld [vmem:[#allocation2 + $0x300] sm:$0xff] }
 0x502   : > { %4638 = vadd.xlane.f32.xlu1 %v4451_v30  ;;  %v4489_v30 = vld [vmem:[#allocation2 + $0x308] sm:$0xff] }
 0x505   : > { %4640 = vadd.xlane.f32.xlu0 %v4452_v22 }
 0x506   : > { %4642 = vadd.xlane.f32.xlu1 %v4453_v12 }
 0x509   : > { %4644 = vadd.xlane.f32.xlu0 %v4454_v11  ;;  %v4490_v11 = vld [vmem:[#allocation2 + $0x310] sm:$0xff] }
 0x50a   : > { %4646 = vadd.xlane.f32.xlu1 %v4455_v3  ;;  %v4491_v3 = vld [vmem:[#allocation2 + $0x318] sm:$0xff] }
 0x50d   : > { %4648 = vadd.xlane.f32.xlu0 %v4456_v44 }
 0x50e   : > { %4650 = vadd.xlane.f32.xlu1 %v4457_v59 }
 0x511   : > { %4652 = vadd.xlane.f32.xlu0 %v4458_v13  ;;  %v4492_v13 = vld [vmem:[#allocation2 + $0x320] sm:$0xff] }
 0x512   : > { %4654 = vadd.xlane.f32.xlu1 %v4459_v49  ;;  %v4493_v49 = vld [vmem:[#allocation2 + $0x328] sm:$0xff] }
 0x515   : > { %4656 = vadd.xlane.f32.xlu0 %v4460_v47 }
 0x516   : > { %4658 = vadd.xlane.f32.xlu1 %v4461_v2 }
 0x519   : > { %4660 = vadd.xlane.f32.xlu0 %v4462_v40  ;;  %v4494_v40 = vld [vmem:[#allocation2 + $0x330] sm:$0xff] }
 0x51a   : > { %4662 = vadd.xlane.f32.xlu1 %v4463_v46  ;;  %v4521_v8 = vpop.xlane.xlu0 %4520  ;;  %v4495_v46 = vld [vmem:[#allocation2 + $0x338] sm:$0xff] }
 0x51b   : > { %v4525_v4 = vpop.xlane.xlu1 %4524  ;;  %4777 = vst.msk [vmem:[%s6364_s18] sm:$0xff] %vm4776_vm1, %v4521_v8 }
 0x51c   : > { %4779 = vst.msk [vmem:[%s6364_s18 + $0x10] sm:$0xff] %vm4776_vm1, %v4525_v4 }
 0x51d   : > { %4664 = vadd.xlane.f32.xlu0 %v4464_v9  ;;  %v4496_v9 = vld [vmem:[#allocation2 + $0x340] sm:$0xff] }
 0x51e   : > { %4666 = vadd.xlane.f32.xlu1 %v4465_v34  ;;  %v4523_v56 = vpop.xlane.xlu0 %4522  ;;  %v4497_v34 = vld [vmem:[#allocation2 + $0x348] sm:$0xff] }
 0x51f   : > { %v4527_v42 = vpop.xlane.xlu1 %4526  ;;  %4778 = vst.msk [vmem:[%s6364_s18 + $0x8] sm:$0xff] %vm4776_vm1, %v4523_v56 }
 0x520   : > { %4780 = vst.msk [vmem:[%s6364_s18 + $0x18] sm:$0xff] %vm4776_vm1, %v4527_v42 }
 0x521   : > { %4668 = vadd.xlane.f32.xlu0 %v4466_v15  ;;  %v4498_v15 = vld [vmem:[#allocation2 + $0x350] sm:$0xff] }
 0x522   : > { %4670 = vadd.xlane.f32.xlu1 %v4467_v57  ;;  %v4529_v28 = vpop.xlane.xlu0 %4528  ;;  %v4499_v57 = vld [vmem:[#allocation2 + $0x358] sm:$0xff] }
 0x523   : > { %v4531_v55 = vpop.xlane.xlu1 %4530  ;;  %4781 = vst.msk [vmem:[%s6364_s18 + $0x20] sm:$0xff] %vm4776_vm1, %v4529_v28 }
 0x524   : > { %4782 = vst.msk [vmem:[%s6364_s18 + $0x28] sm:$0xff] %vm4776_vm1, %v4531_v55 }
 0x525   : > { %4672 = vadd.xlane.f32.xlu0 %v4468_v18  ;;  %v4500_v18 = vld [vmem:[#allocation2 + $0x360] sm:$0xff] }
 0x526   : > { %4674 = vadd.xlane.f32.xlu1 %v4469_v32  ;;  %v4533_v29 = vpop.xlane.xlu0 %4532  ;;  %v4501_v32 = vld [vmem:[#allocation2 + $0x368] sm:$0xff] }
 0x527   : > { %v4535_v17 = vpop.xlane.xlu1 %4534  ;;  %4783 = vst.msk [vmem:[%s6364_s18 + $0x30] sm:$0xff] %vm4776_vm1, %v4533_v29 }
 0x528   : > { %4784 = vst.msk [vmem:[%s6364_s18 + $0x38] sm:$0xff] %vm4776_vm1, %v4535_v17 }
 0x529   : > { %4676 = vadd.xlane.f32.xlu0 %v4470_v62  ;;  %v4502_v62 = vld [vmem:[#allocation2 + $0x370] sm:$0xff] }
 0x52a   : > { %4678 = vadd.xlane.f32.xlu1 %v4471_v10  ;;  %v4537_v20 = vpop.xlane.xlu0 %4536  ;;  %v4503_v10 = vld [vmem:[#allocation2 + $0x378] sm:$0xff] }
 0x52b   : > { %v4539_v38 = vpop.xlane.xlu1 %4538  ;;  %4785 = vst.msk [vmem:[%s6364_s18 + $0x40] sm:$0xff] %vm4776_vm1, %v4537_v20 }
 0x52c   : > { %4786 = vst.msk [vmem:[%s6364_s18 + $0x48] sm:$0xff] %vm4776_vm1, %v4539_v38 }
 0x52d   : > { %4680 = vadd.xlane.f32.xlu0 %v4472_v51  ;;  %v4504_v51 = vld [vmem:[#allocation2 + $0x380] sm:$0xff] }
 0x52e   : > { %4682 = vadd.xlane.f32.xlu1 %v4473_v25  ;;  %v4541_v31 = vpop.xlane.xlu0 %4540  ;;  %v4505_v25 = vld [vmem:[#allocation2 + $0x388] sm:$0xff] }
 0x52f   : > { %v4543_v0 = vpop.xlane.xlu1 %4542  ;;  %4787 = vst.msk [vmem:[%s6364_s18 + $0x50] sm:$0xff] %vm4776_vm1, %v4541_v31 }
 0x530   : > { %4788 = vst.msk [vmem:[%s6364_s18 + $0x58] sm:$0xff] %vm4776_vm1, %v4543_v0 }
 0x531   : > { %4684 = vadd.xlane.f32.xlu0 %v4474_v45  ;;  %v4506_v45 = vld [vmem:[#allocation2 + $0x390] sm:$0xff] }
 0x532   : > { %4686 = vadd.xlane.f32.xlu1 %v4475_v37  ;;  %v4545_v39 = vpop.xlane.xlu0 %4544  ;;  %v4507_v37 = vld [vmem:[#allocation2 + $0x398] sm:$0xff] }
 0x533   : > { %v4547_v23 = vpop.xlane.xlu1 %4546  ;;  %4789 = vst.msk [vmem:[%s6364_s18 + $0x60] sm:$0xff] %vm4776_vm1, %v4545_v39 }
 0x534   : > { %4790 = vst.msk [vmem:[%s6364_s18 + $0x68] sm:$0xff] %vm4776_vm1, %v4547_v23 }
 0x535   : > { %4688 = vadd.xlane.f32.xlu0 %v4476_v27  ;;  %v4508_v27 = vld [vmem:[#allocation2 + $0x3a0] sm:$0xff] }
 0x536   : > { %4690 = vadd.xlane.f32.xlu1 %v4477_v19  ;;  %v4549_v24 = vpop.xlane.xlu0 %4548  ;;  %v4509_v19 = vld [vmem:[#allocation2 + $0x3a8] sm:$0xff] }
 0x537   : > { %v4551_v41 = vpop.xlane.xlu1 %4550  ;;  %4791 = vst.msk [vmem:[%s6364_s18 + $0x70] sm:$0xff] %vm4776_vm1, %v4549_v24 }
 0x538   : > { %4792 = vst.msk [vmem:[%s6364_s18 + $0x78] sm:$0xff] %vm4776_vm1, %v4551_v41 }
 0x539   : > { %4692 = vadd.xlane.f32.xlu0 %v4478_v48  ;;  %v4510_v48 = vld [vmem:[#allocation2 + $0x3b0] sm:$0xff] }
 0x53a   : > { %4694 = vadd.xlane.f32.xlu1 %v4479_v7  ;;  %v4553_v6 = vpop.xlane.xlu0 %4552  ;;  %v4511_v7 = vld [vmem:[#allocation2 + $0x3b8] sm:$0xff] }
 0x53b   : > { %v4555_v60 = vpop.xlane.xlu1 %4554  ;;  %4793 = vst.msk [vmem:[%s6364_s18 + $0x80] sm:$0xff] %vm4776_vm1, %v4553_v6 }
 0x53c   : > { %4794 = vst.msk [vmem:[%s6364_s18 + $0x88] sm:$0xff] %vm4776_vm1, %v4555_v60 }
 0x53d   : > { %4696 = vadd.xlane.f32.xlu0 %v4480_v5  ;;  %v4512_v5 = vld [vmem:[#allocation2 + $0x3c0] sm:$0xff] }
 0x53e   : > { %4698 = vadd.xlane.f32.xlu1 %v4481_v63  ;;  %v4557_v14 = vpop.xlane.xlu0 %4556  ;;  %v4513_v63 = vld [vmem:[#allocation2 + $0x3c8] sm:$0xff] }
 0x53f   : > { %v4559_v21 = vpop.xlane.xlu1 %4558  ;;  %4795 = vst.msk [vmem:[%s6364_s18 + $0x90] sm:$0xff] %vm4776_vm1, %v4557_v14 }
 0x540   : > { %4796 = vst.msk [vmem:[%s6364_s18 + $0x98] sm:$0xff] %vm4776_vm1, %v4559_v21 }
 0x541   : > { %4700 = vadd.xlane.f32.xlu0 %v4482_v52  ;;  %v4514_v52 = vld [vmem:[#allocation2 + $0x3d0] sm:$0xff] }
 0x542   : > { %4702 = vadd.xlane.f32.xlu1 %v4483_v58  ;;  %v4561_v26 = vpop.xlane.xlu0 %4560  ;;  %v4515_v58 = vld [vmem:[#allocation2 + $0x3d8] sm:$0xff] }
 0x543   : > { %v4563_v1 = vpop.xlane.xlu1 %4562  ;;  %4797 = vst.msk [vmem:[%s6364_s18 + $0xa0] sm:$0xff] %vm4776_vm1, %v4561_v26 }
 0x544   : > { %4798 = vst.msk [vmem:[%s6364_s18 + $0xa8] sm:$0xff] %vm4776_vm1, %v4563_v1 }
 0x545   : > { %4704 = vadd.xlane.f32.xlu0 %v4484_v50  ;;  %v4516_v50 = vld [vmem:[#allocation2 + $0x3e0] sm:$0xff] }
 0x546   : > { %4706 = vadd.xlane.f32.xlu1 %v4485_v43  ;;  %v4565_v33 = vpop.xlane.xlu0 %4564  ;;  %v4517_v43 = vld [vmem:[#allocation2 + $0x3e8] sm:$0xff] }
 0x547   : > { %v4567_v53 = vpop.xlane.xlu1 %4566  ;;  %4799 = vst.msk [vmem:[%s6364_s18 + $0xb0] sm:$0xff] %vm4776_vm1, %v4565_v33 }
 0x548   : > { %4800 = vst.msk [vmem:[%s6364_s18 + $0xb8] sm:$0xff] %vm4776_vm1, %v4567_v53 }
 0x549   : > { %4708 = vadd.xlane.f32.xlu0 %v4486_v35  ;;  %v4518_v35 = vld [vmem:[#allocation2 + $0x3f0] sm:$0xff] }
 0x54a   : > { %4710 = vadd.xlane.f32.xlu1 %v4487_v61  ;;  %v4569_v36 = vpop.xlane.xlu0 %4568  ;;  %v4519_v61 = vld [vmem:[#allocation2 + $0x3f8] sm:$0xff] }
 0x54b   : > { %v4571_v16 = vpop.xlane.xlu1 %4570  ;;  %4801 = vst.msk [vmem:[%s6364_s18 + $0xc0] sm:$0xff] %vm4776_vm1, %v4569_v36 }
 0x54c   : > { %4802 = vst.msk [vmem:[%s6364_s18 + $0xc8] sm:$0xff] %vm4776_vm1, %v4571_v16 }
 0x54d   : > { %4712 = vadd.xlane.f32.xlu0 %v4488_v54 }
 0x54e   : > { %4714 = vadd.xlane.f32.xlu1 %v4489_v30  ;;  %v4573_v22 = vpop.xlane.xlu0 %4572 }
 0x54f   : > { %v4575_v12 = vpop.xlane.xlu1 %4574  ;;  %4803 = vst.msk [vmem:[%s6364_s18 + $0xd0] sm:$0xff] %vm4776_vm1, %v4573_v22 }
 0x550   : > { %4804 = vst.msk [vmem:[%s6364_s18 + $0xd8] sm:$0xff] %vm4776_vm1, %v4575_v12 }
 0x551   : > { %4716 = vadd.xlane.f32.xlu0 %v4490_v11 }
 0x552   : > { %4718 = vadd.xlane.f32.xlu1 %v4491_v3  ;;  %v4577_v44 = vpop.xlane.xlu0 %4576 }
 0x553   : > { %v4579_v59 = vpop.xlane.xlu1 %4578  ;;  %4805 = vst.msk [vmem:[%s6364_s18 + $0xe0] sm:$0xff] %vm4776_vm1, %v4577_v44 }
 0x554   : > { %4806 = vst.msk [vmem:[%s6364_s18 + $0xe8] sm:$0xff] %vm4776_vm1, %v4579_v59 }
 0x555   : > { %4720 = vadd.xlane.f32.xlu0 %v4492_v13 }
 0x556   : > { %4722 = vadd.xlane.f32.xlu1 %v4493_v49  ;;  %v4581_v47 = vpop.xlane.xlu0 %4580 }
 0x557   : > { %v4583_v2 = vpop.xlane.xlu1 %4582  ;;  %4807 = vst.msk [vmem:[%s6364_s18 + $0xf0] sm:$0xff] %vm4776_vm1, %v4581_v47 }
 0x558   : > { %4808 = vst.msk [vmem:[%s6364_s18 + $0xf8] sm:$0xff] %vm4776_vm1, %v4583_v2 }
 0x559   : > { %4724 = vadd.xlane.f32.xlu0 %v4494_v40 }
 0x55a   : > { %4726 = vadd.xlane.f32.xlu1 %v4495_v46  ;;  %v4585_v8 = vpop.xlane.xlu0 %4584 }
 0x55b   : > { %v4587_v4 = vpop.xlane.xlu1 %4586  ;;  %4809 = vst.msk [vmem:[%s6364_s18 + $0x100] sm:$0xff] %vm4776_vm1, %v4585_v8 }
 0x55c   : > { %4810 = vst.msk [vmem:[%s6364_s18 + $0x108] sm:$0xff] %vm4776_vm1, %v4587_v4 }
 0x55d   : > { %4728 = vadd.xlane.f32.xlu0 %v4496_v9 }
 0x55e   : > { %4730 = vadd.xlane.f32.xlu1 %v4497_v34  ;;  %v4589_v56 = vpop.xlane.xlu0 %4588 }
 0x55f   : > { %v4591_v42 = vpop.xlane.xlu1 %4590  ;;  %4811 = vst.msk [vmem:[%s6364_s18 + $0x110] sm:$0xff] %vm4776_vm1, %v4589_v56 }
 0x560   : > { %4812 = vst.msk [vmem:[%s6364_s18 + $0x118] sm:$0xff] %vm4776_vm1, %v4591_v42 }
 0x561   : > { %4732 = vadd.xlane.f32.xlu0 %v4498_v15 }
 0x562   : > { %4734 = vadd.xlane.f32.xlu1 %v4499_v57  ;;  %v4593_v28 = vpop.xlane.xlu0 %4592 }
 0x563   : > { %v4595_v55 = vpop.xlane.xlu1 %4594  ;;  %4813 = vst.msk [vmem:[%s6364_s18 + $0x120] sm:$0xff] %vm4776_vm1, %v4593_v28 }
 0x564   : > { %4814 = vst.msk [vmem:[%s6364_s18 + $0x128] sm:$0xff] %vm4776_vm1, %v4595_v55 }
 0x565   : > { %4736 = vadd.xlane.f32.xlu0 %v4500_v18 }
 0x566   : > { %4738 = vadd.xlane.f32.xlu1 %v4501_v32  ;;  %v4597_v29 = vpop.xlane.xlu0 %4596 }
 0x567   : > { %v4599_v17 = vpop.xlane.xlu1 %4598  ;;  %4815 = vst.msk [vmem:[%s6364_s18 + $0x130] sm:$0xff] %vm4776_vm1, %v4597_v29 }
 0x568   : > { %4816 = vst.msk [vmem:[%s6364_s18 + $0x138] sm:$0xff] %vm4776_vm1, %v4599_v17 }
 0x569   : > { %4740 = vadd.xlane.f32.xlu0 %v4502_v62 }
 0x56a   : > { %4742 = vadd.xlane.f32.xlu1 %v4503_v10  ;;  %v4601_v20 = vpop.xlane.xlu0 %4600 }
 0x56b   : > { %v4603_v38 = vpop.xlane.xlu1 %4602  ;;  %4817 = vst.msk [vmem:[%s6364_s18 + $0x140] sm:$0xff] %vm4776_vm1, %v4601_v20 }
 0x56c   : > { %4818 = vst.msk [vmem:[%s6364_s18 + $0x148] sm:$0xff] %vm4776_vm1, %v4603_v38 }
 0x56d   : > { %4744 = vadd.xlane.f32.xlu0 %v4504_v51 }
 0x56e   : > { %4746 = vadd.xlane.f32.xlu1 %v4505_v25  ;;  %v4605_v31 = vpop.xlane.xlu0 %4604 }
 0x56f   : > { %v4607_v0 = vpop.xlane.xlu1 %4606  ;;  %4819 = vst.msk [vmem:[%s6364_s18 + $0x150] sm:$0xff] %vm4776_vm1, %v4605_v31 }
 0x570   : > { %4820 = vst.msk [vmem:[%s6364_s18 + $0x158] sm:$0xff] %vm4776_vm1, %v4607_v0 }
 0x571   : > { %4748 = vadd.xlane.f32.xlu0 %v4506_v45 }
 0x572   : > { %4750 = vadd.xlane.f32.xlu1 %v4507_v37  ;;  %v4609_v39 = vpop.xlane.xlu0 %4608 }
 0x573   : > { %v4611_v23 = vpop.xlane.xlu1 %4610  ;;  %4821 = vst.msk [vmem:[%s6364_s18 + $0x160] sm:$0xff] %vm4776_vm1, %v4609_v39 }
 0x574   : > { %4822 = vst.msk [vmem:[%s6364_s18 + $0x168] sm:$0xff] %vm4776_vm1, %v4611_v23 }
 0x575   : > { %4752 = vadd.xlane.f32.xlu0 %v4508_v27 }
 0x576   : > { %4754 = vadd.xlane.f32.xlu1 %v4509_v19  ;;  %v4613_v24 = vpop.xlane.xlu0 %4612 }
 0x577   : > { %v4615_v41 = vpop.xlane.xlu1 %4614  ;;  %4823 = vst.msk [vmem:[%s6364_s18 + $0x170] sm:$0xff] %vm4776_vm1, %v4613_v24 }
 0x578   : > { %4824 = vst.msk [vmem:[%s6364_s18 + $0x178] sm:$0xff] %vm4776_vm1, %v4615_v41 }
 0x579   : > { %4756 = vadd.xlane.f32.xlu0 %v4510_v48 }
 0x57a   : > { %4758 = vadd.xlane.f32.xlu1 %v4511_v7  ;;  %v4617_v6 = vpop.xlane.xlu0 %4616 }
 0x57b   : > { %v4619_v60 = vpop.xlane.xlu1 %4618  ;;  %4825 = vst.msk [vmem:[%s6364_s18 + $0x180] sm:$0xff] %vm4776_vm1, %v4617_v6 }
 0x57c   : > { %4826 = vst.msk [vmem:[%s6364_s18 + $0x188] sm:$0xff] %vm4776_vm1, %v4619_v60 }
 0x57d   : > { %4760 = vadd.xlane.f32.xlu0 %v4512_v5 }
 0x57e   : > { %4762 = vadd.xlane.f32.xlu1 %v4513_v63  ;;  %v4621_v14 = vpop.xlane.xlu0 %4620 }
 0x57f   : > { %v4623_v21 = vpop.xlane.xlu1 %4622  ;;  %4827 = vst.msk [vmem:[%s6364_s18 + $0x190] sm:$0xff] %vm4776_vm1, %v4621_v14 }
 0x580   : > { %4828 = vst.msk [vmem:[%s6364_s18 + $0x198] sm:$0xff] %vm4776_vm1, %v4623_v21 }
 0x581   : > { %4764 = vadd.xlane.f32.xlu0 %v4514_v52 }
 0x582   : > { %4766 = vadd.xlane.f32.xlu1 %v4515_v58  ;;  %v4625_v26 = vpop.xlane.xlu0 %4624 }
 0x583   : > { %v4627_v1 = vpop.xlane.xlu1 %4626  ;;  %4829 = vst.msk [vmem:[%s6364_s18 + $0x1a0] sm:$0xff] %vm4776_vm1, %v4625_v26 }
 0x584   : > { %4830 = vst.msk [vmem:[%s6364_s18 + $0x1a8] sm:$0xff] %vm4776_vm1, %v4627_v1 }
 0x585   : > { %4768 = vadd.xlane.f32.xlu0 %v4516_v50 }
 0x586   : > { %4770 = vadd.xlane.f32.xlu1 %v4517_v43  ;;  %v4629_v33 = vpop.xlane.xlu0 %4628 }
 0x587   : > { %v4631_v53 = vpop.xlane.xlu1 %4630  ;;  %4831 = vst.msk [vmem:[%s6364_s18 + $0x1b0] sm:$0xff] %vm4776_vm1, %v4629_v33 }
 0x588   : > { %4832 = vst.msk [vmem:[%s6364_s18 + $0x1b8] sm:$0xff] %vm4776_vm1, %v4631_v53 }
 0x589   : > { %4772 = vadd.xlane.f32.xlu0 %v4518_v35 }
 0x58a   : > { %4774 = vadd.xlane.f32.xlu1 %v4519_v61  ;;  %v4633_v36 = vpop.xlane.xlu0 %4632 }
 0x58b   : > { %v4635_v16 = vpop.xlane.xlu1 %4634  ;;  %4833 = vst.msk [vmem:[%s6364_s18 + $0x1c0] sm:$0xff] %vm4776_vm1, %v4633_v36 }
 0x58c   : > { %4834 = vst.msk [vmem:[%s6364_s18 + $0x1c8] sm:$0xff] %vm4776_vm1, %v4635_v16 }
 0x58e   : > { %v4637_v54 = vpop.xlane.xlu0 %4636 }
 0x58f   : > { %v4639_v30 = vpop.xlane.xlu1 %4638  ;;  %4835 = vst.msk [vmem:[%s6364_s18 + $0x1d0] sm:$0xff] %vm4776_vm1, %v4637_v54 }
 0x590   : > { %4836 = vst.msk [vmem:[%s6364_s18 + $0x1d8] sm:$0xff] %vm4776_vm1, %v4639_v30 }
 0x592   : > { %v4641_v22 = vpop.xlane.xlu0 %4640 }
 0x593   : > { %v4643_v12 = vpop.xlane.xlu1 %4642  ;;  %4837 = vst.msk [vmem:[%s6364_s18 + $0x1e0] sm:$0xff] %vm4776_vm1, %v4641_v22 }
 0x594   : > { %4838 = vst.msk [vmem:[%s6364_s18 + $0x1e8] sm:$0xff] %vm4776_vm1, %v4643_v12 }
 0x596   : > { %v4645_v11 = vpop.xlane.xlu0 %4644 }
 0x597   : > { %v4647_v3 = vpop.xlane.xlu1 %4646  ;;  %4839 = vst.msk [vmem:[%s6364_s18 + $0x1f0] sm:$0xff] %vm4776_vm1, %v4645_v11 }
 0x598   : > { %4840 = vst.msk [vmem:[%s6364_s18 + $0x1f8] sm:$0xff] %vm4776_vm1, %v4647_v3 }
 0x59a   : > { %v4649_v44 = vpop.xlane.xlu0 %4648 }
 0x59b   : > { %v4651_v59 = vpop.xlane.xlu1 %4650  ;;  %4841 = vst.msk [vmem:[%s6364_s18 + $0x200] sm:$0xff] %vm4776_vm1, %v4649_v44 }
 0x59c   : > { %4842 = vst.msk [vmem:[%s6364_s18 + $0x208] sm:$0xff] %vm4776_vm1, %v4651_v59 }
 0x59e   : > { %v4653_v13 = vpop.xlane.xlu0 %4652 }
 0x59f   : > { %v4655_v49 = vpop.xlane.xlu1 %4654  ;;  %4843 = vst.msk [vmem:[%s6364_s18 + $0x210] sm:$0xff] %vm4776_vm1, %v4653_v13 }
 0x5a0   : > { %4844 = vst.msk [vmem:[%s6364_s18 + $0x218] sm:$0xff] %vm4776_vm1, %v4655_v49 }
 0x5a2   : > { %v4657_v47 = vpop.xlane.xlu0 %4656 }
 0x5a3   : > { %v4659_v2 = vpop.xlane.xlu1 %4658  ;;  %4845 = vst.msk [vmem:[%s6364_s18 + $0x220] sm:$0xff] %vm4776_vm1, %v4657_v47 }
 0x5a4   : > { %4846 = vst.msk [vmem:[%s6364_s18 + $0x228] sm:$0xff] %vm4776_vm1, %v4659_v2 }
 0x5a6   : > { %v4661_v40 = vpop.xlane.xlu0 %4660 }
 0x5a7   : > { %v4663_v46 = vpop.xlane.xlu1 %4662  ;;  %4847 = vst.msk [vmem:[%s6364_s18 + $0x230] sm:$0xff] %vm4776_vm1, %v4661_v40 }
 0x5a8   : > { %4848 = vst.msk [vmem:[%s6364_s18 + $0x238] sm:$0xff] %vm4776_vm1, %v4663_v46 }
 0x5aa   : > { %v4665_v8 = vpop.xlane.xlu0 %4664 }
 0x5ab   : > { %v4667_v4 = vpop.xlane.xlu1 %4666  ;;  %4849 = vst.msk [vmem:[%s6364_s18 + $0x240] sm:$0xff] %vm4776_vm1, %v4665_v8 }
 0x5ac   : > { %4850 = vst.msk [vmem:[%s6364_s18 + $0x248] sm:$0xff] %vm4776_vm1, %v4667_v4 }
 0x5ae   : > { %v4669_v9 = vpop.xlane.xlu0 %4668 }
 0x5af   : > { %v4671_v34 = vpop.xlane.xlu1 %4670  ;;  %4851 = vst.msk [vmem:[%s6364_s18 + $0x250] sm:$0xff] %vm4776_vm1, %v4669_v9 }
 0x5b0   : > { %4852 = vst.msk [vmem:[%s6364_s18 + $0x258] sm:$0xff] %vm4776_vm1, %v4671_v34 }
 0x5b2   : > { %v4673_v56 = vpop.xlane.xlu0 %4672 }
 0x5b3   : > { %v4675_v42 = vpop.xlane.xlu1 %4674  ;;  %4853 = vst.msk [vmem:[%s6364_s18 + $0x260] sm:$0xff] %vm4776_vm1, %v4673_v56 }
 0x5b4   : > { %4854 = vst.msk [vmem:[%s6364_s18 + $0x268] sm:$0xff] %vm4776_vm1, %v4675_v42 }
 0x5b6   : > { %v4677_v15 = vpop.xlane.xlu0 %4676 }
 0x5b7   : > { %v4679_v57 = vpop.xlane.xlu1 %4678  ;;  %4855 = vst.msk [vmem:[%s6364_s18 + $0x270] sm:$0xff] %vm4776_vm1, %v4677_v15 }
 0x5b8   : > { %4856 = vst.msk [vmem:[%s6364_s18 + $0x278] sm:$0xff] %vm4776_vm1, %v4679_v57 }
 0x5ba   : > { %v4681_v28 = vpop.xlane.xlu0 %4680 }
 0x5bb   : > { %v4683_v55 = vpop.xlane.xlu1 %4682  ;;  %4857 = vst.msk [vmem:[%s6364_s18 + $0x280] sm:$0xff] %vm4776_vm1, %v4681_v28 }
 0x5bc   : > { %4858 = vst.msk [vmem:[%s6364_s18 + $0x288] sm:$0xff] %vm4776_vm1, %v4683_v55 }
 0x5be   : > { %v4685_v18 = vpop.xlane.xlu0 %4684 }
 0x5bf   : > { %v4687_v32 = vpop.xlane.xlu1 %4686  ;;  %4859 = vst.msk [vmem:[%s6364_s18 + $0x290] sm:$0xff] %vm4776_vm1, %v4685_v18 }
 0x5c0   : > { %4860 = vst.msk [vmem:[%s6364_s18 + $0x298] sm:$0xff] %vm4776_vm1, %v4687_v32 }
 0x5c2   : > { %v4689_v29 = vpop.xlane.xlu0 %4688 }
 0x5c3   : > { %v4691_v17 = vpop.xlane.xlu1 %4690  ;;  %4861 = vst.msk [vmem:[%s6364_s18 + $0x2a0] sm:$0xff] %vm4776_vm1, %v4689_v29 }
 0x5c4   : > { %4862 = vst.msk [vmem:[%s6364_s18 + $0x2a8] sm:$0xff] %vm4776_vm1, %v4691_v17 }
 0x5c6   : > { %v4693_v62 = vpop.xlane.xlu0 %4692 }
 0x5c7   : > { %v4695_v10 = vpop.xlane.xlu1 %4694  ;;  %4863 = vst.msk [vmem:[%s6364_s18 + $0x2b0] sm:$0xff] %vm4776_vm1, %v4693_v62 }
 0x5c8   : > { %4864 = vst.msk [vmem:[%s6364_s18 + $0x2b8] sm:$0xff] %vm4776_vm1, %v4695_v10 }
 0x5ca   : > { %v4697_v20 = vpop.xlane.xlu0 %4696 }
 0x5cb   : > { %v4699_v38 = vpop.xlane.xlu1 %4698  ;;  %4865 = vst.msk [vmem:[%s6364_s18 + $0x2c0] sm:$0xff] %vm4776_vm1, %v4697_v20 }
 0x5cc   : > { %4866 = vst.msk [vmem:[%s6364_s18 + $0x2c8] sm:$0xff] %vm4776_vm1, %v4699_v38 }
 0x5ce   : > { %v4701_v51 = vpop.xlane.xlu0 %4700 }
 0x5cf   : > { %v4703_v25 = vpop.xlane.xlu1 %4702  ;;  %4867 = vst.msk [vmem:[%s6364_s18 + $0x2d0] sm:$0xff] %vm4776_vm1, %v4701_v51 }
 0x5d0   : > { %4868 = vst.msk [vmem:[%s6364_s18 + $0x2d8] sm:$0xff] %vm4776_vm1, %v4703_v25 }
 0x5d2   : > { %v4705_v31 = vpop.xlane.xlu0 %4704 }
 0x5d3   : > { %v4707_v0 = vpop.xlane.xlu1 %4706  ;;  %4869 = vst.msk [vmem:[%s6364_s18 + $0x2e0] sm:$0xff] %vm4776_vm1, %v4705_v31 }
 0x5d4   : > { %4870 = vst.msk [vmem:[%s6364_s18 + $0x2e8] sm:$0xff] %vm4776_vm1, %v4707_v0 }
 0x5d6   : > { %v4709_v45 = vpop.xlane.xlu0 %4708 }
 0x5d7   : > { %v4711_v37 = vpop.xlane.xlu1 %4710  ;;  %4871 = vst.msk [vmem:[%s6364_s18 + $0x2f0] sm:$0xff] %vm4776_vm1, %v4709_v45 }
 0x5d8   : > { %4872 = vst.msk [vmem:[%s6364_s18 + $0x2f8] sm:$0xff] %vm4776_vm1, %v4711_v37 }
 0x5da   : > { %v4713_v39 = vpop.xlane.xlu0 %4712 }
 0x5db   : > { %v4715_v23 = vpop.xlane.xlu1 %4714  ;;  %4873 = vst.msk [vmem:[%s6364_s18 + $0x300] sm:$0xff] %vm4776_vm1, %v4713_v39 }
 0x5dc   : > { %4874 = vst.msk [vmem:[%s6364_s18 + $0x308] sm:$0xff] %vm4776_vm1, %v4715_v23 }
 0x5de   : > { %v4717_v27 = vpop.xlane.xlu0 %4716 }
 0x5df   : > { %v4719_v19 = vpop.xlane.xlu1 %4718  ;;  %4875 = vst.msk [vmem:[%s6364_s18 + $0x310] sm:$0xff] %vm4776_vm1, %v4717_v27 }
 0x5e0   : > { %4876 = vst.msk [vmem:[%s6364_s18 + $0x318] sm:$0xff] %vm4776_vm1, %v4719_v19 }
 0x5e2   : > { %v4721_v24 = vpop.xlane.xlu0 %4720 }
 0x5e3   : > { %v4723_v41 = vpop.xlane.xlu1 %4722  ;;  %4877 = vst.msk [vmem:[%s6364_s18 + $0x320] sm:$0xff] %vm4776_vm1, %v4721_v24 }
 0x5e4   : > { %4878 = vst.msk [vmem:[%s6364_s18 + $0x328] sm:$0xff] %vm4776_vm1, %v4723_v41 }
 0x5e6   : > { %v4725_v48 = vpop.xlane.xlu0 %4724 }
 0x5e7   : > { %v4727_v7 = vpop.xlane.xlu1 %4726  ;;  %4879 = vst.msk [vmem:[%s6364_s18 + $0x330] sm:$0xff] %vm4776_vm1, %v4725_v48 }
 0x5e8   : > { %4880 = vst.msk [vmem:[%s6364_s18 + $0x338] sm:$0xff] %vm4776_vm1, %v4727_v7 }
 0x5ea   : > { %v4729_v6 = vpop.xlane.xlu0 %4728 }
 0x5eb   : > { %v4731_v60 = vpop.xlane.xlu1 %4730  ;;  %4881 = vst.msk [vmem:[%s6364_s18 + $0x340] sm:$0xff] %vm4776_vm1, %v4729_v6 }
 0x5ec   : > { %4882 = vst.msk [vmem:[%s6364_s18 + $0x348] sm:$0xff] %vm4776_vm1, %v4731_v60 }
 0x5ee   : > { %v4733_v5 = vpop.xlane.xlu0 %4732 }
 0x5ef   : > { %v4735_v63 = vpop.xlane.xlu1 %4734  ;;  %4883 = vst.msk [vmem:[%s6364_s18 + $0x350] sm:$0xff] %vm4776_vm1, %v4733_v5 }
 0x5f0   : > { %4884 = vst.msk [vmem:[%s6364_s18 + $0x358] sm:$0xff] %vm4776_vm1, %v4735_v63 }
 0x5f2   : > { %v4737_v14 = vpop.xlane.xlu0 %4736 }
 0x5f3   : > { %v4739_v21 = vpop.xlane.xlu1 %4738  ;;  %4885 = vst.msk [vmem:[%s6364_s18 + $0x360] sm:$0xff] %vm4776_vm1, %v4737_v14 }
 0x5f4   : > { %4886 = vst.msk [vmem:[%s6364_s18 + $0x368] sm:$0xff] %vm4776_vm1, %v4739_v21 }
 0x5f6   : > { %v4741_v52 = vpop.xlane.xlu0 %4740 }
 0x5f7   : > { %v4743_v58 = vpop.xlane.xlu1 %4742  ;;  %4887 = vst.msk [vmem:[%s6364_s18 + $0x370] sm:$0xff] %vm4776_vm1, %v4741_v52 }
 0x5f8   : > { %4888 = vst.msk [vmem:[%s6364_s18 + $0x378] sm:$0xff] %vm4776_vm1, %v4743_v58 }
 0x5fa   : > { %v4745_v26 = vpop.xlane.xlu0 %4744 }
 0x5fb   : > { %v4747_v1 = vpop.xlane.xlu1 %4746  ;;  %4889 = vst.msk [vmem:[%s6364_s18 + $0x380] sm:$0xff] %vm4776_vm1, %v4745_v26 }
 0x5fc   : > { %4890 = vst.msk [vmem:[%s6364_s18 + $0x388] sm:$0xff] %vm4776_vm1, %v4747_v1 }
 0x5fe   : > { %v4749_v50 = vpop.xlane.xlu0 %4748 }
 0x5ff   : > { %v4751_v43 = vpop.xlane.xlu1 %4750  ;;  %4891 = vst.msk [vmem:[%s6364_s18 + $0x390] sm:$0xff] %vm4776_vm1, %v4749_v50 }
 0x600   : > { %4892 = vst.msk [vmem:[%s6364_s18 + $0x398] sm:$0xff] %vm4776_vm1, %v4751_v43 }
 0x602   : > { %v4753_v33 = vpop.xlane.xlu0 %4752 }
 0x603   : > { %v4755_v53 = vpop.xlane.xlu1 %4754  ;;  %4893 = vst.msk [vmem:[%s6364_s18 + $0x3a0] sm:$0xff] %vm4776_vm1, %v4753_v33 }
 0x604   : > { %4894 = vst.msk [vmem:[%s6364_s18 + $0x3a8] sm:$0xff] %vm4776_vm1, %v4755_v53 }
 0x606   : > { %v4757_v35 = vpop.xlane.xlu0 %4756 }
 0x607   : > { %v4759_v61 = vpop.xlane.xlu1 %4758  ;;  %4895 = vst.msk [vmem:[%s6364_s18 + $0x3b0] sm:$0xff] %vm4776_vm1, %v4757_v35 }
 0x608   : > { %4896 = vst.msk [vmem:[%s6364_s18 + $0x3b8] sm:$0xff] %vm4776_vm1, %v4759_v61 }
 0x60a   : > { %v4761_v36 = vpop.xlane.xlu0 %4760 }
 0x60b   : > { %v4763_v16 = vpop.xlane.xlu1 %4762  ;;  %4897 = vst.msk [vmem:[%s6364_s18 + $0x3c0] sm:$0xff] %vm4776_vm1, %v4761_v36 }
 0x60c   : > { %4898 = vst.msk [vmem:[%s6364_s18 + $0x3c8] sm:$0xff] %vm4776_vm1, %v4763_v16 }
 0x60e   : > { %v4765_v54 = vpop.xlane.xlu0 %4764 }
 0x60f   : > { %v4767_v30 = vpop.xlane.xlu1 %4766  ;;  %4899 = vst.msk [vmem:[%s6364_s18 + $0x3d0] sm:$0xff] %vm4776_vm1, %v4765_v54 }
 0x610   : > { %4900 = vst.msk [vmem:[%s6364_s18 + $0x3d8] sm:$0xff] %vm4776_vm1, %v4767_v30 }
 0x612   : > { %v4769_v22 = vpop.xlane.xlu0 %4768 }
 0x613   : > { %v4771_v12 = vpop.xlane.xlu1 %4770  ;;  %4901 = vst.msk [vmem:[%s6364_s18 + $0x3e0] sm:$0xff] %vm4776_vm1, %v4769_v22 }
 0x614   : > { %4902 = vst.msk [vmem:[%s6364_s18 + $0x3e8] sm:$0xff] %vm4776_vm1, %v4771_v12 }
 0x616   : > { %v4773_v11 = vpop.xlane.xlu0 %4772 }
 0x617   : > { %v4775_v3 = vpop.xlane.xlu1 %4774  ;;  %4903 = vst.msk [vmem:[%s6364_s18 + $0x3f0] sm:$0xff] %vm4776_vm1, %v4773_v11 }
 0x618   : > { %4904 = vst.msk [vmem:[%s6364_s18 + $0x3f8] sm:$0xff] %vm4776_vm1, %v4775_v3 }
 0x619 PF: > { %s5059_s30 = sshll.u32 %s6116_s27, 1  ;;  %s4925_s16 = sshll.u32 %s302_s17, 4  ;;  %s8427_s16 = int_to_ptr.vmem [resolvable:$true] %s4925_s16 }
 0x61a   : > { %s4921_s1 = sadd.s32 %s6112_s26, %s5059_s30  ;;  %s4906_s11 = scalar_lea.sflag [#allocation6], %s6343_s8 }
 0x61b   : > { %s5060_s19 = sshll.u32 %s4921_s1, 4  ;;  %s6026_s9 = scalar_lea.vmem %s8427_s16, 16 }
 0x61c   : > { %s4923_s18 = scalar_lea.hbm %s8482_s5, %s5060_s19  ;;  %p6027_p0 = scmp.ne.s32.totalorder %s8427_s16, %s6026_s9 }
 0x61d   : > { %p8719_p3 = scmp.ne.s32.totalorder %s8500_s12, 0  ;;  %s6140_s27 = smov [#allocation9]  }
 0x61e   : > { %s6030_s26 = sshll.u32 %s6140_s27, 4  ;;  %s6031_s26 = int_to_ptr.vmem [resolvable:$false] %s6030_s26 }
 0x61f   : > { %p6028_p7 = pnand %p6027_p0, %p8719_p3  ;;  %s6032_s14 = scalar_lea.vmem %s6031_s26, 32 }
 0x620   : > { %p6033_p9 = scmp.lt.s32.totalorder %s8427_s16, %s6031_s26  ;;  %p6034_p2 = scmp.lt.s32.totalorder %s6032_s14, %s6026_s9 }
 0x621   : > { %p6029_p8 = pneg %p6028_p7 }
 0x622   : > { %p6035_p6 = por %p6034_p2, %p6033_p9 }
 0x624   : > { %p6036_p10 = pnand %p6035_p6, %p6029_p8 }
 0x626   : > { %6039 = shalt.err (!%p6036_p10)
}
 0x627   : > { %s6040_s20 = scalar_lea.hbm %s4923_s18, 16  ;;  %s6044_s15 = scalar_lea.hbm %s8482_s5, 64 }
 0x628   : > { %p6041_p1 = scmp.ne.s32.totalorder %s4923_s18, %s6040_s20  ;;  %p6045_p11 = scmp.lt.u32.totalorder %s4923_s18, %s8482_s5 }
 0x629   : > { %p6046_p13 = scmp.lt.u32.totalorder %s6044_s15, %s6040_s20  ;;  %p6048_p0 = scmp.lt.u32.totalorder %s6040_s20, %s4923_s18 }
 0x62a   : > { %p6042_p4 = pnand %p6041_p1, %p8719_p3 }
 0x62b   : > { %p6047_p5 = por %p6046_p13, %p6045_p11 }
 0x62c   : > { %p6043_p12 = pneg %p6042_p4 }
 0x62d   : > { %p6049_p7 = por %p6048_p0, %p6047_p5 }
 0x62f   : > { %p6050_p8 = pnand %p6049_p7, %p6043_p12 }
 0x631   : > { %6053 = shalt.err (!%p6050_p8)
}
 0x632   : > { %5646 = dma.vmem_to_hbm [thread:$0]  (%p8719_p3), %s8427_s16, 16, %s4923_s18, %s4906_s11  }
 0x633 PF: > { %s8720_s17 = sld [smem:[#allocation13_spill]]  ;;  %s8721_s30 = sld [smem:[#allocation15_spill]] }
 0x634   : > { %p5663_p9 = scmp.ge.s32.totalorder %s6128_s4, 2 }
 0x639   : > { %s4940_s1 = sand.u32 1, %s8720_s17   ;;  %p8722_p2 = scmp.ne.s32.totalorder %s8721_s30, 0 }
 0x63a   : > { %s4941_s19 = scalar_lea.sflag [#allocation6], %s4940_s1 }
 0x63b   : > { %p5657_p6 = pnand %p5663_p9, %p8722_p2 }
 0x63d   : > { %6095 = dma.done.wait (!%p5657_p6), %s4941_s19, 16  }
 0x63e   : > { %6097 = vsyncadd (!%p5657_p6), %s4941_s19, 4294967280  ;;  %s25_s4 = sadd.s32 1, %s6128_s4   ;;  %s8723_s26 = sld [smem:[#allocation14_spill]] }
 0x63f   : > { %p22_p10 = scmp.ge.s32.totalorder %s25_s4, 6   ;;  %s8724_s12 = sld [smem:[#allocation16_spill]] }
 0x640   : > { %s8725_s23 = smov %s6104_s24  ;;  %s8726_s24 = smov %s6108_s25 }
 0x641   : > { %s8727_s25 = smov %s6310_s28  ;;  %s8728_s27 = smov %s6124_s29 }
 0x642   : > { %s8730_s29 = smov %s8736_s7  ;;  %24 = sbr.rel (!%p22_p10) target bundleno = 11 (0xb), region = 109 }
 0x645   : > { %s8729_s28 = smov %s8724_s12 }
 0x649   :  { %4953 = vsyncpa [#allocation5], 1 }
 0x64a   :  { %4955 = vsyncpa [#allocation5 + $0x1], 1 }
 0x64b   :  { %4956 = vsyncpa [#allocation8], 1 }
 0x64c   :  { %4957 = vsyncpa [#allocation6], 1 }
 0x64d   :  { %4959 = vsyncpa [#allocation6 + $0x1], 1 }

</bundles_post_ra>
